<compile_context>
chip_gen: v7x
topology: tpu7x:2x2x1
jax: 0.10.0
libtpu: 0.0.40
codegen_flags: <defaults>
</compile_context>

<pallas_src>
import functools

import jax
import jax.numpy as jnp
import numpy as np
from jax import lax
from jax.experimental import pallas as pl
from jax.experimental.pallas import tpu as pltpu

EPS = 1e-5


def _round_up(x, m):
    return (x + m - 1) // m * m


def _vmem_limit_bytes():
    cap = 64 * 1024 * 1024
    try:
        info = pltpu.get_tpu_info()
        cap = int(getattr(info, "vmem_capacity_bytes", cap)) or cap
    except Exception:
        pass
    # ~5/8 of physical VMEM (40 MiB on v7x's 64 MiB, 80 MiB on v5e/v6e's 128 MiB).
    return int(min(cap * 5 // 8, 100 * 1024 * 1024))


# ---------------------------------------------------------------------------
# Conv3x3 (single-matmul im2col) + per-tile BN partial statistics.
# ---------------------------------------------------------------------------
def _conv_core(src_ref, w_ref, vm, y_ref, st_ref, patch_ref, *,
               W, Ltap_pad, Cp, inv_cnt, padded_out):
    Wp = W + 2
    # Build the (Ltap_pad, 9*Cp) im2col patch: each tap is a contiguous row
    # slice of the flattened padded image, stored to a 128-lane-aligned column
    # block of the scratch (no relayout-inducing (W+2)->W reshape).
    for dh in range(3):
        for dw in range(3):
            k = dh * 3 + dw
            off = dh * Wp + dw
            patch_ref[:, k * Cp:(k + 1) * Cp] = src_ref[off:off + Ltap_pad, :]

    # One MXU matmul, K = 9*Cp, accumulation inside the MXU, f32 result.
    acc = jnp.dot(patch_ref[...], w_ref[...], preferred_element_type=jnp.float32)

    # Rows use the "extended" geometry r = h*(W+2) + w; columns w in {W, W+1}
    # (wrap garbage) and padded tail rows are zeroed by the validity mask.
    accm = acc * vm

    # Per-tile centered BN partials in f32 (combined across tiles with Chan's
    # formula in JAX -> no catastrophic cancellation).
    s1 = jnp.sum(accm, axis=0, keepdims=True)                 # (1, Cp)
    mu = s1 * inv_cnt
    ssd = jnp.sum(((acc - mu) * vm) ** 2, axis=0, keepdims=True)
    st_ref[...] = jnp.concatenate([s1, ssd], axis=0)

    yb = accm.astype(y_ref.dtype)
    if padded_out:
        # Emit the conv output directly in the zero-padded flat layout used as
        # the next conv's input (extended row r maps to flat row r + W + 3).
        y_ref[...] = jnp.zeros(y_ref.shape, y_ref.dtype)
        y_ref[W + 3:W + 3 + Ltap_pad, :] = yb
    else:
        y_ref[...] = yb


def _conv_kernel(x_ref, w_ref, vm_ref, y_ref, st_ref, patch_ref, *,
                 W, Ltap_pad, Cp, inv_cnt, padded_out):
    _conv_core(x_ref, w_ref, vm_ref[...], y_ref, st_ref, patch_ref,
               W=W, Ltap_pad=Ltap_pad, Cp=Cp, inv_cnt=inv_cnt,
               padded_out=padded_out)


def _conv_bn_relu_kernel(x_ref, w_ref, sc_ref, sh_ref, vm_ref, im_ref,
                         y_ref, st_ref, patch_ref, zbuf_ref, *,
                         W, Ltap_pad, Cp, inv_cnt, padded_out):
    # Fused bn1-apply + ReLU on the incoming raw conv1 output.  The zero
    # padding ring must stay zero afterwards (relu(shift) != 0), so multiply
    # by the precomputed interior mask.
    z = jnp.maximum(x_ref[...].astype(jnp.float32) * sc_ref[...] + sh_ref[...],
                    0.0)
    zbuf_ref[...] = (z * im_ref[...]).astype(zbuf_ref.dtype)
    _conv_core(zbuf_ref, w_ref, vm_ref[...], y_ref, st_ref, patch_ref,
               W=W, Ltap_pad=Ltap_pad, Cp=Cp, inv_cnt=inv_cnt,
               padded_out=padded_out)


def _conv_call(x_flat, w_mat, vmask, sc=None, sh=None, imask=None, *,
               N, H, W, Cp, Ltap_pad, Lflat, padded_out, vmem_limit):
    y_rows = Lflat if padded_out else Ltap_pad
    kw = dict(W=W, Ltap_pad=Ltap_pad, Cp=Cp, inv_cnt=1.0 / float(H * W),
              padded_out=padded_out)
    flops = 2 * N * Ltap_pad * 9 * Cp * Cp
    bytes_acc = (N * Lflat * Cp * 2 + 9 * Cp * Cp * 2
                 + N * y_rows * Cp * 2 + N * 2 * Cp * 4)

    x_spec = pl.BlockSpec((None, Lflat, Cp), lambda n: (n, 0, 0))
    w_spec = pl.BlockSpec((9 * Cp, Cp), lambda n: (0, 0))       # resident
    vm_spec = pl.BlockSpec((Ltap_pad, 1), lambda n: (0, 0))
    vec_spec = pl.BlockSpec((1, Cp), lambda n: (0, 0))
    out_specs = [pl.BlockSpec((None, y_rows, Cp), lambda n: (n, 0, 0)),
                 pl.BlockSpec((None, 2, Cp), lambda n: (n, 0, 0))]
    out_shape = (jax.ShapeDtypeStruct((N, y_rows, Cp), jnp.bfloat16),
                 jax.ShapeDtypeStruct((N, 2, Cp), jnp.float32))
    scratch = [pltpu.VMEM((Ltap_pad, 9 * Cp), jnp.bfloat16)]

    if sc is None:
        kernel = functools.partial(_conv_kernel, **kw)
        in_specs = [x_spec, w_spec, vm_spec]
        operands = (x_flat, w_mat, vmask)
    else:
        kernel = functools.partial(_conv_bn_relu_kernel, **kw)
        im_spec = pl.BlockSpec((Lflat, 1), lambda n: (0, 0))
        in_specs = [x_spec, w_spec, vec_spec, vec_spec, vm_spec, im_spec]
        operands = (x_flat, w_mat, sc, sh, vmask, imask)
        scratch = scratch + [pltpu.VMEM((Lflat, Cp), jnp.bfloat16)]

    return pl.pallas_call(
        kernel,
        out_shape=out_shape,
        grid=(N,),
        in_specs=in_specs,
        out_specs=out_specs,
        scratch_shapes=scratch,
        compiler_params=pltpu.CompilerParams(
            dimension_semantics=("parallel",), vmem_limit_bytes=vmem_limit),
        cost_estimate=pl.CostEstimate(flops=flops, transcendentals=0,
                                      bytes_accessed=bytes_acc),
    )(*operands)


# ---------------------------------------------------------------------------
# bn2-apply + residual + ReLU (needs global stats, so a separate tiled pass).
# ---------------------------------------------------------------------------
def _bn_add_relu_kernel(y_ref, sc_ref, sh_ref, res_ref, o_ref):
    o_ref[...] = jnp.maximum(
        y_ref[...].astype(jnp.float32) * sc_ref[...] + sh_ref[...]
        + res_ref[...], 0.0)


def _bn_apply(y, sc, sh, res, *, Cp, vmem_limit):
    R = y.shape[0]
    # Pure HBM-bandwidth bound: largest divisor tile (multiple of 8) that keeps
    # the double-buffered (y bf16, res f32, out f32) streams within ~8 MiB.
    bytes_per_row = Cp * (2 + 4 + 4) * 2
    cap = max(8, (8 * 1024 * 1024) // bytes_per_row)
    tmb, d = 8, 8
    while d <= min(R, cap):
        if R % d == 0:
            tmb = d
        d += 8
    tile = pl.BlockSpec((tmb, Cp), lambda i: (i, 0))
    vec = pl.BlockSpec((1, Cp), lambda i: (0, 0))
    return pl.pallas_call(
        _bn_add_relu_kernel,
        out_shape=jax.ShapeDtypeStruct((R, Cp), jnp.float32),
        grid=(R // tmb,),
        in_specs=[tile, vec, vec, pl.BlockSpec((tmb, Cp), lambda i: (i, 0))],
        out_specs=pl.BlockSpec((tmb, Cp), lambda i: (i, 0)),
        compiler_params=pltpu.CompilerParams(
            dimension_semantics=("parallel",), vmem_limit_bytes=vmem_limit),
    )(y, sc, sh, res)


# ---------------------------------------------------------------------------
# Host-side helpers.
# ---------------------------------------------------------------------------
def _prep_w(w_oihw, Cp):
    """(O, I, 3, 3) -> (9*Cp, Cp) bf16; row block k = dh*3+dw holds W[:,:,dh,dw]^T."""
    O, I, _, _ = w_oihw.shape
    w = jnp.transpose(w_oihw, (2, 3, 1, 0))                    # (3, 3, I, O)
    w = jnp.pad(w, ((0, 0), (0, 0), (0, Cp - I), (0, Cp - O)))
    return w.reshape(9 * Cp, Cp).astype(jnp.bfloat16)


def _pad_vec(v, Cp):
    return jnp.pad(v.astype(jnp.float32), (0, Cp - v.shape[0]))


def _bn_scale_shift(stats, cnt_tile, gamma_p, beta_p):
    """stats: (T, 2, Cp) per-tile [sum, centered SSD]; Chan's parallel combine."""
    s1 = stats[:, 0, :]
    ssd = stats[:, 1, :]
    total = cnt_tile * stats.shape[0]
    mean = jnp.sum(s1, axis=0) / total
    tmean = s1 / cnt_tile
    var = (jnp.sum(ssd, axis=0)
           + cnt_tile * jnp.sum((tmean - mean) ** 2, axis=0)) / total
    scale = gamma_p * lax.rsqrt(jnp.maximum(var, 0.0) + EPS)
    shift = beta_p - mean * scale
    return scale.reshape(1, -1), shift.reshape(1, -1)


def basic_block_forward(x_nchw, params):
    """x_nchw: (N, C, H, W) float32; returns (N, C, H, W) float32."""
    N, C, H, W = x_nchw.shape
    Cp = _round_up(C, 128)
    Wp = W + 2
    Ltap = H * Wp                                   # extended-geometry rows / image
    Ltap_pad = _round_up(Ltap, 8)
    Lflat = _round_up(max((H + 2) * Wp, 2 * Wp + 2 + Ltap_pad), 8)
    vmem_limit = _vmem_limit_bytes()

    # Whole padded image per grid step: check it fits (generation-aware).
    est = (2 * Lflat * Cp * 2 + 2 * 9 * Cp * Cp * 2 + 2 * Lflat * Cp * 2
           + Ltap_pad * 9 * Cp * 2 + Lflat * Cp * 2 + 2 * Ltap_pad * Cp * 4)
    assert est <= vmem_limit, (est, vmem_limit)

    # Prep (one fused XLA pass over x): NHWC, lane-padded channels, bf16,
    # zero spatial pad, flattened padded layout; f32 identity in the same
    # "extended" (stride W+2) row layout the conv kernels emit.
    x_nhwc = jnp.transpose(x_nchw, (0, 2, 3, 1))
    x_cp = jnp.pad(x_nhwc, ((0, 0), (0, 0), (0, 0), (0, Cp - C)))
    xb = x_cp.astype(jnp.bfloat16)
    xflat = jnp.pad(xb, ((0, 0), (1, 1), (1, 1), (0, 0))).reshape(
        N, (H + 2) * Wp, Cp)
    xflat = jnp.pad(xflat, ((0, 0), (0, Lflat - (H + 2) * Wp), (0, 0)))
    ident = jnp.pad(x_cp, ((0, 0), (0, 0), (0, 2), (0, 0))).reshape(N, Ltap, Cp)
    ident = jnp.pad(ident, ((0, 0), (0, Ltap_pad - Ltap), (0, 0))).reshape(
        N * Ltap_pad, Cp)

    # Precomputed masks (avoid in-kernel integer div/mod): validity of extended
    # rows, and interior (non-padding) positions of the padded flat layout.
    r = np.arange(Ltap_pad)
    vmask = jnp.asarray(((r % Wp) < W) & (r < Ltap),
                        jnp.float32).reshape(Ltap_pad, 1)
    f = np.arange(Lflat)
    imask = jnp.asarray((f // Wp >= 1) & (f // Wp <= H)
                        & (f % Wp >= 1) & (f % Wp <= W)
                        & (f < (H + 2) * Wp), jnp.float32).reshape(Lflat, 1)

    w1 = _prep_w(params["w1"], Cp)
    w2 = _prep_w(params["w2"], Cp)
    g1, be1 = _pad_vec(params["g1"], Cp), _pad_vec(params["beta1"], Cp)
    g2, be2 = _pad_vec(params["g2"], Cp), _pad_vec(params["beta2"], Cp)
    # Conv biases (params["b1"], params["b2"]) are dropped: batch-statistics
    # BatchNorm subtracts the per-channel mean, cancelling them exactly.

    cnt_tile = float(H * W)
    kw = dict(N=N, H=H, W=W, Cp=Cp, Ltap_pad=Ltap_pad, Lflat=Lflat,
              vmem_limit=vmem_limit)

    # conv1 -> raw conv output written directly in the zero-padded flat layout
    # (ready to be conv2's input) + per-image BN partial stats.
    y1, st1 = _conv_call(xflat, w1, vmask, padded_out=True, **kw)
    sc1, sh1 = _bn_scale_shift(st1, cnt_tile, g1, be1)

    # conv2 with bn1-apply + ReLU fused on its input side.
    y2, st2 = _conv_call(y1, w2, vmask, sc1, sh1, imask, padded_out=False, **kw)
    sc2, sh2 = _bn_scale_shift(st2, cnt_tile, g2, be2)

    # bn2-apply + residual + ReLU.
    out = _bn_apply(y2.reshape(N * Ltap_pad, Cp), sc2, sh2, ident,
                    Cp=Cp, vmem_limit=vmem_limit)

    out = out.reshape(N, Ltap_pad, Cp)[:, :Ltap, :].reshape(N, H, Wp, Cp)
    out = out[:, :, :W, :C]
    return jnp.transpose(out, (0, 3, 1, 2))


# ---------------------------------------------------------------------------
# Pure-JAX reference (matches the PyTorch module: conv bias included, BN with
# biased batch statistics, eps=1e-5, training mode).
# ---------------------------------------------------------------------------
def _reference_forward(x_nchw, params):
    def conv(x, w, b):
        y = lax.conv_general_dilated(x, w, (1, 1), ((1, 1), (1, 1)),
                                     dimension_numbers=("NCHW", "OIHW", "NCHW"))
        return y + b.reshape(1, -1, 1, 1)

    def bn(y, g, beta):
        mean = jnp.mean(y, axis=(0, 2, 3), keepdims=True)
        var = jnp.mean((y - mean) ** 2, axis=(0, 2, 3), keepdims=True)
        return ((y - mean) * lax.rsqrt(var + EPS) * g.reshape(1, -1, 1, 1)
                + beta.reshape(1, -1, 1, 1))

    out = jnp.maximum(bn(conv(x_nchw, params["w1"], params["b1"]),
                         params["g1"], params["beta1"]), 0.0)
    out = bn(conv(out, params["w2"], params["b2"]), params["g2"], params["beta2"])
    return jnp.maximum(out + x_nchw, 0.0)


if __name__ == "__main__":
    # Small shapes: batch=2, in_planes=planes=8, spatial=16x16 (stride=1).
    N, C, H, W = 2, 8, 16, 16
    key = jax.random.PRNGKey(0)
    ks = jax.random.split(key, 9)

    x = jax.random.normal(ks[0], (N, C, H, W), jnp.float32)
    params = {
        "w1": jax.random.normal(ks[1], (C, C, 3, 3), jnp.float32) * 0.1,
        "b1": jax.random.normal(ks[2], (C,), jnp.float32) * 0.1,
        "g1": 1.0 + 0.1 * jax.random.normal(ks[3], (C,), jnp.float32),
        "beta1": 0.1 * jax.random.normal(ks[4], (C,), jnp.float32),
        "w2": jax.random.normal(ks[5], (C, C, 3, 3), jnp.float32) * 0.1,
        "b2": jax.random.normal(ks[6], (C,), jnp.float32) * 0.1,
        "g2": 1.0 + 0.1 * jax.random.normal(ks[7], (C,), jnp.float32),
        "beta2": 0.1 * jax.random.normal(ks[8], (C,), jnp.float32),
    }

    out = jax.block_until_ready(jax.jit(basic_block_forward)(x, params))
    ref = jax.block_until_ready(_reference_forward(x, params))

    assert out.shape == (N, C, H, W)
    err = float(jnp.max(jnp.abs(out - ref)))
    # bf16 activations/weights on the MXU/HBM path => relaxed tolerance vs the
    # f32 reference; BN statistics / scale-shift math stays f32.
    assert jnp.allclose(out, ref, atol=4e-2, rtol=4e-2), err
    print("KERNEL_OK")
</pallas_src>

<mosaic_0001>
module attributes {stable_mosaic.version = 11 : i64} {
  func.func @_conv_bn_relu_kernel(%arg0: i32, %arg1: memref<1x328x128xbf16, #tpu.memory_space<vmem>>, %arg2: memref<1152x128xbf16, #tpu.memory_space<vmem>>, %arg3: memref<1x128xf32, #tpu.memory_space<vmem>>, %arg4: memref<1x128xf32, #tpu.memory_space<vmem>>, %arg5: memref<288x1xf32, #tpu.memory_space<vmem>>, %arg6: memref<328x1xf32, #tpu.memory_space<vmem>>, %arg7: memref<1x288x128xbf16, #tpu.memory_space<vmem>>, %arg8: memref<1x2x128xf32, #tpu.memory_space<vmem>>, %arg9: memref<288x1152xbf16, #tpu.memory_space<vmem>>, %arg10: memref<328x128xbf16, #tpu.memory_space<vmem>>) attributes {dimension_semantics = [#tpu.dimension_semantics<parallel>], iteration_bounds = array<i64: 2>, scalar_prefetch = 0 : i64, scratch_operands = 2 : i64, tpu.core_type = #tpu.core_type<tc>, window_params = [{transform_indices = @transform_0, window_bounds = array<i64: 1, 328, 128>}, {pipeline_mode = #tpu.pipeline_mode<synchronous>, transform_indices = @transform_1, window_bounds = array<i64: 1152, 128>}, {pipeline_mode = #tpu.pipeline_mode<synchronous>, transform_indices = @transform_2, window_bounds = array<i64: 1, 128>}, {pipeline_mode = #tpu.pipeline_mode<synchronous>, transform_indices = @transform_3, window_bounds = array<i64: 1, 128>}, {pipeline_mode = #tpu.pipeline_mode<synchronous>, transform_indices = @transform_4, window_bounds = array<i64: 288, 1>}, {pipeline_mode = #tpu.pipeline_mode<synchronous>, transform_indices = @transform_5, window_bounds = array<i64: 328, 1>}, {transform_indices = @transform_6, window_bounds = array<i64: 1, 288, 128>}, {transform_indices = @transform_7, window_bounds = array<i64: 1, 2, 128>}]} {
    %c0 = arith.constant 0 : index
    %c0_0 = arith.constant 0 : index
    %c0_1 = arith.constant 0 : index
    %0 = vector.load %arg1[%c0, %c0_0, %c0_1] : memref<1x328x128xbf16, #tpu.memory_space<vmem>>, vector<1x328x128xbf16>
    %1 = vector.shape_cast %0 : vector<1x328x128xbf16> to vector<328x128xbf16>
    %2 = arith.extf %1 : vector<328x128xbf16> to vector<328x128xf32>
    %c0_2 = arith.constant 0 : index
    %c0_3 = arith.constant 0 : index
    %3 = vector.load %arg3[%c0_2, %c0_3] : memref<1x128xf32, #tpu.memory_space<vmem>>, vector<1x128xf32>
    %4 = vector.broadcast %3 : vector<1x128xf32> to vector<328x128xf32>
    %5 = arith.mulf %2, %4 : vector<328x128xf32>
    %c0_4 = arith.constant 0 : index
    %c0_5 = arith.constant 0 : index
    %6 = vector.load %arg4[%c0_4, %c0_5] : memref<1x128xf32, #tpu.memory_space<vmem>>, vector<1x128xf32>
    %7 = vector.broadcast %6 : vector<1x128xf32> to vector<328x128xf32>
    %8 = arith.addf %5, %7 : vector<328x128xf32>
    %cst = arith.constant 0.000000e+00 : f32
    %9 = vector.broadcast %cst : f32 to vector<328x128xf32>
    %10 = arith.maximumf %8, %9 : vector<328x128xf32>
    %c0_6 = arith.constant 0 : index
    %c0_7 = arith.constant 0 : index
    %11 = vector.load %arg6[%c0_6, %c0_7] : memref<328x1xf32, #tpu.memory_space<vmem>>, vector<328x1xf32>
    %12 = vector.broadcast %11 : vector<328x1xf32> to vector<328x128xf32>
    %13 = arith.mulf %10, %12 : vector<328x128xf32>
    %14 = arith.truncf %13 : vector<328x128xf32> to vector<328x128xbf16>
    %c0_8 = arith.constant 0 : index
    %c0_9 = arith.constant 0 : index
    %15 = vector.load %arg10[%c0_8, %c0_9] : memref<328x128xbf16, #tpu.memory_space<vmem>>, vector<328x128xbf16>
    tpu.vector_store %arg10[%c0_8, %c0_9], %14 {strides = array<i32>} : memref<328x128xbf16, #tpu.memory_space<vmem>>, vector<328x128xbf16>,
    %c0_10 = arith.constant 0 : index
    %c0_11 = arith.constant 0 : index
    %16 = vector.load %arg5[%c0_10, %c0_11] : memref<288x1xf32, #tpu.memory_space<vmem>>, vector<288x1xf32>
    %c0_12 = arith.constant 0 : index
    %c0_13 = arith.constant 0 : index
    %17 = vector.load %arg10[%c0_12, %c0_13] : memref<328x128xbf16, #tpu.memory_space<vmem>>, vector<288x128xbf16>
    %c0_14 = arith.constant 0 : index
    %c0_15 = arith.constant 0 : index
    %18 = vector.load %arg9[%c0_14, %c0_15] : memref<288x1152xbf16, #tpu.memory_space<vmem>>, vector<288x128xbf16>
    tpu.vector_store %arg9[%c0_14, %c0_15], %17 {strides = array<i32>} : memref<288x1152xbf16, #tpu.memory_space<vmem>>, vector<288x128xbf16>,
    %c1 = arith.constant 1 : index
    %c0_16 = arith.constant 0 : index
    %19 = vector.load %arg10[%c1, %c0_16] : memref<328x128xbf16, #tpu.memory_space<vmem>>, vector<288x128xbf16>
    %c0_17 = arith.constant 0 : index
    %c128 = arith.constant 128 : index
    %20 = vector.load %arg9[%c0_17, %c128] : memref<288x1152xbf16, #tpu.memory_space<vmem>>, vector<288x128xbf16>
    tpu.vector_store %arg9[%c0_17, %c128], %19 {strides = array<i32>} : memref<288x1152xbf16, #tpu.memory_space<vmem>>, vector<288x128xbf16>,
    %c2 = arith.constant 2 : index
    %c0_18 = arith.constant 0 : index
    %21 = vector.load %arg10[%c2, %c0_18] : memref<328x128xbf16, #tpu.memory_space<vmem>>, vector<288x128xbf16>
    %c0_19 = arith.constant 0 : index
    %c256 = arith.constant 256 : index
    %22 = vector.load %arg9[%c0_19, %c256] : memref<288x1152xbf16, #tpu.memory_space<vmem>>, vector<288x128xbf16>
    tpu.vector_store %arg9[%c0_19, %c256], %21 {strides = array<i32>} : memref<288x1152xbf16, #tpu.memory_space<vmem>>, vector<288x128xbf16>,
    %c18 = arith.constant 18 : index
    %c0_20 = arith.constant 0 : index
    %23 = vector.load %arg10[%c18, %c0_20] : memref<328x128xbf16, #tpu.memory_space<vmem>>, vector<288x128xbf16>
    %c0_21 = arith.constant 0 : index
    %c384 = arith.constant 384 : index
    %24 = vector.load %arg9[%c0_21, %c384] : memref<288x1152xbf16, #tpu.memory_space<vmem>>, vector<288x128xbf16>
    tpu.vector_store %arg9[%c0_21, %c384], %23 {strides = array<i32>} : memref<288x1152xbf16, #tpu.memory_space<vmem>>, vector<288x128xbf16>,
    %c19 = arith.constant 19 : index
    %c0_22 = arith.constant 0 : index
    %25 = vector.load %arg10[%c19, %c0_22] : memref<328x128xbf16, #tpu.memory_space<vmem>>, vector<288x128xbf16>
    %c0_23 = arith.constant 0 : index
    %c512 = arith.constant 512 : index
    %26 = vector.load %arg9[%c0_23, %c512] : memref<288x1152xbf16, #tpu.memory_space<vmem>>, vector<288x128xbf16>
    tpu.vector_store %arg9[%c0_23, %c512], %25 {strides = array<i32>} : memref<288x1152xbf16, #tpu.memory_space<vmem>>, vector<288x128xbf16>,
    %c20 = arith.constant 20 : index
    %c0_24 = arith.constant 0 : index
    %27 = vector.load %arg10[%c20, %c0_24] : memref<328x128xbf16, #tpu.memory_space<vmem>>, vector<288x128xbf16>
    %c0_25 = arith.constant 0 : index
    %c640 = arith.constant 640 : index
    %28 = vector.load %arg9[%c0_25, %c640] : memref<288x1152xbf16, #tpu.memory_space<vmem>>, vector<288x128xbf16>
    tpu.vector_store %arg9[%c0_25, %c640], %27 {strides = array<i32>} : memref<288x1152xbf16, #tpu.memory_space<vmem>>, vector<288x128xbf16>,
    %c36 = arith.constant 36 : index
    %c0_26 = arith.constant 0 : index
    %29 = vector.load %arg10[%c36, %c0_26] : memref<328x128xbf16, #tpu.memory_space<vmem>>, vector<288x128xbf16>
    %c0_27 = arith.constant 0 : index
    %c768 = arith.constant 768 : index
    %30 = vector.load %arg9[%c0_27, %c768] : memref<288x1152xbf16, #tpu.memory_space<vmem>>, vector<288x128xbf16>
    tpu.vector_store %arg9[%c0_27, %c768], %29 {strides = array<i32>} : memref<288x1152xbf16, #tpu.memory_space<vmem>>, vector<288x128xbf16>,
    %c37 = arith.constant 37 : index
    %c0_28 = arith.constant 0 : index
    %31 = vector.load %arg10[%c37, %c0_28] : memref<328x128xbf16, #tpu.memory_space<vmem>>, vector<288x128xbf16>
    %c0_29 = arith.constant 0 : index
    %c896 = arith.constant 896 : index
    %32 = vector.load %arg9[%c0_29, %c896] : memref<288x1152xbf16, #tpu.memory_space<vmem>>, vector<288x128xbf16>
    tpu.vector_store %arg9[%c0_29, %c896], %31 {strides = array<i32>} : memref<288x1152xbf16, #tpu.memory_space<vmem>>, vector<288x128xbf16>,
    %c38 = arith.constant 38 : index
    %c0_30 = arith.constant 0 : index
    %33 = vector.load %arg10[%c38, %c0_30] : memref<328x128xbf16, #tpu.memory_space<vmem>>, vector<288x128xbf16>
    %c0_31 = arith.constant 0 : index
    %c1024 = arith.constant 1024 : index
    %34 = vector.load %arg9[%c0_31, %c1024] : memref<288x1152xbf16, #tpu.memory_space<vmem>>, vector<288x128xbf16>
    tpu.vector_store %arg9[%c0_31, %c1024], %33 {strides = array<i32>} : memref<288x1152xbf16, #tpu.memory_space<vmem>>, vector<288x128xbf16>,
    %c0_32 = arith.constant 0 : index
    %c0_33 = arith.constant 0 : index
    %35 = vector.load %arg9[%c0_32, %c0_33] : memref<288x1152xbf16, #tpu.memory_space<vmem>>, vector<288x1152xbf16>
    %c0_34 = arith.constant 0 : index
    %c0_35 = arith.constant 0 : index
    %36 = vector.load %arg2[%c0_34, %c0_35] : memref<1152x128xbf16, #tpu.memory_space<vmem>>, vector<1152x128xbf16>
    %cst_36 = arith.constant dense<0.000000e+00> : vector<288x128xf32>
    %37 = tpu.matmul %35, %36, %cst_36 {dimension_numbers = #tpu.dot_dimension_numbers<[1], [0], [0], [1], [0, 0, 1, 1], [], []>} : vector<288x1152xbf16>, vector<1152x128xbf16>, vector<288x128xf32> -> vector<288x128xf32>
    %38 = vector.broadcast %16 : vector<288x1xf32> to vector<288x128xf32>
    %39 = arith.mulf %37, %38 : vector<288x128xf32>
    %cst_37 = arith.constant dense<0.000000e+00> : vector<128xf32>
    %40 = vector.multi_reduction <add>, %39, %cst_37 [0] : vector<288x128xf32> to vector<128xf32>
    %41 = vector.shape_cast %40 : vector<128xf32> to vector<1x128xf32>
    %cst_38 = arith.constant 3.906250e-03 : f32
    %42 = vector.broadcast %cst_38 : f32 to vector<1x128xf32>
    %43 = arith.mulf %41, %42 : vector<1x128xf32>
    %44 = vector.broadcast %43 : vector<1x128xf32> to vector<288x128xf32>
    %45 = arith.subf %37, %44 : vector<288x128xf32>
    %46 = vector.broadcast %16 : vector<288x1xf32> to vector<288x128xf32>
    %47 = arith.mulf %45, %46 : vector<288x128xf32>
    %48 = arith.mulf %47, %47 : vector<288x128xf32>
    %cst_39 = arith.constant dense<0.000000e+00> : vector<128xf32>
    %49 = vector.multi_reduction <add>, %48, %cst_39 [0] : vector<288x128xf32> to vector<128xf32>
    %50 = vector.shape_cast %49 : vector<128xf32> to vector<1x128xf32>
    %51 = tpu.concatenate %41, %50 in 0 : vector<1x128xf32>, vector<1x128xf32> -> vector<2x128xf32>
    %c0_40 = arith.constant 0 : index
    %c0_41 = arith.constant 0 : index
    %c0_42 = arith.constant 0 : index
    %52 = vector.load %arg8[%c0_40, %c0_41, %c0_42] : memref<1x2x128xf32, #tpu.memory_space<vmem>>, vector<1x2x128xf32>
    %53 = vector.shape_cast %52 : vector<1x2x128xf32> to vector<2x128xf32>
    %54 = vector.shape_cast %51 : vector<2x128xf32> to vector<1x2x128xf32>
    tpu.vector_store %arg8[%c0_40, %c0_41, %c0_42], %54 {strides = array<i32>} : memref<1x2x128xf32, #tpu.memory_space<vmem>>, vector<1x2x128xf32>,
    %55 = arith.truncf %39 : vector<288x128xf32> to vector<288x128xbf16>
    %c0_43 = arith.constant 0 : index
    %c0_44 = arith.constant 0 : index
    %c0_45 = arith.constant 0 : index
    %56 = vector.load %arg7[%c0_43, %c0_44, %c0_45] : memref<1x288x128xbf16, #tpu.memory_space<vmem>>, vector<1x288x128xbf16>
    %57 = vector.shape_cast %56 : vector<1x288x128xbf16> to vector<288x128xbf16>
    %58 = vector.shape_cast %55 : vector<288x128xbf16> to vector<1x288x128xbf16>
    tpu.vector_store %arg7[%c0_43, %c0_44, %c0_45], %58 {strides = array<i32>} : memref<1x288x128xbf16, #tpu.memory_space<vmem>>, vector<1x288x128xbf16>,
    return
  }
  func.func @transform_0(%arg0: i32) -> (i32, i32, i32) {
    %c0_i32 = arith.constant 0 : i32
    %c0_i32_0 = arith.constant 0 : i32
    %c0_i32_1 = arith.constant 0 : i32
    return %arg0, %c0_i32, %c0_i32_0 : i32, i32, i32
  }
  func.func @transform_1(%arg0: i32) -> (i32, i32) {
    %c0_i32 = arith.constant 0 : i32
    %c0_i32_0 = arith.constant 0 : i32
    %c0_i32_1 = arith.constant 0 : i32
    return %c0_i32, %c0_i32_0 : i32, i32
  }
  func.func @transform_2(%arg0: i32) -> (i32, i32) {
    %c0_i32 = arith.constant 0 : i32
    %c0_i32_0 = arith.constant 0 : i32
    %c0_i32_1 = arith.constant 0 : i32
    return %c0_i32, %c0_i32_0 : i32, i32
  }
  func.func @transform_3(%arg0: i32) -> (i32, i32) {
    %c0_i32 = arith.constant 0 : i32
    %c0_i32_0 = arith.constant 0 : i32
    %c0_i32_1 = arith.constant 0 : i32
    return %c0_i32, %c0_i32_0 : i32, i32
  }
  func.func @transform_4(%arg0: i32) -> (i32, i32) {
    %c0_i32 = arith.constant 0 : i32
    %c0_i32_0 = arith.constant 0 : i32
    %c0_i32_1 = arith.constant 0 : i32
    return %c0_i32, %c0_i32_0 : i32, i32
  }
  func.func @transform_5(%arg0: i32) -> (i32, i32) {
    %c0_i32 = arith.constant 0 : i32
    %c0_i32_0 = arith.constant 0 : i32
    %c0_i32_1 = arith.constant 0 : i32
    return %c0_i32, %c0_i32_0 : i32, i32
  }
  func.func @transform_6(%arg0: i32) -> (i32, i32, i32) {
    %c0_i32 = arith.constant 0 : i32
    %c0_i32_0 = arith.constant 0 : i32
    %c0_i32_1 = arith.constant 0 : i32
    return %arg0, %c0_i32, %c0_i32_0 : i32, i32, i32
  }
  func.func @transform_7(%arg0: i32) -> (i32, i32, i32) {
    %c0_i32 = arith.constant 0 : i32
    %c0_i32_0 = arith.constant 0 : i32
    %c0_i32_1 = arith.constant 0 : i32
    return %arg0, %c0_i32, %c0_i32_0 : i32, i32, i32
  }
}

module attributes {stable_mosaic.version = 11 : i64} {
  func.func @_conv_kernel(%arg0: i32, %arg1: memref<1x328x128xbf16, #tpu.memory_space<vmem>>, %arg2: memref<1152x128xbf16, #tpu.memory_space<vmem>>, %arg3: memref<288x1xf32, #tpu.memory_space<vmem>>, %arg4: memref<1x328x128xbf16, #tpu.memory_space<vmem>>, %arg5: memref<1x2x128xf32, #tpu.memory_space<vmem>>, %arg6: memref<288x1152xbf16, #tpu.memory_space<vmem>>) attributes {dimension_semantics = [#tpu.dimension_semantics<parallel>], iteration_bounds = array<i64: 2>, scalar_prefetch = 0 : i64, scratch_operands = 1 : i64, tpu.core_type = #tpu.core_type<tc>, window_params = [{transform_indices = @transform_0, window_bounds = array<i64: 1, 328, 128>}, {pipeline_mode = #tpu.pipeline_mode<synchronous>, transform_indices = @transform_1, window_bounds = array<i64: 1152, 128>}, {pipeline_mode = #tpu.pipeline_mode<synchronous>, transform_indices = @transform_2, window_bounds = array<i64: 288, 1>}, {transform_indices = @transform_3, window_bounds = array<i64: 1, 328, 128>}, {transform_indices = @transform_4, window_bounds = array<i64: 1, 2, 128>}]} {
    %c0 = arith.constant 0 : index
    %c0_0 = arith.constant 0 : index
    %0 = vector.load %arg3[%c0, %c0_0] : memref<288x1xf32, #tpu.memory_space<vmem>>, vector<288x1xf32>
    %c0_1 = arith.constant 0 : index
    %c0_2 = arith.constant 0 : index
    %c0_3 = arith.constant 0 : index
    %1 = vector.load %arg1[%c0_1, %c0_2, %c0_3] : memref<1x328x128xbf16, #tpu.memory_space<vmem>>, vector<1x288x128xbf16>
    %2 = vector.shape_cast %1 : vector<1x288x128xbf16> to vector<288x128xbf16>
    %c0_4 = arith.constant 0 : index
    %c0_5 = arith.constant 0 : index
    %3 = vector.load %arg6[%c0_4, %c0_5] : memref<288x1152xbf16, #tpu.memory_space<vmem>>, vector<288x128xbf16>
    tpu.vector_store %arg6[%c0_4, %c0_5], %2 {strides = array<i32>} : memref<288x1152xbf16, #tpu.memory_space<vmem>>, vector<288x128xbf16>,
    %c0_6 = arith.constant 0 : index
    %c1 = arith.constant 1 : index
    %c0_7 = arith.constant 0 : index
    %4 = vector.load %arg1[%c0_6, %c1, %c0_7] : memref<1x328x128xbf16, #tpu.memory_space<vmem>>, vector<1x288x128xbf16>
    %5 = vector.shape_cast %4 : vector<1x288x128xbf16> to vector<288x128xbf16>
    %c0_8 = arith.constant 0 : index
    %c128 = arith.constant 128 : index
    %6 = vector.load %arg6[%c0_8, %c128] : memref<288x1152xbf16, #tpu.memory_space<vmem>>, vector<288x128xbf16>
    tpu.vector_store %arg6[%c0_8, %c128], %5 {strides = array<i32>} : memref<288x1152xbf16, #tpu.memory_space<vmem>>, vector<288x128xbf16>,
    %c0_9 = arith.constant 0 : index
    %c2 = arith.constant 2 : index
    %c0_10 = arith.constant 0 : index
    %7 = vector.load %arg1[%c0_9, %c2, %c0_10] : memref<1x328x128xbf16, #tpu.memory_space<vmem>>, vector<1x288x128xbf16>
    %8 = vector.shape_cast %7 : vector<1x288x128xbf16> to vector<288x128xbf16>
    %c0_11 = arith.constant 0 : index
    %c256 = arith.constant 256 : index
    %9 = vector.load %arg6[%c0_11, %c256] : memref<288x1152xbf16, #tpu.memory_space<vmem>>, vector<288x128xbf16>
    tpu.vector_store %arg6[%c0_11, %c256], %8 {strides = array<i32>} : memref<288x1152xbf16, #tpu.memory_space<vmem>>, vector<288x128xbf16>,
    %c0_12 = arith.constant 0 : index
    %c18 = arith.constant 18 : index
    %c0_13 = arith.constant 0 : index
    %10 = vector.load %arg1[%c0_12, %c18, %c0_13] : memref<1x328x128xbf16, #tpu.memory_space<vmem>>, vector<1x288x128xbf16>
    %11 = vector.shape_cast %10 : vector<1x288x128xbf16> to vector<288x128xbf16>
    %c0_14 = arith.constant 0 : index
    %c384 = arith.constant 384 : index
    %12 = vector.load %arg6[%c0_14, %c384] : memref<288x1152xbf16, #tpu.memory_space<vmem>>, vector<288x128xbf16>
    tpu.vector_store %arg6[%c0_14, %c384], %11 {strides = array<i32>} : memref<288x1152xbf16, #tpu.memory_space<vmem>>, vector<288x128xbf16>,
    %c0_15 = arith.constant 0 : index
    %c19 = arith.constant 19 : index
    %c0_16 = arith.constant 0 : index
    %13 = vector.load %arg1[%c0_15, %c19, %c0_16] : memref<1x328x128xbf16, #tpu.memory_space<vmem>>, vector<1x288x128xbf16>
    %14 = vector.shape_cast %13 : vector<1x288x128xbf16> to vector<288x128xbf16>
    %c0_17 = arith.constant 0 : index
    %c512 = arith.constant 512 : index
    %15 = vector.load %arg6[%c0_17, %c512] : memref<288x1152xbf16, #tpu.memory_space<vmem>>, vector<288x128xbf16>
    tpu.vector_store %arg6[%c0_17, %c512], %14 {strides = array<i32>} : memref<288x1152xbf16, #tpu.memory_space<vmem>>, vector<288x128xbf16>,
    %c0_18 = arith.constant 0 : index
    %c20 = arith.constant 20 : index
    %c0_19 = arith.constant 0 : index
    %16 = vector.load %arg1[%c0_18, %c20, %c0_19] : memref<1x328x128xbf16, #tpu.memory_space<vmem>>, vector<1x288x128xbf16>
    %17 = vector.shape_cast %16 : vector<1x288x128xbf16> to vector<288x128xbf16>
    %c0_20 = arith.constant 0 : index
    %c640 = arith.constant 640 : index
    %18 = vector.load %arg6[%c0_20, %c640] : memref<288x1152xbf16, #tpu.memory_space<vmem>>, vector<288x128xbf16>
    tpu.vector_store %arg6[%c0_20, %c640], %17 {strides = array<i32>} : memref<288x1152xbf16, #tpu.memory_space<vmem>>, vector<288x128xbf16>,
    %c0_21 = arith.constant 0 : index
    %c36 = arith.constant 36 : index
    %c0_22 = arith.constant 0 : index
    %19 = vector.load %arg1[%c0_21, %c36, %c0_22] : memref<1x328x128xbf16, #tpu.memory_space<vmem>>, vector<1x288x128xbf16>
    %20 = vector.shape_cast %19 : vector<1x288x128xbf16> to vector<288x128xbf16>
    %c0_23 = arith.constant 0 : index
    %c768 = arith.constant 768 : index
    %21 = vector.load %arg6[%c0_23, %c768] : memref<288x1152xbf16, #tpu.memory_space<vmem>>, vector<288x128xbf16>
    tpu.vector_store %arg6[%c0_23, %c768], %20 {strides = array<i32>} : memref<288x1152xbf16, #tpu.memory_space<vmem>>, vector<288x128xbf16>,
    %c0_24 = arith.constant 0 : index
    %c37 = arith.constant 37 : index
    %c0_25 = arith.constant 0 : index
    %22 = vector.load %arg1[%c0_24, %c37, %c0_25] : memref<1x328x128xbf16, #tpu.memory_space<vmem>>, vector<1x288x128xbf16>
    %23 = vector.shape_cast %22 : vector<1x288x128xbf16> to vector<288x128xbf16>
    %c0_26 = arith.constant 0 : index
    %c896 = arith.constant 896 : index
    %24 = vector.load %arg6[%c0_26, %c896] : memref<288x1152xbf16, #tpu.memory_space<vmem>>, vector<288x128xbf16>
    tpu.vector_store %arg6[%c0_26, %c896], %23 {strides = array<i32>} : memref<288x1152xbf16, #tpu.memory_space<vmem>>, vector<288x128xbf16>,
    %c0_27 = arith.constant 0 : index
    %c38 = arith.constant 38 : index
    %c0_28 = arith.constant 0 : index
    %25 = vector.load %arg1[%c0_27, %c38, %c0_28] : memref<1x328x128xbf16, #tpu.memory_space<vmem>>, vector<1x288x128xbf16>
    %26 = vector.shape_cast %25 : vector<1x288x128xbf16> to vector<288x128xbf16>
    %c0_29 = arith.constant 0 : index
    %c1024 = arith.constant 1024 : index
    %27 = vector.load %arg6[%c0_29, %c1024] : memref<288x1152xbf16, #tpu.memory_space<vmem>>, vector<288x128xbf16>
    tpu.vector_store %arg6[%c0_29, %c1024], %26 {strides = array<i32>} : memref<288x1152xbf16, #tpu.memory_space<vmem>>, vector<288x128xbf16>,
    %c0_30 = arith.constant 0 : index
    %c0_31 = arith.constant 0 : index
    %28 = vector.load %arg6[%c0_30, %c0_31] : memref<288x1152xbf16, #tpu.memory_space<vmem>>, vector<288x1152xbf16>
    %c0_32 = arith.constant 0 : index
    %c0_33 = arith.constant 0 : index
    %29 = vector.load %arg2[%c0_32, %c0_33] : memref<1152x128xbf16, #tpu.memory_space<vmem>>, vector<1152x128xbf16>
    %cst = arith.constant dense<0.000000e+00> : vector<288x128xf32>
    %30 = tpu.matmul %28, %29, %cst {dimension_numbers = #tpu.dot_dimension_numbers<[1], [0], [0], [1], [0, 0, 1, 1], [], []>} : vector<288x1152xbf16>, vector<1152x128xbf16>, vector<288x128xf32> -> vector<288x128xf32>
    %31 = vector.broadcast %0 : vector<288x1xf32> to vector<288x128xf32>
    %32 = arith.mulf %30, %31 : vector<288x128xf32>
    %cst_34 = arith.constant dense<0.000000e+00> : vector<128xf32>
    %33 = vector.multi_reduction <add>, %32, %cst_34 [0] : vector<288x128xf32> to vector<128xf32>
    %34 = vector.shape_cast %33 : vector<128xf32> to vector<1x128xf32>
    %cst_35 = arith.constant 3.906250e-03 : f32
    %35 = vector.broadcast %cst_35 : f32 to vector<1x128xf32>
    %36 = arith.mulf %34, %35 : vector<1x128xf32>
    %37 = vector.broadcast %36 : vector<1x128xf32> to vector<288x128xf32>
    %38 = arith.subf %30, %37 : vector<288x128xf32>
    %39 = vector.broadcast %0 : vector<288x1xf32> to vector<288x128xf32>
    %40 = arith.mulf %38, %39 : vector<288x128xf32>
    %41 = arith.mulf %40, %40 : vector<288x128xf32>
    %cst_36 = arith.constant dense<0.000000e+00> : vector<128xf32>
    %42 = vector.multi_reduction <add>, %41, %cst_36 [0] : vector<288x128xf32> to vector<128xf32>
    %43 = vector.shape_cast %42 : vector<128xf32> to vector<1x128xf32>
    %44 = tpu.concatenate %34, %43 in 0 : vector<1x128xf32>, vector<1x128xf32> -> vector<2x128xf32>
    %c0_37 = arith.constant 0 : index
    %c0_38 = arith.constant 0 : index
    %c0_39 = arith.constant 0 : index
    %45 = vector.load %arg5[%c0_37, %c0_38, %c0_39] : memref<1x2x128xf32, #tpu.memory_space<vmem>>, vector<1x2x128xf32>
    %46 = vector.shape_cast %45 : vector<1x2x128xf32> to vector<2x128xf32>
    %47 = vector.shape_cast %44 : vector<2x128xf32> to vector<1x2x128xf32>
    tpu.vector_store %arg5[%c0_37, %c0_38, %c0_39], %47 {strides = array<i32>} : memref<1x2x128xf32, #tpu.memory_space<vmem>>, vector<1x2x128xf32>,
    %48 = arith.truncf %32 : vector<288x128xf32> to vector<288x128xbf16>
    %cst_40 = arith.constant 0.000000e+00 : bf16
    %49 = vector.broadcast %cst_40 : bf16 to vector<328x128xbf16>
    %c0_41 = arith.constant 0 : index
    %c0_42 = arith.constant 0 : index
    %c0_43 = arith.constant 0 : index
    %50 = vector.load %arg4[%c0_41, %c0_42, %c0_43] : memref<1x328x128xbf16, #tpu.memory_space<vmem>>, vector<1x328x128xbf16>
    %51 = vector.shape_cast %50 : vector<1x328x128xbf16> to vector<328x128xbf16>
    %52 = vector.shape_cast %49 : vector<328x128xbf16> to vector<1x328x128xbf16>
    tpu.vector_store %arg4[%c0_41, %c0_42, %c0_43], %52 {strides = array<i32>} : memref<1x328x128xbf16, #tpu.memory_space<vmem>>, vector<1x328x128xbf16>,
    %c0_44 = arith.constant 0 : index
    %c19_45 = arith.constant 19 : index
    %c0_46 = arith.constant 0 : index
    %53 = vector.load %arg4[%c0_44, %c19_45, %c0_46] : memref<1x328x128xbf16, #tpu.memory_space<vmem>>, vector<1x288x128xbf16>
    %54 = vector.shape_cast %53 : vector<1x288x128xbf16> to vector<288x128xbf16>
    %55 = vector.shape_cast %48 : vector<288x128xbf16> to vector<1x288x128xbf16>
    tpu.vector_store %arg4[%c0_44, %c19_45, %c0_46], %55 {strides = array<i32>} : memref<1x328x128xbf16, #tpu.memory_space<vmem>>, vector<1x288x128xbf16>,
    return
  }
  func.func @transform_0(%arg0: i32) -> (i32, i32, i32) {
    %c0_i32 = arith.constant 0 : i32
    %c0_i32_0 = arith.constant 0 : i32
    %c0_i32_1 = arith.constant 0 : i32
    return %arg0, %c0_i32, %c0_i32_0 : i32, i32, i32
  }
  func.func @transform_1(%arg0: i32) -> (i32, i32) {
    %c0_i32 = arith.constant 0 : i32
    %c0_i32_0 = arith.constant 0 : i32
    %c0_i32_1 = arith.constant 0 : i32
    return %c0_i32, %c0_i32_0 : i32, i32
  }
  func.func @transform_2(%arg0: i32) -> (i32, i32) {
    %c0_i32 = arith.constant 0 : i32
    %c0_i32_0 = arith.constant 0 : i32
    %c0_i32_1 = arith.constant 0 : i32
    return %c0_i32, %c0_i32_0 : i32, i32
  }
  func.func @transform_3(%arg0: i32) -> (i32, i32, i32) {
    %c0_i32 = arith.constant 0 : i32
    %c0_i32_0 = arith.constant 0 : i32
    %c0_i32_1 = arith.constant 0 : i32
    return %arg0, %c0_i32, %c0_i32_0 : i32, i32, i32
  }
  func.func @transform_4(%arg0: i32) -> (i32, i32, i32) {
    %c0_i32 = arith.constant 0 : i32
    %c0_i32_0 = arith.constant 0 : i32
    %c0_i32_1 = arith.constant 0 : i32
    return %arg0, %c0_i32, %c0_i32_0 : i32, i32, i32
  }
}

module attributes {stable_mosaic.version = 11 : i64} {
  func.func @_bn_add_relu_kernel(%arg0: i32, %arg1: memref<576x128xbf16, #tpu.memory_space<vmem>>, %arg2: memref<1x128xf32, #tpu.memory_space<vmem>>, %arg3: memref<1x128xf32, #tpu.memory_space<vmem>>, %arg4: memref<576x128xf32, #tpu.memory_space<vmem>>, %arg5: memref<576x128xf32, #tpu.memory_space<vmem>>) attributes {dimension_semantics = [#tpu.dimension_semantics<parallel>], iteration_bounds = array<i64: 1>, scalar_prefetch = 0 : i64, scratch_operands = 0 : i64, tpu.core_type = #tpu.core_type<tc>, window_params = [{transform_indices = @transform_0, window_bounds = array<i64: 576, 128>}, {pipeline_mode = #tpu.pipeline_mode<synchronous>, transform_indices = @transform_1, window_bounds = array<i64: 1, 128>}, {pipeline_mode = #tpu.pipeline_mode<synchronous>, transform_indices = @transform_2, window_bounds = array<i64: 1, 128>}, {transform_indices = @transform_3, window_bounds = array<i64: 576, 128>}, {transform_indices = @transform_4, window_bounds = array<i64: 576, 128>}]} {
    %c0 = arith.constant 0 : index
    %c0_0 = arith.constant 0 : index
    %0 = vector.load %arg1[%c0, %c0_0] : memref<576x128xbf16, #tpu.memory_space<vmem>>, vector<576x128xbf16>
    %1 = arith.extf %0 : vector<576x128xbf16> to vector<576x128xf32>
    %c0_1 = arith.constant 0 : index
    %c0_2 = arith.constant 0 : index
    %2 = vector.load %arg2[%c0_1, %c0_2] : memref<1x128xf32, #tpu.memory_space<vmem>>, vector<1x128xf32>
    %3 = vector.broadcast %2 : vector<1x128xf32> to vector<576x128xf32>
    %4 = arith.mulf %1, %3 : vector<576x128xf32>
    %c0_3 = arith.constant 0 : index
    %c0_4 = arith.constant 0 : index
    %5 = vector.load %arg3[%c0_3, %c0_4] : memref<1x128xf32, #tpu.memory_space<vmem>>, vector<1x128xf32>
    %6 = vector.broadcast %5 : vector<1x128xf32> to vector<576x128xf32>
    %7 = arith.addf %4, %6 : vector<576x128xf32>
    %c0_5 = arith.constant 0 : index
    %c0_6 = arith.constant 0 : index
    %8 = vector.load %arg4[%c0_5, %c0_6] : memref<576x128xf32, #tpu.memory_space<vmem>>, vector<576x128xf32>
    %9 = arith.addf %7, %8 : vector<576x128xf32>
    %cst = arith.constant 0.000000e+00 : f32
    %10 = vector.broadcast %cst : f32 to vector<576x128xf32>
    %11 = arith.maximumf %9, %10 : vector<576x128xf32>
    %c0_7 = arith.constant 0 : index
    %c0_8 = arith.constant 0 : index
    %12 = vector.load %arg5[%c0_7, %c0_8] : memref<576x128xf32, #tpu.memory_space<vmem>>, vector<576x128xf32>
    tpu.vector_store %arg5[%c0_7, %c0_8], %11 {strides = array<i32>} : memref<576x128xf32, #tpu.memory_space<vmem>>, vector<576x128xf32>,
    return
  }
  func.func @transform_0(%arg0: i32) -> (i32, i32) {
    %c0_i32 = arith.constant 0 : i32
    %c0_i32_0 = arith.constant 0 : i32
    return %arg0, %c0_i32 : i32, i32
  }
  func.func @transform_1(%arg0: i32) -> (i32, i32) {
    %c0_i32 = arith.constant 0 : i32
    %c0_i32_0 = arith.constant 0 : i32
    %c0_i32_1 = arith.constant 0 : i32
    return %c0_i32, %c0_i32_0 : i32, i32
  }
  func.func @transform_2(%arg0: i32) -> (i32, i32) {
    %c0_i32 = arith.constant 0 : i32
    %c0_i32_0 = arith.constant 0 : i32
    %c0_i32_1 = arith.constant 0 : i32
    return %c0_i32, %c0_i32_0 : i32, i32
  }
  func.func @transform_3(%arg0: i32) -> (i32, i32) {
    %c0_i32 = arith.constant 0 : i32
    %c0_i32_0 = arith.constant 0 : i32
    return %arg0, %c0_i32 : i32, i32
  }
  func.func @transform_4(%arg0: i32) -> (i32, i32) {
    %c0_i32 = arith.constant 0 : i32
    %c0_i32_0 = arith.constant 0 : i32
    return %arg0, %c0_i32 : i32, i32
  }
}

</mosaic_0001>

<bundles_post_ra>
// kernel: basic_block_forward.5
= control target key start
LH: loop header
LB: loop body
LE: loop exit
PB: predicated region body
PF: predicated region fallthrough
CT: control target
= control target key end

     0   :  { %s1516_s0 = inlined_call_operand.vmem [shape: bf16[576,128], index: 0, kind: input, shape index: {}]   ;;  %s1517_s1 = inlined_call_operand.vmem [shape: f32[1,128], index: 1, kind: input, shape index: {}]   ;;  %s1518_s2 = inlined_call_operand.vmem [shape: f32[1,128], index: 2, kind: input, shape index: {}]   ;;  %s1519_s3 = inlined_call_operand.vmem [shape: f32[576,128], index: 3, kind: input, shape index: {}]   ;;  %s1520_s4 = inlined_call_operand.vmem [shape: f32[576,128], index: 4, kind: output, shape index: {}]  }
   0x1   :  { %v614_v0 = vld [vmem:[%s1516_s0] sm:$0xff]   ;;  %v757_v4 = vld [vmem:[%s1516_s0 + $0x8] sm:$0xff]   ;;  %v758_v8 = vld [vmem:[%s1516_s0 + $0x10] sm:$0xff]  }
   0x2   :  { %v825_v1 = vld [vmem:[%s1517_s1] ss:$0 sm:$0xff]  ;;  %v615_v2 = vunpack.c.l.bf16 %v614_v0  ;;  %v616_v3 = vunpack.c.h.bf16 %v614_v0  ;;  %v619_v6 = vunpack.c.l.bf16 %v757_v4  ;;  %v620_v7 = vunpack.c.h.bf16 %v757_v4  ;;  %v759_v13 = vld [vmem:[%s1516_s0 + $0x18] sm:$0xff]   ;;  %v320_v15 = vld [vmem:[%s1519_s3 + $0x8] sm:$0xff] }
   0x3   :  { %v833_v5 = vld [vmem:[%s1518_s2] ss:$0 sm:$0xff]  ;;  %v623_v11 = vunpack.c.l.bf16 %v758_v8  ;;  %v624_v12 = vunpack.c.h.bf16 %v758_v8  ;;  %v627_v18 = vunpack.c.l.bf16 %v759_v13  ;;  %v628_v19 = vunpack.c.h.bf16 %v759_v13  ;;  %v321_v22 = vld [vmem:[%s1519_s3 + $0x10] sm:$0xff]  ;;  %v322_v23 = vld [vmem:[%s1519_s3 + $0x18] sm:$0xff] }
   0x4   :  { %v168_v9 = vmul.f32 %v615_v2, %v825_v1  ;;  %v169_v10 = vmul.f32 %v616_v3, %v825_v1  ;;  %v319_v14 = vld [vmem:[%s1519_s3] sm:$0xff]  ;;  %v170_v16 = vmul.f32 %v619_v6, %v825_v1  ;;  %v171_v17 = vmul.f32 %v620_v7, %v825_v1  ;;  %v324_v29 = vld [vmem:[%s1519_s3 + $0x28] sm:$0xff]  ;;  %v325_v36 = vld [vmem:[%s1519_s3 + $0x30] sm:$0xff] }
   0x5   :  { %v172_v24 = vmul.f32 %v623_v11, %v825_v1  ;;  %v173_v25 = vmul.f32 %v624_v12, %v825_v1  ;;  %v323_v28 = vld [vmem:[%s1519_s3 + $0x20] sm:$0xff]  ;;  %v174_v30 = vmul.f32 %v627_v18, %v825_v1  ;;  %v175_v31 = vmul.f32 %v628_v19, %v825_v1  ;;  %v326_v37 = vld [vmem:[%s1519_s3 + $0x38] sm:$0xff]  ;;  %v761_v47 = vld [vmem:[%s1516_s0 + $0x28] sm:$0xff]  }
   0x6   :  { %v247_v20 = vadd.f32 %v833_v5, %v168_v9  ;;  %v248_v21 = vadd.f32 %v833_v5, %v169_v10  ;;  %v249_v26 = vadd.f32 %v833_v5, %v170_v16  ;;  %v250_v27 = vadd.f32 %v833_v5, %v171_v17  ;;  %v760_v42 = vld [vmem:[%s1516_s0 + $0x20] sm:$0xff]   ;;  %v762_v52 = vld [vmem:[%s1516_s0 + $0x30] sm:$0xff]   ;;  %v763_v57 = vld [vmem:[%s1516_s0 + $0x38] sm:$0xff]  }
   0x7   :  { %v251_v34 = vadd.f32 %v833_v5, %v172_v24  ;;  %v252_v35 = vadd.f32 %v833_v5, %v173_v25  ;;  %v253_v40 = vadd.f32 %v833_v5, %v174_v30  ;;  %v254_v41 = vadd.f32 %v833_v5, %v175_v31  ;;  %v327_v3 = vld [vmem:[%s1519_s3 + $0x40] sm:$0xff]  ;;  %v328_v4 = vld [vmem:[%s1519_s3 + $0x48] sm:$0xff]  ;;  %v329_v12 = vld [vmem:[%s1519_s3 + $0x50] sm:$0xff] }
   0x8   :  { %v391_v32 = vadd.f32 %v319_v14, %v247_v20  ;;  %v392_v33 = vadd.f32 %v320_v15, %v248_v21  ;;  %v393_v38 = vadd.f32 %v321_v22, %v249_v26  ;;  %v394_v39 = vadd.f32 %v322_v23, %v250_v27  ;;  %v330_v13 = vld [vmem:[%s1519_s3 + $0x58] sm:$0xff]  ;;  %v331_v18 = vld [vmem:[%s1519_s3 + $0x60] sm:$0xff]  ;;  %v332_v19 = vld [vmem:[%s1519_s3 + $0x68] sm:$0xff] }
   0x9   :  { %v395_v45 = vadd.f32 %v323_v28, %v251_v34  ;;  %v396_v46 = vadd.f32 %v324_v29, %v252_v35  ;;  %v397_v50 = vadd.f32 %v325_v36, %v253_v40  ;;  %v398_v51 = vadd.f32 %v326_v37, %v254_v41  ;;  %v333_v26 = vld [vmem:[%s1519_s3 + $0x70] sm:$0xff]  ;;  %v334_v27 = vld [vmem:[%s1519_s3 + $0x78] sm:$0xff]  ;;  %v765_v37 = vld [vmem:[%s1516_s0 + $0x48] sm:$0xff]  }
   0xa   :  { %v463_v43 = vmax.f32 %v391_v32, 0.0  ;;  %v464_v44 = vmax.f32 %v392_v33, 0.0  ;;  %v465_v48 = vmax.f32 %v393_v38, 0.0  ;;  %v466_v49 = vmax.f32 %v394_v39, 0.0  ;;  %v764_v32 = vld [vmem:[%s1516_s0 + $0x40] sm:$0xff]  }
   0xb   :  { %v467_v53 = vmax.f32 %v395_v45, 0.0  ;;  %v468_v54 = vmax.f32 %v396_v46, 0.0  ;;  %v631_v55 = vunpack.c.l.bf16 %v760_v42  ;;  %v632_v56 = vunpack.c.h.bf16 %v760_v42  ;;  %v766_v42 = vld [vmem:[%s1516_s0 + $0x50] sm:$0xff]  }
   0xc   :  { %535 = vst [vmem:[%s1520_s4] sm:$0xff] %v463_v43  ;;  %536 = vst [vmem:[%s1520_s4 + $0x8] sm:$0xff] %v464_v44  ;;  %v469_v58 = vmax.f32 %v397_v50, 0.0  ;;  %v470_v59 = vmax.f32 %v398_v51, 0.0  ;;  %v635_v60 = vunpack.c.l.bf16 %v761_v47  ;;  %v636_v61 = vunpack.c.h.bf16 %v761_v47  ;;  %v767_v47 = vld [vmem:[%s1516_s0 + $0x58] sm:$0xff]  }
   0xd   :  { %537 = vst [vmem:[%s1520_s4 + $0x10] sm:$0xff] %v465_v48  ;;  %538 = vst [vmem:[%s1520_s4 + $0x18] sm:$0xff] %v466_v49  ;;  %v176_v62 = vmul.f32 %v631_v55, %v825_v1  ;;  %v177_v63 = vmul.f32 %v632_v56, %v825_v1  ;;  %v639_v0 = vunpack.c.l.bf16 %v762_v52  ;;  %v640_v2 = vunpack.c.h.bf16 %v762_v52  ;;  %v335_v56 = vld [vmem:[%s1519_s3 + $0x80] sm:$0xff] }
   0xe   :  { %539 = vst [vmem:[%s1520_s4 + $0x20] sm:$0xff] %v467_v53  ;;  %540 = vst [vmem:[%s1520_s4 + $0x28] sm:$0xff] %v468_v54  ;;  %v178_v6 = vmul.f32 %v635_v60, %v825_v1  ;;  %v179_v7 = vmul.f32 %v636_v61, %v825_v1  ;;  %v643_v8 = vunpack.c.l.bf16 %v763_v57  ;;  %v644_v9 = vunpack.c.h.bf16 %v763_v57  ;;  %v336_v57 = vld [vmem:[%s1519_s3 + $0x88] sm:$0xff] }
   0xf   :  { %541 = vst [vmem:[%s1520_s4 + $0x30] sm:$0xff] %v469_v58  ;;  %542 = vst [vmem:[%s1520_s4 + $0x38] sm:$0xff] %v470_v59  ;;  %v255_v10 = vadd.f32 %v833_v5, %v176_v62  ;;  %v256_v11 = vadd.f32 %v833_v5, %v177_v63  ;;  %v180_v14 = vmul.f32 %v639_v0, %v825_v1  ;;  %v647_v45 = vunpack.c.l.bf16 %v764_v32  ;;  %v337_v0 = vld [vmem:[%s1519_s3 + $0x90] sm:$0xff] }
  0x10   :  { %v181_v15 = vmul.f32 %v640_v2, %v825_v1  ;;  %v257_v16 = vadd.f32 %v833_v5, %v178_v6  ;;  %v258_v17 = vadd.f32 %v833_v5, %v179_v7  ;;  %v182_v20 = vmul.f32 %v643_v8, %v825_v1  ;;  %v338_v2 = vld [vmem:[%s1519_s3 + $0x98] sm:$0xff]  ;;  %v339_v8 = vld [vmem:[%s1519_s3 + $0xa0] sm:$0xff] }
  0x11   :  { %v183_v21 = vmul.f32 %v644_v9, %v825_v1  ;;  %v399_v22 = vadd.f32 %v327_v3, %v255_v10  ;;  %v400_v23 = vadd.f32 %v328_v4, %v256_v11  ;;  %v259_v24 = vadd.f32 %v833_v5, %v180_v14  ;;  %v340_v9 = vld [vmem:[%s1519_s3 + $0xa8] sm:$0xff] }
  0x12   :  { %v260_v25 = vadd.f32 %v833_v5, %v181_v15  ;;  %v401_v28 = vadd.f32 %v329_v12, %v257_v16  ;;  %v402_v29 = vadd.f32 %v330_v13, %v258_v17  ;;  %v261_v30 = vadd.f32 %v833_v5, %v182_v20  ;;  %v341_v16 = vld [vmem:[%s1519_s3 + $0xb0] sm:$0xff]  ;;  %v342_v17 = vld [vmem:[%s1519_s3 + $0xb8] sm:$0xff] }
  0x13   :  { %v262_v31 = vadd.f32 %v833_v5, %v183_v21  ;;  %v471_v33 = vmax.f32 %v399_v22, 0.0  ;;  %v472_v34 = vmax.f32 %v400_v23, 0.0  ;;  %v403_v35 = vadd.f32 %v331_v18, %v259_v24  ;;  %v768_v22 = vld [vmem:[%s1516_s0 + $0x60] sm:$0xff]  }
  0x14   :  { %v404_v36 = vadd.f32 %v332_v19, %v260_v25  ;;  %v473_v38 = vmax.f32 %v401_v28, 0.0  ;;  %v474_v39 = vmax.f32 %v402_v29, 0.0  ;;  %v405_v40 = vadd.f32 %v333_v26, %v261_v30 }
  0x15   :  { %v406_v41 = vadd.f32 %v334_v27, %v262_v31  ;;  %543 = vst [vmem:[%s1520_s4 + $0x40] sm:$0xff] %v471_v33  ;;  %544 = vst [vmem:[%s1520_s4 + $0x48] sm:$0xff] %v472_v34  ;;  %v475_v43 = vmax.f32 %v403_v35, 0.0  ;;  %v648_v46 = vunpack.c.h.bf16 %v764_v32  ;;  %v651_v50 = vunpack.c.l.bf16 %v765_v37  ;;  %v769_v27 = vld [vmem:[%s1516_s0 + $0x68] sm:$0xff]   ;;  %v770_v32 = vld [vmem:[%s1516_s0 + $0x70] sm:$0xff]  }
  0x16   :  { %v476_v44 = vmax.f32 %v404_v36, 0.0  ;;  %545 = vst [vmem:[%s1520_s4 + $0x50] sm:$0xff] %v473_v38  ;;  %546 = vst [vmem:[%s1520_s4 + $0x58] sm:$0xff] %v474_v39  ;;  %v477_v48 = vmax.f32 %v405_v40, 0.0  ;;  %v652_v51 = vunpack.c.h.bf16 %v765_v37  ;;  %v184_v52 = vmul.f32 %v647_v45, %v825_v1  ;;  %v771_v37 = vld [vmem:[%s1516_s0 + $0x78] sm:$0xff]  }
  0x17   :  { %v478_v49 = vmax.f32 %v406_v41, 0.0  ;;  %547 = vst [vmem:[%s1520_s4 + $0x60] sm:$0xff] %v475_v43  ;;  %v185_v53 = vmul.f32 %v648_v46, %v825_v1  ;;  %v655_v54 = vunpack.c.l.bf16 %v766_v42  ;;  %v656_v55 = vunpack.c.h.bf16 %v766_v42  ;;  %v343_v46 = vld [vmem:[%s1519_s3 + $0xc0] sm:$0xff] }
  0x18   :  { %548 = vst [vmem:[%s1520_s4 + $0x68] sm:$0xff] %v476_v44  ;;  %549 = vst [vmem:[%s1520_s4 + $0x70] sm:$0xff] %v477_v48  ;;  %v186_v58 = vmul.f32 %v651_v50, %v825_v1  ;;  %v187_v59 = vmul.f32 %v652_v51, %v825_v1  ;;  %v659_v60 = vunpack.c.l.bf16 %v767_v47  ;;  %v660_v61 = vunpack.c.h.bf16 %v767_v47  ;;  %v344_v47 = vld [vmem:[%s1519_s3 + $0xc8] sm:$0xff] }
  0x19   :  { %550 = vst [vmem:[%s1520_s4 + $0x78] sm:$0xff] %v478_v49  ;;  %v263_v62 = vadd.f32 %v833_v5, %v184_v52  ;;  %v264_v63 = vadd.f32 %v833_v5, %v185_v53  ;;  %v188_v3 = vmul.f32 %v655_v54, %v825_v1  ;;  %v189_v4 = vmul.f32 %v656_v55, %v825_v1  ;;  %v345_v54 = vld [vmem:[%s1519_s3 + $0xd0] sm:$0xff]  ;;  %v346_v55 = vld [vmem:[%s1519_s3 + $0xd8] sm:$0xff] }
  0x1a   :  { %v265_v6 = vadd.f32 %v833_v5, %v186_v58  ;;  %v266_v7 = vadd.f32 %v833_v5, %v187_v59  ;;  %v190_v10 = vmul.f32 %v659_v60, %v825_v1  ;;  %v191_v11 = vmul.f32 %v660_v61, %v825_v1  ;;  %v347_v60 = vld [vmem:[%s1519_s3 + $0xe0] sm:$0xff]  ;;  %v348_v61 = vld [vmem:[%s1519_s3 + $0xe8] sm:$0xff] }
  0x1b   :  { %v407_v12 = vadd.f32 %v335_v56, %v263_v62  ;;  %v408_v13 = vadd.f32 %v336_v57, %v264_v63  ;;  %v267_v14 = vadd.f32 %v833_v5, %v188_v3  ;;  %v268_v15 = vadd.f32 %v833_v5, %v189_v4 }
  0x1c   :  { %v409_v18 = vadd.f32 %v337_v0, %v265_v6  ;;  %v410_v19 = vadd.f32 %v338_v2, %v266_v7  ;;  %v269_v20 = vadd.f32 %v833_v5, %v190_v10  ;;  %v270_v21 = vadd.f32 %v833_v5, %v191_v11  ;;  %v349_v6 = vld [vmem:[%s1519_s3 + $0xf0] sm:$0xff]  ;;  %v350_v7 = vld [vmem:[%s1519_s3 + $0xf8] sm:$0xff] }
  0x1d   :  { %v479_v23 = vmax.f32 %v407_v12, 0.0  ;;  %v480_v24 = vmax.f32 %v408_v13, 0.0  ;;  %v411_v25 = vadd.f32 %v339_v8, %v267_v14  ;;  %v412_v26 = vadd.f32 %v340_v9, %v268_v15  ;;  %v772_v12 = vld [vmem:[%s1516_s0 + $0x80] sm:$0xff]  }
  0x1e   :  { %v481_v28 = vmax.f32 %v409_v18, 0.0  ;;  %v482_v29 = vmax.f32 %v410_v19, 0.0  ;;  %v413_v30 = vadd.f32 %v341_v16, %v269_v20  ;;  %v414_v31 = vadd.f32 %v342_v17, %v270_v21  ;;  %v773_v17 = vld [vmem:[%s1516_s0 + $0x88] sm:$0xff]  }
  0x1f   :  { %551 = vst [vmem:[%s1520_s4 + $0x80] sm:$0xff] %v479_v23  ;;  %552 = vst [vmem:[%s1520_s4 + $0x88] sm:$0xff] %v480_v24  ;;  %v483_v33 = vmax.f32 %v411_v25, 0.0  ;;  %v484_v34 = vmax.f32 %v412_v26, 0.0  ;;  %v663_v35 = vunpack.c.l.bf16 %v768_v22  ;;  %v664_v36 = vunpack.c.h.bf16 %v768_v22  ;;  %v774_v22 = vld [vmem:[%s1516_s0 + $0x90] sm:$0xff]  }
  0x20   :  { %553 = vst [vmem:[%s1520_s4 + $0x90] sm:$0xff] %v481_v28  ;;  %554 = vst [vmem:[%s1520_s4 + $0x98] sm:$0xff] %v482_v29  ;;  %v485_v38 = vmax.f32 %v413_v30, 0.0  ;;  %v486_v39 = vmax.f32 %v414_v31, 0.0  ;;  %v667_v40 = vunpack.c.l.bf16 %v769_v27  ;;  %v668_v41 = vunpack.c.h.bf16 %v769_v27  ;;  %v775_v27 = vld [vmem:[%s1516_s0 + $0x98] sm:$0xff]  }
  0x21   :  { %555 = vst [vmem:[%s1520_s4 + $0xa0] sm:$0xff] %v483_v33  ;;  %556 = vst [vmem:[%s1520_s4 + $0xa8] sm:$0xff] %v484_v34  ;;  %v192_v42 = vmul.f32 %v663_v35, %v825_v1  ;;  %v193_v43 = vmul.f32 %v664_v36, %v825_v1  ;;  %v671_v44 = vunpack.c.l.bf16 %v770_v32  ;;  %v672_v45 = vunpack.c.h.bf16 %v770_v32  ;;  %v351_v36 = vld [vmem:[%s1519_s3 + $0x100] sm:$0xff] }
  0x22   :  { %557 = vst [vmem:[%s1520_s4 + $0xb0] sm:$0xff] %v485_v38  ;;  %558 = vst [vmem:[%s1520_s4 + $0xb8] sm:$0xff] %v486_v39  ;;  %v194_v48 = vmul.f32 %v667_v40, %v825_v1  ;;  %v195_v49 = vmul.f32 %v668_v41, %v825_v1  ;;  %v675_v50 = vunpack.c.l.bf16 %v771_v37  ;;  %v676_v51 = vunpack.c.h.bf16 %v771_v37  ;;  %v352_v37 = vld [vmem:[%s1519_s3 + $0x108] sm:$0xff] }
  0x23   :  { %v271_v52 = vadd.f32 %v833_v5, %v192_v42  ;;  %v272_v53 = vadd.f32 %v833_v5, %v193_v43  ;;  %v196_v56 = vmul.f32 %v671_v44, %v825_v1  ;;  %v197_v57 = vmul.f32 %v672_v45, %v825_v1  ;;  %v353_v44 = vld [vmem:[%s1519_s3 + $0x110] sm:$0xff]  ;;  %v354_v45 = vld [vmem:[%s1519_s3 + $0x118] sm:$0xff] }
  0x24   :  { %v273_v58 = vadd.f32 %v833_v5, %v194_v48  ;;  %v274_v59 = vadd.f32 %v833_v5, %v195_v49  ;;  %v198_v62 = vmul.f32 %v675_v50, %v825_v1  ;;  %v199_v63 = vmul.f32 %v676_v51, %v825_v1  ;;  %v355_v50 = vld [vmem:[%s1519_s3 + $0x120] sm:$0xff]  ;;  %v356_v51 = vld [vmem:[%s1519_s3 + $0x128] sm:$0xff] }
  0x25   :  { %v415_v0 = vadd.f32 %v343_v46, %v271_v52  ;;  %v416_v2 = vadd.f32 %v344_v47, %v272_v53  ;;  %v275_v3 = vadd.f32 %v833_v5, %v196_v56  ;;  %v276_v4 = vadd.f32 %v833_v5, %v197_v57 }
  0x26   :  { %v417_v8 = vadd.f32 %v345_v54, %v273_v58  ;;  %v418_v9 = vadd.f32 %v346_v55, %v274_v59  ;;  %v277_v10 = vadd.f32 %v833_v5, %v198_v62  ;;  %v278_v11 = vadd.f32 %v833_v5, %v199_v63  ;;  %v357_v58 = vld [vmem:[%s1519_s3 + $0x130] sm:$0xff]  ;;  %v358_v59 = vld [vmem:[%s1519_s3 + $0x138] sm:$0xff] }
  0x27   :  { %v487_v13 = vmax.f32 %v415_v0, 0.0  ;;  %v488_v14 = vmax.f32 %v416_v2, 0.0  ;;  %v419_v15 = vadd.f32 %v347_v60, %v275_v3  ;;  %v420_v16 = vadd.f32 %v348_v61, %v276_v4  ;;  %v776_v0 = vld [vmem:[%s1516_s0 + $0xa0] sm:$0xff]  }
  0x28   :  { %v489_v18 = vmax.f32 %v417_v8, 0.0  ;;  %v490_v19 = vmax.f32 %v418_v9, 0.0  ;;  %v421_v20 = vadd.f32 %v349_v6, %v277_v10  ;;  %v422_v21 = vadd.f32 %v350_v7, %v278_v11  ;;  %v777_v7 = vld [vmem:[%s1516_s0 + $0xa8] sm:$0xff]  }
  0x29   :  { %559 = vst [vmem:[%s1520_s4 + $0xc0] sm:$0xff] %v487_v13  ;;  %560 = vst [vmem:[%s1520_s4 + $0xc8] sm:$0xff] %v488_v14  ;;  %v491_v23 = vmax.f32 %v419_v15, 0.0  ;;  %v492_v24 = vmax.f32 %v420_v16, 0.0  ;;  %v679_v25 = vunpack.c.l.bf16 %v772_v12  ;;  %v680_v26 = vunpack.c.h.bf16 %v772_v12  ;;  %v778_v12 = vld [vmem:[%s1516_s0 + $0xb0] sm:$0xff]  }
  0x2a   :  { %561 = vst [vmem:[%s1520_s4 + $0xd0] sm:$0xff] %v489_v18  ;;  %562 = vst [vmem:[%s1520_s4 + $0xd8] sm:$0xff] %v490_v19  ;;  %v493_v28 = vmax.f32 %v421_v20, 0.0  ;;  %v494_v29 = vmax.f32 %v422_v21, 0.0  ;;  %v683_v30 = vunpack.c.l.bf16 %v773_v17  ;;  %v684_v31 = vunpack.c.h.bf16 %v773_v17  ;;  %v779_v17 = vld [vmem:[%s1516_s0 + $0xb8] sm:$0xff]  }
  0x2b   :  { %563 = vst [vmem:[%s1520_s4 + $0xe0] sm:$0xff] %v491_v23  ;;  %564 = vst [vmem:[%s1520_s4 + $0xe8] sm:$0xff] %v492_v24  ;;  %v200_v32 = vmul.f32 %v679_v25, %v825_v1  ;;  %v201_v33 = vmul.f32 %v680_v26, %v825_v1  ;;  %v687_v34 = vunpack.c.l.bf16 %v774_v22  ;;  %v688_v35 = vunpack.c.h.bf16 %v774_v22  ;;  %v359_v26 = vld [vmem:[%s1519_s3 + $0x140] sm:$0xff] }
  0x2c   :  { %565 = vst [vmem:[%s1520_s4 + $0xf0] sm:$0xff] %v493_v28  ;;  %566 = vst [vmem:[%s1520_s4 + $0xf8] sm:$0xff] %v494_v29  ;;  %v202_v38 = vmul.f32 %v683_v30, %v825_v1  ;;  %v203_v39 = vmul.f32 %v684_v31, %v825_v1  ;;  %v691_v40 = vunpack.c.l.bf16 %v775_v27  ;;  %v692_v41 = vunpack.c.h.bf16 %v775_v27  ;;  %v360_v27 = vld [vmem:[%s1519_s3 + $0x148] sm:$0xff] }
  0x2d   :  { %v279_v42 = vadd.f32 %v833_v5, %v200_v32  ;;  %v280_v43 = vadd.f32 %v833_v5, %v201_v33  ;;  %v204_v46 = vmul.f32 %v687_v34, %v825_v1  ;;  %v205_v47 = vmul.f32 %v688_v35, %v825_v1  ;;  %v361_v34 = vld [vmem:[%s1519_s3 + $0x150] sm:$0xff]  ;;  %v362_v35 = vld [vmem:[%s1519_s3 + $0x158] sm:$0xff] }
  0x2e   :  { %v281_v48 = vadd.f32 %v833_v5, %v202_v38  ;;  %v282_v49 = vadd.f32 %v833_v5, %v203_v39  ;;  %v206_v52 = vmul.f32 %v691_v40, %v825_v1  ;;  %v207_v53 = vmul.f32 %v692_v41, %v825_v1  ;;  %v363_v40 = vld [vmem:[%s1519_s3 + $0x160] sm:$0xff]  ;;  %v364_v41 = vld [vmem:[%s1519_s3 + $0x168] sm:$0xff] }
  0x2f   :  { %v423_v54 = vadd.f32 %v351_v36, %v279_v42  ;;  %v424_v55 = vadd.f32 %v352_v37, %v280_v43  ;;  %v283_v56 = vadd.f32 %v833_v5, %v204_v46  ;;  %v284_v57 = vadd.f32 %v833_v5, %v205_v47 }
  0x30   :  { %v425_v60 = vadd.f32 %v353_v44, %v281_v48  ;;  %v426_v61 = vadd.f32 %v354_v45, %v282_v49  ;;  %v285_v62 = vadd.f32 %v833_v5, %v206_v52  ;;  %v286_v63 = vadd.f32 %v833_v5, %v207_v53  ;;  %v365_v48 = vld [vmem:[%s1519_s3 + $0x170] sm:$0xff]  ;;  %v366_v49 = vld [vmem:[%s1519_s3 + $0x178] sm:$0xff] }
  0x31   :  { %v495_v2 = vmax.f32 %v423_v54, 0.0  ;;  %v496_v3 = vmax.f32 %v424_v55, 0.0  ;;  %v427_v4 = vadd.f32 %v355_v50, %v283_v56  ;;  %v428_v6 = vadd.f32 %v356_v51, %v284_v57  ;;  %v780_v54 = vld [vmem:[%s1516_s0 + $0xc0] sm:$0xff]  }
  0x32   :  { %v497_v8 = vmax.f32 %v425_v60, 0.0  ;;  %v498_v9 = vmax.f32 %v426_v61, 0.0  ;;  %v429_v10 = vadd.f32 %v357_v58, %v285_v62  ;;  %v430_v11 = vadd.f32 %v358_v59, %v286_v63  ;;  %v781_v59 = vld [vmem:[%s1516_s0 + $0xc8] sm:$0xff]  }
  0x33   :  { %567 = vst [vmem:[%s1520_s4 + $0x100] sm:$0xff] %v495_v2  ;;  %568 = vst [vmem:[%s1520_s4 + $0x108] sm:$0xff] %v496_v3  ;;  %v499_v13 = vmax.f32 %v427_v4, 0.0  ;;  %v500_v14 = vmax.f32 %v428_v6, 0.0  ;;  %v695_v15 = vunpack.c.l.bf16 %v776_v0  ;;  %v696_v16 = vunpack.c.h.bf16 %v776_v0  ;;  %v782_v0 = vld [vmem:[%s1516_s0 + $0xd0] sm:$0xff]  }
  0x34   :  { %569 = vst [vmem:[%s1520_s4 + $0x110] sm:$0xff] %v497_v8  ;;  %570 = vst [vmem:[%s1520_s4 + $0x118] sm:$0xff] %v498_v9  ;;  %v501_v18 = vmax.f32 %v429_v10, 0.0  ;;  %v502_v19 = vmax.f32 %v430_v11, 0.0  ;;  %v699_v20 = vunpack.c.l.bf16 %v777_v7  ;;  %v700_v21 = vunpack.c.h.bf16 %v777_v7  ;;  %v783_v7 = vld [vmem:[%s1516_s0 + $0xd8] sm:$0xff]  }
  0x35   :  { %571 = vst [vmem:[%s1520_s4 + $0x120] sm:$0xff] %v499_v13  ;;  %572 = vst [vmem:[%s1520_s4 + $0x128] sm:$0xff] %v500_v14  ;;  %v208_v22 = vmul.f32 %v695_v15, %v825_v1  ;;  %v209_v23 = vmul.f32 %v696_v16, %v825_v1  ;;  %v703_v24 = vunpack.c.l.bf16 %v778_v12  ;;  %v704_v25 = vunpack.c.h.bf16 %v778_v12  ;;  %v367_v16 = vld [vmem:[%s1519_s3 + $0x180] sm:$0xff] }
  0x36   :  { %573 = vst [vmem:[%s1520_s4 + $0x130] sm:$0xff] %v501_v18  ;;  %574 = vst [vmem:[%s1520_s4 + $0x138] sm:$0xff] %v502_v19  ;;  %v210_v28 = vmul.f32 %v699_v20, %v825_v1  ;;  %v211_v29 = vmul.f32 %v700_v21, %v825_v1  ;;  %v707_v30 = vunpack.c.l.bf16 %v779_v17  ;;  %v708_v31 = vunpack.c.h.bf16 %v779_v17  ;;  %v368_v17 = vld [vmem:[%s1519_s3 + $0x188] sm:$0xff] }
  0x37   :  { %v287_v32 = vadd.f32 %v833_v5, %v208_v22  ;;  %v288_v33 = vadd.f32 %v833_v5, %v209_v23  ;;  %v212_v36 = vmul.f32 %v703_v24, %v825_v1  ;;  %v213_v37 = vmul.f32 %v704_v25, %v825_v1  ;;  %v369_v24 = vld [vmem:[%s1519_s3 + $0x190] sm:$0xff]  ;;  %v370_v25 = vld [vmem:[%s1519_s3 + $0x198] sm:$0xff] }
  0x38   :  { %v289_v38 = vadd.f32 %v833_v5, %v210_v28  ;;  %v290_v39 = vadd.f32 %v833_v5, %v211_v29  ;;  %v214_v42 = vmul.f32 %v707_v30, %v825_v1  ;;  %v215_v43 = vmul.f32 %v708_v31, %v825_v1  ;;  %v371_v30 = vld [vmem:[%s1519_s3 + $0x1a0] sm:$0xff]  ;;  %v372_v31 = vld [vmem:[%s1519_s3 + $0x1a8] sm:$0xff] }
  0x39   :  { %v431_v44 = vadd.f32 %v359_v26, %v287_v32  ;;  %v432_v45 = vadd.f32 %v360_v27, %v288_v33  ;;  %v291_v46 = vadd.f32 %v833_v5, %v212_v36  ;;  %v292_v47 = vadd.f32 %v833_v5, %v213_v37 }
  0x3a   :  { %v433_v50 = vadd.f32 %v361_v34, %v289_v38  ;;  %v434_v51 = vadd.f32 %v362_v35, %v290_v39  ;;  %v293_v52 = vadd.f32 %v833_v5, %v214_v42  ;;  %v294_v53 = vadd.f32 %v833_v5, %v215_v43  ;;  %v373_v38 = vld [vmem:[%s1519_s3 + $0x1b0] sm:$0xff]  ;;  %v374_v39 = vld [vmem:[%s1519_s3 + $0x1b8] sm:$0xff] }
  0x3b   :  { %v503_v55 = vmax.f32 %v431_v44, 0.0  ;;  %v504_v56 = vmax.f32 %v432_v45, 0.0  ;;  %v435_v57 = vadd.f32 %v363_v40, %v291_v46  ;;  %v436_v58 = vadd.f32 %v364_v41, %v292_v47  ;;  %v784_v44 = vld [vmem:[%s1516_s0 + $0xe0] sm:$0xff]  }
  0x3c   :  { %v505_v60 = vmax.f32 %v433_v50, 0.0  ;;  %v506_v61 = vmax.f32 %v434_v51, 0.0  ;;  %v437_v62 = vadd.f32 %v365_v48, %v293_v52  ;;  %v438_v63 = vadd.f32 %v366_v49, %v294_v53  ;;  %v785_v49 = vld [vmem:[%s1516_s0 + $0xe8] sm:$0xff]  }
  0x3d   :  { %575 = vst [vmem:[%s1520_s4 + $0x140] sm:$0xff] %v503_v55  ;;  %576 = vst [vmem:[%s1520_s4 + $0x148] sm:$0xff] %v504_v56  ;;  %v507_v2 = vmax.f32 %v435_v57, 0.0  ;;  %v508_v3 = vmax.f32 %v436_v58, 0.0  ;;  %v711_v4 = vunpack.c.l.bf16 %v780_v54  ;;  %v712_v6 = vunpack.c.h.bf16 %v780_v54  ;;  %v786_v54 = vld [vmem:[%s1516_s0 + $0xf0] sm:$0xff]  }
  0x3e   :  { %577 = vst [vmem:[%s1520_s4 + $0x150] sm:$0xff] %v505_v60  ;;  %578 = vst [vmem:[%s1520_s4 + $0x158] sm:$0xff] %v506_v61  ;;  %v509_v8 = vmax.f32 %v437_v62, 0.0  ;;  %v510_v9 = vmax.f32 %v438_v63, 0.0  ;;  %v715_v10 = vunpack.c.l.bf16 %v781_v59  ;;  %v716_v11 = vunpack.c.h.bf16 %v781_v59  ;;  %v787_v59 = vld [vmem:[%s1516_s0 + $0xf8] sm:$0xff]  }
  0x3f   :  { %579 = vst [vmem:[%s1520_s4 + $0x160] sm:$0xff] %v507_v2  ;;  %580 = vst [vmem:[%s1520_s4 + $0x168] sm:$0xff] %v508_v3  ;;  %v216_v12 = vmul.f32 %v711_v4, %v825_v1  ;;  %v217_v13 = vmul.f32 %v712_v6, %v825_v1  ;;  %v719_v14 = vunpack.c.l.bf16 %v782_v0  ;;  %v720_v15 = vunpack.c.h.bf16 %v782_v0  ;;  %v375_v6 = vld [vmem:[%s1519_s3 + $0x1c0] sm:$0xff] }
  0x40   :  { %581 = vst [vmem:[%s1520_s4 + $0x170] sm:$0xff] %v509_v8  ;;  %582 = vst [vmem:[%s1520_s4 + $0x178] sm:$0xff] %v510_v9  ;;  %v218_v18 = vmul.f32 %v715_v10, %v825_v1  ;;  %v219_v19 = vmul.f32 %v716_v11, %v825_v1  ;;  %v723_v20 = vunpack.c.l.bf16 %v783_v7  ;;  %v724_v21 = vunpack.c.h.bf16 %v783_v7  ;;  %v376_v7 = vld [vmem:[%s1519_s3 + $0x1c8] sm:$0xff] }
  0x41   :  { %v295_v22 = vadd.f32 %v833_v5, %v216_v12  ;;  %v296_v23 = vadd.f32 %v833_v5, %v217_v13  ;;  %v220_v26 = vmul.f32 %v719_v14, %v825_v1  ;;  %v221_v27 = vmul.f32 %v720_v15, %v825_v1  ;;  %v377_v14 = vld [vmem:[%s1519_s3 + $0x1d0] sm:$0xff]  ;;  %v378_v15 = vld [vmem:[%s1519_s3 + $0x1d8] sm:$0xff] }
  0x42   :  { %v297_v28 = vadd.f32 %v833_v5, %v218_v18  ;;  %v298_v29 = vadd.f32 %v833_v5, %v219_v19  ;;  %v222_v32 = vmul.f32 %v723_v20, %v825_v1  ;;  %v223_v33 = vmul.f32 %v724_v21, %v825_v1  ;;  %v379_v20 = vld [vmem:[%s1519_s3 + $0x1e0] sm:$0xff]  ;;  %v380_v21 = vld [vmem:[%s1519_s3 + $0x1e8] sm:$0xff] }
  0x43   :  { %v439_v34 = vadd.f32 %v367_v16, %v295_v22  ;;  %v440_v35 = vadd.f32 %v368_v17, %v296_v23  ;;  %v299_v36 = vadd.f32 %v833_v5, %v220_v26  ;;  %v300_v37 = vadd.f32 %v833_v5, %v221_v27 }
  0x44   :  { %v441_v40 = vadd.f32 %v369_v24, %v297_v28  ;;  %v442_v41 = vadd.f32 %v370_v25, %v298_v29  ;;  %v301_v42 = vadd.f32 %v833_v5, %v222_v32  ;;  %v302_v43 = vadd.f32 %v833_v5, %v223_v33  ;;  %v381_v28 = vld [vmem:[%s1519_s3 + $0x1f0] sm:$0xff]  ;;  %v382_v29 = vld [vmem:[%s1519_s3 + $0x1f8] sm:$0xff] }
  0x45   :  { %v511_v45 = vmax.f32 %v439_v34, 0.0  ;;  %v512_v46 = vmax.f32 %v440_v35, 0.0  ;;  %v443_v47 = vadd.f32 %v371_v30, %v299_v36  ;;  %v444_v48 = vadd.f32 %v372_v31, %v300_v37  ;;  %v788_v34 = vld [vmem:[%s1516_s0 + $0x100] sm:$0xff]  }
  0x46   :  { %v513_v50 = vmax.f32 %v441_v40, 0.0  ;;  %v514_v51 = vmax.f32 %v442_v41, 0.0  ;;  %v445_v52 = vadd.f32 %v373_v38, %v301_v42  ;;  %v446_v53 = vadd.f32 %v374_v39, %v302_v43  ;;  %v789_v39 = vld [vmem:[%s1516_s0 + $0x108] sm:$0xff]  }
  0x47   :  { %583 = vst [vmem:[%s1520_s4 + $0x180] sm:$0xff] %v511_v45  ;;  %584 = vst [vmem:[%s1520_s4 + $0x188] sm:$0xff] %v512_v46  ;;  %v515_v55 = vmax.f32 %v443_v47, 0.0  ;;  %v516_v56 = vmax.f32 %v444_v48, 0.0  ;;  %v727_v57 = vunpack.c.l.bf16 %v784_v44  ;;  %v728_v58 = vunpack.c.h.bf16 %v784_v44  ;;  %v790_v44 = vld [vmem:[%s1516_s0 + $0x110] sm:$0xff]  }
  0x48   :  { %585 = vst [vmem:[%s1520_s4 + $0x190] sm:$0xff] %v513_v50  ;;  %586 = vst [vmem:[%s1520_s4 + $0x198] sm:$0xff] %v514_v51  ;;  %v517_v60 = vmax.f32 %v445_v52, 0.0  ;;  %v518_v61 = vmax.f32 %v446_v53, 0.0  ;;  %v731_v62 = vunpack.c.l.bf16 %v785_v49  ;;  %v732_v63 = vunpack.c.h.bf16 %v785_v49  ;;  %v791_v49 = vld [vmem:[%s1516_s0 + $0x118] sm:$0xff]  }
  0x49   :  { %587 = vst [vmem:[%s1520_s4 + $0x1a0] sm:$0xff] %v515_v55  ;;  %588 = vst [vmem:[%s1520_s4 + $0x1a8] sm:$0xff] %v516_v56  ;;  %v224_v0 = vmul.f32 %v727_v57, %v825_v1  ;;  %v225_v2 = vmul.f32 %v728_v58, %v825_v1  ;;  %v735_v3 = vunpack.c.l.bf16 %v786_v54  ;;  %v736_v4 = vunpack.c.h.bf16 %v786_v54  ;;  %v383_v58 = vld [vmem:[%s1519_s3 + $0x200] sm:$0xff] }
  0x4a   :  { %589 = vst [vmem:[%s1520_s4 + $0x1b0] sm:$0xff] %v517_v60  ;;  %590 = vst [vmem:[%s1520_s4 + $0x1b8] sm:$0xff] %v518_v61  ;;  %v226_v8 = vmul.f32 %v731_v62, %v825_v1  ;;  %v227_v9 = vmul.f32 %v732_v63, %v825_v1  ;;  %v739_v10 = vunpack.c.l.bf16 %v787_v59  ;;  %v740_v11 = vunpack.c.h.bf16 %v787_v59  ;;  %v384_v59 = vld [vmem:[%s1519_s3 + $0x208] sm:$0xff] }
  0x4b   :  { %v303_v12 = vadd.f32 %v833_v5, %v224_v0  ;;  %v304_v13 = vadd.f32 %v833_v5, %v225_v2  ;;  %v228_v16 = vmul.f32 %v735_v3, %v825_v1  ;;  %v229_v17 = vmul.f32 %v736_v4, %v825_v1  ;;  %v385_v3 = vld [vmem:[%s1519_s3 + $0x210] sm:$0xff]  ;;  %v386_v4 = vld [vmem:[%s1519_s3 + $0x218] sm:$0xff] }
  0x4c   :  { %v305_v18 = vadd.f32 %v833_v5, %v226_v8  ;;  %v306_v19 = vadd.f32 %v833_v5, %v227_v9  ;;  %v230_v22 = vmul.f32 %v739_v10, %v825_v1  ;;  %v231_v23 = vmul.f32 %v740_v11, %v825_v1  ;;  %v387_v10 = vld [vmem:[%s1519_s3 + $0x220] sm:$0xff]  ;;  %v388_v11 = vld [vmem:[%s1519_s3 + $0x228] sm:$0xff] }
  0x4d   :  { %v447_v24 = vadd.f32 %v375_v6, %v303_v12  ;;  %v448_v25 = vadd.f32 %v376_v7, %v304_v13  ;;  %v307_v26 = vadd.f32 %v833_v5, %v228_v16  ;;  %v308_v27 = vadd.f32 %v833_v5, %v229_v17  ;;  %v792_v13 = vld [vmem:[%s1517_s1] ss:$0 sm:$0xff] }
  0x4e   :  { %v449_v30 = vadd.f32 %v377_v14, %v305_v18  ;;  %v450_v31 = vadd.f32 %v378_v15, %v306_v19  ;;  %v309_v32 = vadd.f32 %v833_v5, %v230_v22  ;;  %v310_v33 = vadd.f32 %v833_v5, %v231_v23  ;;  %v389_v19 = vld [vmem:[%s1519_s3 + $0x230] sm:$0xff]  ;;  %v793_v22 = vld [vmem:[%s1518_s2] ss:$0 sm:$0xff] }
  0x4f   :  { %v519_v35 = vmax.f32 %v447_v24, 0.0  ;;  %v520_v36 = vmax.f32 %v448_v25, 0.0  ;;  %v451_v37 = vadd.f32 %v379_v20, %v307_v26  ;;  %v452_v38 = vadd.f32 %v380_v21, %v308_v27  ;;  %v390_v20 = vld [vmem:[%s1519_s3 + $0x238] sm:$0xff] }
  0x50   :  { %v521_v40 = vmax.f32 %v449_v30, 0.0  ;;  %v522_v41 = vmax.f32 %v450_v31, 0.0  ;;  %v453_v42 = vadd.f32 %v381_v28, %v309_v32  ;;  %v454_v43 = vadd.f32 %v382_v29, %v310_v33 }
  0x51   :  { %591 = vst [vmem:[%s1520_s4 + $0x1c0] sm:$0xff] %v519_v35  ;;  %592 = vst [vmem:[%s1520_s4 + $0x1c8] sm:$0xff] %v520_v36  ;;  %v523_v45 = vmax.f32 %v451_v37, 0.0  ;;  %v524_v46 = vmax.f32 %v452_v38, 0.0  ;;  %v743_v47 = vunpack.c.l.bf16 %v788_v34  ;;  %v744_v48 = vunpack.c.h.bf16 %v788_v34 }
  0x52   :  { %593 = vst [vmem:[%s1520_s4 + $0x1d0] sm:$0xff] %v521_v40  ;;  %594 = vst [vmem:[%s1520_s4 + $0x1d8] sm:$0xff] %v522_v41  ;;  %v525_v50 = vmax.f32 %v453_v42, 0.0  ;;  %v526_v51 = vmax.f32 %v454_v43, 0.0  ;;  %v747_v52 = vunpack.c.l.bf16 %v789_v39  ;;  %v748_v53 = vunpack.c.h.bf16 %v789_v39 }
  0x53   :  { %595 = vst [vmem:[%s1520_s4 + $0x1e0] sm:$0xff] %v523_v45  ;;  %596 = vst [vmem:[%s1520_s4 + $0x1e8] sm:$0xff] %v524_v46  ;;  %v232_v54 = vmul.f32 %v743_v47, %v825_v1  ;;  %v233_v55 = vmul.f32 %v744_v48, %v825_v1  ;;  %v751_v56 = vunpack.c.l.bf16 %v790_v44  ;;  %v752_v57 = vunpack.c.h.bf16 %v790_v44 }
  0x54   :  { %597 = vst [vmem:[%s1520_s4 + $0x1f0] sm:$0xff] %v525_v50  ;;  %598 = vst [vmem:[%s1520_s4 + $0x1f8] sm:$0xff] %v526_v51  ;;  %v234_v60 = vmul.f32 %v747_v52, %v825_v1  ;;  %v235_v61 = vmul.f32 %v748_v53, %v825_v1  ;;  %v755_v62 = vunpack.c.l.bf16 %v791_v49  ;;  %v756_v63 = vunpack.c.h.bf16 %v791_v49 }
  0x55   :  { %v311_v0 = vadd.f32 %v833_v5, %v232_v54  ;;  %v312_v2 = vadd.f32 %v833_v5, %v233_v55  ;;  %v236_v6 = vmul.f32 %v751_v56, %v825_v1  ;;  %v237_v7 = vmul.f32 %v752_v57, %v825_v1 }
  0x56   :  { %v313_v8 = vadd.f32 %v833_v5, %v234_v60  ;;  %v314_v9 = vadd.f32 %v833_v5, %v235_v61  ;;  %v238_v12 = vmul.f32 %v755_v62, %v825_v1  ;;  %v239_v14 = vmul.f32 %v792_v13, %v756_v63 }
  0x57   :  { %v455_v15 = vadd.f32 %v383_v58, %v311_v0  ;;  %v456_v16 = vadd.f32 %v384_v59, %v312_v2  ;;  %v315_v17 = vadd.f32 %v833_v5, %v236_v6  ;;  %v316_v18 = vadd.f32 %v833_v5, %v237_v7 }
  0x58   :  { %v457_v1 = vadd.f32 %v385_v3, %v313_v8  ;;  %v458_v21 = vadd.f32 %v386_v4, %v314_v9  ;;  %v317_v23 = vadd.f32 %v793_v22, %v238_v12  ;;  %v318_v24 = vadd.f32 %v793_v22, %v239_v14 }
  0x59   :  { %v527_v25 = vmax.f32 %v455_v15, 0.0  ;;  %v528_v26 = vmax.f32 %v456_v16, 0.0  ;;  %v459_v27 = vadd.f32 %v387_v10, %v315_v17  ;;  %v460_v5 = vadd.f32 %v388_v11, %v316_v18 }
  0x5a   :  { %v529_v28 = vmax.f32 %v457_v1, 0.0  ;;  %v530_v29 = vmax.f32 %v458_v21, 0.0  ;;  %v461_v30 = vadd.f32 %v389_v19, %v317_v23  ;;  %v462_v31 = vadd.f32 %v390_v20, %v318_v24 }
  0x5b   :  { %599 = vst [vmem:[%s1520_s4 + $0x200] sm:$0xff] %v527_v25  ;;  %600 = vst [vmem:[%s1520_s4 + $0x208] sm:$0xff] %v528_v26  ;;  %v531_v32 = vmax.f32 %v459_v27, 0.0  ;;  %v532_v33 = vmax.f32 %v460_v5, 0.0 }
  0x5c   :  { %601 = vst [vmem:[%s1520_s4 + $0x210] sm:$0xff] %v529_v28  ;;  %602 = vst [vmem:[%s1520_s4 + $0x218] sm:$0xff] %v530_v29  ;;  %v533_v34 = vmax.f32 %v461_v30, 0.0  ;;  %v534_v35 = vmax.f32 %v462_v31, 0.0 }
  0x5d   :  { %603 = vst [vmem:[%s1520_s4 + $0x220] sm:$0xff] %v531_v32  ;;  %604 = vst [vmem:[%s1520_s4 + $0x228] sm:$0xff] %v532_v33 }
  0x5e   :  { %605 = vst [vmem:[%s1520_s4 + $0x230] sm:$0xff] %v533_v34  ;;  %606 = vst [vmem:[%s1520_s4 + $0x238] sm:$0xff] %v534_v35 }

// kernel: basic_block_forward.3
= control target key start
LH: loop header
LB: loop body
LE: loop exit
PB: predicated region body
PF: predicated region fallthrough
CT: control target
= control target key end

     0   :  { %s6020_s15 = smov 0   ;;  %s7959_s0 = inlined_call_operand.vmem [shape: bf16[2,328,128], index: 0, kind: input, shape index: {}]   ;;  %s7960_s1 = inlined_call_operand.vmem [shape: bf16[1152,128], index: 1, kind: input, shape index: {}]   ;;  %s7961_s2 = inlined_call_operand.vmem [shape: f32[288,1], index: 2, kind: input, shape index: {}]   ;;  %s7962_s3 = inlined_call_operand.vmem [shape: bf16[2,328,128], index: 3, kind: output, shape index: {0}]   ;;  %s7963_s4 = inlined_call_operand.vmem [shape: f32[2,2,128], index: 4, kind: output, shape index: {1}]  }
   0x1 LB: > { %s5128_s16 = sadd.s32 4294967295, %s5992_s15   ;;  %p5132_p0 = scmp.ge.s32.totalorder %s5992_s15, 1  ;;  %s5992_s15 = sphi %s6020_s15, %s15_s15  }
   0x2   : > { %p165_p1 = scmp.lt.s32.totalorder %s5992_s15, 3 }
   0x4   : > { %p166_p2 = pnand %p5132_p0, %p165_p1 }
   0x6   : > { %169 = sbr.rel (%p166_p2) target bundleno = 814 (0x32e), region = 32 }
   0xd   : > { %v5728_v0 = vld [vmem:[%s7960_s1] sm:$0xff]   ;;  %v5994_v1 = vmov 0   ;;  %v5730_v3 = vld [vmem:[%s7960_s1 + $0x8] sm:$0xff]   ;;  %v5732_v5 = vld [vmem:[%s7960_s1 + $0x10] sm:$0xff]   ;;  %p195_p3 = scmp.lt.s32.totalorder %s5128_s16, 1  ;;  %vm853_vm1 = vcmask 1046528  }
   0xe   : > { %3153 = vmatprep.subr.bf16.mxu1 %v5994_v1  ;;  %3330 = vmatprep.subr.bf16.mxu0 %v5994_v1  ;;  %v5729_v2 = vld [vmem:[%s7960_s1 + $0x80] sm:$0xff]   ;;  %v5731_v4 = vld [vmem:[%s7960_s1 + $0x88] sm:$0xff]   ;;  %v5733_v6 = vld [vmem:[%s7960_s1 + $0x90] sm:$0xff]   ;;  %vm538_vm0 = vsmask.f32 7424  ;;  %vm1597_vm3 = vcmask 1045504  }
   0xf   : > { %3154 = vmatpush1.bf16.msra.mxu1 %v5728_v0  ;;  %5726 = vset.pattern.permute.xlu0 %v5994_v1  ;;  %v5734_v7 = vld [vmem:[%s7960_s1 + $0x18] sm:$0xff]   ;;  %v5736_v9 = vld [vmem:[%s7960_s1 + $0x20] sm:$0xff]   ;;  %v5738_v11 = vld [vmem:[%s7960_s1 + $0x28] sm:$0xff]   ;;  %s8192_s16 = smov (!%p195_p3, %s5128_s16), 1  ;;  %vm2004_vm2 = vsmask.f32 5376 }
  0x10   : > { %3331 = vmatpush1.bf16.msra.mxu0 %v5729_v2  ;;  %3155 = vmatprep.subr.bf16.mxu1 %v5994_v1  ;;  %v5735_v8 = vld [vmem:[%s7960_s1 + $0x98] sm:$0xff]   ;;  %v5737_v10 = vld [vmem:[%s7960_s1 + $0xa0] sm:$0xff]   ;;  %v5739_v12 = vld [vmem:[%s7960_s1 + $0xa8] sm:$0xff]   ;;  %s5716_s23 = smul.u32 164, %s8192_s16  ;;  %vm1260_vm4 = vsmask.f32 6400 }
  0x11   : > { %3332 = vmatprep.subr.bf16.mxu0 %v5994_v1  ;;  %5727 = vset.pattern.permute.xlu1 %v5994_v1  ;;  %v5740_v13 = vld [vmem:[%s7960_s1 + $0x30] sm:$0xff]   ;;  %v5742_v15 = vld [vmem:[%s7960_s1 + $0x38] sm:$0xff]   ;;  %v5744_v17 = vld [vmem:[%s7960_s1 + $0x40] sm:$0xff]   ;;  %vm2341_vm5 = vcmask 1044480   ;;  %vm4597_vm6 = vsmask.f32 1280 }
  0x12   : > { %v5741_v14 = vld [vmem:[%s7960_s1 + $0xb0] sm:$0xff]   ;;  %v5743_v16 = vld [vmem:[%s7960_s1 + $0xb8] sm:$0xff]   ;;  %s6109_s30 = scalar_lea.vmem %s7959_s0, %s5716_s23  ;;  %v5745_v18 = vld [vmem:[%s7960_s1 + $0xc0] sm:$0xff]   ;;  %s6992_s25 = scalar_lea.vmem %s7962_s3, %s5716_s23  ;;  %vm4598_vm7 = vsmask.f32 5392  ;;  %vm4996_vm9 = vcmask 1043457  }
  0x13   : > { %3156 = vmatpush1.bf16.msra.mxu1 %v5730_v3  ;;  %v5746_v19 = vld [vmem:[%s7960_s1 + $0x48] sm:$0xff]   ;;  %v5760_v21 = vld [vmem:[%s6109_s30] sm:$0xff]   ;;  %v6129_v26 = vld [vmem:[%s6109_s30 + $0x10] sm:$0xff]   ;;  %4479 = vst [vmem:[%s6992_s25 + $0x34] sm:$0xf] %v5994_v1  ;;  %vm5037_vm12 = vcmask 1041408  }
  0x14   : > { %3333 = vmatpush1.bf16.msra.mxu0 %v5731_v4  ;;  %3157 = vmatprep.subr.bf16.mxu1 %v5994_v1  ;;  %v5747_v20 = vld [vmem:[%s7960_s1 + $0xc8] sm:$0xff]   ;;  %v540_v23 = vshrl.u32 %v5760_v21, 16  ;;  %v542_v24 = vshll.u32 %v5760_v21, 16  ;;  %v1058_v30 = vrot.slane %v6129_v26, 1  ;;  %v5748_v31 = vld [vmem:[%s7960_s1 + $0x50] sm:$0xff]   ;;  %v5750_v36 = vld [vmem:[%s7960_s1 + $0x58] sm:$0xff]  }
  0x15   : > { %3334 = vmatprep.subr.bf16.mxu0 %v5994_v1  ;;  %v6124_v22 = vld [vmem:[%s6109_s30 + $0x8] sm:$0xff]   ;;  %v5749_v33 = vld [vmem:[%s7960_s1 + $0xd0] sm:$0xff]   ;;  %v5751_v38 = vld [vmem:[%s7960_s1 + $0xd8] sm:$0xff]   ;;  %4466 = vst [vmem:[%s6992_s25] sm:$0xf] %v5994_v1  ;;  %vm4997_vm10 = vsmask.f32 7942 }
  0x16   : > { %v547_v25 = vshll.u32 %v6124_v22, 16  ;;  %v5762_v27 = vld [vmem:[%s6109_s30 + $0x8] sm:$0xfe]   ;;  %v544_v28 = vrot.slane %v542_v24, 1  ;;  %v5752_v39 = vld [vmem:[%s7960_s1 + $0x60] sm:$0xff]   ;;  %v5768_v43 = vld [vmem:[%s6109_s30 + $0x10] sm:$0xff]  }
  0x17   : > { %3158 = vmatpush1.bf16.msra.mxu1 %v5732_v5  ;;  %v1057_v32 = vrot.slane %v5762_v27, 1  ;;  %v5753_v40 = vld [vmem:[%s7960_s1 + $0xe0] sm:$0xff]   ;;  %v5754_v41 = vld [vmem:[%s7960_s1 + $0x68] sm:$0xff]   ;;  %v5756_v44 = vld [vmem:[%s7960_s1 + $0x70] sm:$0xff]   ;;  %v551_v48 = vshrl.u32 %v6124_v22, 16  ;;  %v555_v49 = vshll.u32 %v5768_v43, 16 }
  0x18   : > { %3335 = vmatpush1.bf16.msra.mxu0 %v5733_v6  ;;  %3159 = vmatprep.subr.bf16.mxu1 %v5994_v1  ;;  %v549_v29 = vrot.slane %v547_v25, 1  ;;  %v545_v34 = vor.u32 %v544_v28, %v540_v23  ;;  %v5755_v42 = vld [vmem:[%s7960_s1 + $0xe8] sm:$0xff]   ;;  %v5757_v45 = vld [vmem:[%s7960_s1 + $0xf0] sm:$0xff]   ;;  %v5765_v47 = vld [vmem:[%s6109_s30] sm:$0xfe]   ;;  %v559_v0 = vshrl.u32 %v5768_v43, 16 }
  0x19   : > { %3336 = vmatprep.subr.bf16.mxu0 %v5994_v1  ;;  %v1059_v35 = vsel %vm853_vm1, %v1057_v32, %v1058_v30  ;;  %v5766_v46 = vld [vmem:[%s6109_s30 + $0x8] sm:$0xff]   ;;  %v5758_v50 = vld [vmem:[%s7960_s1 + $0x78] sm:$0xff]   ;;  %v854_v53 = vrot.slane %v5765_v47, 1  ;;  %v557_v56 = vrot.slane %v555_v49, 1  ;;  %v5764_v58 = vld [vmem:[%s6109_s30] sm:$0xff]   ;;  %s5135_s23 = sshll.u32 %s8192_s16, 1 }
  0x1a   : > { %v550_v37 = vsel %vm538_vm0, %v545_v34, %v549_v29  ;;  %3362 = vmatprep.mubr.bf16.mxu0 %v1059_v35  ;;  %v5769_v51 = vld [vmem:[%s6109_s30 + $0x18] sm:$0xff]   ;;  %v855_v54 = vrot.slane %v5766_v46, 1  ;;  %v553_v55 = vor.u32 %v551_v48, %v549_v29  ;;  %v5767_v60 = vld [vmem:[%s7960_s1 + $0x100] sm:$0xff]   ;;  %v5771_v61 = vld [vmem:[%s6109_s30 + $0x10] sm:$0xff]   ;;  %4467 = vst [vmem:[%s6992_s25 + $0x4] sm:$0xf] %v5994_v1  ;;  %s208_s28 = scalar_lea.vmem %s7963_s4, %s5135_s23 }
  0x1b   : > { %3160 = vmatpush1.bf16.msra.mxu1 %v5734_v7  ;;  %3185 = vmatprep.mubr.bf16.mxu1 %v550_v37  ;;  %v5759_v52 = vld [vmem:[%s7960_s1 + $0xf8] sm:$0xff]   ;;  %v1060_v59 = vrot.slane %v5769_v51, 1  ;;  %v5774_v4 = vld [vmem:[%s6109_s30 + $0x20] sm:$0xff]   ;;  %v857_v5 = vrot.slane %v5771_v61, 1  ;;  %v5772_v6 = vld [vmem:[%s7960_s1 + $0x108] sm:$0xff]   ;;  %v561_v7 = vor.u32 %v559_v0, %v557_v56  ;;  %vm4445_vm14 = vcmask 1040384  }
  0x1c   : > { %3337 = vmatpush1.bf16.msra.mxu0 %v5735_v8  ;;  %3161 = vmatprep.subr.bf16.mxu1 %v5994_v1  ;;  %v5773_v57 = vld [vmem:[%s6109_s30 + $0x18] sm:$0xff]   ;;  %v856_v62 = vsel %vm853_vm1, %v854_v53, %v855_v54  ;;  %v558_v63 = vsel %vm538_vm0, %v553_v55, %v557_v56  ;;  %v5783_v24 = vld [vmem:[%s6109_s30 + $0x28] sm:$0xff]   ;;  %v5802_v26 = vld [vmem:[%s7960_s1 + $0x180] sm:$0xff]   ;;  %4468 = vst [vmem:[%s6992_s25 + $0x8] sm:$0xf] %v5994_v1 }
  0x1d   : > { %3338 = vmatprep.subr.bf16.mxu0 %v5994_v1  ;;  %v563_v2 = vshll.u32 %v5773_v57, 16  ;;  %v1061_v3 = vsel %vm853_vm1, %v1058_v30, %v1060_v59  ;;  %v5782_v21 = vld [vmem:[%s7960_s1 + $0x118] sm:$0xff]   ;;  %v5775_v27 = vld [vmem:[%s6109_s30 + $0x10] sm:$0xff]   ;;  %v5781_v28 = vld [vmem:[%s6109_s30 + $0x20] sm:$0xff]   ;;  %v579_v32 = vshll.u32 %v5783_v24, 16 }
  0x1e   : > { %v5784_v35 = vld [vmem:[%s6109_s30 + $0x30] sm:$0xff]   ;;  %v861_v37 = vrot.slane %v5781_v28, 1  ;;  %v5789_v46 = vld [vmem:[%s6109_s30 + $0x38] sm:$0xff]   ;;  %4469 = vst [vmem:[%s6992_s25 + $0xc] sm:$0xf] %v5994_v1  ;;  %vm7280_vm8 = vmor %vm4597_vm6, %vm4598_vm7 }
  0x1f   : > { %3162 = vmatpush1.bf16.msra.mxu1 %v5736_v9  ;;  %v565_v8 = vrot.slane %v563_v2, 1  ;;  %v5778_v9 = vld [vmem:[%s6109_s30 + $0x20] sm:$0xff]   ;;  %v1066_v43 = vrot.slane %v5784_v35, 1  ;;  %v5795_v28 = vld [vmem:[%s6109_s30 + $0x30] sm:$0xff]   ;;  %4470 = vst [vmem:[%s6992_s25 + $0x10] sm:$0xf] %v5994_v1  ;;  %vm7442_vm11 = vmand %vm4996_vm9, %vm4997_vm10 }
  0x20   : > { %3339 = vmatpush1.bf16.msra.mxu0 %v5737_v10  ;;  %3163 = vmatprep.subr.bf16.mxu1 %v5994_v1  ;;  %v5770_v10 = vld [vmem:[%s6109_s30 + $0x8] sm:$0xff]   ;;  %v575_v29 = vshrl.u32 %v5778_v9, 16  ;;  %4471 = vst [vmem:[%s6992_s25 + $0x14] sm:$0xf] %v5994_v1  ;;  %4472 = vst [vmem:[%s6992_s25 + $0x18] sm:$0xf] %v5994_v1 }
  0x21   : > { %3340 = vmatprep.subr.bf16.mxu0 %v5994_v1  ;;  %4473 = vst [vmem:[%s6992_s25 + $0x1c] sm:$0xf] %v5994_v1  ;;  %4474 = vst [vmem:[%s6992_s25 + $0x20] sm:$0xf] %v5994_v1 }
  0x22   : > { %4475 = vst [vmem:[%s6992_s25 + $0x24] sm:$0xf] %v5994_v1  ;;  %4476 = vst [vmem:[%s6992_s25 + $0x28] sm:$0xf] %v5994_v1 }
  0x23   : > { %3164 = vmatpush1.bf16.msra.mxu1 %v5738_v11  ;;  %v1062_v11 = vrot.slane %v5774_v4, 1  ;;  %4477 = vst [vmem:[%s6992_s25 + $0x2c] sm:$0xf] %v5994_v1  ;;  %4478 = vst [vmem:[%s6992_s25 + $0x30] sm:$0xf] %v5994_v1 }
  0x24   : > { %3341 = vmatpush1.bf16.msra.mxu0 %v5739_v12  ;;  %3165 = vmatprep.subr.bf16.mxu1 %v5994_v1  ;;  %v5776_v12 = vld [vmem:[%s6109_s30 + $0x18] sm:$0xff]   ;;  %4480 = vst [vmem:[%s6992_s25 + $0x38] sm:$0xf] %v5994_v1  ;;  %4481 = vst [vmem:[%s6992_s25 + $0x3c] sm:$0xf] %v5994_v1 }
  0x25   : > { %3342 = vmatprep.subr.bf16.mxu0 %v5994_v1  ;;  %4482 = vst [vmem:[%s6992_s25 + $0x40] sm:$0xf] %v5994_v1  ;;  %4483 = vst [vmem:[%s6992_s25 + $0x44] sm:$0xf] %v5994_v1 }
  0x26   : > { %4484 = vst [vmem:[%s6992_s25 + $0x48] sm:$0xf] %v5994_v1  ;;  %4485 = vst [vmem:[%s6992_s25 + $0x4c] sm:$0xf] %v5994_v1 }
  0x27   : > { %3166 = vmatpush1.bf16.msra.mxu1 %v5740_v13  ;;  %v5777_v13 = vld [vmem:[%s7960_s1 + $0x110] sm:$0xff]   ;;  %4486 = vst [vmem:[%s6992_s25 + $0x50] sm:$0xf] %v5994_v1  ;;  %4487 = vst [vmem:[%s6992_s25 + $0x54] sm:$0xf] %v5994_v1 }
  0x28   : > { %3343 = vmatpush1.bf16.msra.mxu0 %v5741_v14  ;;  %3167 = vmatprep.subr.bf16.mxu1 %v5994_v1  ;;  %v858_v14 = vsel %vm853_vm1, %v855_v54, %v857_v5  ;;  %v5793_v54 = vld [vmem:[%s6109_s30 + $0x38] sm:$0xff]   ;;  %4488 = vst [vmem:[%s6992_s25 + $0x58] sm:$0xf] %v5994_v1  ;;  %4489 = vst [vmem:[%s6992_s25 + $0x5c] sm:$0xf] %v5994_v1 }
  0x29   : > { %3344 = vmatprep.subr.bf16.mxu0 %v5994_v1  ;;  %v595_v2 = vshll.u32 %v5793_v54, 16  ;;  %4490 = vst [vmem:[%s6992_s25 + $0x60] sm:$0xf] %v5994_v1  ;;  %4491 = vst [vmem:[%s6992_s25 + $0x64] sm:$0xf] %v5994_v1 }
  0x2a   : > { %4492 = vst [vmem:[%s6992_s25 + $0x68] sm:$0xf] %v5994_v1  ;;  %4493 = vst [vmem:[%s6992_s25 + $0x6c] sm:$0xf] %v5994_v1 }
  0x2b   : > { %3168 = vmatpush1.bf16.msra.mxu1 %v5742_v15  ;;  %v566_v15 = vsel %vm538_vm0, %v561_v7, %v565_v8  ;;  %v5797_v7 = vld [vmem:[%s6109_s30 + $0x40] sm:$0xff]   ;;  %4494 = vst [vmem:[%s6992_s25 + $0x70] sm:$0xf] %v5994_v1  ;;  %4495 = vst [vmem:[%s6992_s25 + $0x74] sm:$0xf] %v5994_v1 }
  0x2c   : > { %3345 = vmatpush1.bf16.msra.mxu0 %v5743_v16  ;;  %3169 = vmatprep.subr.bf16.mxu1 %v5994_v1  ;;  %v567_v16 = vshrl.u32 %v5773_v57, 16  ;;  %v5807_v57 = vld [vmem:[%s7960_s1 + $0x138] sm:$0xff]   ;;  %4496 = vst [vmem:[%s6992_s25 + $0x78] sm:$0xf] %v5994_v1  ;;  %4497 = vst [vmem:[%s6992_s25 + $0x7c] sm:$0xf] %v5994_v1 }
  0x2d   : > { %3346 = vmatprep.subr.bf16.mxu0 %v5994_v1  ;;  %4498 = vst [vmem:[%s6992_s25 + $0x80] sm:$0xf] %v5994_v1  ;;  %4499 = vst [vmem:[%s6992_s25 + $0x84] sm:$0xf] %v5994_v1 }
  0x2e   : > { %v569_v22 = vor.u32 %v567_v16, %v565_v8  ;;  %4500 = vst [vmem:[%s6992_s25 + $0x88] sm:$0xf] %v5994_v1  ;;  %4501 = vst [vmem:[%s6992_s25 + $0x8c] sm:$0xf] %v5994_v1 }
  0x2f   : > { %3170 = vmatpush1.bf16.msra.mxu1 %v5744_v17  ;;  %v571_v17 = vshll.u32 %v5778_v9, 16  ;;  %v597_v9 = vrot.slane %v595_v2, 1  ;;  %4502 = vst [vmem:[%s6992_s25 + $0x90] sm:$0xf] %v5994_v1  ;;  %4503 = vst [vmem:[%s6992_s25 + $0x94] sm:$0xf] %v5994_v1 }
  0x30   : > { %3347 = vmatpush1.bf16.msra.mxu0 %v5745_v18  ;;  %3171 = vmatprep.subr.bf16.mxu1 %v5994_v1  ;;  %v1063_v18 = vsel %vm853_vm1, %v1060_v59, %v1062_v11  ;;  %v1068_v59 = vrot.slane %v5789_v46, 1  ;;  %v5806_v46 = vld [vmem:[%s6109_s30 + $0x48] sm:$0xff]   ;;  %4504 = vst [vmem:[%s6992_s25 + $0x98] sm:$0xf] %v5994_v1  ;;  %4505 = vst [vmem:[%s6992_s25 + $0x9c] sm:$0xf] %v5994_v1 }
  0x31   : > { %3348 = vmatprep.subr.bf16.mxu0 %v5994_v1  ;;  %v573_v23 = vrot.slane %v571_v17, 1  ;;  %4506 = vst [vmem:[%s6992_s25 + $0xa0] sm:$0xf] %v5994_v1  ;;  %vm5038_vm13 = vmand %vm5037_vm12, %vm4597_vm6 }
  0x32   : > { %v1069_v4 = vsel %vm853_vm1, %v1066_v43, %v1068_v59 }
  0x33   : > { %3172 = vmatpush1.bf16.msra.mxu1 %v5746_v19  ;;  %v5779_v19 = vld [vmem:[%s6109_s30 + $0x28] sm:$0xff]  }
  0x34   : > { %3349 = vmatpush1.bf16.msra.mxu0 %v5747_v20  ;;  %3173 = vmatprep.subr.bf16.mxu1 %v5994_v1  ;;  %v859_v20 = vrot.slane %v5776_v12, 1  ;;  %v1064_v25 = vrot.slane %v5779_v19, 1  ;;  %v5826_v12 = vld [vmem:[%s7960_s1 + $0x1a0] sm:$0xff]   ;;  %v5825_v19 = vld [vmem:[%s7960_s1 + $0x150] sm:$0xff]  }
  0x35   : > { %3350 = vmatprep.subr.bf16.mxu0 %v5994_v1 }
  0x36   : > { %v860_v30 = vsel %vm853_vm1, %v857_v5, %v859_v20  ;;  %v1065_v34 = vsel %vm853_vm1, %v1062_v11, %v1064_v25  ;;  %v862_v47 = vsel %vm853_vm1, %v859_v20, %v861_v37  ;;  %v1067_v51 = vsel %vm853_vm1, %v1064_v25, %v1066_v43  ;;  %v5794_v5 = vld [vmem:[%s6109_s30 + $0x40] sm:$0xff]   ;;  %v5839_v43 = vld [vmem:[%s7960_s1 + $0x1b8] sm:$0xff]  }
  0x37   : > { %3174 = vmatpush1.bf16.msra.mxu1 %v5748_v31  ;;  %v574_v31 = vsel %vm538_vm0, %v569_v22, %v573_v23  ;;  %v1070_v11 = vrot.slane %v5794_v5, 1  ;;  %v5803_v22 = vld [vmem:[%s6109_s30 + $0x48] sm:$0xff]  }
  0x38   : > { %3351 = vmatpush1.bf16.msra.mxu0 %v5749_v33  ;;  %3175 = vmatprep.subr.bf16.mxu1 %v5994_v1  ;;  %v5787_v33 = vld [vmem:[%s7960_s1 + $0x120] sm:$0xff]   ;;  %v611_v35 = vshll.u32 %v5803_v22, 16 }
  0x39   : > { %3352 = vmatprep.subr.bf16.mxu0 %v5994_v1  ;;  %v1071_v20 = vsel %vm853_vm1, %v1068_v59, %v1070_v11  ;;  %v5845_v59 = vld [vmem:[%s7960_s1 + $0x1c8] sm:$0xff]  }
  0x3b   : > { %3176 = vmatpush1.bf16.msra.mxu1 %v5750_v36  ;;  %v5788_v36 = vld [vmem:[%s6109_s30 + $0x30] sm:$0xff]  }
  0x3c   : > { %3353 = vmatpush1.bf16.msra.mxu0 %v5751_v38  ;;  %3177 = vmatprep.subr.bf16.mxu1 %v5994_v1  ;;  %v5808_v38 = vld [vmem:[%s7960_s1 + $0x188] sm:$0xff]   ;;  %v587_v49 = vshll.u32 %v5788_v36, 16  ;;  %v591_v61 = vshrl.u32 %v5788_v36, 16  ;;  %v5837_v36 = vld [vmem:[%s7960_s1 + $0x1b0] sm:$0xff]  }
  0x3d   : > { %3354 = vmatprep.subr.bf16.mxu0 %v5994_v1 }
  0x3e   : > { %v589_v56 = vrot.slane %v587_v49, 1 }
  0x3f   : > { %3178 = vmatpush1.bf16.msra.mxu1 %v5752_v39  ;;  %v577_v39 = vor.u32 %v575_v29, %v573_v23 }
  0x40   : > { %3355 = vmatpush1.bf16.msra.mxu0 %v5753_v40  ;;  %3179 = vmatprep.subr.bf16.mxu1 %v5994_v1  ;;  %v581_v40 = vrot.slane %v579_v32, 1  ;;  %v593_v8 = vor.u32 %v591_v61, %v589_v56  ;;  %v5804_v32 = vld [vmem:[%s6109_s30 + $0x50] sm:$0xff]   ;;  %v5805_v61 = vld [vmem:[%s6109_s30 + $0x40] sm:$0xff]  }
  0x41   : > { %3356 = vmatprep.subr.bf16.mxu0 %v5994_v1 }
  0x42   : > { %v582_v48 = vsel %vm538_vm0, %v577_v39, %v581_v40  ;;  %v598_v17 = vsel %vm538_vm0, %v593_v8, %v597_v9 }
  0x43   : > { %3180 = vmatpush1.bf16.msra.mxu1 %v5754_v41  ;;  %v5792_v41 = vld [vmem:[%s7960_s1 + $0x128] sm:$0xff]  }
  0x44   : > { %3357 = vmatpush1.bf16.msra.mxu0 %v5755_v42  ;;  %3181 = vmatprep.subr.bf16.mxu1 %v5994_v1  ;;  %v5780_v42 = vld [vmem:[%s6109_s30 + $0x18] sm:$0xff]  }
  0x45   : > { %3358 = vmatprep.subr.bf16.mxu0 %v5994_v1 }
  0x47   : > { %3182 = vmatpush1.bf16.msra.mxu1 %v5756_v44  ;;  %v5786_v44 = vld [vmem:[%s6109_s30 + $0x28] sm:$0xff]  }
  0x48   : > { %3359 = vmatpush1.bf16.msra.mxu0 %v5757_v45  ;;  %3183 = vmatprep.subr.bf16.mxu1 %v5994_v1  ;;  %v583_v45 = vshrl.u32 %v5783_v24, 16  ;;  %v863_v53 = vrot.slane %v5786_v44, 1  ;;  %v5832_v24 = vld [vmem:[%s7960_s1 + $0x1a8] sm:$0xff]   ;;  %v5800_v44 = vld [vmem:[%s6109_s30 + $0x38] sm:$0xff]  }
  0x49   : > { %3360 = vmatprep.subr.bf16.mxu0 %v5994_v1 }
  0x4a   : > { %v585_v55 = vor.u32 %v583_v45, %v581_v40  ;;  %v5809_v40 = vld [vmem:[%s6109_s30 + $0x50] sm:$0xff]   ;;  %v1074_v45 = vrot.slane %v5804_v32, 1 }
  0x4b   : > { %3184 = vmatpush1.bf16.msra.mxu1 %v5758_v50  ;;  %v5799_v50 = vld [vmem:[%s7960_s1 + $0x130] sm:$0xff]  }
  0x4c   : > { %3361 = vmatpush1.bf16.msra.mxu0 %v5759_v52  ;;  %5530 = vmatprep.subr.bf16.mxu1 %v5994_v1  ;;  %v5814_v52 = vld [vmem:[%s7960_s1 + $0x190] sm:$0xff]   ;;  %v590_v0 = vsel %vm538_vm0, %v585_v55, %v589_v56  ;;  %v871_v55 = vrot.slane %v5806_v46, 1  ;;  %v5815_v56 = vld [vmem:[%s6109_s30 + $0x58] sm:$0xff]   ;;  %v5830_v46 = vld [vmem:[%s6109_s30 + $0x68] sm:$0xff]  }
  0x4d   : > { %3507 = vmatprep.subr.bf16.mxu0 %v5994_v1 }
  0x4e   : > { %3186 = vmatmul.mubr.bf16.vlgmr.msra.gmra.mrb[0].mxu1 %v5764_v58  ;;  %v5785_v58 = vld [vmem:[%s6109_s30 + $0x20] sm:$0xff]  }
  0x4f   : > { %3363 = vmatmul.mubr.bf16.vlgmr.msra.gmra.mrb[0].mxu0 %v856_v62  ;;  %3193 = vmatprep.mubr.bf16.mxu1 %v558_v63  ;;  %v5820_v62 = vld [vmem:[%s7960_s1 + $0x198] sm:$0xff]   ;;  %v864_v63 = vsel %vm853_vm1, %v861_v37, %v863_v53 }
  0x50   : > { %3508 = vmatpush1.bf16.msra.mxu0 %v5767_v60  ;;  %3370 = vmatprep.mubr.bf16.mxu0 %v1061_v3  ;;  %v5791_v60 = vld [vmem:[%s6109_s30 + $0x30] sm:$0xff]   ;;  %v5813_v3 = vld [vmem:[%s7960_s1 + $0x140] sm:$0xff]  }
  0x51   : > { %3509 = vmatprep.subr.bf16.mxu0 %v5994_v1  ;;  %5546 = vmatpush1.bf16.msra.mxu1 %v5802_v26 }
  0x52   : > { %5531 = vmatprep.subr.bf16.mxu1 %v5994_v1 }
  0x54   : > { %3510 = vmatpush1.bf16.msra.mxu0 %v5772_v6  ;;  %v865_v6 = vrot.slane %v5791_v60, 1 }
  0x55   : > { %3511 = vmatprep.subr.bf16.mxu0 %v5994_v1  ;;  %5547 = vmatpush1.bf16.msra.mxu1 %v5808_v38  ;;  %v5838_v38 = vld [vmem:[%s7960_s1 + $0x160] sm:$0xff]  }
  0x56   : > { %3194 = vmatmul.mubr.bf16.gmra.mrb[4].mxu1 %v5770_v10  ;;  %5532 = vmatprep.subr.bf16.mxu1 %v5994_v1  ;;  %v5819_v10 = vld [vmem:[%s7960_s1 + $0x148] sm:$0xff]   ;;  %v866_v16 = vsel %vm853_vm1, %v863_v53, %v865_v6 }
  0x57   : > { %3371 = vmatmul.mubr.bf16.gmra.mrb[4].mxu0 %v858_v14  ;;  %3201 = vmatprep.mubr.bf16.mxu1 %v566_v15  ;;  %v5796_v14 = vld [vmem:[%s6109_s30 + $0x38] sm:$0xff]   ;;  %v599_v15 = vshrl.u32 %v5793_v54, 16  ;;  %v5846_v54 = vld [vmem:[%s7960_s1 + $0x168] sm:$0xff]  }
  0x58   : > { %3378 = vmatprep.mubr.bf16.mxu0 %v1063_v18  ;;  %3512 = vmatpush1.bf16.msra.mxu0 %v5777_v13  ;;  %v5790_v13 = vld [vmem:[%s6109_s30 + $0x28] sm:$0xff]   ;;  %v603_v18 = vshll.u32 %v5797_v7, 16  ;;  %v867_v23 = vrot.slane %v5796_v14, 1 }
  0x59   : > { %3513 = vmatprep.subr.bf16.mxu0 %v5994_v1  ;;  %5548 = vmatpush1.bf16.msra.mxu1 %v5814_v52  ;;  %v601_v25 = vor.u32 %v599_v15, %v597_v9  ;;  %v5844_v52 = vld [vmem:[%s7960_s1 + $0x1c0] sm:$0xff]   ;;  %v5818_v15 = vld [vmem:[%s6109_s30 + $0x58] sm:$0xff]  }
  0x5a   : > { %5533 = vmatprep.subr.bf16.mxu1 %v5994_v1  ;;  %v605_v26 = vrot.slane %v603_v18, 1  ;;  %v5821_v9 = vld [vmem:[%s6109_s30 + $0x60] sm:$0xff]  }
  0x5c   : > { %3514 = vmatpush1.bf16.msra.mxu0 %v5782_v21  ;;  %v5798_v21 = vld [vmem:[%s6109_s30 + $0x48] sm:$0xff]  }
  0x5d   : > { %3515 = vmatprep.subr.bf16.mxu0 %v5994_v1  ;;  %5549 = vmatpush1.bf16.msra.mxu1 %v5820_v62  ;;  %v1072_v29 = vrot.slane %v5798_v21, 1  ;;  %v5812_v62 = vld [vmem:[%s6109_s30 + $0x50] sm:$0xff]   ;;  %v5858_v21 = vld [vmem:[%s7960_s1 + $0x1e0] sm:$0xff]  }
  0x5e   : > { %3202 = vmatmul.mubr.bf16.gmra.mrb[8].mxu1 %v5775_v27  ;;  %5534 = vmatprep.subr.bf16.mxu1 %v5994_v1  ;;  %v5831_v27 = vld [vmem:[%s7960_s1 + $0x158] sm:$0xff]   ;;  %v873_v8 = vrot.slane %v5812_v62, 1 }
  0x5f   : > { %3379 = vmatmul.mubr.bf16.gmra.mrb[8].mxu0 %v860_v30  ;;  %3209 = vmatprep.mubr.bf16.mxu1 %v574_v31  ;;  %v5801_v30 = vld [vmem:[%s6109_s30 + $0x40] sm:$0xff]   ;;  %v607_v31 = vshrl.u32 %v5797_v7, 16  ;;  %v1073_v37 = vsel %vm853_vm1, %v1070_v11, %v1072_v29  ;;  %v1075_v53 = vsel %vm853_vm1, %v1072_v29, %v1074_v45  ;;  %v5855_v7 = vld [vmem:[%s7960_s1 + $0x170] sm:$0xff]   ;;  %v5859_v29 = vld [vmem:[%s7960_s1 + $0x1e8] sm:$0xff]  }
  0x60   : > { %3386 = vmatprep.mubr.bf16.mxu0 %v1065_v34  ;;  %3516 = vmatpush1.bf16.msra.mxu0 %v5787_v33  ;;  %v868_v33 = vsel %vm853_vm1, %v865_v6, %v867_v23  ;;  %v606_v34 = vsel %vm538_vm0, %v601_v25, %v605_v26  ;;  %v869_v39 = vrot.slane %v5801_v30, 1  ;;  %v5816_v6 = vld [vmem:[%s6109_s30 + $0x60] sm:$0xff]   ;;  %v874_v18 = vsel %vm853_vm1, %v871_v55, %v873_v8  ;;  %v5817_v30 = vld [vmem:[%s6109_s30 + $0x50] sm:$0xff]  }
  0x61   : > { %3517 = vmatprep.subr.bf16.mxu0 %v5994_v1  ;;  %5550 = vmatpush1.bf16.msra.mxu1 %v5826_v12  ;;  %v5852_v12 = vld [vmem:[%s7960_s1 + $0x1d8] sm:$0xff]   ;;  %v1078_v14 = vrot.slane %v5816_v6, 1 }
  0x62   : > { %5535 = vmatprep.subr.bf16.mxu1 %v5994_v1  ;;  %v870_v49 = vsel %vm853_vm1, %v867_v23, %v869_v39  ;;  %v875_v23 = vrot.slane %v5818_v15, 1  ;;  %v5848_v15 = vld [vmem:[%s6109_s30 + $0x88] sm:$0xff]  }
  0x64   : > { %3518 = vmatpush1.bf16.msra.mxu0 %v5792_v41  ;;  %v609_v41 = vor.u32 %v607_v31, %v605_v26  ;;  %v5827_v26 = vld [vmem:[%s6109_s30 + $0x68] sm:$0xff]   ;;  %v876_v31 = vsel %vm853_vm1, %v873_v8, %v875_v23 }
  0x65   : > { %3519 = vmatprep.subr.bf16.mxu0 %v5994_v1  ;;  %5551 = vmatpush1.bf16.msra.mxu1 %v5832_v24  ;;  %v5864_v24 = vld [vmem:[%s7960_s1 + $0x178] sm:$0xff]   ;;  %v5835_v8 = vld [vmem:[%s6109_s30 + $0x68] sm:$0xff]  }
  0x66   : > { %3210 = vmatmul.mubr.bf16.gmra.mrb[12].mxu1 %v5780_v42  ;;  %5536 = vmatprep.subr.bf16.mxu1 %v5994_v1  ;;  %v613_v42 = vrot.slane %v611_v35, 1  ;;  %v643_v35 = vshll.u32 %v5827_v26, 16 }
  0x67   : > { %3387 = vmatmul.mubr.bf16.gmra.mrb[12].mxu0 %v862_v47  ;;  %3217 = vmatprep.mubr.bf16.mxu1 %v582_v48  ;;  %v615_v47 = vshrl.u32 %v5803_v22, 16  ;;  %v5810_v48 = vld [vmem:[%s6109_s30 + $0x58] sm:$0xff]  }
  0x68   : > { %3394 = vmatprep.mubr.bf16.mxu0 %v1067_v51  ;;  %3520 = vmatpush1.bf16.msra.mxu0 %v5799_v50  ;;  %v614_v50 = vsel %vm538_vm0, %v609_v41, %v613_v42  ;;  %v619_v51 = vshll.u32 %v5809_v40, 16  ;;  %v1076_v60 = vrot.slane %v5810_v48, 1  ;;  %v645_v41 = vrot.slane %v643_v35, 1 }
  0x69   : > { %3521 = vmatprep.subr.bf16.mxu0 %v5994_v1  ;;  %5552 = vmatpush1.bf16.msra.mxu1 %v5837_v36  ;;  %v5865_v36 = vld [vmem:[%s7960_s1 + $0x1f0] sm:$0xff]  }
  0x6a   : > { %5537 = vmatprep.subr.bf16.mxu1 %v5994_v1  ;;  %v1077_v5 = vsel %vm853_vm1, %v1074_v45, %v1076_v60  ;;  %v1079_v22 = vsel %vm853_vm1, %v1076_v60, %v1078_v14  ;;  %v5823_v45 = vld [vmem:[%s6109_s30 + $0x58] sm:$0xff]  }
  0x6c   : > { %3522 = vmatpush1.bf16.msra.mxu0 %v5807_v57  ;;  %v617_v57 = vor.u32 %v615_v47, %v613_v42  ;;  %v5833_v42 = vld [vmem:[%s6109_s30 + $0x70] sm:$0xff]  }
  0x6d   : > { %3523 = vmatprep.subr.bf16.mxu0 %v5994_v1  ;;  %5553 = vmatpush1.bf16.msra.mxu1 %v5839_v43  ;;  %v5866_v43 = vld [vmem:[%s7960_s1 + $0x1f8] sm:$0xff]   ;;  %v655_v60 = vshrl.u32 %v5833_v42, 16 }
  0x6e   : > { %3218 = vmatmul.mubr.bf16.gmra.mrb[16].mxu1 %v5785_v58  ;;  %5538 = vmatprep.subr.bf16.mxu1 %v5994_v1  ;;  %v621_v58 = vrot.slane %v619_v51, 1 }
  0x6f   : > { %3395 = vmatmul.mubr.bf16.gmra.mrb[16].mxu0 %v864_v63  ;;  %3225 = vmatprep.mubr.bf16.mxu1 %v590_v0  ;;  %v623_v63 = vshrl.u32 %v5809_v40, 16  ;;  %v872_v0 = vsel %vm853_vm1, %v869_v39, %v871_v55 }
  0x70   : > { %3402 = vmatprep.mubr.bf16.mxu0 %v1069_v4  ;;  %3524 = vmatpush1.bf16.msra.mxu0 %v5813_v3  ;;  %v622_v2 = vsel %vm538_vm0, %v617_v57, %v621_v58  ;;  %v627_v3 = vshll.u32 %v5815_v56, 16  ;;  %v5851_v4 = vld [vmem:[%s7960_s1 + $0x1d0] sm:$0xff]  }
  0x71   : > { %3525 = vmatprep.subr.bf16.mxu0 %v5994_v1  ;;  %5554 = vmatpush1.bf16.msra.mxu1 %v5844_v52  ;;  %v5834_v52 = vld [vmem:[%s6109_s30 + $0x78] sm:$0xff]  }
  0x72   : > { %5539 = vmatprep.subr.bf16.mxu1 %v5994_v1  ;;  %v629_v11 = vrot.slane %v627_v3, 1  ;;  %v1084_v57 = vrot.slane %v5834_v52, 1 }
  0x74   : > { %3526 = vmatpush1.bf16.msra.mxu0 %v5819_v10  ;;  %v625_v10 = vor.u32 %v623_v63, %v621_v58  ;;  %v5829_v58 = vld [vmem:[%s6109_s30 + $0x60] sm:$0xff]  }
  0x75   : > { %3527 = vmatprep.subr.bf16.mxu0 %v5994_v1  ;;  %5555 = vmatpush1.bf16.msra.mxu1 %v5845_v59  ;;  %v5836_v59 = vld [vmem:[%s6109_s30 + $0x70] sm:$0xff]  }
  0x76   : > { %3226 = vmatmul.mubr.bf16.gmra.mrb[20].mxu1 %v5790_v13  ;;  %5540 = vmatprep.subr.bf16.mxu1 %v5994_v1  ;;  %v5811_v13 = vld [vmem:[%s6109_s30 + $0x48] sm:$0xff]   ;;  %v881_v3 = vrot.slane %v5836_v59, 1 }
  0x77   : > { %3403 = vmatmul.mubr.bf16.gmra.mrb[20].mxu0 %v866_v16  ;;  %3233 = vmatprep.mubr.bf16.mxu1 %v598_v17  ;;  %v631_v16 = vshrl.u32 %v5815_v56, 16  ;;  %v5822_v17 = vld [vmem:[%s6109_s30 + $0x68] sm:$0xff]   ;;  %v5840_v56 = vld [vmem:[%s6109_s30 + $0x78] sm:$0xff]  }
  0x78   : > { %3410 = vmatprep.mubr.bf16.mxu0 %v1071_v20  ;;  %3528 = vmatpush1.bf16.msra.mxu0 %v5825_v19  ;;  %v630_v19 = vsel %vm538_vm0, %v625_v10, %v629_v11  ;;  %v635_v20 = vshll.u32 %v5821_v9, 16  ;;  %v1080_v25 = vrot.slane %v5822_v17, 1  ;;  %v659_v63 = vshll.u32 %v5840_v56, 16 }
  0x79   : > { %3529 = vmatprep.subr.bf16.mxu0 %v5994_v1  ;;  %5556 = vmatpush1.bf16.msra.mxu1 %v5851_v4 }
  0x7a   : > { %5541 = vmatprep.subr.bf16.mxu1 %v5994_v1 }
  0x7c   : > { %3530 = vmatpush1.bf16.msra.mxu0 %v5831_v27  ;;  %v633_v27 = vor.u32 %v631_v16, %v629_v11  ;;  %v5843_v11 = vld [vmem:[%s6109_s30 + $0x78] sm:$0xff]  }
  0x7d   : > { %3531 = vmatprep.subr.bf16.mxu0 %v5994_v1  ;;  %5557 = vmatpush1.bf16.msra.mxu1 %v5852_v12  ;;  %v663_v12 = vshrl.u32 %v5840_v56, 16  ;;  %v883_v16 = vrot.slane %v5843_v11, 1  ;;  %v5867_v56 = vld [vmem:[%s6109_s30 + $0x8] sm:$0xfc]  }
  0x7e   : > { %3234 = vmatmul.mubr.bf16.gmra.mrb[24].mxu1 %v5795_v28  ;;  %5542 = vmatprep.subr.bf16.mxu1 %v5994_v1  ;;  %v637_v28 = vrot.slane %v635_v20, 1  ;;  %v1088_v20 = vrot.slane %v5848_v15, 1 }
  0x7f   : > { %3411 = vmatmul.mubr.bf16.gmra.mrb[24].mxu0 %v868_v33  ;;  %3241 = vmatprep.mubr.bf16.mxu1 %v606_v34  ;;  %v5824_v33 = vld [vmem:[%s6109_s30 + $0x60] sm:$0xff]   ;;  %v639_v34 = vshrl.u32 %v5821_v9, 16 }
  0x80   : > { %3418 = vmatprep.mubr.bf16.mxu0 %v1073_v37  ;;  %3532 = vmatpush1.bf16.msra.mxu0 %v5838_v38  ;;  %v638_v32 = vsel %vm538_vm0, %v633_v27, %v637_v28  ;;  %v1081_v37 = vsel %vm853_vm1, %v1078_v14, %v1080_v25  ;;  %v5828_v38 = vld [vmem:[%s6109_s30 + $0x70] sm:$0xff]   ;;  %v877_v39 = vrot.slane %v5824_v33, 1 }
  0x81   : > { %3533 = vmatprep.subr.bf16.mxu0 %v5994_v1  ;;  %5558 = vmatpush1.bf16.msra.mxu1 %v5858_v21  ;;  %v641_v40 = vor.u32 %v639_v34, %v637_v28  ;;  %v5842_v21 = vld [vmem:[%s6109_s30 + $0x70] sm:$0xff]   ;;  %v5861_v34 = vld [vmem:[%s6109_s30 + $0x98] ss:$0 sps:$4 sm:$0x11]  }
  0x82   : > { %5543 = vmatprep.subr.bf16.mxu1 %v5994_v1  ;;  %v878_v47 = vsel %vm853_vm1, %v875_v23, %v877_v39  ;;  %v884_v23 = vsel %vm853_vm1, %v881_v3, %v883_v16  ;;  %v5854_v28 = vld [vmem:[%s6109_s30 + $0x90] sm:$0xff]  }
  0x83   : > { %v646_v48 = vsel %vm538_vm0, %v641_v40, %v645_v41  ;;  %v1090_v35 = vrot.slane %v5854_v28, 1  ;;  %v5869_v40 = vld [vmem:[%s6109_s30 + $0x38] sm:$0xff]  }
  0x84   : > { %3534 = vmatpush1.bf16.msra.mxu0 %v5846_v54 }
  0x85   : > { %3535 = vmatprep.subr.bf16.mxu0 %v5994_v1  ;;  %5559 = vmatpush1.bf16.msra.mxu1 %v5859_v29 }
  0x86   : > { %3242 = vmatmul.mubr.bf16.gmra.mrb[28].mxu1 %v5800_v44  ;;  %5544 = vmatprep.subr.bf16.mxu1 %v5994_v1  ;;  %v1082_v44 = vrot.slane %v5828_v38, 1  ;;  %v5863_v38 = vld [vmem:[%s6109_s30 + $0x90] ss:$0 sps:$4 sm:$0x11]  }
  0x87   : > { %3419 = vmatmul.mubr.bf16.gmra.mrb[28].mxu0 %v870_v49  ;;  %3249 = vmatprep.mubr.bf16.mxu1 %v614_v50  ;;  %v647_v49 = vshrl.u32 %v5827_v26, 16  ;;  %v651_v50 = vshll.u32 %v5833_v42, 16  ;;  %v889_v52 = vrot.slane %v5863_v38, 1 }
  0x88   : > { %3426 = vmatprep.mubr.bf16.mxu0 %v1075_v53  ;;  %3536 = vmatpush1.bf16.msra.mxu0 %v5855_v7  ;;  %v1083_v51 = vsel %vm853_vm1, %v1080_v25, %v1082_v44  ;;  %v879_v53 = vrot.slane %v5830_v46, 1  ;;  %v5847_v7 = vld [vmem:[%s6109_s30 + $0x80] sm:$0xff]   ;;  %v1092_v46 = vrot.slane %v5861_v34, 1 }
  0x89   : > { %3537 = vmatprep.subr.bf16.mxu0 %v5994_v1  ;;  %5560 = vmatpush1.bf16.msra.mxu1 %v5865_v36  ;;  %v649_v54 = vor.u32 %v647_v49, %v645_v41  ;;  %v653_v55 = vrot.slane %v651_v50, 1  ;;  %v671_v25 = vshrl.u32 %v5847_v7, 16  ;;  %v5857_v36 = vld [vmem:[%s6109_s30 + $0x88] sm:$0xff]   ;;  %v2050_v50 = vshrl.u32 %v5869_v40, 16 }
  0x8a   : > { %5545 = vmatprep.subr.bf16.mxu1 %v5994_v1  ;;  %v882_v9 = vsel %vm853_vm1, %v879_v53, %v881_v3  ;;  %v1093_v3 = vsel %vm853_vm1, %v1090_v35, %v1092_v46 }
  0x8b   : > { %v654_v62 = vsel %vm538_vm0, %v649_v54, %v653_v55  ;;  %v657_v4 = vor.u32 %v655_v60, %v653_v55  ;;  %v2052_v59 = vrot.slane %v2050_v50, 2  ;;  %v5872_v60 = vld [vmem:[%s6109_s30 + $0x10] sm:$0xff]  }
  0x8c   : > { %3538 = vmatpush1.bf16.msra.mxu0 %v5864_v24 }
  0x8d   : > { %3684 = vmatprep.subr.bf16.mxu0 %v5994_v1  ;;  %5561 = vmatpush1.bf16.msra.mxu1 %v5866_v43  ;;  %v5870_v43 = vld [vmem:[%s6109_s30 + $0x40] sm:$0xff]  }
  0x8e   : > { %3250 = vmatmul.mubr.bf16.gmra.mrb[32].mxu1 %v5805_v61  ;;  %v880_v61 = vsel %vm853_vm1, %v877_v39, %v879_v53  ;;  %v2053_v53 = vshll.u32 %v5869_v40, 16  ;;  %v2059_v54 = vshrl.u32 %v5870_v43, 16  ;;  %v2062_v55 = vshll.u32 %v5870_v43, 16  ;;  %v6468_v40 = vld [vmem:[%s6109_s30 + $0x48] sm:$0xff]  }
  0x8f   : > { %3427 = vmatmul.mubr.bf16.gmra.mrb[32].mxu0 %v872_v0  ;;  %3257 = vmatprep.mubr.bf16.mxu1 %v622_v2  ;;  %v5841_v0 = vld [vmem:[%s6109_s30 + $0x80] sm:$0xff]   ;;  %v1085_v2 = vsel %vm853_vm1, %v1082_v44, %v1084_v57  ;;  %v1091_v44 = vsel %vm853_vm1, %v1088_v20, %v1090_v35 }
  0x90   : > { %3434 = vmatprep.mubr.bf16.mxu0 %v1077_v5  ;;  %v661_v5 = vrot.slane %v659_v63, 1  ;;  %v1086_v6 = vrot.slane %v5841_v0, 1  ;;  %v2061_v63 = vrot.slane %v2059_v54, 2  ;;  %v2064_v0 = vrot.slane %v2062_v55, 3  ;;  %v5908_v55 = vld [vmem:[%s7960_s1 + $0x208] sm:$0xff]  }
  0x92   : > { %v662_v10 = vsel %vm538_vm0, %v657_v4, %v661_v5  ;;  %v1087_v14 = vsel %vm853_vm1, %v1084_v57, %v1086_v6  ;;  %v665_v17 = vor.u32 %v663_v12, %v661_v5  ;;  %v1089_v27 = vsel %vm853_vm1, %v1086_v6, %v1088_v20  ;;  %v5871_v57 = vld [vmem:[%s6109_s30 + $0x8] sm:$0xfe]   ;;  %v5868_v4 = vld [vmem:[%s6109_s30 + $0x10] sm:$0xff]  }
  0x93   : > { %v1598_v5 = vrot.slane %v5867_v56, 2  ;;  %v1262_v6 = vshrl.u32 %v5871_v57, 16  ;;  %v2065_v12 = vor.u32 %v2064_v0, %v2061_v63  ;;  %v1599_v15 = vrot.slane %v5868_v4, 2  ;;  %v6491_v63 = vld [vmem:[%s6109_s30 + $0x50] sm:$0xff]   ;;  %v5885_v0 = vld [vmem:[%s6109_s30 + $0x28] sm:$0xff]  }
  0x95   : > { %v1600_v28 = vsel %vm1597_vm3, %v1598_v5, %v1599_v15 }
  0x96   : > { %3258 = vmatmul.mubr.bf16.gmra.mrb[36].mxu1 %v5811_v13  ;;  %v667_v13 = vshll.u32 %v5847_v7, 16  ;;  %v1265_v7 = vshll.u32 %v5871_v57, 16 }
  0x97   : > { %3435 = vmatmul.mubr.bf16.gmra.mrb[36].mxu0 %v874_v18  ;;  %3265 = vmatprep.mubr.bf16.mxu1 %v630_v19  ;;  %v5853_v19 = vld [vmem:[%s6109_s30 + $0x88] sm:$0xff]  }
  0x98   : > { %3442 = vmatprep.mubr.bf16.mxu0 %v1079_v22  ;;  %v669_v18 = vrot.slane %v667_v13, 1  ;;  %v5850_v22 = vld [vmem:[%s6109_s30 + $0x80] sm:$0xff]   ;;  %v675_v26 = vshll.u32 %v5853_v19, 16 }
  0x99   : > { %v885_v29 = vrot.slane %v5850_v22, 1 }
  0x9a   : > { %v670_v24 = vsel %vm538_vm0, %v665_v17, %v669_v18  ;;  %v677_v33 = vrot.slane %v675_v26, 1  ;;  %v1264_v17 = vrot.slane %v1262_v6, 1  ;;  %v6500_v6 = vld [vmem:[%s6109_s30 + $0x28] sm:$0xff]  }
  0x9b   : > { %v886_v41 = vsel %vm853_vm1, %v883_v16, %v885_v29  ;;  %v5877_v16 = vld [vmem:[%s6109_s30 + $0x18] sm:$0xff]  }
  0x9c   : > { %v1282_v34 = vshll.u32 %v5877_v16, 16 }
  0x9e   : > { %3266 = vmatmul.mubr.bf16.gmra.mrb[40].mxu1 %v5817_v30  ;;  %v5860_v30 = vld [vmem:[%s6109_s30 + $0x90] ss:$0 sps:$4 sm:$0x11]  }
  0x9f   : > { %3443 = vmatmul.mubr.bf16.gmra.mrb[40].mxu0 %v876_v31  ;;  %3273 = vmatprep.mubr.bf16.mxu1 %v638_v32  ;;  %v5849_v31 = vld [vmem:[%s6109_s30 + $0x78] sm:$0xff]   ;;  %v673_v32 = vor.u32 %v671_v25, %v669_v18  ;;  %v683_v39 = vshll.u32 %v5860_v30, 16  ;;  %v1279_v30 = vshrl.u32 %v5877_v16, 16  ;;  %v1816_v16 = vrot.slane %v6491_v63, 2 }
  0xa0   : > { %3450 = vmatprep.mubr.bf16.mxu0 %v1081_v37  ;;  %v679_v37 = vshrl.u32 %v5853_v19, 16  ;;  %v6457_v18 = vld [vmem:[%s6109_s30 + $0x38] sm:$0xff]   ;;  %v5874_v19 = vld [vmem:[%s6109_s30 + $0x40] sm:$0xff]  }
  0xa1   : > { %v678_v42 = vsel %vm538_vm0, %v673_v32, %v677_v33  ;;  %v685_v49 = vrot.slane %v683_v39, 1  ;;  %v1810_v32 = vrot.slane %v6457_v18, 2 }
  0xa6   : > { %3274 = vmatmul.mubr.bf16.gmra.mrb[44].mxu1 %v5823_v45  ;;  %v887_v45 = vrot.slane %v5857_v36, 1 }
  0xa7   : > { %3451 = vmatmul.mubr.bf16.gmra.mrb[44].mxu0 %v878_v47  ;;  %3281 = vmatprep.mubr.bf16.mxu1 %v646_v48  ;;  %v6440_v47 = vld [vmem:[%s7960_s1 + $0x200] sm:$0xff]   ;;  %v681_v48 = vor.u32 %v679_v37, %v677_v33  ;;  %v1812_v33 = vrot.slane %v5874_v19, 2  ;;  %v1300_v19 = vshll.u32 %v5885_v0, 16 }
  0xa8   : > { %3458 = vmatprep.mubr.bf16.mxu0 %v1083_v51  ;;  %v5856_v51 = vld [vmem:[%s6109_s30 + $0x80] sm:$0xff]   ;;  %5478 = vmatprep.subr.bf16.mxu1 %v6440_v47  ;;  %v890_v20 = vsel %vm853_vm1, %v887_v45, %v889_v52 }
  0xa9   : > { %v1813_v43 = vsel %vm1597_vm3, %v1810_v32, %v1812_v33  ;;  %v6479_v52 = vld [vmem:[%s6109_s30 + $0x20] sm:$0xff]  }
  0xae   : > { %3282 = vmatmul.mubr.bf16.gmra.mrb[48].mxu1 %v5829_v58  ;;  %v888_v58 = vsel %vm853_vm1, %v885_v29, %v887_v45  ;;  %v5875_v29 = vld [vmem:[%s6109_s30 + $0x18] sm:$0xff]  }
  0xaf   : > { %3459 = vmatmul.mubr.bf16.gmra.mrb[48].mxu0 %v880_v61  ;;  %3289 = vmatprep.mubr.bf16.mxu1 %v654_v62  ;;  %v686_v61 = vsel %vm538_vm0, %v681_v48, %v685_v49  ;;  %v2055_v62 = vrot.slane %v2053_v53, 3  ;;  %v1601_v39 = vrot.slane %v5875_v29, 2  ;;  %v5884_v45 = vld [vmem:[%s6109_s30 + $0x58] sm:$0xff]   ;;  %v1814_v53 = vrot.slane %v6468_v40, 2 }
  0xb0   : > { %3466 = vmatprep.mubr.bf16.mxu0 %v1085_v2  ;;  %v5876_v2 = vld [vmem:[%s6109_s30 + $0x48] sm:$0xff]   ;;  %v2086_v57 = vshrl.u32 %v5884_v45, 16 }
  0xb1   : > { %v6453_v11 = vor.u32 %v2055_v62, %v2052_v59  ;;  %v2068_v13 = vshrl.u32 %v5876_v2, 16  ;;  %v1603_v62 = vrot.slane %v6479_v52, 2  ;;  %v1817_v29 = vsel %vm1597_vm3, %v1814_v53, %v1816_v16  ;;  %v5893_v52 = vld [vmem:[%s6109_s30 + $0x38] sm:$0xff]  }
  0xb3   : > { %v2070_v25 = vrot.slane %v2068_v13, 2  ;;  %v1604_v13 = vsel %vm1597_vm3, %v1601_v39, %v1603_v62 }
  0xb6   : > { %3290 = vmatmul.mubr.bf16.gmra.mrb[52].mxu1 %v5835_v8  ;;  %v1270_v8 = vshrl.u32 %v5872_v60, 16 }
  0xb7   : > { %3467 = vmatmul.mubr.bf16.gmra.mrb[52].mxu0 %v882_v9  ;;  %3297 = vmatprep.mubr.bf16.mxu1 %v662_v10  ;;  %v1273_v9 = vshll.u32 %v5872_v60, 16  ;;  %v5862_v10 = vld [vmem:[%s6109_s30 + $0x88] sm:$0xff]  }
  0xb8   : > { %3474 = vmatprep.mubr.bf16.mxu0 %v1087_v14  ;;  %v2071_v14 = vshll.u32 %v5876_v2, 16  ;;  %v1272_v22 = vrot.slane %v1270_v8, 1  ;;  %v5917_v2 = vld [vmem:[%s7960_s1 + $0x210] sm:$0xff]  }
  0xba   : > { %v2073_v26 = vrot.slane %v2071_v14, 3  ;;  %v1297_v14 = vshrl.u32 %v5885_v0, 16  ;;  %v6563_v0 = vld [vmem:[%s6109_s30 + $0x38] sm:$0xff]  }
  0xbc   : > { %v2074_v36 = vor.u32 %v2073_v26, %v2070_v25  ;;  %v5889_v26 = vld [vmem:[%s6109_s30 + $0x30] sm:$0xff]  }
  0xbe   : > { %3298 = vmatmul.mubr.bf16.gmra.mrb[56].mxu1 %v5842_v21  ;;  %v1267_v21 = vrot.slane %v1265_v7, 2  ;;  %v2075_v48 = vsel %vm2004_vm2, %v2065_v12, %v2074_v36  ;;  %v2088_v7 = vrot.slane %v2086_v57, 2 }
  0xbf   : > { %3475 = vmatmul.mubr.bf16.gmra.mrb[56].mxu0 %v884_v23  ;;  %3305 = vmatprep.mubr.bf16.mxu1 %v670_v24  ;;  %v2066_v23 = vsel %vm2004_vm2, %v6453_v11, %v2065_v12  ;;  %v1275_v24 = vrot.slane %v1273_v9, 2  ;;  %v5971_v9 = vld [vmem:[%s7960_s1 + $0x188] sm:$0xff]   ;;  %v5888_v12 = vld [vmem:[%s6109_s30 + $0x60] sm:$0xff]  }
  0xc0   : > { %3482 = vmatprep.mubr.bf16.mxu0 %v1089_v27  ;;  %v5880_v27 = vld [vmem:[%s6109_s30 + $0x50] sm:$0xff]   ;;  %v2098_v25 = vshll.u32 %v5888_v12, 16 }
  0xc1   : > { %v1276_v35 = vor.u32 %v1275_v24, %v1272_v22  ;;  %v2077_v37 = vshrl.u32 %v5880_v27, 16  ;;  %v2080_v38 = vshll.u32 %v5880_v27, 16  ;;  %v2095_v24 = vshrl.u32 %v5888_v12, 16  ;;  %v6575_v12 = vld [vmem:[%s6109_s30 + $0x68] sm:$0xff]  }
  0xc2   : > { %v1299_v27 = vrot.slane %v1297_v14, 1 }
  0xc3   : > { %v2079_v49 = vrot.slane %v2077_v37, 2  ;;  %v2082_v50 = vrot.slane %v2080_v38, 3  ;;  %v2100_v37 = vrot.slane %v2098_v25, 3  ;;  %v5895_v25 = vld [vmem:[%s6109_s30 + $0x40] sm:$0xff]  }
  0xc5   : > { %v2083_v60 = vor.u32 %v2082_v50, %v2079_v49  ;;  %v5974_v49 = vld [vmem:[%s7960_s1 + $0x1a0] sm:$0xff]  }
  0xc6   : > { %3306 = vmatmul.mubr.bf16.gmra.mrb[60].mxu1 %v5849_v31  ;;  %v1268_v31 = vor.u32 %v1267_v21, %v1264_v17  ;;  %v1605_v17 = vrot.slane %v6500_v6, 2  ;;  %v5972_v21 = vld [vmem:[%s7960_s1 + $0x190] sm:$0xff]  }
  0xc7   : > { %3483 = vmatmul.mubr.bf16.gmra.mrb[60].mxu0 %v886_v41  ;;  %3313 = vmatprep.mubr.bf16.mxu1 %v678_v42  ;;  %v1281_v41 = vrot.slane %v1279_v30, 1  ;;  %v5881_v42 = vld [vmem:[%s6109_s30 + $0x20] sm:$0xff]   ;;  %v1302_v30 = vrot.slane %v1300_v19, 2 }
  0xc8   : > { %3490 = vmatprep.mubr.bf16.mxu0 %v1091_v44  ;;  %v1284_v44 = vrot.slane %v1282_v34, 2  ;;  %v1277_v46 = vsel %vm1260_vm4, %v1268_v31, %v1276_v35  ;;  %v1288_v54 = vshrl.u32 %v5881_v42, 16  ;;  %v1291_v56 = vshll.u32 %v5881_v42, 16  ;;  %v5892_v31 = vld [vmem:[%s6109_s30 + $0x68] sm:$0xff]  }
  0xc9   : > { %v1606_v38 = vsel %vm1597_vm3, %v1603_v62, %v1605_v17  ;;  %v5924_v42 = vld [vmem:[%s7960_s1 + $0x228] sm:$0xff]   ;;  %v2107_v50 = vshll.u32 %v5892_v31, 16  ;;  %v5896_v62 = vld [vmem:[%s6109_s30 + $0x70] sm:$0xff]  }
  0xca   : > { %v1285_v59 = vor.u32 %v1284_v44, %v1281_v41  ;;  %v1290_v4 = vrot.slane %v1288_v54, 1  ;;  %v1293_v5 = vrot.slane %v1291_v56, 2  ;;  %v1306_v41 = vshrl.u32 %v5889_v26, 16 }
  0xcb   : > { %v2104_v44 = vshrl.u32 %v5892_v31, 16 }
  0xcc   : > { %v1286_v8 = vsel %vm1260_vm4, %v1276_v35, %v1285_v59  ;;  %v5973_v35 = vld [vmem:[%s7960_s1 + $0x198] sm:$0xff]  }
  0xcd   : > { %v2106_v57 = vrot.slane %v2104_v44, 2 }
  0xce   : > { %3314 = vmatmul.mubr.bf16.gmra.mrb[64].mxu1 %v5856_v51  ;;  %v1602_v51 = vsel %vm1597_vm3, %v1599_v15, %v1601_v39  ;;  %v5918_v15 = vld [vmem:[%s7960_s1 + $0x218] sm:$0xff]   ;;  %v6535_v39 = vld [vmem:[%s6109_s30 + $0x30] sm:$0xff]  }
  0xcf   : > { %3491 = vmatmul.mubr.bf16.gmra.mrb[64].mxu0 %v888_v58  ;;  %3321 = vmatprep.mubr.bf16.mxu1 %v686_v61  ;;  %v5970_v58 = vld [vmem:[%s7960_s1 + $0x180] sm:$0xff]   ;;  %v2089_v61 = vshll.u32 %v5884_v45, 16  ;;  %v1303_v45 = vor.u32 %v1302_v30, %v1299_v27 }
  0xd0   : > { %3498 = vmatprep.mubr.bf16.mxu0 %v1093_v3  ;;  %v1815_v3 = vsel %vm1597_vm3, %v1812_v33, %v1814_v53  ;;  %v5929_v53 = vld [vmem:[%s7960_s1 + $0x230] sm:$0xff]  }
  0xd6   : > { %3322 = vmatmul.mubr.bf16.gmra.mrb[68].mxu1 %v5862_v10  ;;  %v2091_v10 = vrot.slane %v2089_v61, 3  ;;  %v5975_v61 = vld [vmem:[%s7960_s1 + $0x1a8] sm:$0xff]  }
  0xd7   : > { %3499 = vmatmul.mubr.bf16.gmra.mrb[68].mxu0 %v890_v20  ;;  %3756 = vmatprep.mubr.bf16.mxu1 %v2066_v23  ;;  %v1294_v20 = vor.u32 %v1293_v5, %v1290_v4  ;;  %v6519_v23 = vld [vmem:[%s6109_s30 + $0x58] sm:$0xff]  }
  0xd8   : > { %3539 = vmatprep.mubr.bf16.mxu0 %v1600_v28  ;;  %v2092_v22 = vor.u32 %v2091_v10, %v2088_v7  ;;  %v5923_v28 = vld [vmem:[%s7960_s1 + $0x220] sm:$0xff]   ;;  %v1818_v40 = vrot.slane %v6519_v23, 2  ;;  %v5930_v4 = vld [vmem:[%s7960_s1 + $0x238] sm:$0xff]   ;;  %v1318_v7 = vshll.u32 %v5893_v52, 16  ;;  %v1609_v10 = vrot.slane %v6563_v0, 2 }
  0xd9   : > { %v1295_v33 = vsel %vm1260_vm4, %v1285_v59, %v1294_v20  ;;  %v5977_v23 = vld [vmem:[%s7960_s1 + $0x1b8] sm:$0xff]  }
  0xda   : > { %v2093_v34 = vsel %vm2004_vm2, %v2083_v60, %v2092_v22  ;;  %v1819_v54 = vsel %vm1597_vm3, %v1816_v16, %v1818_v40 }
  0xde   : > { %3757 = vmatmul.mubr.bf16.vlgmr.msra.gmra.mrb[72].mxu1 %v1813_v43  ;;  %v1309_v43 = vshll.u32 %v5889_v26, 16  ;;  %v1822_v26 = vrot.slane %v6575_v12, 2 }
  0xdf   : > { %3540 = vmatmul.mubr.bf16.vlgmr.msra.gmra.mrb[0].mxu0 %v1277_v46  ;;  %3764 = vmatprep.mubr.bf16.mxu1 %v2075_v48  ;;  %v6543_v48 = vld [vmem:[%s6109_s30 + $0x60] sm:$0xff]  }
  0xe0   : > { %3685 = vmatpush1.bf16.msra.mxu0 %v5970_v58  ;;  %3547 = vmatprep.mubr.bf16.mxu0 %v1602_v51  ;;  %v1607_v51 = vrot.slane %v6535_v39, 2  ;;  %v1311_v56 = vrot.slane %v1309_v43, 2  ;;  %v1304_v58 = vsel %vm1260_vm4, %v1294_v20, %v1303_v45  ;;  %v1320_v20 = vrot.slane %v1318_v7, 2 }
  0xe1   : > { %3686 = vmatprep.subr.bf16.mxu0 %v5994_v1  ;;  %5479 = vmatpush3.bf16.msra.mxu1 %v6440_v47  ;;  %v2084_v47 = vsel %vm2004_vm2, %v2074_v36, %v2083_v60  ;;  %v2097_v36 = vrot.slane %v2095_v24, 2  ;;  %v2109_v60 = vrot.slane %v2107_v50, 3 }
  0xe2   : > { %5480 = vmatprep.subr.bf16.mxu1 %v5908_v55  ;;  %v1608_v63 = vsel %vm1597_vm3, %v1605_v17, %v1607_v51  ;;  %v5900_v17 = vld [vmem:[%s6109_s30 + $0x78] sm:$0xff]   ;;  %v1610_v24 = vsel %vm1597_vm3, %v1607_v51, %v1609_v10 }
  0xe3   : > { %v2101_v46 = vor.u32 %v2100_v37, %v2097_v36  ;;  %v2110_v6 = vor.u32 %v2109_v60, %v2106_v57  ;;  %v2125_v30 = vshll.u32 %v5900_v17, 16  ;;  %v6594_v36 = vld [vmem:[%s6109_s30 + $0x70] sm:$0xff]   ;;  %v5901_v37 = vld [vmem:[%s6109_s30 + $0x48] sm:$0xff]  }
  0xe4   : > { %3687 = vmatpush1.bf16.msra.mxu0 %v5971_v9  ;;  %v2116_v9 = vshll.u32 %v5896_v62, 16  ;;  %v1824_v50 = vrot.slane %v6594_v36, 2  ;;  %v1333_v51 = vshrl.u32 %v5901_v37, 16  ;;  %v5980_v57 = vld [vmem:[%s7960_s1 + $0x1d0] sm:$0xff]  }
  0xe5   : > { %3688 = vmatprep.subr.bf16.mxu0 %v5994_v1  ;;  %5481 = vmatpush3.bf16.msra.mxu1 %v5908_v55  ;;  %v1308_v55 = vrot.slane %v1306_v41, 1  ;;  %v2102_v59 = vsel %vm2004_vm2, %v2092_v22, %v2101_v46  ;;  %v2111_v19 = vsel %vm2004_vm2, %v2101_v46, %v2110_v6  ;;  %v5905_v41 = vld [vmem:[%s6109_s30 + $0x80] sm:$0xff]   ;;  %v5979_v46 = vld [vmem:[%s7960_s1 + $0x1c8] sm:$0xff]   ;;  %v5906_v60 = vld [vmem:[%s6109_s30 + $0x50] sm:$0xff]  }
  0xe6   : > { %3765 = vmatmul.mubr.bf16.gmra.mrb[76].mxu1 %v1815_v3  ;;  %5482 = vmatprep.subr.bf16.mxu1 %v5917_v2  ;;  %v1315_v3 = vshrl.u32 %v5893_v52, 16  ;;  %v2118_v22 = vrot.slane %v2116_v9, 3  ;;  %v1336_v52 = vshll.u32 %v5901_v37, 16 }
  0xe7   : > { %3548 = vmatmul.mubr.bf16.gmra.mrb[4].mxu0 %v1286_v8  ;;  %3772 = vmatprep.mubr.bf16.mxu1 %v2084_v47  ;;  %v1312_v5 = vor.u32 %v1311_v56, %v1308_v55  ;;  %v2113_v8 = vshrl.u32 %v5896_v62, 16  ;;  %v5976_v47 = vld [vmem:[%s7960_s1 + $0x1b0] sm:$0xff]   ;;  %v2134_v56 = vshll.u32 %v5905_v41, 16  ;;  %v1335_v62 = vrot.slane %v1333_v51, 1  ;;  %v6675_v51 = vld [vmem:[%s6109_s30 + $0x88] sm:$0xff]  }
  0xe8   : > { %3555 = vmatprep.mubr.bf16.mxu0 %v1604_v13  ;;  %3689 = vmatpush1.bf16.msra.mxu0 %v5972_v21  ;;  %v5897_v13 = vld [vmem:[%s6109_s30 + $0x40] sm:$0xff]   ;;  %v1317_v16 = vrot.slane %v1315_v3, 1 }
  0xe9   : > { %3690 = vmatprep.subr.bf16.mxu0 %v5994_v1  ;;  %5483 = vmatpush3.bf16.msra.mxu1 %v5917_v2  ;;  %v1820_v2 = vrot.slane %v6543_v48, 2  ;;  %v1313_v14 = vsel %vm1260_vm4, %v1303_v45, %v1312_v5  ;;  %v2115_v21 = vrot.slane %v2113_v8, 2  ;;  %v1324_v27 = vshrl.u32 %v5897_v13, 16  ;;  %v6626_v8 = vld [vmem:[%s6109_s30 + $0x50] sm:$0xff]  }
  0xea   : > { %5484 = vmatprep.subr.bf16.mxu1 %v5918_v15  ;;  %v1321_v31 = vor.u32 %v1320_v20, %v1317_v16  ;;  %v2127_v45 = vrot.slane %v2125_v30, 3  ;;  %v5982_v16 = vld [vmem:[%s7960_s1 + $0x1e0] sm:$0xff]  }
  0xeb   : > { %v1326_v39 = vrot.slane %v1324_v27, 1  ;;  %v6636_v20 = vld [vmem:[%s6109_s30 + $0x80] sm:$0xff]  }
  0xec   : > { %3691 = vmatpush1.bf16.msra.mxu0 %v5973_v35  ;;  %v1611_v35 = vrot.slane %v5895_v25, 2  ;;  %v210_v30 = vld [vmem:[%s7961_s2] sm:$0xff]  ;;  %v1828_v37 = vrot.slane %v6636_v20, 2 }
  0xed   : > { %3692 = vmatprep.subr.bf16.mxu0 %v5994_v1  ;;  %5485 = vmatpush3.bf16.msra.mxu1 %v5918_v15  ;;  %v1821_v15 = vsel %vm1597_vm3, %v1818_v40, %v1820_v2 }
  0xee   : > { %3773 = vmatmul.mubr.bf16.gmra.mrb[80].mxu1 %v1817_v29  ;;  %5486 = vmatprep.subr.bf16.mxu1 %v5923_v28  ;;  %v2122_v29 = vshrl.u32 %v5900_v17, 16  ;;  %v1612_v48 = vsel %vm1597_vm3, %v1609_v10, %v1611_v35  ;;  %v1345_v10 = vshll.u32 %v5906_v60, 16  ;;  %v1615_v17 = vrot.slane %v6626_v8, 2 }
  0xef   : > { %3556 = vmatmul.mubr.bf16.gmra.mrb[8].mxu0 %v1295_v33  ;;  %3780 = vmatprep.mubr.bf16.mxu1 %v2093_v34  ;;  %v2119_v33 = vor.u32 %v2118_v22, %v2115_v21  ;;  %v5978_v34 = vld [vmem:[%s7960_s1 + $0x1c0] sm:$0xff]  }
  0xf0   : > { %3563 = vmatprep.mubr.bf16.mxu0 %v1606_v38  ;;  %3693 = vmatpush1.bf16.msra.mxu0 %v5974_v49  ;;  %v1823_v38 = vsel %vm1597_vm3, %v1820_v2, %v1822_v26  ;;  %v2124_v44 = vrot.slane %v2122_v29, 2  ;;  %v5899_v49 = vld [vmem:[%s6109_s30 + $0x48] sm:$0xff]   ;;  %v1347_v22 = vrot.slane %v1345_v10, 2  ;;  %v218_v10 = vld [vmem:[%s7961_s2 + $0x40] sm:$0xff] }
  0xf1   : > { %3694 = vmatprep.subr.bf16.mxu0 %v5994_v1  ;;  %5487 = vmatpush3.bf16.msra.mxu1 %v5923_v28  ;;  %v1327_v28 = vshll.u32 %v5897_v13, 16  ;;  %v2120_v43 = vsel %vm2004_vm2, %v2110_v6, %v2119_v33  ;;  %v5981_v6 = vld [vmem:[%s7960_s1 + $0x1d8] sm:$0xff]   ;;  %v5983_v29 = vld [vmem:[%s7960_s1 + $0x1e8] sm:$0xff]  }
  0xf2   : > { %5488 = vmatprep.subr.bf16.mxu1 %v5924_v42  ;;  %v2128_v55 = vor.u32 %v2127_v45, %v2124_v44  ;;  %4040 = vperm.xlu0 %5726, %v210_v30   ;;  %v5984_v44 = vld [vmem:[%s7960_s1 + $0x1f0] sm:$0xff]  }
  0xf3   : > { %v1329_v40 = vrot.slane %v1327_v28, 2  ;;  %v5914_v28 = vld [vmem:[%s6109_s30 + $0x90] sm:$0xff]  }
  0xf4   : > { %3695 = vmatpush1.bf16.msra.mxu0 %v5975_v61  ;;  %v1825_v61 = vsel %vm1597_vm3, %v1822_v26, %v1824_v50  ;;  %v2129_v3 = vsel %vm2004_vm2, %v2119_v33, %v2128_v55  ;;  %v6651_v33 = vld [vmem:[%s6109_s30 + $0x58] sm:$0xff]  }
  0xf5   : > { %3696 = vmatprep.subr.bf16.mxu0 %v5994_v1  ;;  %5489 = vmatpush3.bf16.msra.mxu1 %v5924_v42  ;;  %v1322_v42 = vsel %vm1260_vm4, %v1312_v5, %v1321_v31  ;;  %v5910_v5 = vld [vmem:[%s6109_s30 + $0x88] sm:$0xff]   ;;  %v1617_v45 = vrot.slane %v6651_v33, 2  ;;  %v221_v33 = vld [vmem:[%s7961_s2 + $0x58] sm:$0xff] }
  0xf6   : > { %3781 = vmatmul.mubr.bf16.gmra.mrb[84].mxu1 %v1819_v54  ;;  %5490 = vmatprep.subr.bf16.mxu1 %v5929_v53  ;;  %v1330_v54 = vor.u32 %v1329_v40, %v1326_v39  ;;  %v213_v39 = vld [vmem:[%s7961_s2 + $0x18] sm:$0xff] }
  0xf7   : > { %3564 = vmatmul.mubr.bf16.gmra.mrb[12].mxu0 %v1304_v58  ;;  %3788 = vmatprep.mubr.bf16.mxu1 %v2102_v59  ;;  %v1613_v58 = vrot.slane %v5899_v49, 2  ;;  %v6613_v59 = vld [vmem:[%s6109_s30 + $0x78] sm:$0xff]  }
  0xf8   : > { %3571 = vmatprep.mubr.bf16.mxu0 %v1608_v63  ;;  %3697 = vmatpush1.bf16.msra.mxu0 %v5976_v47  ;;  %v1338_v63 = vrot.slane %v1336_v52, 2  ;;  %v1331_v2 = vsel %vm1260_vm4, %v1321_v31, %v1330_v54  ;;  %v1826_v9 = vrot.slane %v6613_v59, 2  ;;  %v1342_v47 = vshrl.u32 %v5906_v60, 16  ;;  %v5915_v52 = vld [vmem:[%s6109_s30 + $0x60] sm:$0xff]   ;;  %v5985_v59 = vld [vmem:[%s7960_s1 + $0x1f8] sm:$0xff]  }
  0xf9   : > { %3698 = vmatprep.subr.bf16.mxu0 %v5994_v1  ;;  %5491 = vmatpush3.bf16.msra.mxu1 %v5929_v53  ;;  %v2131_v53 = vshrl.u32 %v5905_v41, 16  ;;  %v1614_v7 = vsel %vm1597_vm3, %v1611_v35, %v1613_v58  ;;  %v1616_v31 = vsel %vm1597_vm3, %v1613_v58, %v1615_v17  ;;  %v211_v35 = vld [vmem:[%s7961_s2 + $0x8] sm:$0xff]  ;;  %v5920_v58 = vld [vmem:[%s6109_s30 + $0x98] sm:$0xff]   ;;  %v1618_v60 = vsel %vm1597_vm3, %v1615_v17, %v1617_v45 }
  0xfa   : > { %5492 = vmatprep.subr.bf16.mxu1 %v5930_v4  ;;  %v1339_v12 = vor.u32 %v1338_v63, %v1335_v62  ;;  %v1827_v21 = vsel %vm1597_vm3, %v1824_v50, %v1826_v9  ;;  %4045 = vperm.xlu0 %5726, %v211_v35   ;;  %v1829_v49 = vsel %vm1597_vm3, %v1826_v9, %v1828_v37  ;;  %v216_v62 = vld [vmem:[%s7961_s2 + $0x30] sm:$0xff]  ;;  %v1830_v63 = vrot.slane %v6675_v51, 2 }
  0xfb   : > { %v2133_v0 = vrot.slane %v2131_v53, 2  ;;  %v215_v53 = vld [vmem:[%s7961_s2 + $0x28] sm:$0xff] }
  0xfc   : > { %3699 = vmatpush1.bf16.msra.mxu0 %v5977_v23  ;;  %v5911_v23 = vld [vmem:[%s6109_s30 + $0x58] sm:$0xff]  }
  0xfd   : > { %3700 = vmatprep.subr.bf16.mxu0 %v5994_v1  ;;  %5493 = vmatpush3.bf16.msra.mxu1 %v5930_v4  ;;  %v2136_v4 = vrot.slane %v2134_v56, 3  ;;  %v1354_v41 = vshll.u32 %v5911_v23, 16 }
  0xfe   : > { %3789 = vmatmul.mubr.bf16.gmra.mrb[88].mxu1 %v1821_v15  ;;  %v2143_v15 = vshll.u32 %v5910_v5, 16 }
  0xff   : > { %3572 = vmatmul.mubr.bf16.gmra.mrb[16].mxu0 %v1313_v14  ;;  %3796 = vmatprep.mubr.bf16.mxu1 %v2111_v19  ;;  %v2137_v13 = vor.u32 %v2136_v4, %v2133_v0  ;;  %v2140_v14 = vshrl.u32 %v5910_v5, 16  ;;  %v1344_v19 = vrot.slane %v1342_v47, 1  ;;  %v1360_v0 = vshrl.u32 %v5915_v52, 16 }
 0x100   : > { %3579 = vmatprep.mubr.bf16.mxu0 %v1610_v24  ;;  %3701 = vmatpush1.bf16.msra.mxu0 %v5978_v34  ;;  %v1340_v24 = vsel %vm1260_vm4, %v1330_v54, %v1339_v12  ;;  %v2145_v27 = vrot.slane %v2143_v15, 3  ;;  %v212_v34 = vld [vmem:[%s7961_s2 + $0x10] sm:$0xff] }
 0x101   : > { %3702 = vmatprep.subr.bf16.mxu0 %v5994_v1  ;;  %v2138_v25 = vsel %vm2004_vm2, %v2128_v55, %v2137_v13  ;;  %v2142_v26 = vrot.slane %v2140_v14, 2  ;;  %4050 = vperm.xlu1 %5727, %v212_v34   ;;  %v1348_v36 = vor.u32 %v1347_v22, %v1344_v19  ;;  %v1356_v55 = vrot.slane %v1354_v41, 2  ;;  %v6705_v15 = vld [vmem:[%s6109_s30 + $0x90] sm:$0xff]   ;;  %v219_v19 = vld [vmem:[%s7961_s2 + $0x48] sm:$0xff]  ;;  %v222_v41 = vld [vmem:[%s7961_s2 + $0x60] sm:$0xff] }
 0x102   : > { %v1832_v30 = vrot.slane %v6705_v15, 2  ;;  %v5933_v15 = vld [vmem:[%s6109_s30 + $0x18] sm:$0xff]  }
 0x103   : > { %v2146_v40 = vor.u32 %v2145_v27, %v2142_v26  ;;  %v6718_v27 = vld [vmem:[%s6109_s30 + $0x68] sm:$0xff]  }
 0x104   : > { %3703 = vmatpush1.bf16.msra.mxu0 %v5979_v46  ;;  %v214_v46 = vld [vmem:[%s7961_s2 + $0x20] sm:$0xff] }
 0x105   : > { %3704 = vmatprep.subr.bf16.mxu0 %v5994_v1  ;;  %4055 = vperm.xlu1 %5727, %v213_v39   ;;  %v2147_v54 = vsel %vm2004_vm2, %v2137_v13, %v2146_v40  ;;  %v1362_v13 = vrot.slane %v1360_v0, 1 }
 0x106   : > { %3797 = vmatmul.mubr.bf16.gmra.mrb[92].mxu1 %v1823_v38  ;;  %v1351_v38 = vshrl.u32 %v5911_v23, 16  ;;  %4060 = vperm.xlu0 %5726, %v214_v46   ;;  %v5927_v46 = vld [vmem:[%s6109_s30 + $0x70] sm:$0xff]  }
 0x107   : > { %3580 = vmatmul.mubr.bf16.gmra.mrb[20].mxu0 %v1322_v42  ;;  %3804 = vmatprep.mubr.bf16.mxu1 %v2120_v43  ;;  %v2149_v42 = vshrl.u32 %v5914_v28, 16  ;;  %v2152_v43 = vshll.u32 %v5914_v28, 16  ;;  %v220_v28 = vld [vmem:[%s7961_s2 + $0x50] sm:$0xff] }
 0x108   : > { %3587 = vmatprep.mubr.bf16.mxu0 %v1612_v48  ;;  %3705 = vmatpush1.bf16.msra.mxu0 %v5980_v57  ;;  %v1349_v48 = vsel %vm1260_vm4, %v1339_v12, %v1348_v36  ;;  %v1353_v50 = vrot.slane %v1351_v38, 1  ;;  %v1831_v12 = vsel %vm1597_vm3, %v1828_v37, %v1830_v63  ;;  %v1621_v38 = vrot.slane %v6718_v27, 2 }
 0x109   : > { %3706 = vmatprep.subr.bf16.mxu0 %v5994_v1  ;;  %v2151_v56 = vrot.slane %v2149_v42, 2  ;;  %v2154_v57 = vrot.slane %v2152_v43, 3  ;;  %4065 = vperm.xlu1 %5727, %v215_v53   ;;  %v1833_v43 = vsel %vm1597_vm3, %v1830_v63, %v1832_v30  ;;  %v2343_v27 = vrot.slane %v5933_v15, 3  ;;  %v236_v15 = vld [vmem:[%s7961_s2 + $0xd0] sm:$0xff] }
 0x10a   : > { %v1357_v4 = vor.u32 %v1356_v55, %v1353_v50  ;;  %4070 = vperm.xlu0 %5726, %v216_v62  }
 0x10b   : > { %v2155_v5 = vor.u32 %v2154_v57, %v2151_v56  ;;  %v6747_v56 = vld [vmem:[%s6109_s30 + $0x70] sm:$0xff]  }
 0x10c   : > { %3707 = vmatpush1.bf16.msra.mxu0 %v5981_v6  ;;  %v2158_v6 = vshrl.u32 %v5920_v58, 16  ;;  %v1358_v20 = vsel %vm1260_vm4, %v1348_v36, %v1357_v4  ;;  %v224_v57 = vld [vmem:[%s7961_s2 + $0x70] sm:$0xff]  ;;  %v1623_v0 = vrot.slane %v6747_v56, 2 }
 0x10d   : > { %3708 = vmatprep.subr.bf16.mxu0 %v5994_v1 }
 0x10e   : > { %3805 = vmatmul.mubr.bf16.gmra.mrb[96].mxu1 %v1825_v61  ;;  %v6688_v61 = vld [vmem:[%s6109_s30 + $0x60] sm:$0xff]   ;;  %v2160_v22 = vrot.slane %v2158_v6, 2  ;;  %4080 = vperm.xlu0 %5726, %v218_v10   ;;  %v227_v10 = vld [vmem:[%s7961_s2 + $0x88] sm:$0xff] }
 0x10f   : > { %3588 = vmatmul.mubr.bf16.gmra.mrb[24].mxu0 %v1331_v2  ;;  %3812 = vmatprep.mubr.bf16.mxu1 %v2129_v3  ;;  %v1363_v2 = vshll.u32 %v5915_v52, 16  ;;  %v217_v3 = vld [vmem:[%s7961_s2 + $0x38] sm:$0xff]  ;;  %v1619_v8 = vrot.slane %v6688_v61, 2 }
 0x110   : > { %3595 = vmatprep.mubr.bf16.mxu0 %v1614_v7  ;;  %3709 = vmatpush1.bf16.msra.mxu0 %v5982_v16  ;;  %v2161_v7 = vshll.u32 %v5920_v58, 16  ;;  %v5921_v16 = vld [vmem:[%s6109_s30 + $0x68] sm:$0xff]   ;;  %v225_v61 = vld [vmem:[%s7961_s2 + $0x78] sm:$0xff] }
 0x111   : > { %3710 = vmatprep.subr.bf16.mxu0 %v5994_v1  ;;  %4075 = vperm.xlu1 %5727, %v217_v3   ;;  %v1365_v14 = vrot.slane %v1363_v2, 2  ;;  %v1620_v26 = vsel %vm1597_vm3, %v1617_v45, %v1619_v8  ;;  %v1372_v35 = vshll.u32 %v5921_v16, 16  ;;  %v6736_v45 = vld [vmem:[%s6109_s30 + $0x98] sm:$0xff]   ;;  %v1622_v55 = vsel %vm1597_vm3, %v1619_v8, %v1621_v38  ;;  %v5928_v3 = vld [vmem:[%s6109_s30 + $0xa0] ss:$0 sps:$4 sm:$0x33]  }
 0x112   : > { %v2163_v23 = vrot.slane %v2161_v7, 3  ;;  %4090 = vperm.xlu0 %5726, %v220_v28   ;;  %v1834_v58 = vrot.slane %v6736_v45, 2  ;;  %v5938_v45 = vld [vmem:[%s6109_s30 + $0x80] sm:$0xff]  }
 0x113   : > { %v1374_v51 = vrot.slane %v1372_v35, 2  ;;  %v1396_v56 = vshrl.u32 %v5938_v45, 16 }
 0x114   : > { %3711 = vmatpush1.bf16.msra.mxu0 %v5983_v29  ;;  %v1366_v29 = vor.u32 %v1365_v14, %v1362_v13  ;;  %v2164_v34 = vor.u32 %v2163_v23, %v2160_v22  ;;  %v1835_v6 = vsel %vm1597_vm3, %v1832_v30, %v1834_v58  ;;  %v5932_v14 = vld [vmem:[%s6109_s30 + $0x10] sm:$0xf8]  }
 0x115   : > { %3712 = vmatprep.subr.bf16.mxu0 %v5994_v1  ;;  %4085 = vperm.xlu1 %5727, %v219_v19   ;;  %v228_v22 = vld [vmem:[%s7961_s2 + $0x90] sm:$0xff] }
 0x116   : > { %3813 = vmatmul.mubr.bf16.gmra.mrb[100].mxu1 %v1827_v21  ;;  %v2156_v21 = vsel %vm2004_vm2, %v2146_v40, %v2155_v5  ;;  %v1367_v42 = vsel %vm1260_vm4, %v1357_v4, %v1366_v29  ;;  %v2165_v50 = vsel %vm2004_vm2, %v2155_v5, %v2164_v34  ;;  %4100 = vperm.xlu0 %5726, %v222_v41   ;;  %v226_v5 = vld [vmem:[%s7961_s2 + $0x80] sm:$0xff] }
 0x117   : > { %3596 = vmatmul.mubr.bf16.gmra.mrb[28].mxu0 %v1340_v24  ;;  %3820 = vmatprep.mubr.bf16.mxu1 %v2138_v25  ;;  %v5926_v24 = vld [vmem:[%s6109_s30 + $0xa0] ss:$0 sps:$4 sm:$0x77]  }
 0x118   : > { %3603 = vmatprep.mubr.bf16.mxu0 %v1616_v31  ;;  %3713 = vmatpush1.bf16.msra.mxu0 %v5984_v44  ;;  %v1369_v31 = vshrl.u32 %v5921_v16, 16  ;;  %v2167_v36 = vshrl.u32 %v5926_v24, 16  ;;  %v2170_v37 = vshll.u32 %v5926_v24, 16  ;;  %v5934_v16 = vld [vmem:[%s6109_s30 + $0x78] sm:$0xff]   ;;  %v1836_v24 = vrot.slane %v5928_v3, 2  ;;  %v235_v3 = vld [vmem:[%s7961_s2 + $0xc8] sm:$0xff] }
 0x119   : > { %3714 = vmatprep.subr.bf16.mxu0 %v5994_v1  ;;  %4095 = vperm.xlu1 %5727, %v221_v33   ;;  %v1387_v28 = vshrl.u32 %v5934_v16, 16 }
 0x11a   : > { %v1371_v44 = vrot.slane %v1369_v31, 1  ;;  %v2169_v52 = vrot.slane %v2167_v36, 2  ;;  %v2172_v53 = vrot.slane %v2170_v37, 3  ;;  %4110 = vperm.xlu0 %5726, %v224_v57   ;;  %v1837_v35 = vsel %vm1597_vm3, %v1834_v58, %v1836_v24  ;;  %v5935_v36 = vld [vmem:[%s6109_s30 + $0x20] sm:$0xff]  }
 0x11b   : > { %v1399_v57 = vshll.u32 %v5938_v45, 16  ;;  %v240_v45 = vld [vmem:[%s7961_s2 + $0xf0] sm:$0xff] }
 0x11c   : > { %3715 = vmatpush1.bf16.msra.mxu0 %v5985_v59  ;;  %v1378_v59 = vshrl.u32 %v5927_v46, 16  ;;  %v1375_v62 = vor.u32 %v1374_v51, %v1371_v44  ;;  %v2173_v63 = vor.u32 %v2172_v53, %v2169_v52  ;;  %v5937_v44 = vld [vmem:[%s6109_s30 + $0x28] sm:$0xff]   ;;  %v232_v51 = vld [vmem:[%s7961_s2 + $0xb0] sm:$0xff]  ;;  %v2345_v52 = vrot.slane %v5935_v36, 3  ;;  %v233_v53 = vld [vmem:[%s7961_s2 + $0xb8] sm:$0xff] }
 0x11e   : > { %3821 = vmatmul.mubr.bf16.gmra.mrb[104].mxu1 %v1829_v49  ;;  %v223_v49 = vld [vmem:[%s7961_s2 + $0x68] sm:$0xff]  ;;  %v1380_v7 = vrot.slane %v1378_v59, 1  ;;  %v2174_v13 = vsel %vm2004_vm2, %v2164_v34, %v2173_v63  ;;  %4120 = vperm.xlu0 %5726, %v226_v5   ;;  %v230_v34 = vld [vmem:[%s7961_s2 + $0xa0] sm:$0xff]  ;;  %v5939_v63 = vld [vmem:[%s6109_s30 + $0x30] sm:$0xff]  }
 0x11f   : > { %3604 = vmatmul.mubr.bf16.gmra.mrb[32].mxu0 %v1349_v48  ;;  %3828 = vmatprep.mubr.bf16.mxu1 %v2147_v54 }
 0x120   : > { %3611 = vmatprep.mubr.bf16.mxu0 %v1618_v60  ;;  %4105 = vperm.xlu1 %5727, %v223_v49   ;;  %v1381_v60 = vshll.u32 %v5927_v46, 16 }
 0x121   : > { %v6698_v9 = vpop.f32.mrb[0].mxu1 }
 0x122   : > { %v3189_v47 = vpop.f32.mrb[1].mxu1  ;;  %v1383_v8 = vrot.slane %v1381_v60, 2  ;;  %4130 = vperm.xlu0 %5726, %v228_v22  }
 0x123   : > { %v6708_v17 = vpop.f32.mrb[2].mxu1 }
 0x124   : > { %v3192_v25 = vpop.f32.mrb[3].mxu1  ;;  %4115 = vperm.xlu1 %5727, %v225_v61   ;;  %v1384_v23 = vor.u32 %v1383_v8, %v1380_v7  ;;  %v234_v61 = vld [vmem:[%s7961_s2 + $0xc0] sm:$0xff]  ;;  %v1401_v7 = vrot.slane %v1399_v57, 2  ;;  %v5941_v8 = vld [vmem:[%s6109_s30 + $0x38] sm:$0xff]  }
 0x125   : > { %v229_v25 = vld [vmem:[%s7961_s2 + $0x98] sm:$0xff] }
 0x126   : > { %3829 = vmatmul.mubr.bf16.gmra.mrb[108].mxu1 %v1831_v12  ;;  %v1376_v12 = vsel %vm1260_vm4, %v1366_v29, %v1375_v62  ;;  %v1390_v29 = vshll.u32 %v5934_v16, 16  ;;  %4140 = vperm.xlu0 %5726, %v230_v34   ;;  %v2349_v16 = vrot.slane %v5939_v63, 3 }
 0x127   : > { %3612 = vmatmul.mubr.bf16.gmra.mrb[36].mxu0 %v1358_v20  ;;  %3836 = vmatprep.mubr.bf16.mxu1 %v2156_v21  ;;  %v1624_v20 = vsel %vm1597_vm3, %v1621_v38, %v1623_v0  ;;  %v6776_v21 = vld [vmem:[%s6109_s30 + $0x78] sm:$0xff]   ;;  %v231_v38 = vld [vmem:[%s7961_s2 + $0xa8] sm:$0xff] }
 0x128   : > { %3619 = vmatprep.mubr.bf16.mxu0 %v1620_v26  ;;  %4125 = vperm.xlu1 %5727, %v227_v10   ;;  %v2342_v26 = vrot.slane %v5932_v14, 3  ;;  %v1625_v30 = vrot.slane %v6776_v21, 2  ;;  %v5942_v10 = vld [vmem:[%s6109_s30 + $0x88] sm:$0xff]   ;;  %v2351_v21 = vrot.slane %v5941_v8, 3 }
 0x129   : > { %v6728_v39 = vpop.f32.mrb[4].mxu1  ;;  %v6830_v14 = vld [vmem:[%s6109_s30 + $0x88] sm:$0xff]   ;;  %v1405_v22 = vshrl.u32 %v5942_v10, 16  ;;  %v5950_v8 = vld [vmem:[%s6109_s30 + $0x98] ss:$0 sps:$4 sm:$0x33]  }
 0x12a   : > { %v3197_v40 = vpop.f32.mrb[5].mxu1  ;;  %v2344_v41 = vsel %vm2341_vm5, %v2342_v26, %v2343_v27  ;;  %v1626_v49 = vsel %vm1597_vm3, %v1623_v0, %v1625_v30  ;;  %4150 = vperm.xlu0 %5726, %v232_v51   ;;  %v1629_v24 = vrot.slane %v6830_v14, 2  ;;  %v5953_v14 = vld [vmem:[%s6109_s30 + $0x18] sm:$0xff]  }
 0x12b   : > { %v6739_v48 = vpop.f32.mrb[6].mxu1  ;;  %v1385_v40 = vsel %vm1260_vm4, %v1375_v62, %v1384_v23  ;;  %v2346_v62 = vsel %vm2341_vm5, %v2343_v27, %v2345_v52  ;;  %v238_v27 = vld [vmem:[%s7961_s2 + $0xe0] sm:$0xff]  ;;  %v1407_v36 = vrot.slane %v1405_v22, 1 }
 0x12c   : > { %v3200_v54 = vpop.f32.mrb[7].mxu1  ;;  %4135 = vperm.xlu1 %5727, %v229_v25  }
 0x12e   : > { %3837 = vmatmul.mubr.bf16.gmra.mrb[112].mxu1 %v1833_v43  ;;  %v1392_v43 = vrot.slane %v1390_v29, 2  ;;  %4160 = vperm.xlu0 %5726, %v234_v61   ;;  %v5943_v29 = vld [vmem:[%s6109_s30 + $0x40] sm:$0xff]   ;;  %v5948_v61 = vld [vmem:[%s6109_s30 + $0x98] ss:$0 sps:$4 sm:$0x33]  }
 0x12f   : > { %3620 = vmatmul.mubr.bf16.gmra.mrb[40].mxu0 %v1367_v42  ;;  %3844 = vmatprep.mubr.bf16.mxu1 %v2165_v50  ;;  %v1389_v42 = vrot.slane %v1387_v28, 1  ;;  %v6803_v50 = vld [vmem:[%s6109_s30 + $0x80] sm:$0xff]  }
 0x130   : > { %3627 = vmatprep.mubr.bf16.mxu0 %v1622_v55  ;;  %4145 = vperm.xlu1 %5727, %v231_v38   ;;  %v2347_v55 = vrot.slane %v5937_v44, 3  ;;  %v1627_v58 = vrot.slane %v6803_v50, 2  ;;  %v5944_v44 = vld [vmem:[%s6109_s30 + $0x90] sm:$0xff]  }
 0x131   : > { %v6757_v2 = vpop.f32.mrb[8].mxu1  ;;  %v1393_v54 = vor.u32 %v1392_v43, %v1389_v42 }
 0x132   : > { %v3205_v4 = vpop.f32.mrb[9].mxu1  ;;  %v2348_v5 = vsel %vm2341_vm5, %v2345_v52, %v2347_v55  ;;  %4170 = vperm.xlu0 %5726, %v236_v15   ;;  %v2350_v28 = vsel %vm2341_vm5, %v2347_v55, %v2349_v16  ;;  %v1630_v43 = vsel %vm1597_vm3, %v1627_v58, %v1629_v24  ;;  %v244_v15 = vld [vmem:[%s7961_s2 + $0x110] sm:$0xff] }
 0x133   : > { %v6764_v47 = vpop.f32.mrb[10].mxu1  ;;  %v1394_v4 = vsel %vm1260_vm4, %v1384_v23, %v1393_v54  ;;  %v1408_v23 = vshll.u32 %v5942_v10, 16 }
 0x134   : > { %v3208_v19 = vpop.f32.mrb[11].mxu1  ;;  %4155 = vperm.xlu1 %5727, %v233_v53  }
 0x135   : > { %v237_v19 = vld [vmem:[%s7961_s2 + $0xd8] sm:$0xff]  ;;  %v1410_v38 = vrot.slane %v1408_v23, 2  ;;  %v1423_v23 = vshrl.u32 %v5950_v8, 16 }
 0x136   : > { %3845 = vmatmul.mubr.bf16.gmra.mrb[116].mxu1 %v1835_v6  ;;  %v1398_v6 = vrot.slane %v1396_v56, 1  ;;  %4180 = vperm.xlu0 %5726, %v238_v27   ;;  %v5947_v56 = vld [vmem:[%s6109_s30 + $0x50] sm:$0xff]  }
 0x137   : > { %3628 = vmatmul.mubr.bf16.gmra.mrb[44].mxu0 %v1376_v12  ;;  %3852 = vmatprep.mubr.bf16.mxu1 %v2174_v13  ;;  %v1628_v13 = vsel %vm1597_vm3, %v1625_v30, %v1627_v58  ;;  %v1411_v50 = vor.u32 %v1410_v38, %v1407_v36  ;;  %v242_v58 = vld [vmem:[%s7961_s2 + $0x100] sm:$0xff] }
 0x138   : > { %3635 = vmatprep.mubr.bf16.mxu0 %v1624_v20  ;;  %4165 = vperm.xlu1 %5727, %v235_v3   ;;  %v1402_v20 = vor.u32 %v1401_v7, %v1398_v6  ;;  %v243_v3 = vld [vmem:[%s7961_s2 + $0x108] sm:$0xff]  ;;  %v5951_v38 = vld [vmem:[%s6109_s30 + $0x60] sm:$0xff]  }
 0x139   : > { %v6785_v31 = vpop.f32.mrb[12].mxu1 }
 0x13a   : > { %8029 = vst [vmem:[#allocation3_spill] sm:$0xff] %v6785_v31  ;;  %v3213_v33 = vpop.f32.mrb[13].mxu1  ;;  %v1403_v34 = vsel %vm1260_vm4, %v1393_v54, %v1402_v20  ;;  %v1631_v54 = vrot.slane %v5944_v44, 2  ;;  %4190 = vperm.xlu0 %5726, %v240_v45   ;;  %v5954_v45 = vld [vmem:[%s6109_s30 + $0x68] sm:$0xff]  }
 0x13b   : > { %v6792_v37 = vpop.f32.mrb[14].mxu1  ;;  %v239_v33 = vld [vmem:[%s7961_s2 + $0xe8] sm:$0xff] }
 0x13c   : > { %8030 = vst [vmem:[#allocation4_spill] sm:$0xff] %v6792_v37  ;;  %v3216_v46 = vpop.f32.mrb[15].mxu1  ;;  %4175 = vperm.xlu1 %5727, %v237_v19   ;;  %v1633_v19 = vrot.slane %v5948_v61, 2 }
 0x13d   : > { %v2353_v46 = vrot.slane %v5943_v29, 3  ;;  %v2017_v29 = vshll.u32 %v5953_v14, 16 }
 0x13e   : > { %3853 = vmatmul.mubr.bf16.gmra.mrb[120].mxu1 %v1837_v35  ;;  %v2352_v35 = vsel %vm2341_vm5, %v2349_v16, %v2351_v21  ;;  %4200 = vperm.xlu0 %5726, %v242_v58   ;;  %v2357_v16 = vrot.slane %v5947_v56, 3  ;;  %v1634_v36 = vsel %vm1597_vm3, %v1631_v54, %v1633_v19 }
 0x13f   : > { %3636 = vmatmul.mubr.bf16.gmra.mrb[48].mxu0 %v1385_v40  ;;  %5494 = vmatprep.mubr.bf16.mxu1 %v2344_v41  ;;  %v6854_v40 = vld [vmem:[%s6109_s30 + $0x48] sm:$0xff]   ;;  %v5946_v41 = vld [vmem:[%s6109_s30 + $0x90] sm:$0xff]   ;;  %v2019_v56 = vrot.slane %v2017_v29, 3 }
 0x140   : > { %3643 = vmatprep.mubr.bf16.mxu0 %v1626_v49  ;;  %4185 = vperm.xlu1 %5727, %v239_v33   ;;  %v241_v49 = vld [vmem:[%s7961_s2 + $0xf8] sm:$0xff]  ;;  %v2355_v51 = vrot.slane %v6854_v40, 3  ;;  %v1414_v52 = vshrl.u32 %v5946_v41, 16  ;;  %v1417_v53 = vshll.u32 %v5946_v41, 16 }
 0x141   : > { %v6812_v59 = vpop.f32.mrb[16].mxu1 }
 0x142   : > { %8031 = vst [vmem:[#allocation5_spill] sm:$0xff] %v6812_v59  ;;  %v3221_v60 = vpop.f32.mrb[17].mxu1  ;;  %v1416_v6 = vrot.slane %v1414_v52, 1  ;;  %v1419_v7 = vrot.slane %v1417_v53, 2  ;;  %4210 = vperm.xlu0 %5726, %v244_v15  }
 0x143   : > { %v6819_v0 = vpop.f32.mrb[18].mxu1  ;;  %v2354_v60 = vsel %vm2341_vm5, %v2351_v21, %v2353_v46 }
 0x144   : > { %8032 = vst [vmem:[#allocation6_spill] sm:$0xff] %v6819_v0  ;;  %v3224_v12 = vpop.f32.mrb[19].mxu1  ;;  %4195 = vperm.xlu1 %5727, %v241_v49   ;;  %v1420_v21 = vor.u32 %v1419_v7, %v1416_v6  ;;  %v5957_v6 = vld [vmem:[%s6109_s30 + $0x70] sm:$0xff]  }
 0x145   : > { %v1632_v12 = vsel %vm1597_vm3, %v1629_v24, %v1631_v54  ;;  %v1426_v24 = vshll.u32 %v5950_v8, 16  ;;  %v2363_v54 = vrot.slane %v5954_v45, 3  ;;  %v5963_v45 = vld [vmem:[%s6109_s30 + $0x88] sm:$0xff]  }
 0x146   : > { %5495 = vmatmul.mubr.bf16.vlgmr.msra.gmra.mrb[124].mxu1 %v2346_v62  ;;  %v6875_v62 = vld [vmem:[%s6109_s30 + $0x58] sm:$0xff]   ;;  %v1421_v41 = vsel %vm1260_vm4, %v1411_v50, %v1420_v21 }
 0x147   : > { %3644 = vmatmul.mubr.bf16.gmra.mrb[52].mxu0 %v1394_v4  ;;  %5498 = vmatprep.mubr.bf16.mxu1 %v2348_v5  ;;  %v1412_v4 = vsel %vm1260_vm4, %v1402_v20, %v1411_v50  ;;  %v2356_v5 = vsel %vm2341_vm5, %v2353_v46, %v2355_v51  ;;  %v245_v20 = vld [vmem:[%s7961_s2 + $0x118] sm:$0xff]  ;;  %v2359_v22 = vrot.slane %v6875_v62, 3  ;;  %v1428_v44 = vrot.slane %v1426_v24, 2 }
 0x148   : > { %3651 = vmatprep.mubr.bf16.mxu0 %v1628_v13  ;;  %v5952_v13 = vld [vmem:[%s6109_s30 + $0x10] sm:$0xfc]   ;;  %4205 = vperm.xlu1 %5727, %v243_v3  }
 0x149   : > { %v6839_v25 = vpop.f32.mrb[20].mxu1  ;;  %v2009_v27 = vshll.u32 %v5952_v13, 16 }
 0x14a   : > { %v3229_v26 = vpop.f32.mrb[21].mxu1 }
 0x14b   : > { %v6846_v30 = vpop.f32.mrb[22].mxu1  ;;  %v2006_v26 = vshrl.u32 %v5952_v13, 16  ;;  %v2011_v52 = vrot.slane %v2009_v27, 3  ;;  %v5956_v13 = vld [vmem:[%s6109_s30 + $0x18] sm:$0xff]  }
 0x14c   : > { %v3232_v42 = vpop.f32.mrb[23].mxu1  ;;  %4215 = vperm.xlu1 %5727, %v245_v20   ;;  %v1802_v24 = vrot.slane %v5956_v13, 2  ;;  %v5967_v13 = vld [vmem:[%s6109_s30 + $0x98] sm:$0xff]  }
 0x14d   : > { %v2360_v42 = vsel %vm2341_vm5, %v2357_v16, %v2359_v22  ;;  %v2008_v49 = vrot.slane %v2006_v26, 2 }
 0x14e   : > { %5499 = vmatmul.mubr.bf16.gmra.mrb[128].mxu1 %v2350_v28  ;;  %v2014_v28 = vshrl.u32 %v5953_v14, 16  ;;  %v5959_v14 = vld [vmem:[%s6109_s30 + $0x78] sm:$0xff]  }
 0x14f   : > { %3652 = vmatmul.mubr.bf16.gmra.mrb[56].mxu0 %v1403_v34  ;;  %5502 = vmatprep.mubr.bf16.mxu1 %v2352_v35  ;;  %v2358_v35 = vsel %vm2341_vm5, %v2355_v51, %v2357_v16  ;;  %v2361_v51 = vrot.slane %v5951_v38, 3  ;;  %v2012_v58 = vor.u32 %v2011_v52, %v2008_v49  ;;  %v2367_v26 = vrot.slane %v5959_v14, 3  ;;  %v5961_v38 = vld [vmem:[%s6109_s30 + $0x80] sm:$0xff]  }
 0x150   : > { %3659 = vmatprep.mubr.bf16.mxu0 %v1630_v43  ;;  %v1425_v43 = vrot.slane %v1423_v23, 1  ;;  %v2016_v53 = vrot.slane %v2014_v28, 2  ;;  %v5962_v23 = vld [vmem:[%s6109_s30 + $0x28] sm:$0xff]  }
 0x151   : > { %v6866_v55 = vpop.f32.mrb[24].mxu1  ;;  %v2032_v28 = vshrl.u32 %v5962_v23, 16  ;;  %v2035_v29 = vshll.u32 %v5962_v23, 16 }
 0x152   : > { %v3237_v57 = vpop.f32.mrb[25].mxu1  ;;  %v1429_v50 = vor.u32 %v1428_v44, %v1425_v43  ;;  %v5960_v44 = vld [vmem:[%s6109_s30 + $0x20] sm:$0xff]  }
 0x153   : > { %v6877_v63 = vpop.f32.mrb[26].mxu1  ;;  %v5958_v57 = vld [vmem:[%s6109_s30 + $0x20] sm:$0xff]   ;;  %v2034_v52 = vrot.slane %v2032_v28, 2 }
 0x154   : > { %v3240_v10 = vpop.f32.mrb[27].mxu1  ;;  %v2023_v61 = vshrl.u32 %v5958_v57, 16  ;;  %v2026_v62 = vshll.u32 %v5958_v57, 16  ;;  %v1430_v8 = vsel %vm1260_vm4, %v1420_v21, %v1429_v50  ;;  %v2369_v57 = vrot.slane %v5961_v38, 3  ;;  %v5968_v38 = vld [vmem:[%s6109_s30 + $0x30] sm:$0xff]  }
 0x155   : > { %v2364_v10 = vsel %vm2341_vm5, %v2361_v51, %v2363_v54  ;;  %v2371_v50 = vrot.slane %v5963_v45, 3  ;;  %v1808_v45 = vrot.slane %v5968_v38, 2 }
 0x156   : > { %5503 = vmatmul.mubr.bf16.gmra.mrb[132].mxu1 %v2354_v60  ;;  %v2020_v60 = vor.u32 %v2019_v56, %v2016_v53  ;;  %v2025_v19 = vrot.slane %v2023_v61, 2  ;;  %v2028_v20 = vrot.slane %v2026_v62, 3  ;;  %v2037_v53 = vrot.slane %v2035_v29, 3  ;;  %v5966_v56 = vld [vmem:[%s6109_s30 + $0x30] sm:$0xff]  }
 0x157   : > { %3660 = vmatmul.mubr.bf16.gmra.mrb[60].mxu0 %v1412_v4  ;;  %5506 = vmatprep.mubr.bf16.mxu1 %v2356_v5  ;;  %v2362_v5 = vsel %vm2341_vm5, %v2359_v22, %v2361_v51  ;;  %v2365_v22 = vrot.slane %v5957_v6, 3  ;;  %v1804_v51 = vrot.slane %v5960_v44, 2  ;;  %v2044_v61 = vshll.u32 %v5966_v56, 16  ;;  %v5969_v29 = vld [vmem:[%s6109_s30 + $0xa0] ss:$0 sps:$4 sm:$0x77]  }
 0x158   : > { %3667 = vmatprep.mubr.bf16.mxu0 %v1632_v12  ;;  %v5955_v12 = vld [vmem:[%s6109_s30 + $0x10] sm:$0xfc]   ;;  %v2021_v16 = vsel %vm2004_vm2, %v2012_v58, %v2020_v60  ;;  %v2029_v27 = vor.u32 %v2028_v20, %v2025_v19  ;;  %v2041_v58 = vshrl.u32 %v5966_v56, 16  ;;  %v2377_v44 = vrot.slane %v5969_v29, 3 }
 0x159   : > { %v6895_v33 = vpop.f32.mrb[28].mxu1  ;;  %v1801_v21 = vrot.slane %v5955_v12, 2  ;;  %v2368_v43 = vsel %vm2341_vm5, %v2365_v22, %v2367_v26  ;;  %v5964_v12 = vld [vmem:[%s6109_s30 + $0x28] sm:$0xff]   ;;  %v2046_v19 = vrot.slane %v2044_v61, 3  ;;  %v1811_v61 = vsel %vm1597_vm3, %v1808_v45, %v1810_v32 }
 0x15a   : > { %v3245_v34 = vpop.f32.mrb[29].mxu1  ;;  %v2030_v49 = vsel %vm2004_vm2, %v2020_v60, %v2029_v27  ;;  %v2370_v60 = vsel %vm2341_vm5, %v2367_v26, %v2369_v57  ;;  %v1806_v23 = vrot.slane %v5964_v12, 2 }
 0x15b   : > { %v6900_v40 = vpop.f32.mrb[30].mxu1 }
 0x15c   : > { %v3248_v46 = vpop.f32.mrb[31].mxu1  ;;  %v1809_v56 = vsel %vm1597_vm3, %v1806_v23, %v1808_v45 }
 0x15e   : > { %5507 = vmatmul.mubr.bf16.gmra.mrb[136].mxu1 %v2358_v35 }
 0x15f   : > { %3668 = vmatmul.mubr.bf16.gmra.mrb[64].mxu0 %v1421_v41  ;;  %5510 = vmatprep.mubr.bf16.mxu1 %v2360_v42  ;;  %v1803_v42 = vsel %vm1597_vm3, %v1801_v21, %v1802_v24 }
 0x160   : > { %3675 = vmatprep.mubr.bf16.mxu0 %v1634_v36  ;;  %v2366_v36 = vsel %vm2341_vm5, %v2363_v54, %v2365_v22  ;;  %v2038_v54 = vor.u32 %v2037_v53, %v2034_v52  ;;  %v2375_v22 = vrot.slane %v5967_v13, 3 }
 0x161   : > { %v6906_v3 = vpop.f32.mrb[32].mxu1 }
 0x162   : > { %v3253_v4 = vpop.f32.mrb[33].mxu1  ;;  %v2378_v52 = vsel %vm2341_vm5, %v2375_v22, %v2377_v44 }
 0x163   : > { %v6910_v7 = vpop.f32.mrb[34].mxu1 }
 0x164   : > { %v3256_v15 = vpop.f32.mrb[35].mxu1 }
 0x165   : > { %v2039_v15 = vsel %vm2004_vm2, %v2029_v27, %v2038_v54  ;;  %v1807_v27 = vsel %vm1597_vm3, %v1804_v51, %v1806_v23 }
 0x166   : > { %5511 = vmatmul.mubr.bf16.gmra.mrb[140].mxu1 %v2362_v5  ;;  %v5965_v5 = vld [vmem:[%s6109_s30 + $0x90] sm:$0xff]  }
 0x167   : > { %3676 = vmatmul.mubr.bf16.gmra.mrb[68].mxu0 %v1430_v8  ;;  %5514 = vmatprep.mubr.bf16.mxu1 %v2364_v10  ;;  %v1805_v8 = vsel %vm1597_vm3, %v1802_v24, %v1804_v51  ;;  %v2372_v10 = vsel %vm2341_vm5, %v2369_v57, %v2371_v50  ;;  %v2373_v20 = vrot.slane %v5965_v5, 3 }
 0x168   : > { %3716 = vmatprep.mubr.bf16.mxu0 %v2021_v16  ;;  %v2043_v16 = vrot.slane %v2041_v58, 2 }
 0x169   : > { %v6919_v34 = vpop.f32.mrb[36].mxu1  ;;  %v2374_v28 = vsel %vm2341_vm5, %v2371_v50, %v2373_v20 }
 0x16a   : > { %v3261_v35 = vpop.f32.mrb[37].mxu1  ;;  %v2047_v21 = vor.u32 %v2046_v19, %v2043_v16 }
 0x16b   : > { %v6923_v41 = vpop.f32.mrb[38].mxu1 }
 0x16c   : > { %v3264_v46 = vpop.f32.mrb[39].mxu1  ;;  %v2057_v51 = vsel %vm2004_vm2, %v2047_v21, %v6453_v11 }
 0x16e   : > { %5515 = vmatmul.mubr.bf16.gmra.mrb[144].mxu1 %v2366_v36  ;;  %v2376_v36 = vsel %vm2341_vm5, %v2373_v20, %v2375_v22 }
 0x16f   : > { %3717 = vmatmul.mubr.bf16.vlgmr.msra.gmra.mrb[0].mxu0 %v1803_v42  ;;  %5518 = vmatprep.mubr.bf16.mxu1 %v2368_v43  ;;  %v2048_v43 = vsel %vm2004_vm2, %v2038_v54, %v2047_v21 }
 0x170   : > { %3724 = vmatprep.mubr.bf16.mxu0 %v2030_v49 }
 0x171   : > { %v6931_v62 = vpop.f32.mrb[40].mxu1 }
 0x172   : > { %v3269_v4 = vpop.f32.mrb[41].mxu1 }
 0x173   : > { %v6935_v6 = vpop.f32.mrb[42].mxu1 }
 0x174   : > { %v3272_v14 = vpop.f32.mrb[43].mxu1 }
 0x176   : > { %5519 = vmatmul.mubr.bf16.gmra.mrb[148].mxu1 %v2370_v60 }
 0x177   : > { %3725 = vmatmul.mubr.bf16.gmra.mrb[4].mxu0 %v1805_v8  ;;  %5522 = vmatprep.mubr.bf16.mxu1 %v2372_v10 }
 0x178   : > { %3732 = vmatprep.mubr.bf16.mxu0 %v2039_v15 }
 0x179   : > { %v6942_v24 = vpop.f32.mrb[44].mxu1 }
 0x17a   : > { %v3277_v26 = vpop.f32.mrb[45].mxu1 }
 0x17b   : > { %v6946_v35 = vpop.f32.mrb[46].mxu1 }
 0x17c   : > { %v3280_v42 = vpop.f32.mrb[47].mxu1 }
 0x17e   : > { %5523 = vmatmul.mubr.bf16.gmra.mrb[152].mxu1 %v2374_v28 }
 0x17f   : > { %3733 = vmatmul.mubr.bf16.gmra.mrb[8].mxu0 %v1807_v27  ;;  %5526 = vmatprep.mubr.bf16.mxu1 %v2376_v36 }
 0x180   : > { %3740 = vmatprep.mubr.bf16.mxu0 %v2048_v43 }
 0x181   : > { %v6952_v46 = vpop.f32.mrb[48].mxu1 }
 0x182   : > { %v3285_v49 = vpop.f32.mrb[49].mxu1 }
 0x183   : > { %v6955_v53 = vpop.f32.mrb[50].mxu1 }
 0x184   : > { %v3288_v57 = vpop.f32.mrb[51].mxu1 }
 0x186   : > { %5527 = vmatmul.mubr.bf16.gmra.mrb[156].mxu1 %v2378_v52 }
 0x187   : > { %3741 = vmatmul.mubr.bf16.gmra.mrb[12].mxu0 %v1809_v56 }
 0x188   : > { %3748 = vmatprep.mubr.bf16.mxu0 %v2057_v51 }
 0x189   : > { %v6960_v50 = vpop.f32.mrb[52].mxu1 }
 0x18a   : > { %v3293_v54 = vpop.f32.mrb[53].mxu1 }
 0x18b   : > { %v6962_v58 = vpop.f32.mrb[54].mxu1 }
 0x18c   : > { %v3296_v4 = vpop.f32.mrb[55].mxu1 }
 0x18f   : > { %3749 = vmatmul.mubr.bf16.gmra.mrb[16].mxu0 %v1811_v61 }
 0x191   : > { %v6967_v60 = vpop.f32.mrb[56].mxu1 }
 0x192   : > { %v3301_v5 = vpop.f32.mrb[57].mxu1 }
 0x193   : > { %v6969_v8 = vpop.f32.mrb[58].mxu1 }
 0x194   : > { %v3304_v11 = vpop.f32.mrb[59].mxu1 }
 0x199   : > { %v6971_v10 = vpop.f32.mrb[60].mxu1 }
 0x19a   : > { %v3309_v12 = vpop.f32.mrb[61].mxu1 }
 0x19b   : > { %v6973_v13 = vpop.f32.mrb[62].mxu1 }
 0x19c   : > { %v3312_v14 = vpop.f32.mrb[63].mxu1 }
 0x1a1   : > { %v6975_v15 = vpop.f32.mrb[64].mxu1 }
 0x1a2   : > { %v3317_v18 = vpop.f32.mrb[65].mxu1 }
 0x1a3   : > { %v6977_v16 = vpop.f32.mrb[66].mxu1 }
 0x1a4   : > { %v3320_v32 = vpop.f32.mrb[67].mxu1 }
 0x1a9   : > { %v6979_v19 = vpop.f32.mrb[68].mxu1 }
 0x1aa   : > { %v3325_v20 = vpop.f32.mrb[69].mxu1 }
 0x1ab   : > { %v6981_v23 = vpop.f32.mrb[70].mxu1 }
 0x1ac   : > { %v3328_v22 = vpop.f32.mrb[71].mxu1 }
 0x1b1   : > { %v6983_v21 = vpop.f32.mrb[72].mxu1 }
 0x1b2   : > { %v3760_v26 = vpop.f32.mrb[73].mxu1 }
 0x1b3   : > { %v6985_v28 = vpop.f32.mrb[74].mxu1 }
 0x1b4   : > { %v3763_v29 = vpop.f32.mrb[75].mxu1 }
 0x1b9   : > { %v3766_v27 = vpop.f32.mrb[76].mxu1 }
 0x1ba   : > { %v3768_v36 = vpop.f32.mrb[77].mxu1 }
 0x1bb   : > { %v3769_v38 = vpop.f32.mrb[78].mxu1 }
 0x1bc   : > { %v3771_v42 = vpop.f32.mrb[79].mxu1 }
 0x1c1   : > { %v3774_v43 = vpop.f32.mrb[80].mxu1 }
 0x1c2   : > { %v3776_v44 = vpop.f32.mrb[81].mxu1 }
 0x1c3   : > { %v3777_v45 = vpop.f32.mrb[82].mxu1 }
 0x1c4   : > { %v3779_v49 = vpop.f32.mrb[83].mxu1 }
 0x1c9   : > { %v3782_v52 = vpop.f32.mrb[84].mxu1 }
 0x1ca   : > { %v3784_v56 = vpop.f32.mrb[85].mxu1 }
 0x1cb   : > { %v3785_v57 = vpop.f32.mrb[86].mxu1 }
 0x1cc   : > { %v3787_v51 = vpop.f32.mrb[87].mxu1 }
 0x1d1   : > { %v7076_v54 = vpop.f32.mrb[88].mxu1 }
 0x1d2   : > { %v3792_v61 = vpop.f32.mrb[89].mxu1 }
 0x1d3   : > { %v7078_v4 = vpop.f32.mrb[90].mxu1 }
 0x1d4   : > { %v3795_v5 = vpop.f32.mrb[91].mxu1 }
 0x1d9   : > { %v7080_v11 = vpop.f32.mrb[92].mxu1 }
 0x1da   : > { %v3581_v1 = vpop.f32.mrb[20].mxu0  ;;  %v3800_v12 = vpop.f32.mrb[93].mxu1 }
 0x1db   : > { %v5572_v14 = vadd.f32 %v3581_v1, %v6839_v25  ;;  %v3583_v18 = vpop.f32.mrb[21].mxu0  ;;  %v7083_v32 = vpop.f32.mrb[94].mxu1 }
 0x1dc   : > { %v3584_v20 = vpop.f32.mrb[22].mxu0  ;;  %v3803_v22 = vpop.f32.mrb[95].mxu1 }
 0x1dd   : > { %v5574_v26 = vadd.f32 %v3584_v20, %v6846_v30  ;;  %v7087_v29 = vadd.f32 %v5572_v14, %v6983_v21  ;;  %v3586_v36 = vpop.f32.mrb[23].mxu0 }
 0x1df   : > { %v7090_v42 = vadd.f32 %v5574_v26, %v6985_v28 }
 0x1e1   : > { %v7092_v44 = vpop.f32.mrb[96].mxu1 }
 0x1e2   : > { %v3589_v49 = vpop.f32.mrb[24].mxu0  ;;  %v3808_v56 = vpop.f32.mrb[97].mxu1 }
 0x1e3   : > { %v5576_v25 = vadd.f32 %v3589_v49, %v6866_v55  ;;  %v3591_v51 = vpop.f32.mrb[25].mxu0  ;;  %v7095_v61 = vpop.f32.mrb[98].mxu1 }
 0x1e4   : > { %v3592_v5 = vpop.f32.mrb[26].mxu0  ;;  %v3811_v1 = vpop.f32.mrb[99].mxu1 }
 0x1e5   : > { %v5578_v30 = vadd.f32 %v3592_v5, %v6877_v63  ;;  %v7098_v12 = vadd.f32 %v5576_v25, %v3766_v27  ;;  %v3594_v21 = vpop.f32.mrb[27].mxu0  ;;  %v7114_v25 = vpop.permute.xlu0 %4040 }
 0x1e6   : > { %8033 = vst [vmem:[#allocation7_spill] sm:$0xff] %v7114_v25 }
 0x1e7   : > { %v7100_v14 = vadd.f32 %v5578_v30, %v3769_v38 }
 0x1e9   : > { %v7102_v28 = vpop.f32.mrb[100].mxu1 }
 0x1ea   : > { %v3597_v18 = vpop.f32.mrb[28].mxu0  ;;  %v3816_v20 = vpop.f32.mrb[101].mxu1 }
 0x1eb   : > { %v5580_v22 = vadd.f32 %v3597_v18, %v6895_v33  ;;  %v3599_v26 = vpop.f32.mrb[29].mxu0  ;;  %v7105_v55 = vpop.f32.mrb[102].mxu1 }
 0x1ec   : > { %v3600_v36 = vpop.f32.mrb[30].mxu0  ;;  %v3819_v49 = vpop.f32.mrb[103].mxu1 }
 0x1ed   : > { %v5582_v56 = vadd.f32 %v3600_v36, %v6900_v40  ;;  %v7108_v51 = vadd.f32 %v5580_v22, %v3774_v43  ;;  %v3602_v63 = vpop.f32.mrb[31].mxu0  ;;  %v7124_v26 = vpop.permute.xlu1 %4050 }
 0x1ee   : > { %8034 = vst [vmem:[#allocation8_spill] sm:$0xff] %v7124_v26  ;;  %v7128_v49 = vpop.permute.xlu0 %4045 }
 0x1ef   : > { %v7110_v27 = vadd.f32 %v5582_v56, %v3777_v45  ;;  %8035 = vst [vmem:[#allocation9_spill] sm:$0xff] %v7128_v49 }
 0x1f1   : > { %v7112_v38 = vpop.f32.mrb[104].mxu1 }
 0x1f2   : > { %v3605_v5 = vpop.f32.mrb[32].mxu0  ;;  %v3824_v1 = vpop.f32.mrb[105].mxu1 }
 0x1f3   : > { %v5584_v33 = vadd.f32 %v3605_v5, %v6906_v3  ;;  %v3607_v30 = vpop.f32.mrb[33].mxu0  ;;  %v7117_v21 = vpop.f32.mrb[106].mxu1 }
 0x1f4   : > { %v3608_v18 = vpop.f32.mrb[34].mxu0  ;;  %v3827_v20 = vpop.f32.mrb[107].mxu1 }
 0x1f5   : > { %v5586_v40 = vadd.f32 %v3608_v18, %v6910_v7  ;;  %v7120_v43 = vadd.f32 %v5584_v33, %v3782_v52  ;;  %v3610_v22 = vpop.f32.mrb[35].mxu0  ;;  %v7140_v20 = vpop.permute.xlu1 %4055 }
 0x1f6   : > { %v7144_v22 = vpop.permute.xlu0 %4060 }
 0x1f7   : > { %v7122_v45 = vadd.f32 %v5586_v40, %v3785_v57 }
 0x1f9   : > { %v7126_v36 = vpop.f32.mrb[108].mxu1 }
 0x1fa   : > { %v3613_v56 = vpop.f32.mrb[36].mxu0  ;;  %v3832_v3 = vpop.f32.mrb[109].mxu1 }
 0x1fb   : > { %v5588_v63 = vadd.f32 %v3613_v56, %v6919_v34  ;;  %v3615_v5 = vpop.f32.mrb[37].mxu0  ;;  %v7131_v1 = vpop.f32.mrb[110].mxu1 }
 0x1fc   : > { %v3616_v30 = vpop.f32.mrb[38].mxu0  ;;  %v3835_v7 = vpop.f32.mrb[111].mxu1 }
 0x1fd   : > { %v5590_v52 = vadd.f32 %v3616_v30, %v6923_v41  ;;  %v7135_v57 = vadd.f32 %v5588_v63, %v7076_v54  ;;  %v3618_v33 = vpop.f32.mrb[39].mxu0 }
 0x1fe   : > { %v7156_v33 = vpop.permute.xlu1 %4065 }
 0x1ff   : > { %v7138_v18 = vadd.f32 %v5590_v52, %v7078_v4  ;;  %8036 = vst [vmem:[#allocation10_spill] sm:$0xff] %v7156_v33 }
 0x201   : > { %v7142_v40 = vpop.f32.mrb[112].mxu1 }
 0x202   : > { %v3621_v34 = vpop.f32.mrb[40].mxu0  ;;  %v3840_v56 = vpop.f32.mrb[113].mxu1 }
 0x203   : > { %v5592_v3 = vadd.f32 %v3621_v34, %v6931_v62  ;;  %v3623_v5 = vpop.f32.mrb[41].mxu0  ;;  %v7147_v7 = vpop.f32.mrb[114].mxu1 }
 0x204   : > { %v3624_v41 = vpop.f32.mrb[42].mxu0  ;;  %v3843_v54 = vpop.f32.mrb[115].mxu1 }
 0x205   : > { %v7150_v63 = vadd.f32 %v5592_v3, %v7080_v11  ;;  %v5594_v4 = vadd.f32 %v3624_v41, %v6935_v6  ;;  %v3626_v30 = vpop.f32.mrb[43].mxu0  ;;  %v7160_v56 = vpop.permute.xlu0 %4070 }
 0x206   : > { %8037 = vst [vmem:[#allocation11_spill] sm:$0xff] %v7160_v56  ;;  %v7172_v30 = vpop.permute.xlu1 %4075 }
 0x207   : > { %v7154_v52 = vadd.f32 %v5594_v4, %v7083_v32  ;;  %8038 = vst [vmem:[#allocation12_spill] sm:$0xff] %v7172_v30 }
 0x209   : > { %v7158_v0 = vpop.f32.mrb[116].mxu1 }
 0x20a   : > { %v3629_v62 = vpop.f32.mrb[44].mxu0  ;;  %v3848_v34 = vpop.f32.mrb[117].mxu1 }
 0x20b   : > { %v5596_v5 = vadd.f32 %v3629_v62, %v6942_v24  ;;  %v3631_v54 = vpop.f32.mrb[45].mxu0  ;;  %v7163_v59 = vpop.f32.mrb[118].mxu1 }
 0x20c   : > { %v3632_v11 = vpop.f32.mrb[46].mxu0  ;;  %v3851_v3 = vpop.f32.mrb[119].mxu1 }
 0x20d   : > { %v5598_v6 = vadd.f32 %v3632_v11, %v6946_v35  ;;  %v3634_v41 = vpop.f32.mrb[47].mxu0  ;;  %v7167_v32 = vadd.f32 %v5596_v5, %v7092_v44  ;;  %v7176_v34 = vpop.permute.xlu0 %4080 }
 0x20e   : > { %8040 = vst [vmem:[#allocation14_spill] sm:$0xff] %v7176_v34  ;;  %v7188_v41 = vpop.permute.xlu1 %4085 }
 0x20f   : > { %v7170_v4 = vadd.f32 %v5598_v6, %v7095_v61  ;;  %8042 = vst [vmem:[#allocation16_spill] sm:$0xff] %v7188_v41 }
 0x211   : > { %v7174_v37 = vpop.f32.mrb[120].mxu1 }
 0x212   : > { %8039 = vst [vmem:[#allocation13_spill] sm:$0xff] %v7174_v37  ;;  %v3637_v24 = vpop.f32.mrb[48].mxu0  ;;  %v3856_v62 = vpop.f32.mrb[121].mxu1 }
 0x213   : > { %v5600_v54 = vadd.f32 %v3637_v24, %v6952_v46  ;;  %v3639_v3 = vpop.f32.mrb[49].mxu0  ;;  %v7179_v56 = vpop.f32.mrb[122].mxu1 }
 0x214   : > { %8041 = vst [vmem:[#allocation15_spill] sm:$0xff] %v7179_v56  ;;  %v3640_v35 = vpop.f32.mrb[50].mxu0  ;;  %v3859_v11 = vpop.f32.mrb[123].mxu1 }
 0x215   : > { %v5602_v44 = vadd.f32 %v3640_v35, %v6955_v53  ;;  %v3642_v5 = vpop.f32.mrb[51].mxu0  ;;  %v7183_v61 = vadd.f32 %v5600_v54, %v7102_v28  ;;  %v7192_v62 = vpop.permute.xlu0 %4090 }
 0x216   : > { %8043 = vst [vmem:[#allocation17_spill] sm:$0xff] %v7192_v62  ;;  %v7208_v41 = vpop.permute.xlu1 %4095 }
 0x217   : > { %v7186_v6 = vadd.f32 %v5602_v44, %v7105_v55  ;;  %8044 = vst [vmem:[#allocation18_spill] sm:$0xff] %v7208_v41 }
 0x219   : > { %v7190_v34 = vpop.f32.mrb[124].mxu1 }
 0x21a   : > { %v3645_v46 = vpop.f32.mrb[52].mxu0  ;;  %v7194_v24 = vpop.f32.mrb[125].mxu1 }
 0x21b   : > { %v5604_v3 = vadd.f32 %v3645_v46, %v6960_v50  ;;  %v3647_v11 = vpop.f32.mrb[53].mxu0  ;;  %v7197_v53 = vpop.f32.mrb[126].mxu1 }
 0x21c   : > { %v3648_v35 = vpop.f32.mrb[54].mxu0  ;;  %v7199_v28 = vpop.f32.mrb[127].mxu1 }
 0x21d   : > { %v5606_v55 = vadd.f32 %v3648_v35, %v6962_v58  ;;  %v3650_v54 = vpop.f32.mrb[55].mxu0  ;;  %v7203_v44 = vadd.f32 %v5604_v3, %v7112_v38  ;;  %v7212_v50 = vpop.permute.xlu0 %4100 }
 0x21e   : > { %8046 = vst [vmem:[#allocation20_spill] sm:$0xff] %v7212_v50 }
 0x21f   : > { %v7206_v5 = vadd.f32 %v5606_v55, %v7117_v21 }
 0x221   : > { %v7210_v30 = vpop.f32.mrb[128].mxu1  ;;  %v7230_v33 = vpop.permute.xlu0 %4110 }
 0x222   : > { %8045 = vst [vmem:[#allocation19_spill] sm:$0xff] %v7210_v30  ;;  %v3653_v46 = vpop.f32.mrb[56].mxu0  ;;  %v7214_v11 = vpop.f32.mrb[129].mxu1  ;;  %8050 = vst [vmem:[#allocation24_spill] sm:$0xff] %v7230_v33 }
 0x223   : > { %v5608_v56 = vadd.f32 %v3653_v46, %v6967_v60  ;;  %v3655_v37 = vpop.f32.mrb[57].mxu0  ;;  %v7217_v58 = vpop.f32.mrb[130].mxu1 }
 0x224   : > { %8047 = vst [vmem:[#allocation21_spill] sm:$0xff] %v7217_v58  ;;  %v3656_v35 = vpop.f32.mrb[58].mxu0  ;;  %v7219_v38 = vpop.f32.mrb[131].mxu1 }
 0x225   : > { %v5610_v21 = vadd.f32 %v3656_v35, %v6969_v8  ;;  %v3658_v3 = vpop.f32.mrb[59].mxu0  ;;  %v7223_v55 = vadd.f32 %v5608_v56, %v7126_v36  ;;  %v7228_v30 = vpop.permute.xlu1 %4105 }
 0x226   : > { %8049 = vst [vmem:[#allocation23_spill] sm:$0xff] %v7228_v30 }
 0x227   : > { %v7226_v54 = vadd.f32 %v5610_v21, %v7131_v1 }
 0x229   : > { %8048 = vst [vmem:[#allocation22_spill] sm:$0xff] %v7226_v54  ;;  %v5504_v31 = vpop.f32.mrb[132].mxu1 }
 0x22a   : > { %v3661_v37 = vpop.f32.mrb[60].mxu0  ;;  %v7233_v60 = vadd.f32 %v7087_v29, %v5504_v31  ;;  %v7235_v46 = vpop.f32.mrb[133].mxu1 }
 0x22b   : > { %8052 = vst [vmem:[#allocation26_spill] sm:$0xff] %v7235_v46  ;;  %v5612_v8 = vadd.f32 %v3661_v37, %v6971_v10  ;;  %v3663_v35 = vpop.f32.mrb[61].mxu0  ;;  %v5505_v3 = vpop.f32.mrb[134].mxu1 }
 0x22c   : > { %8051 = vst [vmem:[#allocation25_spill] sm:$0xff] %v7233_v60  ;;  %v7240_v36 = vmul.f32 %v7192_v62, %v7233_v60  ;;  %v3664_v1 = vpop.f32.mrb[62].mxu0  ;;  %v7243_v56 = vadd.f32 %v7090_v42, %v5505_v3  ;;  %v7245_v21 = vpop.f32.mrb[135].mxu1 }
 0x22d   : > { %8055 = vst [vmem:[#allocation29_spill] sm:$0xff] %v7245_v21  ;;  %v5614_v58 = vadd.f32 %v3664_v1, %v6973_v13  ;;  %v3666_v31 = vpop.f32.mrb[63].mxu0  ;;  %v7249_v29 = vadd.f32 %v5612_v8, %v7142_v40  ;;  %v7262_v13 = vpop.permute.xlu1 %4115 }
 0x22e   : > { %8053 = vst [vmem:[#allocation27_spill] sm:$0xff] %v7240_v36  ;;  %8054 = vst [vmem:[#allocation28_spill] sm:$0xff] %v7243_v56  ;;  %v5426_v10 = vpack.c.bf16 %v7240_v36, %v7240_v36  ;;  %v7255_v37 = vmul.f32 %v7208_v41, %v7243_v56  ;;  %v7264_v40 = vpop.permute.xlu0 %4120 }
 0x22f   : > { %v7258_v35 = vadd.f32 %v5614_v58, %v7147_v7  ;;  %8058 = vst [vmem:[#allocation32_spill] sm:$0xff] %v7262_v13  ;;  %8059 = vst [vmem:[#allocation33_spill] sm:$0xff] %v7264_v40 }
 0x230   : > { %8056 = vst [vmem:[#allocation30_spill] sm:$0xff] %v7255_v37  ;;  %v4700_v42 = vshrl.u32 %v5426_v10, 16  ;;  %v4703_v3 = vshll.u32 %v5426_v10, 16  ;;  %v5427_v62 = vpack.c.bf16 %v7255_v37, %v7255_v37 }
 0x231   : > { %8057 = vst [vmem:[#allocation31_spill] sm:$0xff] %v7258_v35  ;;  %v5508_v8 = vpop.f32.mrb[136].mxu1 }
 0x232   : > { %v4702_v1 = vrot.slane %v4700_v42, 6  ;;  %v4705_v31 = vrot.slane %v4703_v3, 7  ;;  %v4710_v60 = vshrl.u32 %v5427_v62, 16  ;;  %v4713_v41 = vshll.u32 %v5427_v62, 16  ;;  %v3669_v56 = vpop.f32.mrb[64].mxu0  ;;  %v3943_v36 = vpop.f32.mrb[137].mxu1 }
 0x233   : > { %v5616_v7 = vadd.f32 %v3669_v56, %v6975_v15  ;;  %v7268_v58 = vadd.f32 %v7108_v51, %v5508_v8  ;;  %v3671_v10 = vpop.f32.mrb[65].mxu0  ;;  %v7271_v37 = vadd.f32 %v7098_v12, %v3943_v36  ;;  %v5509_v21 = vpop.f32.mrb[138].mxu1 }
 0x234   : > { %v7273_v46 = vor.u32 %v4705_v31, %v4702_v1  ;;  %v4712_v54 = vrot.slane %v4710_v60, 6  ;;  %v4715_v35 = vrot.slane %v4713_v41, 7  ;;  %v3672_v42 = vpop.f32.mrb[66].mxu0  ;;  %v7276_v3 = vadd.f32 %v7110_v27, %v5509_v21  ;;  %v3946_v62 = vpop.f32.mrb[139].mxu1 }
 0x235   : > { %8060 = vst [vmem:[#allocation34_spill] sm:$0xff] %v7268_v58  ;;  %8061 = vst [vmem:[#allocation35_spill] sm:$0xff] %v7271_v37  ;;  %v7286_v12 = vmul.f32 %v7230_v33, %v7268_v58  ;;  %v7290_v51 = vmul.f32 %v7212_v50, %v7271_v37  ;;  %v5618_v41 = vadd.f32 %v3672_v42, %v6977_v16  ;;  %v3674_v27 = vpop.f32.mrb[67].mxu0 }
 0x236   : > { %8062 = vst [vmem:[#allocation36_spill] sm:$0xff] %v7273_v46  ;;  %8063 = vst [vmem:[#allocation37_spill] sm:$0xff] %v7276_v3  ;;  %v7294_v60 = vadd.f32 %v7100_v14, %v3946_v62  ;;  %v4708_v36 = vrot.slane %v7273_v46, 4  ;;  %v4716_v56 = vor.u32 %v4715_v35, %v4712_v54  ;;  %v7299_v21 = vmul.f32 %v7262_v13, %v7276_v3  ;;  %v7322_v13 = vpop.permute.xlu0 %4130 }
 0x237   : > { %8066 = vst [vmem:[#allocation38_spill] sm:$0xff] %v7286_v12  ;;  %8067 = vst [vmem:[#allocation39_spill] sm:$0xff] %v7290_v51  ;;  %v7302_v8 = vadd.f32 %v5616_v7, %v7158_v0  ;;  %v5430_v1 = vpack.c.bf16 %v7286_v12, %v7286_v12  ;;  %v5428_v16 = vpack.c.bf16 %v7290_v51, %v7290_v51  ;;  %v7319_v7 = vpop.permute.xlu1 %4125 }
 0x238   : > { %8068 = vst [vmem:[#allocation40_spill] sm:$0xff] %v7294_v60  ;;  %8069 = vst [vmem:[#allocation41_spill] sm:$0xff] %v7299_v21  ;;  %v7310_v14 = vmul.f32 %v7228_v30, %v7294_v60  ;;  %v7313_v31 = vadd.f32 %v5618_v41, %v7163_v59  ;;  %v4717_v54 = vsel %vm7280_vm8, %v4708_v36, %v4716_v56  ;;  %v4718_v35 = vrot.slane %v4716_v56, 4 }
 0x239   : > { %8070 = vst [vmem:[#allocation42_spill] sm:$0xff] %v7302_v8  ;;  %v5431_v0 = vpack.c.bf16 %v7299_v21, %v7299_v21  ;;  %8073 = vst [vmem:[#allocation45_spill] sm:$0xff] %v7319_v7  ;;  %v4740_v10 = vshrl.u32 %v5430_v1, 16  ;;  %v4743_v42 = vshll.u32 %v5430_v1, 16  ;;  %v4720_v62 = vshrl.u32 %v5428_v16, 16  ;;  %v5512_v33 = vpop.f32.mrb[140].mxu1 }
 0x23a   : > { %8071 = vst [vmem:[#allocation43_spill] sm:$0xff] %v7310_v14  ;;  %8072 = vst [vmem:[#allocation44_spill] sm:$0xff] %v7313_v31  ;;  %v4723_v27 = vshll.u32 %v5428_v16, 16  ;;  %v5429_v41 = vpack.c.bf16 %v7310_v14, %v7310_v14  ;;  %v3677_v36 = vpop.f32.mrb[68].mxu0  ;;  %v7327_v56 = vadd.f32 %v7135_v57, %v5512_v33  ;;  %v3959_v3 = vpop.f32.mrb[141].mxu1 }
 0x23b   : > { %5012 = vst [vmem:[%s6992_s25 + $0x34] sm:$0xf] %v4717_v54  ;;  %8074 = vst [vmem:[#allocation46_spill] sm:$0xff] %v7322_v13  ;;  %v4750_v30 = vshrl.u32 %v5431_v0, 16  ;;  %v4753_v59 = vshll.u32 %v5431_v0, 16  ;;  %v4742_v50 = vrot.slane %v4740_v10, 6  ;;  %v7330_v8 = vadd.f32 %v3677_v36, %v6979_v19 }
 0x23c   : > { %8075 = vst [vmem:[#allocation47_spill] sm:$0xff] %v7327_v56  ;;  %v4745_v58 = vrot.slane %v4743_v42, 7  ;;  %v4722_v54 = vrot.slane %v4720_v62, 6  ;;  %v4725_v60 = vrot.slane %v4723_v27, 7  ;;  %v3679_v1 = vpop.f32.mrb[69].mxu0  ;;  %v5513_v37 = vpop.f32.mrb[142].mxu1  ;;  %v7334_v57 = vmul.f32 %v7322_v13, %v7327_v56 }
 0x23d   : > { %v4752_v16 = vrot.slane %v4750_v30, 6  ;;  %v4755_v21 = vrot.slane %v4753_v59, 7  ;;  %v4730_v46 = vshrl.u32 %v5429_v41, 16  ;;  %v4733_v12 = vshll.u32 %v5429_v41, 16  ;;  %v3680_v0 = vpop.f32.mrb[70].mxu0  ;;  %v3962_v51 = vpop.f32.mrb[143].mxu1 }
 0x23e   : > { %v4746_v31 = vor.u32 %v4745_v58, %v4742_v50  ;;  %v4726_v14 = vor.u32 %v4725_v60, %v4722_v54  ;;  %v3682_v33 = vpop.f32.mrb[71].mxu0  ;;  %v7339_v62 = vadd.f32 %v7120_v43, %v3959_v3  ;;  %v5434_v19 = vpack.c.bf16 %v7334_v57, %v7334_v57 }
 0x23f   : > { %v7336_v10 = vor.u32 %v4755_v21, %v4752_v16  ;;  %v4732_v42 = vrot.slane %v4730_v46, 6  ;;  %v4735_v30 = vrot.slane %v4733_v12, 7  ;;  %v7347_v21 = vpop.permute.xlu1 %4135  ;;  %v7354_v46 = vadd.f32 %v3680_v0, %v6981_v23  ;;  %v7359_v12 = vpop.permute.xlu0 %4140 }
 0x240   : > { %8076 = vst [vmem:[#allocation48_spill] sm:$0xff] %v7339_v62  ;;  %v4748_v27 = vrot.slane %v4746_v31, 4  ;;  %v4727_v50 = vsel %vm7280_vm8, %v4718_v35, %v4726_v14  ;;  %v4728_v58 = vrot.slane %v4726_v14, 4  ;;  %8077 = vst [vmem:[#allocation49_spill] sm:$0xff] %v7347_v21  ;;  %v7351_v43 = vmul.f32 %v7264_v40, %v7339_v62 }
 0x241   : > { %5013 = vst [vmem:[%s6992_s25 + $0x38] sm:$0xf] %v4727_v50  ;;  %v4758_v60 = vrot.slane %v7336_v10, 4  ;;  %v4736_v59 = vor.u32 %v4735_v30, %v4732_v42  ;;  %8078 = vst [vmem:[#allocation50_spill] sm:$0xff] %v7359_v12  ;;  %v4780_v14 = vshrl.u32 %v5434_v19, 16  ;;  %v4783_v35 = vshll.u32 %v5434_v19, 16 }
 0x242   : > { %v4757_v3 = vsel %vm7280_vm8, %v4748_v27, %v7336_v10  ;;  %v7362_v41 = vadd.f32 %v7138_v18, %v5513_v37  ;;  %v5516_v36 = vpop.f32.mrb[144].mxu1  ;;  %v5432_v23 = vpack.c.bf16 %v7351_v43, %v7351_v43  ;;  %v7370_v16 = vadd.f32 %v7122_v45, %v3962_v51  ;;  %v3718_v0 = vpop.f32.mrb[0].mxu0 }
 0x243   : > { %5016 = vst [vmem:[%s6992_s25 + $0x44] sm:$0xf] %v4757_v3  ;;  %v4737_v54 = vsel %vm7280_vm8, %v4728_v58, %v4736_v59  ;;  %v4738_v1 = vrot.slane %v4736_v59, 4  ;;  %v3975_v33 = vpop.f32.mrb[145].mxu1  ;;  %v4782_v10 = vrot.slane %v4780_v14, 6  ;;  %v4785_v42 = vrot.slane %v4783_v35, 7 }
 0x244   : > { %8079 = vst [vmem:[#allocation51_spill] sm:$0xff] %v7362_v41  ;;  %8080 = vst [vmem:[#allocation52_spill] sm:$0xff] %v7370_v16  ;;  %v7375_v18 = vmul.f32 %v7347_v21, %v7362_v41  ;;  %v5562_v37 = vadd.f32 %v3718_v0, %v6698_v9  ;;  %v3720_v30 = vpop.f32.mrb[1].mxu0  ;;  %v5517_v27 = vpop.f32.mrb[146].mxu1  ;;  %v4760_v51 = vshrl.u32 %v5432_v23, 16  ;;  %v4763_v50 = vshll.u32 %v5432_v23, 16 }
 0x245   : > { %5014 = vst [vmem:[%s6992_s25 + $0x3c] sm:$0xf] %v4737_v54  ;;  %v4747_v45 = vsel %vm7280_vm8, %v4738_v1, %v4746_v31  ;;  %v7382_v58 = vmul.f32 %v7319_v7, %v7370_v16  ;;  %v3721_v19 = vpop.f32.mrb[2].mxu0  ;;  %v7384_v59 = vpop.f32.mrb[147].mxu1  ;;  %v4786_v3 = vor.u32 %v4785_v42, %v4782_v10  ;;  %v7393_v35 = vadd.f32 %v7167_v32, %v5516_v36 }
 0x246   : > { %5015 = vst [vmem:[%s6992_s25 + $0x40] sm:$0xf] %v4747_v45  ;;  %v5435_v9 = vpack.c.bf16 %v7375_v18, %v7375_v18  ;;  %v7390_v14 = vadd.f32 %v5562_v37, %v7194_v24  ;;  %v3723_v31 = vpop.f32.mrb[3].mxu0  ;;  %v4762_v54 = vrot.slane %v4760_v51, 6  ;;  %v4765_v1 = vrot.slane %v4763_v50, 7  ;;  %v7400_v45 = vpop.permute.xlu0 %4150 }
 0x247   : > { %8082 = vst [vmem:[#allocation54_spill] sm:$0xff] %v7393_v35  ;;  %v5433_v23 = vpack.c.bf16 %v7382_v58, %v7382_v58  ;;  %v7398_v0 = vadd.f32 %v7150_v63, %v3975_v33  ;;  %v4788_v30 = vrot.slane %v4786_v3, 4  ;;  %8084 = vst [vmem:[#allocation56_spill] sm:$0xff] %v7400_v45  ;;  %v7408_v51 = vmul.f32 %v7400_v45, %v7393_v35  ;;  %v7410_v33 = vpop.permute.xlu1 %4145 }
 0x248   : > { %8081 = vst [vmem:[#allocation53_spill] sm:$0xff] %v7390_v14  ;;  %v4790_v10 = vshrl.u32 %v5435_v9, 16  ;;  %v4793_v42 = vshll.u32 %v5435_v9, 16  ;;  %v7404_v24 = vmul.f32 %v7114_v25, %v7390_v14  ;;  %v4766_v32 = vor.u32 %v4765_v1, %v4762_v54  ;;  %8085 = vst [vmem:[#allocation57_spill] sm:$0xff] %v7410_v33 }
 0x249   : > { %8083 = vst [vmem:[#allocation55_spill] sm:$0xff] %v7398_v0  ;;  %v4770_v36 = vshrl.u32 %v5433_v23, 16  ;;  %v4773_v37 = vshll.u32 %v5433_v23, 16  ;;  %v7416_v31 = vmul.f32 %v7359_v12, %v7398_v0  ;;  %v5520_v21 = vpop.f32.mrb[148].mxu1  ;;  %v5438_v41 = vpack.c.bf16 %v7408_v51, %v7408_v51 }
 0x24a   : > { %v4792_v50 = vrot.slane %v4790_v10, 6  ;;  %v4795_v63 = vrot.slane %v4793_v42, 7  ;;  %v5416_v9 = vpack.c.bf16 %v7404_v24, %v7404_v24  ;;  %v4767_v54 = vsel %vm7280_vm8, %v4758_v60, %v4766_v32  ;;  %v3726_v45 = vpop.f32.mrb[4].mxu0  ;;  %v3991_v35 = vpop.f32.mrb[149].mxu1 }
 0x24b   : > { %v4768_v1 = vrot.slane %v4766_v32, 4  ;;  %v4772_v23 = vrot.slane %v4770_v36, 6  ;;  %v4775_v13 = vrot.slane %v4773_v37, 7  ;;  %5017 = vst [vmem:[%s6992_s25 + $0x48] sm:$0xf] %v4767_v54  ;;  %v3728_v40 = vpop.f32.mrb[5].mxu0  ;;  %v5436_v60 = vpack.c.bf16 %v7416_v31, %v7416_v31 }
 0x24c   : > { %v4796_v10 = vor.u32 %v4795_v63, %v4792_v50  ;;  %v4601_v42 = vshrl.u32 %v5416_v9, 16  ;;  %v4604_v7 = vshll.u32 %v5416_v9, 16  ;;  %v7423_v12 = vpop.f32.mrb[150].mxu1  ;;  %v5563_v32 = vadd.f32 %v3721_v19, %v6708_v17  ;;  %v7431_v37 = vpop.f32.mrb[6].mxu0 }
 0x24d   : > { %v4776_v0 = vor.u32 %v4775_v13, %v4772_v23  ;;  %v7429_v36 = vadd.f32 %v7170_v4, %v5517_v27  ;;  %v7433_v50 = vpop.f32.mrb[151].mxu1  ;;  %v3731_v13 = vpop.f32.mrb[7].mxu0  ;;  %v4999_v27 = vld [vmem:[%s6992_s25 + $0x8] sm:$0xe]  ;;  %v4820_v19 = vshrl.u32 %v5438_v41, 16  ;;  %v4823_v56 = vshll.u32 %v5438_v41, 16 }
 0x24e   : > { %v4797_v40 = vsel %vm7280_vm8, %v4788_v30, %v4796_v10  ;;  %v4798_v63 = vrot.slane %v4796_v10, 4  ;;  %v4603_v9 = vrot.slane %v4601_v42, 6  ;;  %v4606_v54 = vrot.slane %v4604_v7, 7  ;;  %v7448_v30 = vpop.permute.xlu1 %4155 }
 0x24f   : > { %8086 = vst [vmem:[#allocation58_spill] sm:$0xff] %v7429_v36  ;;  %5020 = vst [vmem:[%s6992_s25 + $0x54] sm:$0xf] %v4797_v40  ;;  %v4777_v23 = vsel %vm7280_vm8, %v4768_v1, %v4776_v0  ;;  %v4778_v17 = vrot.slane %v4776_v0, 4  ;;  %v4800_v10 = vshrl.u32 %v5436_v60, 16  ;;  %v4803_v42 = vshll.u32 %v5436_v60, 16  ;;  %v7457_v40 = vpop.permute.xlu0 %4160 }
 0x250   : > { %5018 = vst [vmem:[%s6992_s25 + $0x4c] sm:$0xf] %v4777_v23  ;;  %8089 = vst [vmem:[#allocation59_spill] sm:$0xff] %v7448_v30  ;;  %v7450_v7 = vor.u32 %v4606_v54, %v4603_v9  ;;  %v7453_v0 = vadd.f32 %v5563_v32, %v7199_v28  ;;  %v4822_v13 = vrot.slane %v4820_v19, 6  ;;  %v4825_v16 = vrot.slane %v4823_v56, 7 }
 0x251   : > { %v4787_v1 = vsel %vm7280_vm8, %v4778_v17, %v4786_v3  ;;  %8091 = vst [vmem:[#allocation61_spill] sm:$0xff] %v7457_v40  ;;  %v7461_v41 = vmul.f32 %v7448_v30, %v7429_v36  ;;  %v4802_v28 = vrot.slane %v4800_v10, 6  ;;  %v4805_v32 = vrot.slane %v4803_v42, 7  ;;  %v7468_v54 = vpop.f32.mrb[152].mxu1 }
 0x252   : > { %8090 = vst [vmem:[#allocation60_spill] sm:$0xff] %v7453_v0  ;;  %5019 = vst [vmem:[%s6992_s25 + $0x50] sm:$0xf] %v4787_v1  ;;  %v4608_v9 = vrot.slane %v7450_v7, 4  ;;  %v5000_v60 = vsel %vm7442_vm11, %v7450_v7, %v4999_v27  ;;  %v7471_v3 = vor.u32 %v4825_v16, %v4822_v13  ;;  %v4219_v56 = vmul.f32 %v7128_v49, %v7453_v0  ;;  %v7481_v19 = vpop.f32.mrb[8].mxu0  ;;  %v7483_v4 = vpop.f32.mrb[153].mxu1 }
 0x253   : > { %5001 = vst [vmem:[%s6992_s25 + $0x8] sm:$0xe] %v5000_v60  ;;  %v5439_v23 = vpack.c.bf16 %v7461_v41, %v7461_v41  ;;  %v7479_v17 = vadd.f32 %v7154_v52, %v7384_v59  ;;  %v7485_v27 = vor.u32 %v4805_v32, %v4802_v28  ;;  %v5564_v7 = vadd.f32 %v3726_v45, %v6728_v39  ;;  %v3736_v42 = vpop.f32.mrb[9].mxu0  ;;  %v7494_v1 = vpop.f32.mrb[154].mxu1 }
 0x254   : > { %v7489_v16 = vadd.f32 %v7203_v44, %v5520_v21  ;;  %v7492_v10 = vadd.f32 %v7183_v61, %v3991_v35  ;;  %v4828_v52 = vrot.slane %v7471_v3, 4  ;;  %v4254_v59 = vadd.f32 %v4219_v56, %v7404_v24  ;;  %v7498_v28 = vpop.f32.mrb[10].mxu0  ;;  %v7500_v32 = vpop.f32.mrb[155].mxu1 }
 0x255   : > { %8092 = vst [vmem:[#allocation62_spill] sm:$0xff] %v7479_v17  ;;  %v5417_v13 = vpack.c.bf16 %v4219_v56, %v4219_v56  ;;  %v4830_v60 = vshrl.u32 %v5439_v23, 16  ;;  %v4807_v39 = vsel %vm7280_vm8, %v4798_v63, %v7485_v27  ;;  %v4808_v61 = vrot.slane %v7485_v27, 4  ;;  %v3739_v35 = vpop.f32.mrb[11].mxu0  ;;  %v7511_v42 = vpop.permute.xlu0 %4170 }
 0x256   : > { %8093 = vst [vmem:[#allocation63_spill] sm:$0xff] %v7489_v16  ;;  %8094 = vst [vmem:[#allocation64_spill] sm:$0xff] %v7492_v10  ;;  %v4833_v44 = vshll.u32 %v5439_v23, 16  ;;  %v7508_v21 = vmul.f32 %v7410_v33, %v7479_v17  ;;  %v7514_v30 = vadd.f32 %v5564_v7, %v7190_v34  ;;  %v7520_v23 = vmul.f32 %v7511_v42, %v7489_v16 }
 0x257   : > { %5021 = vst [vmem:[%s6992_s25 + $0x58] sm:$0xf] %v4807_v39  ;;  %v4610_v45 = vshrl.u32 %v5417_v13, 16  ;;  %v4613_v24 = vshll.u32 %v5417_v13, 16  ;;  %v4832_v56 = vrot.slane %v4830_v60, 6  ;;  %8095 = vst [vmem:[#allocation65_spill] sm:$0xff] %v7511_v42  ;;  %v7524_v27 = vmul.f32 %v7457_v40, %v7492_v10 }
 0x258   : > { %8096 = vst [vmem:[#allocation66_spill] sm:$0xff] %v7514_v30  ;;  %v4835_v36 = vrot.slane %v4833_v44, 7  ;;  %v5437_v63 = vpack.c.bf16 %v7508_v21, %v7508_v21  ;;  %8097 = vst [vmem:[#allocation67_spill] sm:$0xff] %v7520_v23  ;;  %v4220_v60 = vmul.f32 %v7124_v26, %v7514_v30  ;;  %v5565_v34 = vadd.f32 %v7431_v37, %v6739_v48  ;;  %v7532_v44 = vpop.permute.xlu1 %4165 }
 0x259   : > { %v4612_v39 = vrot.slane %v4610_v45, 6  ;;  %v4615_v13 = vrot.slane %v4613_v24, 7  ;;  %v5442_v42 = vpack.c.bf16 %v7520_v23, %v7520_v23  ;;  %v7536_v40 = vpop.f32.mrb[156].mxu1  ;;  %v5440_v10 = vpack.c.bf16 %v7524_v27, %v7524_v27 }
 0x25a   : > { %v7530_v7 = vor.u32 %v4835_v36, %v4832_v56  ;;  %v4810_v35 = vshrl.u32 %v5437_v63, 16  ;;  %v4813_v33 = vshll.u32 %v5437_v63, 16  ;;  %v4255_v24 = vadd.f32 %v4254_v59, %v4220_v60  ;;  %v7540_v48 = vpop.f32.mrb[12].mxu0  ;;  %v7542_v36 = vpop.f32.mrb[157].mxu1 }
 0x25b   : > { %v4616_v45 = vor.u32 %v4615_v13, %v4612_v39  ;;  %v5418_v16 = vpack.c.bf16 %v4220_v60, %v4220_v60  ;;  %v3744_v62 = vpop.f32.mrb[13].mxu0  ;;  %v7548_v39 = vpop.f32.mrb[158].mxu1  ;;  %v4843_v14 = vshll.u32 %v5440_v10, 16 }
 0x25c   : > { %v4837_v37 = vsel %vm7280_vm8, %v4828_v52, %v7530_v7  ;;  %v4838_v56 = vrot.slane %v7530_v7, 4  ;;  %v4812_v63 = vrot.slane %v4810_v35, 6  ;;  %v4815_v17 = vrot.slane %v4813_v33, 7  ;;  %v7553_v49 = vpop.f32.mrb[14].mxu0  ;;  %v7555_v25 = vpop.f32.mrb[159].mxu1 }
 0x25d   : > { %v4617_v59 = vsel %vm7280_vm8, %v4608_v9, %v4616_v45  ;;  %v4618_v13 = vrot.slane %v4616_v45, 4  ;;  %5024 = vst [vmem:[%s6992_s25 + $0x64] sm:$0xf] %v4837_v37  ;;  %v4620_v60 = vshrl.u32 %v5418_v16, 16  ;;  %v4623_v26 = vshll.u32 %v5418_v16, 16  ;;  %v3747_v62 = vpop.f32.mrb[15].mxu0  ;;  %v7563_v37 = vpop.permute.xlu0 %4180 }
 0x25e   : > { %5002 = vst [vmem:[%s6992_s25 + $0xc] sm:$0xf] %v4617_v59  ;;  %v4816_v52 = vor.u32 %v4815_v17, %v4812_v63  ;;  %v4860_v7 = vshrl.u32 %v5442_v42, 16  ;;  %v4863_v35 = vshll.u32 %v5442_v42, 16  ;;  %v4840_v33 = vshrl.u32 %v5440_v10, 16  ;;  %8098 = vst [vmem:[#allocation68_spill] sm:$0xff] %v7563_v37 }
 0x25f   : > { %v4622_v30 = vrot.slane %v4620_v60, 6  ;;  %v4625_v0 = vrot.slane %v4623_v26, 7  ;;  %v7559_v9 = vadd.f32 %v5565_v34, %v7197_v53  ;;  %v4845_v63 = vrot.slane %v4843_v14, 7 }
 0x260   : > { %v4817_v16 = vsel %vm7280_vm8, %v4808_v61, %v4816_v52  ;;  %v4818_v45 = vrot.slane %v4816_v52, 4  ;;  %v4862_v23 = vrot.slane %v4860_v7, 6  ;;  %v4865_v59 = vrot.slane %v4863_v35, 7 }
 0x261   : > { %5022 = vst [vmem:[%s6992_s25 + $0x5c] sm:$0xf] %v4817_v16  ;;  %v4626_v17 = vor.u32 %v4625_v0, %v4622_v30  ;;  %v4842_v42 = vrot.slane %v4840_v33, 6  ;;  %v4221_v26 = vmul.f32 %v7140_v20, %v7559_v9  ;;  %v7575_v61 = vadd.f32 %v7206_v5, %v7423_v12  ;;  %v7582_v30 = vpop.permute.xlu1 %4175 }
 0x262   : > { %v4827_v53 = vsel %vm7280_vm8, %v4818_v45, %v7471_v3  ;;  %v7571_v10 = vor.u32 %v4865_v59, %v4862_v23  ;;  %v7579_v34 = vadd.f32 %v7186_v6, %v7433_v50  ;;  %v7586_v23 = vpop.f32.mrb[16].mxu0  ;;  %v7604_v35 = vadd.f32 %v7249_v29, %v7468_v54  ;;  %v7611_v59 = vpop.permute.xlu0 %4190 }
 0x263   : > { %5023 = vst [vmem:[%s6992_s25 + $0x60] sm:$0xf] %v4827_v53  ;;  %v4627_v14 = vsel %vm7280_vm8, %v4618_v13, %v4626_v17  ;;  %v4628_v0 = vrot.slane %v4626_v17, 4  ;;  %v4846_v60 = vor.u32 %v4845_v63, %v4842_v42  ;;  %v4256_v3 = vadd.f32 %v4255_v24, %v4221_v26  ;;  %v3752_v52 = vpop.f32.mrb[17].mxu0  ;;  %8100 = vst [vmem:[#allocation70_spill] sm:$0xff] %v7611_v59 }
 0x264   : > { %5003 = vst [vmem:[%s6992_s25 + $0x10] sm:$0xf] %v4627_v14  ;;  %v4868_v5 = vrot.slane %v7571_v10, 4  ;;  %v5419_v12 = vpack.c.bf16 %v4221_v26, %v4221_v26  ;;  %v7592_v6 = vmul.f32 %v7582_v30, %v7575_v61  ;;  %v7596_v50 = vmul.f32 %v7532_v44, %v7579_v34  ;;  %8099 = vst [vmem:[#allocation69_spill] sm:$0xff] %v7604_v35  ;;  %v7606_v33 = vpop.f32.mrb[18].mxu0 }
 0x265   : > { %v4847_v13 = vsel %vm7280_vm8, %v4838_v56, %v4846_v60  ;;  %v4848_v7 = vrot.slane %v4846_v60, 4  ;;  %v5566_v24 = vadd.f32 %v7481_v19, %v6757_v2  ;;  %v3755_v17 = vpop.f32.mrb[19].mxu0  ;;  %v7620_v29 = vmul.f32 %v7611_v59, %v7604_v35 }
 0x266   : > { %5025 = vst [vmem:[%s6992_s25 + $0x68] sm:$0xf] %v4847_v13  ;;  %v4630_v62 = vshrl.u32 %v5419_v12, 16  ;;  %v4633_v16 = vshll.u32 %v5419_v12, 16  ;;  %v5443_v45 = vpack.c.bf16 %v7592_v6, %v7592_v6  ;;  %v5441_v56 = vpack.c.bf16 %v7596_v50, %v7596_v50  ;;  %v7638_v17 = vpop.permute.xlu1 %4185 }
 0x267   : > { %v7616_v2 = vadd.f32 %v5566_v24, %v7214_v11  ;;  %v7624_v54 = vadd.f32 %v7223_v55, %v7483_v4  ;;  %v5567_v19 = vadd.f32 %v7498_v28, %v6764_v47  ;;  %v5446_v12 = vpack.c.bf16 %v7620_v29, %v7620_v29  ;;  %8101 = vst [vmem:[#allocation71_spill] sm:$0xff] %v7638_v17 }
 0x268   : > { %v4632_v42 = vrot.slane %v4630_v62, 6  ;;  %v4635_v63 = vrot.slane %v4633_v16, 7  ;;  %v4870_v26 = vshrl.u32 %v5443_v45, 16  ;;  %v4873_v53 = vshll.u32 %v5443_v45, 16 }
 0x269   : > { %v4850_v14 = vshrl.u32 %v5441_v56, 16  ;;  %v4853_v60 = vshll.u32 %v5441_v56, 16  ;;  %v4222_v11 = vmul.f32 %v7144_v22, %v7616_v2  ;;  %v7634_v4 = vmul.f32 %v7563_v37, %v7624_v54  ;;  %v8110_v37 = vld [vmem:[#allocation19_spill] sm:$0xff] }
 0x26a   : > { %v4636_v52 = vor.u32 %v4635_v63, %v4632_v42  ;;  %v4872_v13 = vrot.slane %v4870_v26, 6  ;;  %v4875_v55 = vrot.slane %v4873_v53, 7  ;;  %v4900_v42 = vshrl.u32 %v5446_v12, 16 }
 0x26b   : > { %v4852_v47 = vrot.slane %v4850_v14, 6  ;;  %v4855_v28 = vrot.slane %v4853_v60, 7  ;;  %v4257_v24 = vadd.f32 %v4256_v3, %v4222_v11  ;;  %v5420_v62 = vpack.c.bf16 %v4222_v11, %v4222_v11 }
 0x26c   : > { %v4637_v16 = vsel %vm7280_vm8, %v4628_v0, %v4636_v52  ;;  %v4638_v45 = vrot.slane %v4636_v52, 4  ;;  %v4876_v56 = vor.u32 %v4875_v55, %v4872_v13  ;;  %v4903_v59 = vshll.u32 %v5446_v12, 16 }
 0x26d   : > { %5004 = vst [vmem:[%s6992_s25 + $0x14] sm:$0xf] %v4637_v16  ;;  %v4856_v63 = vor.u32 %v4855_v28, %v4852_v47  ;;  %v4640_v26 = vshrl.u32 %v5420_v62, 16  ;;  %v4643_v53 = vshll.u32 %v5420_v62, 16  ;;  %v4902_v60 = vrot.slane %v4900_v42, 6 }
 0x26e   : > { %v4877_v14 = vsel %vm7280_vm8, %v4868_v5, %v4876_v56  ;;  %v4878_v3 = vrot.slane %v4876_v56, 4  ;;  %v5444_v0 = vpack.c.bf16 %v7634_v4, %v7634_v4  ;;  %v4905_v47 = vrot.slane %v4903_v59, 7  ;;  %v8102_v56 = vld [vmem:[#allocation31_spill] sm:$0xff]  ;;  %v7664_v59 = vpop.permute.xlu1 %4195 }
 0x26f   : > { %5028 = vst [vmem:[%s6992_s25 + $0x74] sm:$0xf] %v4877_v14  ;;  %v4857_v11 = vsel %vm7280_vm8, %v4848_v7, %v4856_v63  ;;  %v4858_v52 = vrot.slane %v4856_v63, 4  ;;  %v4642_v13 = vrot.slane %v4640_v26, 6  ;;  %v4645_v55 = vrot.slane %v4643_v53, 7  ;;  %v8104_v7 = vld [vmem:[#allocation22_spill] sm:$0xff] }
 0x270   : > { %5026 = vst [vmem:[%s6992_s25 + $0x6c] sm:$0xf] %v4857_v11  ;;  %v4880_v28 = vshrl.u32 %v5444_v0, 16  ;;  %v4883_v12 = vshll.u32 %v5444_v0, 16  ;;  %v7650_v62 = vadd.f32 %v5567_v19, %v7219_v38  ;;  %v7657_v42 = vadd.f32 %v8102_v56, %v7494_v1  ;;  %8105 = vst [vmem:[#allocation22_spill] sm:$0xff] %v7664_v59  ;;  %v8106_v53 = vld [vmem:[#allocation10_spill] sm:$0xff]  ;;  %v7668_v0 = vpop.permute.xlu0 %4200 }
 0x271   : > { %v4867_v5 = vsel %vm7280_vm8, %v4858_v52, %v7571_v10  ;;  %v4646_v16 = vor.u32 %v4645_v55, %v4642_v13  ;;  %v7661_v63 = vadd.f32 %v8104_v7, %v7500_v32  ;;  %v4906_v26 = vor.u32 %v4905_v47, %v4902_v60  ;;  %8107 = vst [vmem:[#allocation10_spill] sm:$0xff] %v7668_v0 }
 0x272   : > { %8103 = vst [vmem:[#allocation31_spill] sm:$0xff] %v7657_v42  ;;  %5027 = vst [vmem:[%s6992_s25 + $0x70] sm:$0xf] %v4867_v5  ;;  %v4882_v38 = vrot.slane %v4880_v28, 6  ;;  %v4885_v19 = vrot.slane %v4883_v12, 7  ;;  %v4223_v14 = vmul.f32 %v8106_v53, %v7650_v62  ;;  %v7674_v32 = vmul.f32 %v7664_v59, %v7657_v42  ;;  %v8108_v28 = vld [vmem:[#allocation3_spill] sm:$0xff] }
 0x273   : > { %v4647_v10 = vsel %vm7280_vm8, %v4638_v45, %v4646_v16  ;;  %v4648_v1 = vrot.slane %v4646_v16, 4  ;;  %v7678_v11 = vmul.f32 %v7638_v17, %v7661_v63  ;;  %v4908_v60 = vrot.slane %v4906_v26, 4  ;;  %v8109_v5 = vld [vmem:[#allocation13_spill] sm:$0xff] }
 0x274   : > { %5005 = vst [vmem:[%s6992_s25 + $0x18] sm:$0xf] %v4647_v10  ;;  %v4886_v52 = vor.u32 %v4885_v19, %v4882_v38  ;;  %v4258_v13 = vadd.f32 %v4257_v24, %v4223_v14  ;;  %v5421_v55 = vpack.c.bf16 %v4223_v14, %v4223_v14  ;;  %v5447_v47 = vpack.c.bf16 %v7674_v32, %v7674_v32 }
 0x275   : > { %v5445_v45 = vpack.c.bf16 %v7678_v11, %v7678_v11  ;;  %v5568_v12 = vadd.f32 %v7540_v48, %v8108_v28  ;;  %v5621_v16 = vadd.f32 %v7330_v8, %v8109_v5  ;;  %v7698_v5 = vpop.permute.xlu0 %4210 }
 0x276   : > { %v4887_v56 = vsel %vm7280_vm8, %v4878_v3, %v4886_v52  ;;  %v4888_v7 = vrot.slane %v4886_v52, 4  ;;  %v4650_v10 = vshrl.u32 %v5421_v55, 16  ;;  %v4653_v38 = vshll.u32 %v5421_v55, 16  ;;  %8112 = vst [vmem:[#allocation13_spill] sm:$0xff] %v7698_v5 }
 0x277   : > { %5029 = vst [vmem:[%s6992_s25 + $0x78] sm:$0xf] %v4887_v56  ;;  %v4910_v24 = vshrl.u32 %v5447_v47, 16  ;;  %v4913_v19 = vshll.u32 %v5447_v47, 16  ;;  %v4890_v14 = vshrl.u32 %v5445_v45, 16  ;;  %v4893_v59 = vshll.u32 %v5445_v45, 16  ;;  %v7700_v56 = vpop.permute.xlu1 %4205 }
 0x278   : > { %v4652_v17 = vrot.slane %v4650_v10, 6  ;;  %v4655_v42 = vrot.slane %v4653_v38, 7  ;;  %v7693_v35 = vadd.f32 %v5568_v12, %v8110_v37  ;;  %v7696_v48 = vadd.f32 %v5621_v16, %v7536_v40  ;;  %8113 = vst [vmem:[#allocation19_spill] sm:$0xff] %v7700_v56  ;;  %v8114_v47 = vld [vmem:[#allocation11_spill] sm:$0xff]  ;;  %v8115_v40 = vld [vmem:[#allocation42_spill] sm:$0xff] }
 0x279   : > { %v4912_v8 = vrot.slane %v4910_v24, 6  ;;  %v4915_v28 = vrot.slane %v4913_v19, 7  ;;  %v4892_v3 = vrot.slane %v4890_v14, 6  ;;  %v4895_v52 = vrot.slane %v4893_v59, 7  ;;  %v8117_v59 = vld [vmem:[#allocation4_spill] sm:$0xff] }
 0x27a   : > { %8111 = vst [vmem:[#allocation3_spill] sm:$0xff] %v7696_v48  ;;  %v4656_v55 = vor.u32 %v4655_v42, %v4652_v17  ;;  %v4224_v45 = vmul.f32 %v8114_v47, %v7693_v35  ;;  %v7706_v37 = vmul.f32 %v7698_v5, %v7696_v48  ;;  %v7710_v12 = vadd.f32 %v8115_v40, %v7542_v36  ;;  %v8118_v42 = vld [vmem:[#allocation15_spill] sm:$0xff] }
 0x27b   : > { %v7712_v16 = vor.u32 %v4915_v28, %v4912_v8  ;;  %v4896_v10 = vor.u32 %v4895_v52, %v4892_v3  ;;  %v5569_v17 = vadd.f32 %v7553_v49, %v8117_v59  ;;  %v5623_v38 = vadd.f32 %v7354_v46, %v8118_v42  ;;  %v8119_v52 = vld [vmem:[#allocation21_spill] sm:$0xff] }
 0x27c   : > { %8116 = vst [vmem:[#allocation11_spill] sm:$0xff] %v7710_v12  ;;  %v4657_v24 = vsel %vm7280_vm8, %v4648_v1, %v4656_v55  ;;  %v4658_v19 = vrot.slane %v4656_v55, 4  ;;  %v4259_v14 = vadd.f32 %v4258_v13, %v4224_v45  ;;  %v5422_v5 = vpack.c.bf16 %v4224_v45, %v4224_v45  ;;  %v8121_v45 = vld [vmem:[#allocation44_spill] sm:$0xff] }
 0x27d   : > { %5006 = vst [vmem:[%s6992_s25 + $0x1c] sm:$0xf] %v4657_v24  ;;  %v4917_v36 = vsel %vm7280_vm8, %v4908_v60, %v7712_v16  ;;  %v4918_v8 = vrot.slane %v7712_v16, 4  ;;  %v4897_v49 = vsel %vm7280_vm8, %v4888_v7, %v4896_v10  ;;  %v4898_v28 = vrot.slane %v4896_v10, 4 }
 0x27e   : > { %5032 = vst [vmem:[%s6992_s25 + $0x84] sm:$0xf] %v4917_v36  ;;  %5030 = vst [vmem:[%s6992_s25 + $0x7c] sm:$0xf] %v4897_v49  ;;  %v4660_v46 = vshrl.u32 %v5422_v5, 16  ;;  %v4663_v3 = vshll.u32 %v5422_v5, 16  ;;  %v5450_v1 = vpack.c.bf16 %v7706_v37, %v7706_v37  ;;  %v7733_v13 = vmul.f32 %v7668_v0, %v7710_v12  ;;  %v7748_v5 = vpop.permute.xlu1 %4215 }
 0x27f   : > { %v4907_v60 = vsel %vm7280_vm8, %v4898_v28, %v4906_v26  ;;  %v7738_v55 = vadd.f32 %v5569_v17, %v8119_v52  ;;  %v7741_v7 = vadd.f32 %v5623_v38, %v7548_v39  ;;  %v7745_v40 = vadd.f32 %v8121_v45, %v7555_v25  ;;  %8123 = vst [vmem:[#allocation15_spill] sm:$0xff] %v7748_v5  ;;  %v8124_v17 = vld [vmem:[#allocation12_spill] sm:$0xff]  ;;  %v8125_v28 = vld [vmem:[#allocation5_spill] sm:$0xff] }
 0x280   : > { %5031 = vst [vmem:[%s6992_s25 + $0x80] sm:$0xf] %v4907_v60  ;;  %v4662_v16 = vrot.slane %v4660_v46, 6  ;;  %v4665_v10 = vrot.slane %v4663_v3, 7  ;;  %v4940_v59 = vshrl.u32 %v5450_v1, 16  ;;  %v4943_v42 = vshll.u32 %v5450_v1, 16 }
 0x281   : > { %8120 = vst [vmem:[#allocation42_spill] sm:$0xff] %v7741_v7  ;;  %8122 = vst [vmem:[#allocation4_spill] sm:$0xff] %v7745_v40  ;;  %v5448_v26 = vpack.c.bf16 %v7733_v13, %v7733_v13  ;;  %v4225_v39 = vmul.f32 %v8124_v17, %v7738_v55  ;;  %v7756_v38 = vmul.f32 %v7748_v5, %v7741_v7 }
 0x282   : > { %v7760_v25 = vmul.f32 %v7700_v56, %v7745_v40  ;;  %v4666_v24 = vor.u32 %v4665_v10, %v4662_v16  ;;  %v4942_v36 = vrot.slane %v4940_v59, 6  ;;  %v4945_v49 = vrot.slane %v4943_v42, 7  ;;  %v8127_v40 = vld [vmem:[#allocation14_spill] sm:$0xff] }
 0x283   : > { %v5570_v46 = vadd.f32 %v7586_v23, %v8125_v28  ;;  %v4920_v3 = vshrl.u32 %v5448_v26, 16  ;;  %v4923_v1 = vshll.u32 %v5448_v26, 16  ;;  %v4260_v60 = vadd.f32 %v4259_v14, %v4225_v39 }
 0x284   : > { %v5423_v52 = vpack.c.bf16 %v4225_v39, %v4225_v39  ;;  %v4667_v45 = vsel %vm7280_vm8, %v4658_v19, %v4666_v24  ;;  %v4668_v0 = vrot.slane %v4666_v24, 4  ;;  %v4946_v5 = vor.u32 %v4945_v49, %v4942_v36  ;;  %v8126_v24 = vld [vmem:[#allocation26_spill] sm:$0xff] }
 0x285   : > { %v5451_v7 = vpack.c.bf16 %v7756_v38, %v7756_v38  ;;  %5007 = vst [vmem:[%s6992_s25 + $0x20] sm:$0xf] %v4667_v45  ;;  %v4922_v56 = vrot.slane %v4920_v3, 6  ;;  %v4925_v16 = vrot.slane %v4923_v1, 7  ;;  %v5449_v14 = vpack.c.bf16 %v7760_v25, %v7760_v25 }
 0x286   : > { %v4670_v10 = vshrl.u32 %v5423_v52, 16  ;;  %v4673_v59 = vshll.u32 %v5423_v52, 16  ;;  %v4948_v42 = vrot.slane %v4946_v5, 4  ;;  %v7772_v36 = vadd.f32 %v5570_v46, %v8126_v24  ;;  %v8129_v24 = vld [vmem:[#allocation29_spill] sm:$0xff] }
 0x287   : > { %v4950_v23 = vshrl.u32 %v5451_v7, 16  ;;  %v4953_v28 = vshll.u32 %v5451_v7, 16  ;;  %v4926_v26 = vor.u32 %v4925_v16, %v4922_v56  ;;  %v4930_v3 = vshrl.u32 %v5449_v14, 16 }
 0x288   : > { %v4672_v39 = vrot.slane %v4670_v10, 6  ;;  %v4675_v19 = vrot.slane %v4673_v59, 7  ;;  %v4933_v1 = vshll.u32 %v5449_v14, 16  ;;  %v4226_v12 = vmul.f32 %v8127_v40, %v7772_v36  ;;  %v8128_v10 = vld [vmem:[#allocation6_spill] sm:$0xff] }
 0x289   : > { %v4952_v49 = vrot.slane %v4950_v23, 6  ;;  %v4955_v45 = vrot.slane %v4953_v28, 7  ;;  %v4927_v52 = vsel %vm7280_vm8, %v4918_v8, %v4926_v26  ;;  %v4928_v48 = vrot.slane %v4926_v26, 4  ;;  %v5039_v8 = vld [vmem:[%s6992_s25 + $0x98] sm:$0x3] }
 0x28a   : > { %v4676_v7 = vor.u32 %v4675_v19, %v4672_v39  ;;  %5033 = vst [vmem:[%s6992_s25 + $0x88] sm:$0xf] %v4927_v52  ;;  %v4932_v16 = vrot.slane %v4930_v3, 6  ;;  %v4935_v46 = vrot.slane %v4933_v1, 7  ;;  %v5571_v59 = vadd.f32 %v7606_v33, %v8128_v10 }
 0x28b   : > { %v4956_v56 = vor.u32 %v4955_v45, %v4952_v49  ;;  %v4261_v28 = vadd.f32 %v4260_v60, %v4226_v12  ;;  %v5424_v14 = vpack.c.bf16 %v4226_v12, %v4226_v12  ;;  %v8130_v12 = vld [vmem:[#allocation16_spill] sm:$0xff] }
 0x28c   : > { %v4677_v23 = vsel %vm7280_vm8, %v4668_v0, %v4676_v7  ;;  %v4936_v19 = vor.u32 %v4935_v46, %v4932_v16  ;;  %v7790_v49 = vadd.f32 %v5571_v59, %v8129_v24  ;;  %v4678_v10 = vrot.slane %v4676_v7, 4 }
 0x28d   : > { %5008 = vst [vmem:[%s6992_s25 + $0x24] sm:$0xf] %v4677_v23  ;;  %v4957_v26 = vsel %vm7280_vm8, %v4948_v42, %v4956_v56  ;;  %v4958_v39 = vrot.slane %v4956_v56, 4  ;;  %v4680_v33 = vshrl.u32 %v5424_v14, 16  ;;  %v4683_v0 = vshll.u32 %v5424_v14, 16  ;;  %v8131_v23 = vld [vmem:[#allocation27_spill] sm:$0xff] }
 0x28e   : > { %5036 = vst [vmem:[%s6992_s25 + $0x94] sm:$0xf] %v4957_v26  ;;  %v4937_v3 = vsel %vm7280_vm8, %v4928_v48, %v4936_v19  ;;  %v4938_v1 = vrot.slane %v4936_v19, 4  ;;  %v4227_v60 = vmul.f32 %v8130_v12, %v7790_v49  ;;  %v8132_v19 = vld [vmem:[#allocation30_spill] sm:$0xff] }
 0x28f   : > { %v5040_v45 = vsel %vm5038_vm13, %v4958_v39, %v5039_v8  ;;  %5034 = vst [vmem:[%s6992_s25 + $0x8c] sm:$0xf] %v4937_v3  ;;  %v4682_v42 = vrot.slane %v4680_v33, 6  ;;  %v4685_v52 = vrot.slane %v4683_v0, 7 }
 0x290   : > { %5041 = vst [vmem:[%s6992_s25 + $0x98] sm:$0x3] %v5040_v45  ;;  %v4947_v56 = vsel %vm7280_vm8, %v4938_v1, %v4946_v5  ;;  %v4262_v16 = vadd.f32 %v4261_v28, %v4227_v60  ;;  %v5425_v46 = vpack.c.bf16 %v4227_v60, %v4227_v60  ;;  %v8133_v28 = vld [vmem:[#allocation39_spill] sm:$0xff] }
 0x291   : > { %5035 = vst [vmem:[%s6992_s25 + $0x90] sm:$0xf] %v4947_v56  ;;  %v4686_v59 = vor.u32 %v4685_v52, %v4682_v42  ;;  %v8134_v45 = vld [vmem:[#allocation43_spill] sm:$0xff]  ;;  %v8135_v42 = vld [vmem:[#allocation38_spill] sm:$0xff]  ;;  %v8136_v56 = vld [vmem:[#allocation36_spill] sm:$0xff] }
 0x292   : > { %v4263_v48 = vadd.f32 %v4262_v16, %v8131_v23  ;;  %v4690_v8 = vshrl.u32 %v5425_v46, 16  ;;  %v4693_v14 = vshll.u32 %v5425_v46, 16  ;;  %v8137_v46 = vld [vmem:[#allocation41_spill] sm:$0xff] }
 0x293   : > { %v4687_v26 = vsel %vm7280_vm8, %v4678_v10, %v4686_v59  ;;  %v4688_v39 = vrot.slane %v4686_v59, 4 }
 0x294   : > { %5009 = vst [vmem:[%s6992_s25 + $0x28] sm:$0xf] %v4687_v26  ;;  %v4264_v24 = vadd.f32 %v4263_v48, %v8132_v19  ;;  %v4692_v33 = vrot.slane %v4690_v8, 6  ;;  %v4695_v5 = vrot.slane %v4693_v14, 7 }
 0x296   : > { %v4265_v0 = vadd.f32 %v4264_v24, %v8133_v28  ;;  %v4696_v7 = vor.u32 %v4695_v5, %v4692_v33  ;;  %v8138_v33 = vld [vmem:[#allocation67_spill] sm:$0xff] }
 0x298   : > { %v4266_v3 = vadd.f32 %v4265_v0, %v8134_v45  ;;  %v4697_v1 = vsel %vm7280_vm8, %v4688_v39, %v4696_v7  ;;  %v4698_v60 = vrot.slane %v4696_v7, 4 }
 0x299   : > { %5010 = vst [vmem:[%s6992_s25 + $0x2c] sm:$0xf] %v4697_v1  ;;  %v8143_v1 = vld [vmem:[#allocation9_spill] sm:$0xff] }
 0x29a   : > { %v4267_v52 = vadd.f32 %v4266_v3, %v8135_v42  ;;  %v4707_v16 = vsel %vm7280_vm8, %v4698_v60, %v8136_v56  ;;  %v8144_v56 = vld [vmem:[#allocation8_spill] sm:$0xff] }
 0x29b   : > { %5011 = vst [vmem:[%s6992_s25 + $0x30] sm:$0xf] %v4707_v16 }
 0x29c   : > { %v4268_v10 = vadd.f32 %v4267_v52, %v8137_v46 }
 0x29e   : > { %v4269_v59 = vadd.f32 %v4268_v10, %v7351_v43 }
 0x2a0   : > { %v4270_v23 = vadd.f32 %v4269_v59, %v7382_v58 }
 0x2a2   : > { %v4271_v48 = vadd.f32 %v4270_v23, %v7334_v57 }
 0x2a4   : > { %v4272_v8 = vadd.f32 %v4271_v48, %v7375_v18 }
 0x2a6   : > { %v4273_v14 = vadd.f32 %v4272_v8, %v7416_v31 }
 0x2a8   : > { %v4274_v26 = vadd.f32 %v4273_v14, %v7508_v21 }
 0x2aa   : > { %v4275_v39 = vadd.f32 %v4274_v26, %v7408_v51 }
 0x2ac   : > { %v4276_v15 = vadd.f32 %v4275_v39, %v7461_v41 }
 0x2ae   : > { %v4277_v19 = vadd.f32 %v4276_v15, %v7524_v27 }
 0x2b0   : > { %v4278_v24 = vadd.f32 %v4277_v19, %v7596_v50 }
 0x2b2   : > { %v4279_v43 = vadd.f32 %v4278_v24, %v8138_v33 }
 0x2b4   : > { %v4280_v58 = vadd.f32 %v4279_v43, %v7592_v6 }
 0x2b6   : > { %v4281_v57 = vadd.f32 %v4280_v58, %v7634_v4 }
 0x2b8   : > { %v4282_v18 = vadd.f32 %v4281_v57, %v7678_v11 }
 0x2ba   : > { %v4283_v31 = vadd.f32 %v4282_v18, %v7620_v29  ;;  %v8139_v29 = vld [vmem:[#allocation53_spill] sm:$0xff] }
 0x2bc   : > { %v4284_v21 = vadd.f32 %v4283_v31, %v7674_v32 }
 0x2be   : > { %v4285_v51 = vadd.f32 %v4284_v21, %v7733_v13  ;;  %v8140_v13 = vld [vmem:[#allocation60_spill] sm:$0xff] }
 0x2c0   : > { %v4286_v41 = vadd.f32 %v4285_v51, %v7760_v25 }
 0x2c2   : > { %v4287_v27 = vadd.f32 %v4286_v41, %v7706_v37  ;;  %v8141_v37 = vld [vmem:[#allocation66_spill] sm:$0xff] }
 0x2c4   : > { %v4288_v50 = vadd.f32 %v4287_v27, %v7756_v38  ;;  %v8142_v38 = vld [vmem:[#allocation7_spill] sm:$0xff] }
 0x2c6   : > { %v4289_v5 = vrot.slane %v4288_v50, 4 }
 0x2c8   : > { %v4290_v28 = vadd.f32 %v4289_v5, %v4288_v50 }
 0x2ca   : > { %v4291_v0 = vrot.slane %v4290_v28, 2 }
 0x2cc   : > { %v4292_v6 = vadd.f32 %v4291_v0, %v4290_v28  ;;  %v8149_v28 = vld [vmem:[#allocation40_spill] sm:$0xff] }
 0x2ce   : > { %v4293_v7 = vrot.slane %v4292_v6, 1 }
 0x2d0   : > { %v7838_v4 = vadd.f32 %v4293_v7, %v4292_v6 }
 0x2d2   : > { %v7841_v11 = vmul.f32 0.00390625, %v7838_v4 }
 0x2d4   : > { %v4296_v32 = vsub.f32 %v8139_v29, %v7841_v11  ;;  %v4297_v25 = vsub.f32 %v8140_v13, %v7841_v11  ;;  %v4298_v45 = vsub.f32 %v8141_v37, %v7841_v11  ;;  %v4299_v42 = vsub.f32 %v7559_v9, %v7841_v11 }
 0x2d5   : > { %v4300_v52 = vsub.f32 %v7616_v2, %v7841_v11  ;;  %v4301_v59 = vsub.f32 %v7650_v62, %v7841_v11  ;;  %v4302_v48 = vsub.f32 %v7693_v35, %v7841_v11  ;;  %v4303_v9 = vsub.f32 %v7738_v55, %v7841_v11  ;;  %v8145_v55 = vld [vmem:[#allocation25_spill] sm:$0xff] }
 0x2d6   : > { %v4332_v3 = vmul.f32 %v4296_v32, %v8142_v38  ;;  %v4333_v60 = vmul.f32 %v4297_v25, %v8143_v1  ;;  %v4334_v16 = vmul.f32 %v4298_v45, %v8144_v56  ;;  %v4335_v23 = vmul.f32 %v4299_v42, %v7140_v20  ;;  %v8151_v32 = vld [vmem:[#allocation34_spill] sm:$0xff]  ;;  %v8153_v38 = vld [vmem:[#allocation37_spill] sm:$0xff]  ;;  %v8154_v1 = vld [vmem:[#allocation23_spill] sm:$0xff] }
 0x2d7   : > { %v4336_v8 = vmul.f32 %v4300_v52, %v7144_v22  ;;  %v4337_v2 = vmul.f32 %v4301_v59, %v8106_v53  ;;  %v4304_v19 = vsub.f32 %v7772_v36, %v7841_v11  ;;  %v4338_v62 = vmul.f32 %v4302_v48, %v8114_v47  ;;  %v8146_v36 = vld [vmem:[#allocation28_spill] sm:$0xff] }
 0x2d8   : > { %v4368_v46 = vmul.f32 %v4332_v3, %v4332_v3  ;;  %v4369_v10 = vmul.f32 %v4333_v60, %v4333_v60  ;;  %v4370_v14 = vmul.f32 %v4334_v16, %v4334_v16  ;;  %v4371_v39 = vmul.f32 %v4335_v23, %v4335_v23  ;;  %v8155_v56 = vld [vmem:[#allocation48_spill] sm:$0xff] }
 0x2d9   : > { %v4372_v20 = vmul.f32 %v4336_v8, %v4336_v8  ;;  %v4305_v35 = vsub.f32 %v7790_v49, %v7841_v11  ;;  %v4339_v22 = vmul.f32 %v4303_v9, %v8124_v17  ;;  %v4373_v33 = vmul.f32 %v4337_v2, %v4337_v2  ;;  %v8147_v49 = vld [vmem:[#allocation35_spill] sm:$0xff]  ;;  %v8148_v17 = vld [vmem:[#allocation17_spill] sm:$0xff]  ;;  %v8157_v48 = vld [vmem:[#allocation52_spill] sm:$0xff] }
 0x2da   : > { %v4404_v26 = vadd.f32 %v4369_v10, %v4368_v46  ;;  %v4306_v58 = vsub.f32 %v8145_v55, %v7841_v11  ;;  %v4340_v53 = vmul.f32 %v4304_v19, %v8127_v40  ;;  %v4374_v57 = vmul.f32 %v4338_v62, %v4338_v62  ;;  %v8150_v40 = vld [vmem:[#allocation18_spill] sm:$0xff]  ;;  %v8156_v46 = vld [vmem:[#allocation24_spill] sm:$0xff]  ;;  %v8160_v19 = vld [vmem:[#allocation33_spill] sm:$0xff] }
 0x2db   : > { %v4307_v31 = vsub.f32 %v8146_v36, %v7841_v11  ;;  %v4341_v47 = vmul.f32 %v4305_v35, %v8130_v12  ;;  %v4375_v21 = vmul.f32 %v4339_v22, %v4339_v22  ;;  %v4308_v41 = vsub.f32 %v8147_v49, %v7841_v11  ;;  %v8152_v12 = vld [vmem:[#allocation20_spill] sm:$0xff]  ;;  %v8161_v35 = vld [vmem:[#allocation51_spill] sm:$0xff]  ;;  %v8166_v49 = vld [vmem:[#allocation49_spill] sm:$0xff] }
 0x2dc   : > { %v4405_v15 = vadd.f32 %v4404_v26, %v4370_v14  ;;  %v4342_v27 = vmul.f32 %v4306_v58, %v8148_v17  ;;  %v4376_v50 = vmul.f32 %v4340_v53, %v4340_v53  ;;  %v4309_v0 = vsub.f32 %v8149_v28, %v7841_v11  ;;  %v8158_v14 = vld [vmem:[#allocation32_spill] sm:$0xff]  ;;  %v8163_v53 = vld [vmem:[#allocation55_spill] sm:$0xff]  ;;  %v8168_v28 = vld [vmem:[#allocation50_spill] sm:$0xff] }
 0x2dd   : > { %v4343_v6 = vmul.f32 %v4307_v31, %v8150_v40  ;;  %v4377_v7 = vmul.f32 %v4341_v47, %v4341_v47  ;;  %v4310_v13 = vsub.f32 %v8151_v32, %v7841_v11  ;;  %v4344_v25 = vmul.f32 %v4308_v41, %v8152_v12  ;;  %v8170_v32 = vld [vmem:[#allocation57_spill] sm:$0xff] }
 0x2de   : > { %v4406_v24 = vadd.f32 %v4405_v15, %v4371_v39  ;;  %v4378_v37 = vmul.f32 %v4342_v27, %v4342_v27  ;;  %v4311_v3 = vsub.f32 %v8153_v38, %v7841_v11  ;;  %v4345_v60 = vmul.f32 %v4309_v0, %v8154_v1  ;;  %v8159_v39 = vld [vmem:[#allocation47_spill] sm:$0xff]  ;;  %v8172_v38 = vld [vmem:[#allocation56_spill] sm:$0xff] }
 0x2df   : > { %v4379_v42 = vmul.f32 %v4343_v6, %v4343_v6  ;;  %v4312_v16 = vsub.f32 %v8155_v56, %v7841_v11  ;;  %v4346_v10 = vmul.f32 %v4310_v13, %v8156_v46  ;;  %v4380_v59 = vmul.f32 %v4344_v25, %v4344_v25 }
 0x2e0   : > { %v4407_v43 = vadd.f32 %v4406_v24, %v4372_v20  ;;  %v4313_v8 = vsub.f32 %v8157_v48, %v7841_v11  ;;  %v4347_v26 = vmul.f32 %v4311_v3, %v8158_v14  ;;  %v4381_v9 = vmul.f32 %v4345_v60, %v4345_v60 }
 0x2e1   : > { %v4314_v15 = vsub.f32 %v8159_v39, %v7841_v11  ;;  %v4348_v62 = vmul.f32 %v4312_v16, %v8160_v19  ;;  %v4382_v20 = vmul.f32 %v4346_v10, %v4346_v10  ;;  %v4315_v22 = vsub.f32 %v8161_v35, %v7841_v11  ;;  %v8174_v10 = vld [vmem:[#allocation63_spill] sm:$0xff] }
 0x2e2   : > { %v4408_v18 = vadd.f32 %v4407_v43, %v4373_v33  ;;  %v8162_v33 = vld [vmem:[#allocation45_spill] sm:$0xff]  ;;  %v4383_v55 = vmul.f32 %v4347_v26, %v4347_v26  ;;  %v4323_v26 = vsub.f32 %v7575_v61, %v7841_v11 }
 0x2e3   : > { %v4349_v43 = vmul.f32 %v4313_v8, %v8162_v33  ;;  %v4384_v31 = vmul.f32 %v4348_v62, %v4348_v62  ;;  %v4351_v41 = vmul.f32 %v4315_v22, %v8166_v49  ;;  %v8177_v61 = vld [vmem:[#allocation69_spill] sm:$0xff] }
 0x2e4   : > { %v4409_v51 = vadd.f32 %v4408_v18, %v4374_v57  ;;  %v4316_v57 = vsub.f32 %v8163_v53, %v7841_v11  ;;  %v8164_v18 = vld [vmem:[#allocation46_spill] sm:$0xff]  ;;  %v4359_v35 = vmul.f32 %v4323_v26, %v7582_v30 }
 0x2e5   : > { %v4350_v36 = vmul.f32 %v4314_v15, %v8164_v18  ;;  %v4385_v17 = vmul.f32 %v4349_v43, %v4349_v43  ;;  %v4387_v12 = vmul.f32 %v4351_v41, %v4351_v41  ;;  %v8176_v15 = vld [vmem:[#allocation65_spill] sm:$0xff]  ;;  %v4326_v43 = vsub.f32 %v8177_v61, %v7841_v11  ;;  %v8180_v18 = vld [vmem:[#allocation71_spill] sm:$0xff]  ;;  %v8182_v30 = vld [vmem:[#allocation70_spill] sm:$0xff] }
 0x2e6   : > { %v4410_v5 = vadd.f32 %v4409_v51, %v4375_v21  ;;  %v8165_v21 = vld [vmem:[#allocation62_spill] sm:$0xff]  ;;  %v4352_v0 = vmul.f32 %v4316_v57, %v8168_v28 }
 0x2e7   : > { %v4317_v51 = vsub.f32 %v8165_v21, %v7841_v11  ;;  %v4386_v40 = vmul.f32 %v4350_v36, %v4350_v36 }
 0x2e8   : > { %v4411_v29 = vadd.f32 %v4410_v5, %v4376_v50  ;;  %v8167_v50 = vld [vmem:[#allocation54_spill] sm:$0xff]  ;;  %v4388_v1 = vmul.f32 %v4352_v0, %v4352_v0 }
 0x2e9   : > { %v4318_v5 = vsub.f32 %v8167_v50, %v7841_v11  ;;  %v4353_v13 = vmul.f32 %v4317_v51, %v8170_v32  ;;  %v4362_v51 = vmul.f32 %v4326_v43, %v8182_v30  ;;  %v8184_v50 = vld [vmem:[#allocation22_spill] sm:$0xff] }
 0x2ea   : > { %v4412_v45 = vadd.f32 %v4411_v29, %v4377_v7  ;;  %v8169_v7 = vld [vmem:[#allocation58_spill] sm:$0xff] }
 0x2eb   : > { %v4319_v29 = vsub.f32 %v8169_v7, %v7841_v11  ;;  %v4354_v3 = vmul.f32 %v4318_v5, %v8172_v38  ;;  %v4389_v16 = vmul.f32 %v4353_v13, %v4353_v13  ;;  %v8186_v7 = vld [vmem:[#allocation10_spill] sm:$0xff]  ;;  %v4398_v32 = vmul.f32 %v4362_v51, %v4362_v51 }
 0x2ec   : > { %v4413_v52 = vadd.f32 %v4412_v45, %v4378_v37  ;;  %v8171_v37 = vld [vmem:[#allocation64_spill] sm:$0xff] }
 0x2ed   : > { %v4320_v45 = vsub.f32 %v8171_v37, %v7841_v11  ;;  %v4390_v8 = vmul.f32 %v4354_v3, %v4354_v3  ;;  %v8188_v37 = vld [vmem:[#allocation19_spill] sm:$0xff] }
 0x2ee   : > { %v4414_v23 = vadd.f32 %v4413_v52, %v4379_v42  ;;  %v4321_v42 = vsub.f32 %v7579_v34, %v7841_v11  ;;  %v8173_v52 = vld [vmem:[#allocation59_spill] sm:$0xff]  ;;  %v4324_v34 = vsub.f32 %v7624_v54, %v7841_v11 }
 0x2ef   : > { %v4355_v56 = vmul.f32 %v4319_v29, %v8173_v52  ;;  %v8179_v54 = vld [vmem:[#allocation31_spill] sm:$0xff] }
 0x2f0   : > { %v4415_v2 = vadd.f32 %v4414_v23, %v4380_v59  ;;  %v4322_v59 = vsub.f32 %v8174_v10, %v7841_v11  ;;  %v8175_v23 = vld [vmem:[#allocation61_spill] sm:$0xff]  ;;  %v4327_v57 = vsub.f32 %v8179_v54, %v7841_v11 }
 0x2f1   : > { %v4356_v48 = vmul.f32 %v4320_v45, %v8175_v23 }
 0x2f2   : > { %v4416_v24 = vadd.f32 %v4415_v2, %v4381_v9  ;;  %v4357_v9 = vmul.f32 %v4321_v42, %v7532_v44  ;;  %v4391_v2 = vmul.f32 %v4355_v56, %v4355_v56  ;;  %v4358_v19 = vmul.f32 %v4322_v59, %v8176_v15  ;;  %v8178_v44 = vld [vmem:[#allocation68_spill] sm:$0xff]  ;;  %v8190_v56 = vld [vmem:[#allocation15_spill] sm:$0xff] }
 0x2f3   : > { %v4392_v62 = vmul.f32 %v4356_v48, %v4356_v48  ;;  %v4363_v5 = vmul.f32 %v4327_v57, %v8184_v50 }
 0x2f4   : > { %v4417_v58 = vadd.f32 %v4416_v24, %v4382_v20  ;;  %v4325_v24 = vsub.f32 %v7661_v63, %v7841_v11  ;;  %v4393_v22 = vmul.f32 %v4357_v9, %v4357_v9  ;;  %v8181_v63 = vld [vmem:[#allocation11_spill] sm:$0xff] }
 0x2f5   : > { %v4328_v21 = vsub.f32 %v8181_v63, %v7841_v11  ;;  %v4399_v38 = vmul.f32 %v4363_v5, %v4363_v5 }
 0x2f6   : > { %v4418_v47 = vadd.f32 %v4417_v58, %v4383_v55  ;;  %v4360_v55 = vmul.f32 %v4324_v34, %v8178_v44  ;;  %v4394_v58 = vmul.f32 %v4358_v19, %v4358_v19  ;;  %v4361_v36 = vmul.f32 %v4325_v24, %v8180_v18 }
 0x2f7   : > { %v4364_v29 = vmul.f32 %v4328_v21, %v8186_v7 }
 0x2f8   : > { %v4419_v27 = vadd.f32 %v4418_v47, %v4384_v31  ;;  %v4395_v31 = vmul.f32 %v4359_v35, %v4359_v35  ;;  %v4396_v49 = vmul.f32 %v4360_v55, %v4360_v55  ;;  %v4397_v28 = vmul.f32 %v4361_v36, %v4361_v36 }
 0x2f9   : > { %v4400_v42 = vmul.f32 %v4364_v29, %v4364_v29 }
 0x2fa   : > { %v4420_v6 = vadd.f32 %v4419_v27, %v4385_v17  ;;  %v8183_v17 = vld [vmem:[#allocation4_spill] sm:$0xff] }
 0x2fb   : > { %v4329_v27 = vsub.f32 %v8183_v17, %v7841_v11 }
 0x2fc   : > { %v4421_v25 = vadd.f32 %v4420_v6, %v4386_v40  ;;  %v8185_v40 = vld [vmem:[#allocation3_spill] sm:$0xff] }
 0x2fd   : > { %v4330_v6 = vsub.f32 %v8185_v40, %v7841_v11  ;;  %v4365_v45 = vmul.f32 %v4329_v27, %v8188_v37 }
 0x2fe   : > { %v4422_v60 = vadd.f32 %v4421_v25, %v4387_v12  ;;  %v8187_v12 = vld [vmem:[#allocation42_spill] sm:$0xff] }
 0x2ff   : > { %v4331_v25 = vsub.f32 %v8187_v12, %v7841_v11 }
 0x300   : > { %v4423_v46 = vadd.f32 %v4422_v60, %v4388_v1  ;;  %v8189_v1 = vld [vmem:[#allocation13_spill] sm:$0xff] }
 0x301   : > { %v4366_v60 = vmul.f32 %v4330_v6, %v8189_v1 }
 0x302   : > { %v4424_v14 = vadd.f32 %v4423_v46, %v4389_v16  ;;  %v4367_v16 = vmul.f32 %v4331_v25, %v8190_v56  ;;  %v4401_v46 = vmul.f32 %v4365_v45, %v4365_v45 }
 0x303   : > { %v4402_v59 = vmul.f32 %v4366_v60, %v4366_v60 }
 0x304   : > { %v4425_v39 = vadd.f32 %v4424_v14, %v4390_v8  ;;  %v4403_v48 = vmul.f32 %v4367_v16, %v4367_v16 }
 0x306   : > { %v4426_v20 = vadd.f32 %v4425_v39, %v4391_v2 }
 0x308   : > { %v4427_v33 = vadd.f32 %v4426_v20, %v4392_v62 }
 0x30a   : > { %v4428_v53 = vadd.f32 %v4427_v33, %v4393_v22 }
 0x30c   : > { %v4429_v47 = vadd.f32 %v4428_v53, %v4394_v58 }
 0x30e   : > { %v4430_v41 = vadd.f32 %v4429_v47, %v4395_v31 }
 0x310   : > { %v4431_v0 = vadd.f32 %v4430_v41, %v4396_v49 }
 0x312   : > { %v4432_v13 = vadd.f32 %v4431_v0, %v4397_v28 }
 0x314   : > { %v4433_v3 = vadd.f32 %v4432_v13, %v4398_v32 }
 0x316   : > { %v4434_v52 = vadd.f32 %v4433_v3, %v4399_v38 }
 0x318   : > { %v4435_v10 = vadd.f32 %v4434_v52, %v4400_v42 }
 0x31a   : > { %v4436_v23 = vadd.f32 %v4435_v10, %v4401_v46 }
 0x31c   : > { %v4437_v8 = vadd.f32 %v4436_v23, %v4402_v59 }
 0x31e   : > { %v4438_v14 = vadd.f32 %v4437_v8, %v4403_v48 }
 0x320   : > { %v4439_v26 = vrot.slane %v4438_v14, 4 }
 0x322   : > { %v4440_v11 = vadd.f32 %v4439_v26, %v4438_v14 }
 0x324   : > { %v4441_v9 = vrot.slane %v4440_v11, 2 }
 0x326   : > { %v4442_v2 = vadd.f32 %v4441_v9, %v4440_v11 }
 0x328   : > { %v4443_v39 = vrot.slane %v4442_v2, 1 }
 0x32a   : > { %v4444_v34 = vadd.f32 %v4443_v39, %v4442_v2 }
 0x32c   : > { %v4446_v15 = vsel %vm4445_vm14, %v7838_v4, %v4444_v34 }
 0x32d   : > { %4447 = vst [vmem:[%s208_s28] sm:$0x3] %v4446_v15 }
 0x32e PF: > { %s15_s15 = sadd.s32 1, %s5992_s15  }
 0x32f   : > { %p12_p4 = scmp.ge.s32.totalorder %s15_s15, 4  }
 0x331   :  { %14 = sbr.rel (!%p12_p4) target bundleno = 1 (0x1), region = 74 }

// kernel: basic_block_forward.4
= control target key start
LH: loop header
LB: loop body
LE: loop exit
PB: predicated region body
PF: predicated region fallthrough
CT: control target
= control target key end

     0   :  { %s6826_s24 = smov 0   ;;  %s8684_s0 = inlined_call_operand.vmem [shape: bf16[2,328,128], index: 0, kind: input, shape index: {}]   ;;  %s8685_s1 = inlined_call_operand.vmem [shape: bf16[1152,128], index: 1, kind: input, shape index: {}]   ;;  %s8686_s2 = inlined_call_operand.vmem [shape: f32[1,128], index: 2, kind: input, shape index: {}]   ;;  %s8687_s3 = inlined_call_operand.vmem [shape: f32[1,128], index: 3, kind: input, shape index: {}]   ;;  %s8688_s4 = inlined_call_operand.vmem [shape: f32[288,1], index: 4, kind: input, shape index: {}]   ;;  %s8689_s5 = inlined_call_operand.vmem [shape: f32[328,1], index: 5, kind: input, shape index: {}]   ;;  %s8690_s6 = inlined_call_operand.vmem [shape: bf16[2,288,128], index: 6, kind: output, shape index: {0}]   ;;  %s8691_s7 = inlined_call_operand.vmem [shape: f32[2,2,128], index: 7, kind: output, shape index: {1}]  }
   0x1 LB: > { %s5507_s25 = sadd.s32 4294967295, %s6783_s24   ;;  %p5511_p0 = scmp.ge.s32.totalorder %s6783_s24, 1  ;;  %s6783_s24 = sphi %s6826_s24, %s18_s24  }
   0x2   : > { %p240_p1 = scmp.lt.s32.totalorder %s6783_s24, 3 }
   0x4   : > { %p241_p2 = pnand %p5511_p0, %p240_p1 }
   0x6   : > { %244 = sbr.rel (%p241_p2) target bundleno = 864 (0x360), region = 44 }
   0xd   : > { %v514_v0 = vld [vmem:[%s8689_s5 + $0x20] sm:$0xff]  ;;  %v512_v1 = vld [vmem:[%s8689_s5 + $0x10] sm:$0xff]  ;;  %v6785_v2 = vmov 0   ;;  %v515_v3 = vld [vmem:[%s8689_s5 + $0x28] sm:$0xff]  ;;  %p276_p3 = scmp.lt.s32.totalorder %s5507_s25, 1  ;;  %vm1646_vm0 = vcmask 1046528  }
   0xe   : > { %6516 = vset.pattern.permute.xlu1 %v6785_v2  ;;  %6515 = vset.pattern.permute.xlu0 %v6785_v2  ;;  %v513_v4 = vld [vmem:[%s8689_s5 + $0x18] sm:$0xff]  ;;  %v511_v5 = vld [vmem:[%s8689_s5 + $0x8] sm:$0xff]  ;;  %v510_v6 = vld [vmem:[%s8689_s5] sm:$0xff]  ;;  %vm1331_vm1 = vsmask.f32 7424  ;;  %vm2390_vm2 = vcmask 1045504  }
   0xf   : > { %573 = vperm.xlu1 %6516, %v514_v0   ;;  %563 = vperm.xlu0 %6515, %v512_v1   ;;  %v517_v7 = vld [vmem:[%s8689_s5 + $0x38] sm:$0xff]  ;;  %v516_v8 = vld [vmem:[%s8689_s5 + $0x30] sm:$0xff]  ;;  %v519_v9 = vld [vmem:[%s8689_s5 + $0x48] sm:$0xff]  ;;  %s8881_s25 = smov (!%p276_p3, %s5507_s25), 1  ;;  %vm2053_vm3 = vsmask.f32 6400 }
  0x10   : > { %4123 = vmatprep.subr.bf16.mxu0 %v6785_v2  ;;  %3946 = vmatprep.subr.bf16.mxu1 %v6785_v2  ;;  %v518_v10 = vld [vmem:[%s8689_s5 + $0x40] sm:$0xff]  ;;  %v521_v12 = vld [vmem:[%s8689_s5 + $0x58] sm:$0xff]  ;;  %v520_v14 = vld [vmem:[%s8689_s5 + $0x50] sm:$0xff]  ;;  %s6504_s11 = smul.u32 164, %s8881_s25  ;;  %vm2797_vm4 = vsmask.f32 5376 }
  0x11   : > { %v6517_v11 = vld [vmem:[%s8685_s1 + $0x80] sm:$0xff]   ;;  %v6518_v15 = vld [vmem:[%s8685_s1 + $0x88] sm:$0xff]   ;;  %v6520_v19 = vld [vmem:[%s8685_s1 + $0x90] sm:$0xff]   ;;  %vm3134_vm5 = vcmask 1044480   ;;  %s6505_s13 = smul.u32 144, %s8881_s25  ;;  %s5514_s17 = sshll.u32 %s8881_s25, 1 }
  0x12   : > { %v6519_v13 = vld [vmem:[%s8685_s1] sm:$0xff]   ;;  %4124 = vmatpush1.bf16.msra.mxu0 %v6517_v11  ;;  %v523_v16 = vld [vmem:[%s8689_s5 + $0x68] sm:$0xff]  ;;  %v6523_v20 = vld [vmem:[%s8685_s1 + $0x10] sm:$0xff]   ;;  %s7096_s28 = scalar_lea.vmem %s8684_s0, %s6504_s11  ;;  %vm5238_vm6 = vcmask 1040384   ;;  %s289_s20 = scalar_lea.vmem %s8691_s7, %s5514_s17 }
  0x13   : > { %578 = vperm.xlu1 %6516, %v515_v3   ;;  %568 = vperm.xlu0 %6515, %v513_v4   ;;  %v6521_v17 = vld [vmem:[%s8685_s1 + $0x8] sm:$0xff]   ;;  %v522_v18 = vld [vmem:[%s8689_s5 + $0x60] sm:$0xff]  ;;  %v525_v21 = vld [vmem:[%s8689_s5 + $0x78] sm:$0xff]  ;;  %s8246_s16 = scalar_lea.vmem %s8690_s6, %s6505_s13 }
  0x14   : > { %4125 = vmatprep.subr.bf16.mxu0 %v6785_v2  ;;  %3947 = vmatpush1.bf16.msra.mxu1 %v6519_v13  ;;  %v524_v22 = vld [vmem:[%s8689_s5 + $0x70] sm:$0xff]  ;;  %v6522_v23 = vld [vmem:[%s8685_s1 + $0x98] sm:$0xff]   ;;  %v527_v25 = vld [vmem:[%s8689_s5 + $0x88] sm:$0xff] }
  0x15   : > { %3948 = vmatprep.subr.bf16.mxu1 %v6785_v2  ;;  %v6525_v24 = vld [vmem:[%s8685_s1 + $0x18] sm:$0xff]   ;;  %v526_v26 = vld [vmem:[%s8689_s5 + $0x80] sm:$0xff]  ;;  %v528_v30 = vld [vmem:[%s8689_s5 + $0x90] sm:$0xff] }
  0x16   : > { %4126 = vmatpush1.bf16.msra.mxu0 %v6518_v15  ;;  %v6524_v27 = vld [vmem:[%s8685_s1 + $0xa0] sm:$0xff]   ;;  %v529_v29 = vld [vmem:[%s8689_s5 + $0x98] sm:$0xff]  ;;  %v6526_v31 = vld [vmem:[%s8685_s1 + $0xa8] sm:$0xff]  }
  0x17   : > { %558 = vperm.xlu1 %6516, %v511_v5   ;;  %553 = vperm.xlu0 %6515, %v510_v6   ;;  %v6527_v28 = vld [vmem:[%s8685_s1 + $0x20] sm:$0xff]   ;;  %v6529_v32 = vld [vmem:[%s8685_s1 + $0x28] sm:$0xff]   ;;  %v6528_v35 = vld [vmem:[%s8685_s1 + $0xb0] sm:$0xff]  }
  0x18   : > { %4127 = vmatprep.subr.bf16.mxu0 %v6785_v2  ;;  %3949 = vmatpush1.bf16.msra.mxu1 %v6521_v17  ;;  %v531_v33 = vld [vmem:[%s8689_s5 + $0xa8] sm:$0xff]  ;;  %v530_v34 = vld [vmem:[%s8689_s5 + $0xa0] sm:$0xff]  ;;  %v6531_v36 = vld [vmem:[%s8685_s1 + $0x30] sm:$0xff]  }
  0x19   : > { %3950 = vmatprep.subr.bf16.mxu1 %v6785_v2  ;;  %v533_v37 = vld [vmem:[%s8689_s5 + $0xb8] sm:$0xff]  ;;  %v532_v38 = vld [vmem:[%s8689_s5 + $0xb0] sm:$0xff]  ;;  %v535_v41 = vld [vmem:[%s8689_s5 + $0xc8] sm:$0xff] }
  0x1a   : > { %4128 = vmatpush1.bf16.msra.mxu0 %v6520_v19  ;;  %v6530_v39 = vld [vmem:[%s8685_s1 + $0xb8] sm:$0xff]   ;;  %v534_v42 = vld [vmem:[%s8689_s5 + $0xc0] sm:$0xff]  ;;  %v536_v46 = vld [vmem:[%s8689_s5 + $0xd0] sm:$0xff] }
  0x1b   : > { %588 = vperm.xlu1 %6516, %v517_v7   ;;  %583 = vperm.xlu0 %6515, %v516_v8   ;;  %v6533_v40 = vld [vmem:[%s8685_s1 + $0x38] sm:$0xff]   ;;  %v6532_v43 = vld [vmem:[%s8685_s1 + $0xc0] sm:$0xff]   ;;  %v6534_v47 = vld [vmem:[%s8685_s1 + $0xc8] sm:$0xff]  }
  0x1c   : > { %4129 = vmatprep.subr.bf16.mxu0 %v6785_v2  ;;  %3951 = vmatpush1.bf16.msra.mxu1 %v6523_v20  ;;  %v6535_v44 = vld [vmem:[%s8685_s1 + $0x40] sm:$0xff]   ;;  %v537_v45 = vld [vmem:[%s8689_s5 + $0xd8] sm:$0xff]  ;;  %v6537_v48 = vld [vmem:[%s8685_s1 + $0x48] sm:$0xff]  }
  0x1d   : > { %3952 = vmatprep.subr.bf16.mxu1 %v6785_v2  ;;  %v539_v49 = vld [vmem:[%s8689_s5 + $0xe8] sm:$0xff]  ;;  %v538_v50 = vld [vmem:[%s8689_s5 + $0xe0] sm:$0xff]  ;;  %v6536_v51 = vld [vmem:[%s8685_s1 + $0xd0] sm:$0xff]  }
  0x1e   : > { %4130 = vmatpush1.bf16.msra.mxu0 %v6522_v23  ;;  %v6539_v52 = vld [vmem:[%s8685_s1 + $0x50] sm:$0xff]   ;;  %v541_v53 = vld [vmem:[%s8689_s5 + $0xf8] sm:$0xff]  ;;  %v543_v57 = vld [vmem:[%s8689_s5 + $0x108] sm:$0xff] }
  0x1f   : > { %598 = vperm.xlu1 %6516, %v519_v9   ;;  %593 = vperm.xlu0 %6515, %v518_v10   ;;  %v540_v54 = vld [vmem:[%s8689_s5 + $0xf0] sm:$0xff]  ;;  %v6538_v55 = vld [vmem:[%s8685_s1 + $0xd8] sm:$0xff]   ;;  %v542_v58 = vld [vmem:[%s8689_s5 + $0x100] sm:$0xff] }
  0x20   : > { %4131 = vmatprep.subr.bf16.mxu0 %v6785_v2  ;;  %3953 = vmatpush1.bf16.msra.mxu1 %v6525_v24  ;;  %v6541_v56 = vld [vmem:[%s8685_s1 + $0x58] sm:$0xff]   ;;  %v6540_v59 = vld [vmem:[%s8685_s1 + $0xe0] sm:$0xff]   ;;  %v544_v62 = vld [vmem:[%s8689_s5 + $0x110] sm:$0xff] }
  0x21   : > { %3954 = vmatprep.subr.bf16.mxu1 %v6785_v2  ;;  %v6543_v60 = vld [vmem:[%s8685_s1 + $0x60] sm:$0xff]   ;;  %v545_v61 = vld [vmem:[%s8689_s5 + $0x118] sm:$0xff]  ;;  %v6542_v63 = vld [vmem:[%s8685_s1 + $0xe8] sm:$0xff]  }
  0x22   : > { %4132 = vmatpush1.bf16.msra.mxu0 %v6524_v27  ;;  %v6545_v0 = vld [vmem:[%s8685_s1 + $0x68] sm:$0xff]   ;;  %v546_v3 = vld [vmem:[%s8689_s5 + $0x120] sm:$0xff]  ;;  %v6544_v4 = vld [vmem:[%s8685_s1 + $0xf0] sm:$0xff]  }
  0x23   : > { %608 = vperm.xlu1 %6516, %v521_v12   ;;  %603 = vperm.xlu0 %6515, %v520_v14   ;;  %v547_v1 = vld [vmem:[%s8689_s5 + $0x128] sm:$0xff]  ;;  %v6549_v5 = vld [vmem:[%s8685_s1 + $0x70] sm:$0xff]   ;;  %v549_v6 = vld [vmem:[%s8689_s5 + $0x138] sm:$0xff] }
  0x24   : > { %4133 = vmatprep.subr.bf16.mxu0 %v6785_v2  ;;  %3955 = vmatpush1.bf16.msra.mxu1 %v6527_v28  ;;  %v548_v7 = vld [vmem:[%s8689_s5 + $0x130] sm:$0xff]  ;;  %v6546_v8 = vld [vmem:[%s8685_s1 + $0xf8] sm:$0xff]   ;;  %v1003_v10 = vld [vmem:[%s8688_s4] sm:$0xff] }
  0x25   : > { %3956 = vmatprep.subr.bf16.mxu1 %v6785_v2  ;;  %v6553_v9 = vld [vmem:[%s8685_s1 + $0x78] sm:$0xff]   ;;  %v550_v11 = vld [vmem:[%s8689_s5 + $0x140] sm:$0xff]  ;;  %v6201_v12 = vld [vmem:[%s7096_s28 + $0x88] sm:$0xff]  }
  0x26   : > { %4134 = vmatpush1.bf16.msra.mxu0 %v6526_v31  ;;  %v6202_v13 = vld [vmem:[%s7096_s28 + $0x90] sm:$0xff]   ;;  %v7107_v14 = vld [vmem:[%s8686_s2] ss:$0 sm:$0xff]  ;;  %v5986_v17 = vunpack.c.h.bf16 %v6201_v12  ;;  %v6203_v20 = vld [vmem:[%s7096_s28 + $0x98] sm:$0xff]  }
  0x27   : > { %618 = vperm.xlu1 %6516, %v523_v16   ;;  %613 = vperm.xlu0 %6515, %v522_v18   ;;  %v1005_v15 = vld [vmem:[%s8688_s4 + $0x10] sm:$0xff]  ;;  %v1004_v16 = vld [vmem:[%s8688_s4 + $0x8] sm:$0xff]  ;;  %v5985_v18 = vunpack.c.l.bf16 %v6201_v12  ;;  %v7120_v19 = vld [vmem:[%s8687_s3] ss:$0 sm:$0xff]  ;;  %v5990_v23 = vunpack.c.h.bf16 %v6202_v13  ;;  %v5989_v24 = vunpack.c.l.bf16 %v6202_v13 }
  0x28   : > { %4135 = vmatprep.subr.bf16.mxu0 %v6785_v2  ;;  %3957 = vmatpush1.bf16.msra.mxu1 %v6529_v32  ;;  %v331_v27 = vld [vmem:[%s7096_s28 + $0xa0] sm:$0xf]  ;;  %v1006_v31 = vld [vmem:[%s8688_s4 + $0x18] sm:$0xff]  ;;  %v5994_v32 = vunpack.c.h.bf16 %v6203_v20  ;;  %v1024_v12 = vld [vmem:[%s8688_s4 + $0xa8] sm:$0xff] }
  0x29   : > { %3958 = vmatprep.subr.bf16.mxu1 %v6785_v2  ;;  %v1007_v28 = vld [vmem:[%s8688_s4 + $0x20] sm:$0xff] }
  0x2a   : > { %4136 = vmatpush1.bf16.msra.mxu0 %v6528_v35 }
  0x2b   : > { %628 = vperm.xlu1 %6516, %v525_v21   ;;  %623 = vperm.xlu0 %6515, %v524_v22   ;;  %v415_v21 = vmul.f32 %v5986_v17, %v7107_v14  ;;  %v414_v22 = vmul.f32 %v5985_v18, %v7107_v14 }
  0x2c   : > { %4137 = vmatprep.subr.bf16.mxu0 %v6785_v2  ;;  %3959 = vmatpush1.bf16.msra.mxu1 %v6531_v36  ;;  %v372_v36 = vunpack.c.l.bf16 %v331_v27  ;;  %v1027_v27 = vld [vmem:[%s8688_s4 + $0xc0] sm:$0xff] }
  0x2d   : > { %3960 = vmatprep.subr.bf16.mxu1 %v6785_v2 }
  0x2e   : > { %4138 = vmatpush1.bf16.msra.mxu0 %v6530_v39 }
  0x2f   : > { %638 = vperm.xlu1 %6516, %v527_v25   ;;  %633 = vperm.xlu0 %6515, %v526_v26   ;;  %v7126_v25 = vadd.f32 %v7120_v19, %v415_v21  ;;  %v7129_v26 = vadd.f32 %v7120_v19, %v414_v22 }
  0x30   : > { %4139 = vmatprep.subr.bf16.mxu0 %v6785_v2  ;;  %3961 = vmatpush1.bf16.msra.mxu1 %v6533_v40  ;;  %v1008_v40 = vld [vmem:[%s8688_s4 + $0x28] sm:$0xff] }
  0x31   : > { %3962 = vmatprep.subr.bf16.mxu1 %v6785_v2 }
  0x32   : > { %4140 = vmatpush1.bf16.msra.mxu0 %v6532_v43 }
  0x33   : > { %648 = vperm.xlu1 %6516, %v529_v29   ;;  %643 = vperm.xlu0 %6515, %v528_v30   ;;  %v417_v29 = vmul.f32 %v5990_v23, %v7107_v14  ;;  %v416_v30 = vmul.f32 %v5989_v24, %v7107_v14  ;;  %v6188_v23 = vld [vmem:[%s7096_s28 + $0x20] sm:$0xff]   ;;  %v6189_v24 = vld [vmem:[%s7096_s28 + $0x28] sm:$0xff]  }
  0x34   : > { %4141 = vmatprep.subr.bf16.mxu0 %v6785_v2  ;;  %3963 = vmatpush1.bf16.msra.mxu1 %v6535_v44 }
  0x35   : > { %3964 = vmatprep.subr.bf16.mxu1 %v6785_v2  ;;  %v7144_v35 = vadd.f32 %v7120_v19, %v416_v30 }
  0x36   : > { %4142 = vmatpush1.bf16.msra.mxu0 %v6534_v47  ;;  %v1013_v47 = vld [vmem:[%s8688_s4 + $0x50] sm:$0xff] }
  0x37   : > { %658 = vperm.xlu1 %6516, %v531_v33   ;;  %653 = vperm.xlu0 %6515, %v530_v34   ;;  %v5993_v33 = vunpack.c.l.bf16 %v6203_v20  ;;  %v7141_v34 = vadd.f32 %v7120_v19, %v417_v29 }
  0x38   : > { %4143 = vmatprep.subr.bf16.mxu0 %v6785_v2  ;;  %3965 = vmatpush1.bf16.msra.mxu1 %v6537_v48  ;;  %v1012_v48 = vld [vmem:[%s8688_s4 + $0x48] sm:$0xff] }
  0x39   : > { %3966 = vmatprep.subr.bf16.mxu1 %v6785_v2  ;;  %v418_v39 = vmul.f32 %v5993_v33, %v7107_v14 }
  0x3a   : > { %4144 = vmatpush1.bf16.msra.mxu0 %v6536_v51  ;;  %v1017_v51 = vld [vmem:[%s8688_s4 + $0x70] sm:$0xff] }
  0x3b   : > { %668 = vperm.xlu1 %6516, %v533_v37   ;;  %663 = vperm.xlu0 %6515, %v532_v38   ;;  %v1009_v37 = vld [vmem:[%s8688_s4 + $0x30] sm:$0xff]  ;;  %v419_v38 = vmul.f32 %v5994_v32, %v7107_v14  ;;  %v7159_v43 = vadd.f32 %v7120_v19, %v418_v39  ;;  %v5933_v39 = vunpack.c.l.bf16 %v6188_v23 }
  0x3c   : > { %4145 = vmatprep.subr.bf16.mxu0 %v6785_v2  ;;  %3967 = vmatpush1.bf16.msra.mxu1 %v6539_v52  ;;  %v1016_v52 = vld [vmem:[%s8688_s4 + $0x68] sm:$0xff]  ;;  %v6190_v32 = vld [vmem:[%s7096_s28 + $0x30] sm:$0xff]  }
  0x3d   : > { %3968 = vmatprep.subr.bf16.mxu1 %v6785_v2 }
  0x3e   : > { %4146 = vmatpush1.bf16.msra.mxu0 %v6538_v55  ;;  %v1021_v55 = vld [vmem:[%s8688_s4 + $0x90] sm:$0xff] }
  0x3f   : > { %678 = vperm.xlu1 %6516, %v535_v41   ;;  %673 = vperm.xlu0 %6515, %v534_v42   ;;  %v420_v41 = vmul.f32 %v7107_v14, %v372_v36  ;;  %v7156_v42 = vadd.f32 %v7120_v19, %v419_v38  ;;  %v5934_v38 = vunpack.c.h.bf16 %v6188_v23 }
  0x40   : > { %4147 = vmatprep.subr.bf16.mxu0 %v6785_v2  ;;  %3969 = vmatpush1.bf16.msra.mxu1 %v6541_v56  ;;  %v6186_v56 = vld [vmem:[%s7096_s28 + $0x10] sm:$0xff]  }
  0x41   : > { %3970 = vmatprep.subr.bf16.mxu1 %v6785_v2  ;;  %v7162_v44 = vadd.f32 %v7120_v19, %v420_v41  ;;  %v6191_v41 = vld [vmem:[%s7096_s28 + $0x38] sm:$0xff]  }
  0x42   : > { %4148 = vmatpush1.bf16.msra.mxu0 %v6540_v59  ;;  %v5916_v59 = vld [vmem:[%s7096_s28] sm:$0xff]  }
  0x43   : > { %688 = vperm.xlu1 %6516, %v537_v45   ;;  %683 = vperm.xlu0 %6515, %v536_v46   ;;  %v1011_v45 = vld [vmem:[%s8688_s4 + $0x40] sm:$0xff]  ;;  %v1010_v46 = vld [vmem:[%s8688_s4 + $0x38] sm:$0xff] }
  0x44   : > { %4149 = vmatprep.subr.bf16.mxu0 %v6785_v2  ;;  %3971 = vmatpush1.bf16.msra.mxu1 %v6543_v60  ;;  %v5925_v60 = vunpack.c.l.bf16 %v6186_v56 }
  0x45   : > { %3972 = vmatprep.subr.bf16.mxu1 %v6785_v2 }
  0x46   : > { %4150 = vmatpush1.bf16.msra.mxu0 %v6542_v63 }
  0x47   : > { %698 = vperm.xlu1 %6516, %v539_v49   ;;  %693 = vperm.xlu0 %6515, %v538_v50   ;;  %v1015_v49 = vld [vmem:[%s8688_s4 + $0x60] sm:$0xff]  ;;  %v1014_v50 = vld [vmem:[%s8688_s4 + $0x58] sm:$0xff] }
  0x48   : > { %4151 = vmatprep.subr.bf16.mxu0 %v6785_v2  ;;  %3973 = vmatpush1.bf16.msra.mxu1 %v6545_v0  ;;  %v5918_v0 = vunpack.c.h.bf16 %v5916_v59 }
  0x49   : > { %3974 = vmatprep.subr.bf16.mxu1 %v6785_v2 }
  0x4a   : > { %4152 = vmatpush1.bf16.msra.mxu0 %v6544_v4  ;;  %v5917_v4 = vunpack.c.l.bf16 %v5916_v59  ;;  %v5945_v59 = vunpack.c.l.bf16 %v6191_v41 }
  0x4b   : > { %708 = vperm.xlu1 %6516, %v541_v53   ;;  %703 = vperm.xlu0 %6515, %v540_v54   ;;  %v1019_v53 = vld [vmem:[%s8688_s4 + $0x80] sm:$0xff]  ;;  %v1018_v54 = vld [vmem:[%s8688_s4 + $0x78] sm:$0xff] }
  0x4c   : > { %4153 = vmatprep.subr.bf16.mxu0 %v6785_v2  ;;  %3975 = vmatpush1.bf16.msra.mxu1 %v6549_v5  ;;  %v384_v5 = vmul.f32 %v5925_v60, %v7107_v14  ;;  %v380_v13 = vmul.f32 %v5917_v4, %v7107_v14 }
  0x4d   : > { %3976 = vmatprep.subr.bf16.mxu1 %v6785_v2 }
  0x4e   : > { %4154 = vmatpush1.bf16.msra.mxu0 %v6546_v8  ;;  %v432_v17 = vadd.f32 %v7120_v19, %v384_v5  ;;  %v428_v29 = vadd.f32 %v7120_v19, %v380_v13 }
  0x4f   : > { %718 = vperm.xlu1 %6516, %v543_v57   ;;  %713 = vperm.xlu0 %6515, %v542_v58   ;;  %v1020_v57 = vld [vmem:[%s8688_s4 + $0x88] sm:$0xff] }
  0x50   : > { %4300 = vmatprep.subr.bf16.mxu0 %v6785_v2  ;;  %3977 = vmatpush1.bf16.msra.mxu1 %v6553_v9  ;;  %v6185_v58 = vld [vmem:[%s7096_s28 + $0x8] sm:$0xff]   ;;  %v473_v36 = vmax.f32 %v432_v17, 0.0  ;;  %v394_v17 = vmul.f32 %v5945_v59, %v7107_v14 }
  0x51   : > { %6318 = vmatprep.subr.bf16.mxu1 %v6785_v2  ;;  %v5922_v63 = vunpack.c.h.bf16 %v6185_v58 }
  0x53   : > { %728 = vperm.xlu1 %6516, %v545_v61   ;;  %723 = vperm.xlu0 %6515, %v544_v62   ;;  %v5926_v61 = vunpack.c.h.bf16 %v6186_v56  ;;  %v5921_v62 = vunpack.c.l.bf16 %v6185_v58  ;;  %v383_v9 = vmul.f32 %v5922_v63, %v7107_v14  ;;  %v5946_v58 = vunpack.c.h.bf16 %v6191_v41 }
  0x54   : > { %v389_v63 = vmul.f32 %v5934_v38, %v7107_v14 }
  0x55   : > { %v382_v8 = vmul.f32 %v5921_v62, %v7107_v14  ;;  %v431_v21 = vadd.f32 %v7120_v19, %v383_v9 }
  0x57   : > { %738 = vperm.xlu1 %6516, %v547_v1   ;;  %733 = vperm.xlu0 %6515, %v546_v3   ;;  %v1023_v1 = vld [vmem:[%s8688_s4 + $0xa0] sm:$0xff]  ;;  %v1022_v3 = vld [vmem:[%s8688_s4 + $0x98] sm:$0xff]  ;;  %v430_v20 = vadd.f32 %v7120_v19, %v382_v8 }
  0x58   : > { %v1030_v8 = vld [vmem:[%s8688_s4 + $0xd8] sm:$0xff] }
  0x5b   : > { %748 = vperm.xlu1 %6516, %v549_v6   ;;  %743 = vperm.xlu0 %6515, %v548_v7   ;;  %v385_v6 = vmul.f32 %v5926_v61, %v7107_v14  ;;  %v6187_v7 = vld [vmem:[%s7096_s28 + $0x18] sm:$0xff]  }
  0x5d   : > { %v433_v18 = vadd.f32 %v7120_v19, %v385_v6 }
  0x5f   : > { %4833 = vperm.xlu1 %6516, %v1003_v10   ;;  %753 = vperm.xlu0 %6515, %v550_v11   ;;  %v381_v10 = vmul.f32 %v5918_v0, %v7107_v14  ;;  %v1025_v11 = vld [vmem:[%s8688_s4 + $0xb0] sm:$0xff]  ;;  %v388_v0 = vmul.f32 %v5933_v39, %v7107_v14 }
  0x61   : > { %v7227_v22 = vadd.f32 %v7120_v19, %v381_v10  ;;  %v436_v23 = vadd.f32 %v7120_v19, %v388_v0 }
  0x63   : > { %4843 = vperm.xlu1 %6516, %v1005_v15   ;;  %4838 = vperm.xlu0 %6515, %v1004_v16   ;;  %v5930_v15 = vunpack.c.h.bf16 %v6187_v7  ;;  %v5929_v16 = vunpack.c.l.bf16 %v6187_v7  ;;  %v1031_v7 = vld [vmem:[%s8688_s4 + $0xe0] sm:$0xff] }
  0x65   : > { %v387_v30 = vmul.f32 %v5930_v15, %v7107_v14 }
  0x67   : > { %4853 = vperm.xlu1 %6516, %v1007_v28   ;;  %4848 = vperm.xlu0 %6515, %v1006_v31   ;;  %v1026_v28 = vld [vmem:[%s8688_s4 + $0xb8] sm:$0xff]  ;;  %v386_v31 = vmul.f32 %v5929_v16, %v7107_v14  ;;  %v435_v56 = vadd.f32 %v7120_v19, %v387_v30  ;;  %v395_v16 = vmul.f32 %v5946_v58, %v7107_v14 }
  0x69   : > { %v7290_v41 = vadd.f32 %v7120_v19, %v395_v16 }
  0x6b   : > { %4863 = vperm.xlu1 %6516, %v1009_v37   ;;  %4858 = vperm.xlu0 %6515, %v1008_v40   ;;  %v5938_v40 = vunpack.c.h.bf16 %v6189_v24 }
  0x6f   : > { %4873 = vperm.xlu1 %6516, %v1011_v45   ;;  %4868 = vperm.xlu0 %6515, %v1010_v46   ;;  %v471_v45 = vmax.f32 %v430_v20, 0.0  ;;  %v474_v46 = vmax.f32 %v433_v18, 0.0 }
  0x73   : > { %4883 = vperm.xlu1 %6516, %v1013_v47   ;;  %4878 = vperm.xlu0 %6515, %v1012_v48   ;;  %v472_v47 = vmax.f32 %v431_v21, 0.0  ;;  %v470_v48 = vmax.f32 %v7227_v22, 0.0  ;;  %v476_v21 = vmax.f32 %v435_v56, 0.0  ;;  %v437_v22 = vadd.f32 %v7120_v19, %v389_v63  ;;  %v1034_v56 = vld [vmem:[%s8688_s4 + $0xf8] sm:$0xff] }
  0x77   : > { %4893 = vperm.xlu1 %6516, %v1015_v49   ;;  %4888 = vperm.xlu0 %6515, %v1014_v50   ;;  %v1029_v49 = vld [vmem:[%s8688_s4 + $0xd0] sm:$0xff]  ;;  %v1028_v50 = vld [vmem:[%s8688_s4 + $0xc8] sm:$0xff] }
  0x7b   : > { %4903 = vperm.xlu1 %6516, %v1017_v51   ;;  %4898 = vperm.xlu0 %6515, %v1016_v52   ;;  %v469_v51 = vmax.f32 %v428_v29, 0.0  ;;  %v5937_v52 = vunpack.c.l.bf16 %v6189_v24 }
  0x7d   : > { %v390_v9 = vmul.f32 %v5937_v52, %v7107_v14 }
  0x7f   : > { %4913 = vperm.xlu1 %6516, %v1019_v53   ;;  %4908 = vperm.xlu0 %6515, %v1018_v54   ;;  %v5942_v53 = vunpack.c.h.bf16 %v6190_v32  ;;  %v5941_v54 = vunpack.c.l.bf16 %v6190_v32  ;;  %v1033_v32 = vld [vmem:[%s8688_s4 + $0xf0] sm:$0xff] }
  0x81   : > { %v393_v10 = vmul.f32 %v5942_v53, %v7107_v14 }
  0x83   : > { %4923 = vperm.xlu1 %6516, %v1021_v55   ;;  %4918 = vperm.xlu0 %6515, %v1020_v57   ;;  %v6192_v55 = vld [vmem:[%s7096_s28 + $0x40] sm:$0xff]   ;;  %v434_v57 = vadd.f32 %v7120_v19, %v386_v31 }
  0x84   : > { %v5950_v6 = vunpack.c.h.bf16 %v6192_v55 }
  0x85   : > { %v475_v30 = vmax.f32 %v434_v57, 0.0 }
  0x86   : > { %v397_v31 = vmul.f32 %v5950_v6, %v7107_v14  ;;  %v1036_v6 = vld [vmem:[%s8688_s4 + $0x108] sm:$0xff] }
  0x87   : > { %4933 = vperm.xlu1 %6516, %v1023_v1   ;;  %4928 = vperm.xlu0 %6515, %v1022_v3   ;;  %v391_v1 = vmul.f32 %v5938_v40, %v7107_v14 }
  0x89   : > { %v7269_v24 = vadd.f32 %v7120_v19, %v391_v1  ;;  %v6194_v1 = vld [vmem:[%s7096_s28 + $0x50] sm:$0xff]  }
  0x8a   : > { %v5958_v16 = vunpack.c.h.bf16 %v6194_v1 }
  0x8b   : > { %4943 = vperm.xlu1 %6516, %v1025_v11   ;;  %4938 = vperm.xlu0 %6515, %v1024_v12   ;;  %v392_v11 = vmul.f32 %v5941_v54, %v7107_v14  ;;  %v5949_v12 = vunpack.c.l.bf16 %v6192_v55  ;;  %v480_v53 = vmax.f32 %v7269_v24, 0.0  ;;  %v7298_v54 = vadd.f32 %v7120_v19, %v397_v31  ;;  %v1035_v55 = vld [vmem:[%s8688_s4 + $0x100] sm:$0xff]  ;;  %v1038_v24 = vld [vmem:[%s8688_s4 + $0x118] sm:$0xff] }
  0x8d   : > { %v7286_v38 = vadd.f32 %v7120_v19, %v392_v11  ;;  %v396_v39 = vmul.f32 %v5949_v12, %v7107_v14  ;;  %v486_v12 = vmax.f32 %v7298_v54, 0.0 }
  0x8e   : > { %v574_v33 = vpop.permute.xlu1 %573  ;;  %v564_v37 = vpop.permute.xlu0 %563 }
  0x8f   : > { %4953 = vperm.xlu1 %6516, %v1027_v27   ;;  %4948 = vperm.xlu0 %6515, %v1026_v28   ;;  %v760_v60 = vmul.f32 %v574_v33, %v473_v36  ;;  %v758_v3 = vmul.f32 %v564_v37, %v471_v45  ;;  %v7272_v27 = vld [vmem:[%s7096_s28 + $0x48] sm:$0xff]   ;;  %v438_v36 = vadd.f32 %v7120_v19, %v390_v9  ;;  %v481_v59 = vmax.f32 %v7286_v38, 0.0 }
  0x90   : > { %v1032_v33 = vld [vmem:[%s8688_s4 + $0xe8] sm:$0xff]  ;;  %v7283_v37 = vadd.f32 %v7120_v19, %v393_v10  ;;  %v7293_v45 = vadd.f32 %v7120_v19, %v394_v17 }
  0x91   : > { %v479_v57 = vmax.f32 %v438_v36, 0.0 }
  0x92   : > { %v579_v61 = vpop.permute.xlu1 %578  ;;  %v569_v62 = vpop.permute.xlu0 %568  ;;  %v482_v58 = vmax.f32 %v7283_v37, 0.0  ;;  %v483_v63 = vmax.f32 %v7293_v45, 0.0 }
  0x93   : > { %v761_v4 = vmul.f32 %v579_v61, %v474_v46  ;;  %v759_v5 = vmul.f32 %v569_v62, %v472_v47  ;;  %4963 = vperm.xlu1 %6516, %v1029_v49   ;;  %4958 = vperm.xlu0 %6515, %v1028_v50   ;;  %v5954_v46 = vunpack.c.h.bf16 %v7272_v27  ;;  %v478_v49 = vmax.f32 %v437_v22, 0.0 }
  0x94   : > { %v477_v50 = vmax.f32 %v436_v23, 0.0  ;;  %v484_v62 = vmax.f32 %v7290_v41, 0.0 }
  0x95   : > { %v6008_v13 = vpack.c.bf16 %v761_v4, %v760_v60  ;;  %v6003_v15 = vpack.c.bf16 %v759_v5, %v758_v3  ;;  %v7309_v60 = vadd.f32 %v7120_v19, %v396_v39  ;;  %v399_v0 = vmul.f32 %v5954_v46, %v7107_v14  ;;  %v1037_v5 = vld [vmem:[%s8688_s4 + $0x110] sm:$0xff] }
  0x96   : > { %v559_v18 = vpop.permute.xlu1 %558  ;;  %v554_v20 = vpop.permute.xlu0 %553 }
  0x97   : > { %6205 = vst [vmem:[#allocation3 + $0x10] sm:$0xff] %v6008_v13   ;;  %6204 = vst [vmem:[#allocation3 + $0x8] sm:$0xff] %v6003_v15   ;;  %v757_v28 = vmul.f32 %v559_v18, %v470_v48  ;;  %v756_v29 = vmul.f32 %v554_v20, %v469_v51  ;;  %4973 = vperm.xlu1 %6516, %v1031_v7   ;;  %4968 = vperm.xlu0 %6515, %v1030_v8   ;;  %v5953_v7 = vunpack.c.l.bf16 %v7272_v27 }
  0x98   : > { %v485_v15 = vmax.f32 %v7309_v60, 0.0 }
  0x99   : > { %v5998_v40 = vpack.c.bf16 %v757_v28, %v756_v29  ;;  %v6552_v28 = vld [vmem:[%s8685_s1 + $0x100] sm:$0xff]   ;;  %v398_v29 = vmul.f32 %v5953_v7, %v7107_v14 }
  0x9a   : > { %v589_v47 = vpop.permute.xlu1 %588  ;;  %v584_v48 = vpop.permute.xlu0 %583 }
  0x9b   : > { %5999 = vst [vmem:[#allocation3] sm:$0xff] %v5998_v40   ;;  %v763_v51 = vmul.f32 %v589_v47, %v476_v21  ;;  %v762_v52 = vmul.f32 %v584_v48, %v475_v30  ;;  %4983 = vperm.xlu1 %6516, %v1033_v32   ;;  %4978 = vperm.xlu0 %6515, %v1032_v33   ;;  %v5957_v30 = vunpack.c.l.bf16 %v6194_v1  ;;  %v7342_v40 = vld [vmem:[%s7096_s28 + $0x58] sm:$0xff]  }
  0x9c   : > { %v7330_v21 = vadd.f32 %v7120_v19, %v399_v0  ;;  %v401_v48 = vmul.f32 %v5958_v16, %v7107_v14 }
  0x9d   : > { %v6013_v61 = vpack.c.bf16 %v763_v51, %v762_v52 }
  0x9e   : > { %v599_v3 = vpop.permute.xlu1 %598  ;;  %v594_v4 = vpop.permute.xlu0 %593  ;;  %v6547_v10 = vld [vmem:[#allocation3 + $0x8] sm:$0xfe]   ;;  %v7322_v11 = vld [vmem:[#allocation3 + $0x10] sm:$0xff]   ;;  %v7374_v38 = vadd.f32 %v7120_v19, %v401_v48 }
  0x9f   : > { %6206 = vst [vmem:[#allocation3 + $0x18] sm:$0xff] %v6013_v61   ;;  %v765_v8 = vmul.f32 %v599_v3, %v478_v49  ;;  %v764_v9 = vmul.f32 %v594_v4, %v477_v50  ;;  %4993 = vperm.xlu1 %6516, %v1035_v55   ;;  %4988 = vperm.xlu0 %6515, %v1034_v56   ;;  %v7325_v13 = vld [vmem:[#allocation3 + $0x8] sm:$0xff]   ;;  %v1850_v18 = vrot.slane %v6547_v10, 1  ;;  %v1851_v20 = vrot.slane %v7322_v11, 1  ;;  %v7345_v52 = vld [vmem:[#allocation3 + $0x10] sm:$0xff]   ;;  %v7349_v55 = vld [vmem:[%s7096_s28 + $0x60] sm:$0xff]  }
  0xa0   : > { %v1648_v36 = vrot.slane %v7325_v13, 1  ;;  %v6555_v47 = vld [vmem:[#allocation3 + $0x8] sm:$0xff]   ;;  %v7360_v4 = vadd.f32 %v7120_v19, %v398_v29  ;;  %v1348_v16 = vshll.u32 %v7345_v52, 16  ;;  %v5965_v45 = vunpack.c.l.bf16 %v7349_v55 }
  0xa1   : > { %v6018_v17 = vpack.c.bf16 %v765_v8, %v764_v9  ;;  %v1852_v33 = vsel %vm1646_vm0, %v1850_v18, %v1851_v20  ;;  %v1340_v0 = vshll.u32 %v6555_v47, 16  ;;  %v6561_v3 = vld [vmem:[%s8685_s1 + $0x108] sm:$0xff]   ;;  %v1344_v9 = vshrl.u32 %v6555_v47, 16 }
  0xa2   : > { %v609_v22 = vpop.permute.xlu1 %608  ;;  %v604_v23 = vpop.permute.xlu0 %603  ;;  %v6550_v27 = vld [vmem:[#allocation3] sm:$0xfe]   ;;  %4155 = vmatprep.mubr.bf16.mxu0 %v1852_v33  ;;  %v5962_v18 = vunpack.c.h.bf16 %v7342_v40  ;;  %v5966_v33 = vunpack.c.h.bf16 %v7349_v55  ;;  %v487_v48 = vmax.f32 %v7360_v4, 0.0  ;;  %v1352_v54 = vshrl.u32 %v7345_v52, 16 }
  0xa3   : > { %6207 = vst [vmem:[#allocation3 + $0x20] sm:$0xff] %v6018_v17   ;;  %v767_v31 = vmul.f32 %v609_v22, %v480_v53  ;;  %v766_v32 = vmul.f32 %v604_v23, %v479_v57  ;;  %5003 = vperm.xlu1 %6516, %v1037_v5   ;;  %4998 = vperm.xlu0 %6515, %v1036_v6   ;;  %v6554_v39 = vld [vmem:[#allocation3] sm:$0xff]   ;;  %v1647_v46 = vrot.slane %v6550_v27, 1  ;;  %v488_v53 = vmax.f32 %v7330_v21, 0.0  ;;  %v7369_v17 = vld [vmem:[#allocation3 + $0x10] sm:$0xff]   ;;  %v7378_v22 = vld [vmem:[%s7096_s28 + $0x68] sm:$0xff]  }
  0xa4   : > { %v1333_v50 = vshrl.u32 %v6554_v39, 16  ;;  %v1335_v51 = vshll.u32 %v6554_v39, 16  ;;  %v400_v5 = vmul.f32 %v5957_v30, %v7107_v14  ;;  %v1342_v10 = vrot.slane %v1340_v0, 1  ;;  %v6591_v23 = vld [vmem:[%s8685_s1 + $0x180] sm:$0xff]  }
  0xa5   : > { %v6023_v49 = vpack.c.bf16 %v767_v31, %v766_v32  ;;  %v1649_v61 = vsel %vm1646_vm0, %v1647_v46, %v1648_v36  ;;  %v6557_v29 = vld [vmem:[#allocation3] sm:$0xff]   ;;  %v1650_v31 = vrot.slane %v7369_v17, 1  ;;  %v6566_v32 = vld [vmem:[%s8685_s1 + $0x110] sm:$0xff]   ;;  %v403_v41 = vmul.f32 %v5962_v18, %v7107_v14 }
  0xa6   : > { %v619_v56 = vpop.permute.xlu1 %618  ;;  %v614_v57 = vpop.permute.xlu0 %613  ;;  %v7354_v1 = vld [vmem:[#allocation3 + $0x18] sm:$0xff]   ;;  %4156 = vmatmul.mubr.bf16.vlgmr.msra.gmra.mrb[0].mxu0 %v1649_v61  ;;  %v1337_v8 = vrot.slane %v1335_v51, 1  ;;  %v1346_v30 = vor.u32 %v1344_v9, %v1342_v10  ;;  %v405_v4 = vmul.f32 %v5966_v33, %v7107_v14  ;;  %v404_v60 = vmul.f32 %v5965_v45, %v7107_v14  ;;  %v6576_v21 = vld [vmem:[%s8685_s1 + $0x120] sm:$0xff]  }
  0xa7   : > { %6208 = vst [vmem:[#allocation3 + $0x28] sm:$0xff] %v6023_v49   ;;  %v769_v6 = vmul.f32 %v619_v56, %v482_v58  ;;  %v768_v7 = vmul.f32 %v614_v57, %v481_v59  ;;  %5008 = vperm.xlu0 %6515, %v1038_v24   ;;  %4301 = vmatpush1.bf16.msra.mxu0 %v6552_v28  ;;  %v1853_v11 = vrot.slane %v7354_v1, 1  ;;  %v5961_v59 = vunpack.c.l.bf16 %v7342_v40  ;;  %v6597_v57 = vld [vmem:[%s8685_s1 + $0x188] sm:$0xff]  }
  0xa8   : > { %v1338_v58 = vor.u32 %v1337_v8, %v1333_v50  ;;  %4302 = vmatprep.subr.bf16.mxu0 %v6785_v2  ;;  %v7398_v49 = vadd.f32 %v7120_v19, %v400_v5  ;;  %v7400_v50 = vld [vmem:[#allocation3 + $0x18] sm:$0xff]   ;;  %v1651_v55 = vsel %vm1646_vm0, %v1648_v36, %v1650_v31  ;;  %v5970_v5 = vunpack.c.h.bf16 %v7378_v22 }
  0xa9   : > { %v6028_v37 = vpack.c.bf16 %v769_v6, %v768_v7  ;;  %v1854_v28 = vsel %vm1646_vm0, %v1851_v20, %v1853_v11  ;;  %v1350_v20 = vrot.slane %v1348_v16, 1  ;;  %v402_v56 = vmul.f32 %v5961_v59, %v7107_v14 }
  0xaa   : > { %v629_v24 = vpop.permute.xlu1 %628  ;;  %v624_v27 = vpop.permute.xlu0 %623  ;;  %v1343_v46 = vsel %vm1331_vm1, %v1338_v58, %v1342_v10  ;;  %4163 = vmatprep.mubr.bf16.mxu0 %v1854_v28  ;;  %v7394_v47 = vld [vmem:[#allocation3 + $0x20] sm:$0xff]   ;;  %v1356_v1 = vshll.u32 %v7400_v50, 16  ;;  %v490_v36 = vmax.f32 %v7374_v38, 0.0  ;;  %v489_v9 = vmax.f32 %v7398_v49, 0.0  ;;  %v6198_v10 = vld [vmem:[%s7096_s28 + $0x70] sm:$0xff]   ;;  %v7474_v49 = vld [vmem:[%s7096_s28 + $0x78] sm:$0xff]  }
  0xab   : > { %6209 = vst [vmem:[#allocation3 + $0x30] sm:$0xff] %v6028_v37   ;;  %v771_v39 = vmul.f32 %v629_v24, %v484_v62  ;;  %v770_v40 = vmul.f32 %v624_v27, %v483_v63  ;;  %3978 = vmatprep.mubr.bf16.mxu1 %v1343_v46  ;;  %4303 = vmatpush1.bf16.msra.mxu0 %v6561_v3  ;;  %v1855_v51 = vrot.slane %v7394_v47, 1  ;;  %v7417_v3 = vld [vmem:[#allocation3 + $0x18] sm:$0xff]   ;;  %v7444_v18 = vld [vmem:[#allocation3 + $0x20] sm:$0xff]   ;;  %v5969_v37 = vunpack.c.l.bf16 %v7378_v22  ;;  %v6603_v27 = vld [vmem:[%s8685_s1 + $0x190] sm:$0xff]  }
  0xac   : > { %3979 = vmatmul.mubr.bf16.vlgmr.msra.gmra.mrb[0].mxu1 %v6557_v29  ;;  %v1351_v63 = vsel %vm1331_vm1, %v1346_v30, %v1350_v20  ;;  %4304 = vmatprep.subr.bf16.mxu0 %v6785_v2  ;;  %v7442_v16 = vrot.slane %v1356_v1, 1  ;;  %v1652_v38 = vrot.slane %v7417_v3, 1  ;;  %v7450_v59 = vadd.f32 %v7120_v19, %v402_v56  ;;  %v6562_v29 = vld [vmem:[#allocation3 + $0x8] sm:$0xff]  }
  0xad   : > { %v6033_v62 = vpack.c.bf16 %v771_v39, %v770_v40  ;;  %3986 = vmatprep.mubr.bf16.mxu1 %v1351_v63  ;;  %6334 = vmatpush1.bf16.msra.mxu1 %v6591_v23  ;;  %v1856_v13 = vsel %vm1646_vm0, %v1853_v11, %v1855_v51  ;;  %v7453_v23 = vadd.f32 %v7120_v19, %v405_v4  ;;  %v5974_v40 = vunpack.c.h.bf16 %v6198_v10 }
  0xae   : > { %v639_v61 = vpop.permute.xlu1 %638  ;;  %v634_v0 = vpop.permute.xlu0 %633  ;;  %4164 = vmatmul.mubr.bf16.gmra.mrb[4].mxu0 %v1651_v55  ;;  %v7429_v8 = vld [vmem:[#allocation3 + $0x28] sm:$0xff]   ;;  %6319 = vmatprep.subr.bf16.mxu1 %v6785_v2  ;;  %v407_v24 = vmul.f32 %v5970_v5, %v7107_v14  ;;  %v1354_v30 = vor.u32 %v1352_v54, %v1350_v20  ;;  %v7465_v39 = vadd.f32 %v7120_v19, %v404_v60  ;;  %v5973_v46 = vunpack.c.l.bf16 %v6198_v10 }
  0xaf   : > { %6210 = vst [vmem:[#allocation3 + $0x38] sm:$0xff] %v6033_v62   ;;  %v773_v6 = vmul.f32 %v639_v61, %v486_v12  ;;  %v772_v7 = vmul.f32 %v634_v0, %v485_v15  ;;  %4171 = vmatprep.mubr.bf16.mxu0 %v1856_v13  ;;  %v7435_v12 = vadd.f32 %v7120_v19, %v403_v41  ;;  %v6571_v15 = vld [vmem:[%s8685_s1 + $0x118] sm:$0xff]   ;;  %v491_v56 = vmax.f32 %v7450_v59, 0.0  ;;  %v6582_v55 = vld [vmem:[%s8685_s1 + $0x128] sm:$0xff]  }
  0xb0   : > { %4305 = vmatpush1.bf16.msra.mxu0 %v6566_v32  ;;  %v1857_v32 = vrot.slane %v7429_v8, 1  ;;  %v1359_v20 = vsel %vm1331_vm1, %v1354_v30, %v7442_v16  ;;  %v6609_v41 = vld [vmem:[%s8685_s1 + $0x198] sm:$0xff]   ;;  %v1653_v63 = vsel %vm1646_vm0, %v1650_v31, %v1652_v38  ;;  %v7489_v61 = vadd.f32 %v7120_v19, %v407_v24  ;;  %v7513_v54 = vld [vmem:[#allocation3 + $0x28] sm:$0xff]  }
  0xb1   : > { %v6038_v11 = vpack.c.bf16 %v773_v6, %v772_v7  ;;  %4306 = vmatprep.subr.bf16.mxu0 %v6785_v2  ;;  %6335 = vmatpush1.bf16.msra.mxu1 %v6597_v57  ;;  %v492_v33 = vmax.f32 %v7435_v12, 0.0  ;;  %v7486_v57 = vld [vmem:[#allocation3 + $0x20] sm:$0xff]   ;;  %v406_v0 = vmul.f32 %v5969_v37, %v7107_v14  ;;  %v494_v4 = vmax.f32 %v7453_v23, 0.0 }
  0xb2   : > { %v649_v52 = vpop.permute.xlu1 %648  ;;  %v644_v58 = vpop.permute.xlu0 %643  ;;  %6320 = vmatprep.subr.bf16.mxu1 %v6785_v2  ;;  %v1858_v31 = vsel %vm1646_vm0, %v1855_v51, %v1857_v32  ;;  %v7501_v5 = vld [vmem:[#allocation3 + $0x30] sm:$0xff]   ;;  %v493_v6 = vmax.f32 %v7465_v39, 0.0  ;;  %v1360_v7 = vshrl.u32 %v7400_v50, 16  ;;  %v409_v13 = vmul.f32 %v5974_v40, %v7107_v14 }
  0xb3   : > { %6211 = vst [vmem:[#allocation3 + $0x40] sm:$0xff] %v6038_v11   ;;  %v775_v22 = vmul.f32 %v649_v52, %v488_v53  ;;  %v774_v28 = vmul.f32 %v644_v58, %v487_v48  ;;  %v1364_v48 = vshll.u32 %v7444_v18, 16  ;;  %v7518_v50 = vadd.f32 %v7120_v19, %v406_v0  ;;  %v6616_v11 = vld [vmem:[%s8685_s1 + $0x1a0] sm:$0xff]   ;;  %v6567_v58 = vld [vmem:[#allocation3 + $0x10] sm:$0xff]   ;;  %v6594_v0 = vld [vmem:[%s8685_s1 + $0x138] sm:$0xff]  }
  0xb4   : > { %4307 = vmatpush1.bf16.msra.mxu0 %v6571_v15  ;;  %3987 = vmatmul.mubr.bf16.gmra.mrb[4].mxu1 %v6562_v29  ;;  %v1654_v15 = vrot.slane %v7486_v57, 1  ;;  %v5978_v10 = vunpack.c.h.bf16 %v7474_v49  ;;  %v1362_v59 = vor.u32 %v1360_v7, %v7442_v16  ;;  %v1859_v23 = vrot.slane %v7501_v5, 1 }
  0xb5   : > { %v6043_v53 = vpack.c.bf16 %v775_v22, %v774_v28  ;;  %4308 = vmatprep.subr.bf16.mxu0 %v6785_v2  ;;  %3994 = vmatprep.mubr.bf16.mxu1 %v1359_v20  ;;  %v7511_v51 = vrot.slane %v1364_v48, 1  ;;  %v496_v24 = vmax.f32 %v7489_v61, 0.0  ;;  %v6588_v28 = vld [vmem:[%s8685_s1 + $0x130] sm:$0xff]   ;;  %v1372_v30 = vshll.u32 %v7513_v54, 16 }
  0xb6   : > { %v659_v45 = vpop.permute.xlu1 %658  ;;  %v654_v62 = vpop.permute.xlu0 %653  ;;  %6336 = vmatpush1.bf16.msra.mxu1 %v6603_v27  ;;  %4172 = vmatmul.mubr.bf16.gmra.mrb[8].mxu0 %v1653_v63  ;;  %v7530_v27 = vadd.f32 %v7120_v19, %v409_v13  ;;  %v1860_v3 = vsel %vm1646_vm0, %v1857_v32, %v1859_v23  ;;  %v1368_v61 = vshrl.u32 %v7444_v18, 16  ;;  %v6760_v18 = vld [vmem:[%s8687_s3] ss:$0 sm:$0xff] }
  0xb7   : > { %6212 = vst [vmem:[#allocation3 + $0x48] sm:$0xff] %v6043_v53   ;;  %v777_v1 = vmul.f32 %v659_v45, %v490_v36  ;;  %v776_v17 = vmul.f32 %v654_v62, %v489_v9  ;;  %6321 = vmatprep.subr.bf16.mxu1 %v6785_v2  ;;  %4179 = vmatprep.mubr.bf16.mxu0 %v1858_v31  ;;  %v7509_v9 = vld [vmem:[%s7096_s28 + $0x80] sm:$0xff]   ;;  %v7563_v62 = vld [vmem:[#allocation3 + $0x38] sm:$0xff]   ;;  %v7571_v8 = vrot.slane %v1372_v30, 1 }
  0xb8   : > { %v408_v36 = vmul.f32 %v5973_v46, %v7107_v14  ;;  %4309 = vmatpush1.bf16.msra.mxu0 %v6576_v21  ;;  %v5977_v14 = vunpack.c.l.bf16 %v7474_v49  ;;  %v1367_v16 = vsel %vm1331_vm1, %v1362_v59, %v7511_v51  ;;  %v1655_v46 = vsel %vm1646_vm0, %v1652_v38, %v1654_v15  ;;  %v7551_v21 = vld [vmem:[#allocation3 + $0x28] sm:$0xff]   ;;  %v6759_v53 = vld [vmem:[%s8686_s2] ss:$0 sm:$0xff] }
  0xb9   : > { %v6048_v47 = vpack.c.bf16 %v777_v1, %v776_v17  ;;  %4310 = vmatprep.subr.bf16.mxu0 %v6785_v2  ;;  %v411_v20 = vmul.f32 %v6759_v53, %v5978_v10  ;;  %v5981_v49 = vunpack.c.l.bf16 %v7509_v9  ;;  %v495_v38 = vmax.f32 %v7518_v50, 0.0  ;;  %v7573_v1 = vld [vmem:[#allocation3 + $0x30] sm:$0xff]   ;;  %v6601_v10 = vld [vmem:[%s8685_s1 + $0x140] sm:$0xff]  }
  0xba   : > { %v669_v12 = vpop.permute.xlu1 %668  ;;  %v664_v60 = vpop.permute.xlu0 %663  ;;  %6337 = vmatpush1.bf16.msra.mxu1 %v6609_v41  ;;  %v7533_v22 = vadd.f32 %v7120_v19, %v408_v36  ;;  %v6623_v19 = vld [vmem:[%s8685_s1 + $0x1a8] sm:$0xff]   ;;  %v410_v48 = vmul.f32 %v6759_v53, %v5977_v14  ;;  %v498_v63 = vmax.f32 %v7530_v27, 0.0  ;;  %v6629_v36 = vld [vmem:[%s8685_s1 + $0x1b0] sm:$0xff]   ;;  %v1861_v50 = vrot.slane %v7563_v62, 1  ;;  %v7609_v57 = vld [vmem:[#allocation3 + $0x40] sm:$0xff]  }
  0xbb   : > { %6213 = vst [vmem:[#allocation3 + $0x50] sm:$0xff] %v6048_v47   ;;  %v779_v37 = vmul.f32 %v669_v12, %v492_v33  ;;  %v778_v52 = vmul.f32 %v664_v60, %v491_v56  ;;  %6322 = vmatprep.subr.bf16.mxu1 %v6785_v2  ;;  %v5982_v33 = vunpack.c.h.bf16 %v7509_v9  ;;  %v412_v13 = vmul.f32 %v6759_v53, %v5981_v49  ;;  %v6572_v12 = vld [vmem:[#allocation3 + $0x18] sm:$0xff]  }
  0xbc   : > { %4311 = vmatpush1.bf16.msra.mxu0 %v6582_v55  ;;  %3995 = vmatmul.mubr.bf16.gmra.mrb[8].mxu1 %v6567_v58  ;;  %v497_v56 = vmax.f32 %v7533_v22, 0.0  ;;  %v458_v7 = vadd.f32 %v6760_v18, %v410_v48  ;;  %v1370_v60 = vor.u32 %v1368_v61, %v7511_v51  ;;  %v6632_v51 = vld [vmem:[%s8685_s1 + $0x1b8] sm:$0xff]   ;;  %v1862_v30 = vsel %vm1646_vm0, %v1859_v23, %v1861_v50 }
  0xbd   : > { %v6053_v29 = vpack.c.bf16 %v779_v37, %v778_v52  ;;  %4312 = vmatprep.subr.bf16.mxu0 %v6785_v2  ;;  %4002 = vmatprep.mubr.bf16.mxu1 %v1367_v16  ;;  %v413_v32 = vmul.f32 %v6759_v53, %v5982_v33  ;;  %v1380_v37 = vshll.u32 %v7573_v1, 16  ;;  %v460_v22 = vadd.f32 %v6760_v18, %v412_v13 }
  0xbe   : > { %v679_v39 = vpop.permute.xlu1 %678  ;;  %v674_v40 = vpop.permute.xlu0 %673  ;;  %6338 = vmatpush1.bf16.msra.mxu1 %v6616_v11  ;;  %4180 = vmatmul.mubr.bf16.gmra.mrb[12].mxu0 %v1655_v46  ;;  %v1375_v11 = vsel %vm1331_vm1, %v1370_v60, %v7571_v8  ;;  %v499_v33 = vmax.f32 %v458_v7, 0.0  ;;  %v7616_v46 = vld [vmem:[#allocation3 + $0x38] sm:$0xff]   ;;  %v506_v13 = vmax.f32 %v7141_v34, 0.0  ;;  %v505_v34 = vmax.f32 %v7144_v35, 0.0 }
  0xbf   : > { %6214 = vst [vmem:[#allocation3 + $0x58] sm:$0xff] %v6053_v29   ;;  %v781_v41 = vmul.f32 %v679_v39, %v494_v4  ;;  %v780_v45 = vmul.f32 %v674_v40, %v493_v6  ;;  %4187 = vmatprep.mubr.bf16.mxu0 %v1860_v3  ;;  %6323 = vmatprep.subr.bf16.mxu1 %v6785_v2  ;;  %v1656_v4 = vrot.slane %v7551_v21, 1  ;;  %v1382_v40 = vrot.slane %v1380_v37, 1 }
  0xc0   : > { %4313 = vmatpush1.bf16.msra.mxu0 %v6588_v28  ;;  %v459_v6 = vadd.f32 %v6760_v18, %v411_v20  ;;  %v461_v27 = vadd.f32 %v6760_v18, %v413_v32  ;;  %v7602_v28 = vld [vmem:[#allocation3 + $0x30] sm:$0xff]   ;;  %v501_v20 = vmax.f32 %v460_v22, 0.0  ;;  %v1863_v3 = vrot.slane %v7609_v57, 1  ;;  %v6634_v57 = vld [vmem:[%s8685_s1 + $0x168] sm:$0xff]  }
  0xc1   : > { %v6058_v55 = vpack.c.bf16 %v781_v41, %v780_v45  ;;  %4314 = vmatprep.subr.bf16.mxu0 %v6785_v2  ;;  %v1657_v59 = vsel %vm1646_vm0, %v1654_v15, %v1656_v4  ;;  %v1376_v15 = vshrl.u32 %v7513_v54, 16  ;;  %v1658_v48 = vrot.slane %v7602_v28, 1  ;;  %v6577_v41 = vld [vmem:[#allocation3 + $0x20] sm:$0xff]  }
  0xc2   : > { %v689_v17 = vpop.permute.xlu1 %688  ;;  %v684_v31 = vpop.permute.xlu0 %683  ;;  %6339 = vmatpush1.bf16.msra.mxu1 %v6623_v19  ;;  %v6608_v19 = vld [vmem:[%s8685_s1 + $0x148] sm:$0xff]   ;;  %v502_v53 = vmax.f32 %v461_v27, 0.0  ;;  %v1388_v61 = vshll.u32 %v7616_v46, 16  ;;  %v504_v32 = vmax.f32 %v7126_v25, 0.0  ;;  %v1864_v7 = vsel %vm1646_vm0, %v1861_v50, %v1863_v3  ;;  %v6620_v25 = vld [vmem:[%s8685_s1 + $0x158] sm:$0xff]   ;;  %v6589_v27 = vld [vmem:[#allocation3 + $0x40] sm:$0xff]  }
  0xc3   : > { %6215 = vst [vmem:[#allocation3 + $0x60] sm:$0xff] %v6058_v55   ;;  %v783_v9 = vmul.f32 %v689_v17, %v496_v24  ;;  %v782_v47 = vmul.f32 %v684_v31, %v495_v38  ;;  %6324 = vmatprep.subr.bf16.mxu1 %v6785_v2  ;;  %v500_v24 = vmax.f32 %v459_v6, 0.0  ;;  %v1378_v45 = vor.u32 %v1376_v15, %v7571_v8  ;;  %v6614_v38 = vld [vmem:[%s8685_s1 + $0x150] sm:$0xff]   ;;  %v7634_v31 = vld [vmem:[#allocation3 + $0x38] sm:$0xff]   ;;  %v6581_v50 = vld [vmem:[#allocation3 + $0x28] sm:$0xff]  }
  0xc4   : > { %4315 = vmatpush1.bf16.msra.mxu0 %v6594_v0  ;;  %4003 = vmatmul.mubr.bf16.gmra.mrb[12].mxu1 %v6572_v12  ;;  %v1659_v8 = vsel %vm1646_vm0, %v1656_v4, %v1658_v48  ;;  %v503_v17 = vmax.f32 %v7129_v26, 0.0  ;;  %v1384_v21 = vshrl.u32 %v7573_v1, 16  ;;  %v1390_v4 = vrot.slane %v1388_v61, 1 }
  0xc5   : > { %v6063_v14 = vpack.c.bf16 %v783_v9, %v782_v47  ;;  %4316 = vmatprep.subr.bf16.mxu0 %v6785_v2  ;;  %4010 = vmatprep.mubr.bf16.mxu1 %v1375_v11  ;;  %v7646_v9 = vld [vmem:[#allocation3 + $0x40] sm:$0xff]   ;;  %v1660_v12 = vrot.slane %v7634_v31, 1 }
  0xc6   : > { %v699_v52 = vpop.permute.xlu1 %698  ;;  %v694_v58 = vpop.permute.xlu0 %693  ;;  %6340 = vmatpush1.bf16.msra.mxu1 %v6629_v36  ;;  %4188 = vmatmul.mubr.bf16.gmra.mrb[16].mxu0 %v1657_v59  ;;  %v7640_v36 = vld [vmem:[#allocation3 + $0x48] sm:$0xff]   ;;  %v6626_v11 = vld [vmem:[%s8685_s1 + $0x160] sm:$0xff]   ;;  %v1396_v35 = vshll.u32 %v7646_v9, 16  ;;  %v1400_v61 = vshrl.u32 %v7646_v9, 16 }
  0xc7   : > { %6216 = vst [vmem:[#allocation3 + $0x68] sm:$0xff] %v6063_v14   ;;  %v785_v29 = vmul.f32 %v699_v52, %v498_v63  ;;  %v784_v16 = vmul.f32 %v694_v58, %v497_v56  ;;  %6325 = vmatprep.subr.bf16.mxu1 %v6785_v2  ;;  %4195 = vmatprep.mubr.bf16.mxu0 %v1862_v30  ;;  %v1865_v14 = vrot.slane %v7640_v36, 1  ;;  %v6590_v30 = vld [vmem:[#allocation3 + $0x50] sm:$0xff]  }
  0xc8   : > { %4317 = vmatpush1.bf16.msra.mxu0 %v6601_v10  ;;  %v1383_v56 = vsel %vm1331_vm1, %v1378_v45, %v1382_v40  ;;  %v1386_v10 = vor.u32 %v1384_v21, %v1382_v40  ;;  %v1661_v59 = vsel %vm1646_vm0, %v1658_v48, %v1660_v12  ;;  %v1867_v48 = vrot.slane %v6590_v30, 1  ;;  %v6600_v21 = vld [vmem:[#allocation3 + $0x50] sm:$0xff]  }
  0xc9   : > { %v6068_v39 = vpack.c.bf16 %v785_v29, %v784_v16  ;;  %4318 = vmatprep.subr.bf16.mxu0 %v6785_v2  ;;  %v1866_v29 = vsel %vm1646_vm0, %v1863_v3, %v1865_v14  ;;  %v507_v16 = vmax.f32 %v7159_v43, 0.0 }
  0xca   : > { %v709_v5 = vpop.permute.xlu1 %708  ;;  %v704_v23 = vpop.permute.xlu0 %703  ;;  %6341 = vmatpush1.bf16.msra.mxu1 %v6632_v51  ;;  %v1391_v51 = vsel %vm1331_vm1, %v1386_v10, %v1390_v4 }
  0xcb   : > { %6217 = vst [vmem:[#allocation3 + $0x70] sm:$0xff] %v6068_v39   ;;  %v787_v54 = vmul.f32 %v709_v5, %v500_v24  ;;  %v786_v49 = vmul.f32 %v704_v23, %v499_v33  ;;  %6326 = vmatprep.subr.bf16.mxu1 %v6785_v2  ;;  %v508_v24 = vmax.f32 %v7156_v42, 0.0  ;;  %v1392_v33 = vshrl.u32 %v7616_v46, 16 }
  0xcc   : > { %4319 = vmatpush1.bf16.msra.mxu0 %v6608_v19  ;;  %4011 = vmatmul.mubr.bf16.gmra.mrb[16].mxu1 %v6577_v41  ;;  %v1398_v42 = vrot.slane %v1396_v35, 1  ;;  %v6593_v19 = vld [vmem:[#allocation3 + $0x48] sm:$0xff]   ;;  %v509_v5 = vmax.f32 %v7162_v44, 0.0  ;;  %v1662_v23 = vrot.slane %v6589_v27, 1  ;;  %v6646_v35 = vld [vmem:[%s8685_s1 + $0x1d8] sm:$0xff]  }
  0xcd   : > { %v6073_v63 = vpack.c.bf16 %v787_v54, %v786_v49  ;;  %4320 = vmatprep.subr.bf16.mxu0 %v6785_v2  ;;  %4018 = vmatprep.mubr.bf16.mxu1 %v1383_v56  ;;  %v1394_v46 = vor.u32 %v1392_v33, %v1390_v4  ;;  %v1404_v41 = vshll.u32 %v6593_v19, 16  ;;  %v6595_v44 = vld [vmem:[#allocation3 + $0x48] sm:$0xff]   ;;  %v6596_v56 = vld [vmem:[#allocation3 + $0x58] sm:$0xff]   ;;  %v6602_v4 = vld [vmem:[#allocation3 + $0x60] sm:$0xff]   ;;  %v1408_v9 = vshrl.u32 %v6593_v19, 16 }
  0xce   : > { %v719_v0 = vpop.permute.xlu1 %718  ;;  %v714_v55 = vpop.permute.xlu0 %713  ;;  %4196 = vmatmul.mubr.bf16.gmra.mrb[20].mxu0 %v1659_v8  ;;  %v1663_v3 = vsel %vm1646_vm0, %v1660_v12, %v1662_v23  ;;  %v6599_v8 = vld [vmem:[#allocation3 + $0x50] sm:$0xff]   ;;  %v1402_v31 = vor.u32 %v1400_v61, %v1398_v42  ;;  %v1666_v12 = vrot.slane %v6600_v21, 1  ;;  %v1871_v10 = vrot.slane %v6602_v4, 1 }
  0xcf   : > { %6218 = vst [vmem:[#allocation3 + $0x78] sm:$0xff] %v6073_v63   ;;  %v789_v18 = vmul.f32 %v719_v0, %v502_v53  ;;  %v788_v6 = vmul.f32 %v714_v55, %v501_v20  ;;  %4203 = vmatprep.mubr.bf16.mxu0 %v1864_v7  ;;  %v6586_v20 = vld [vmem:[#allocation3 + $0x30] sm:$0xff]   ;;  %v1399_v49 = vsel %vm1331_vm1, %v1394_v46, %v1398_v42  ;;  %v1406_v55 = vrot.slane %v1404_v41, 1  ;;  %v6612_v42 = vld [vmem:[#allocation3 + $0x60] sm:$0xff]  }
  0xd0   : > { %4321 = vmatpush1.bf16.msra.mxu0 %v6614_v38  ;;  %v1868_v63 = vsel %vm1646_vm0, %v1865_v14, %v1867_v48  ;;  %v6656_v46 = vld [vmem:[%s8685_s1 + $0x1f0] sm:$0xff]  }
  0xd1   : > { %v6078_v26 = vpack.c.bf16 %v789_v18, %v788_v6  ;;  %4322 = vmatprep.subr.bf16.mxu0 %v6785_v2  ;;  %v1869_v18 = vrot.slane %v6596_v56, 1  ;;  %v6636_v6 = vld [vmem:[%s8685_s1 + $0x1c0] sm:$0xff]   ;;  %v1407_v7 = vsel %vm1331_vm1, %v1402_v31, %v1406_v55 }
  0xd2   : > { %v729_v62 = vpop.permute.xlu1 %728  ;;  %v724_v47 = vpop.permute.xlu0 %723  ;;  %6342 = vmatpush1.bf16.msra.mxu1 %v6636_v6 }
  0xd3   : > { %6219 = vst [vmem:[#allocation3 + $0x80] sm:$0xff] %v6078_v26   ;;  %v791_v60 = vmul.f32 %v729_v62, %v504_v32  ;;  %v790_v1 = vmul.f32 %v724_v47, %v503_v17  ;;  %v1664_v32 = vrot.slane %v6595_v44, 1  ;;  %v6592_v17 = vld [vmem:[#allocation3 + $0x38] sm:$0xff]   ;;  %v1870_v26 = vsel %vm1646_vm0, %v1867_v48, %v1869_v18  ;;  %6327 = vmatprep.subr.bf16.mxu1 %v6785_v2  ;;  %v6610_v48 = vld [vmem:[#allocation3 + $0x50] sm:$0xff]  }
  0xd4   : > { %4323 = vmatpush1.bf16.msra.mxu0 %v6620_v25  ;;  %4019 = vmatmul.mubr.bf16.gmra.mrb[20].mxu1 %v6581_v50  ;;  %v6639_v25 = vld [vmem:[%s8685_s1 + $0x1c8] sm:$0xff]   ;;  %v6605_v47 = vld [vmem:[#allocation3 + $0x58] sm:$0xff]   ;;  %v1410_v50 = vor.u32 %v1408_v9, %v1406_v55  ;;  %v6622_v55 = vld [vmem:[#allocation3 + $0x70] sm:$0xff]  }
  0xd5   : > { %v6083_v37 = vpack.c.bf16 %v791_v60, %v790_v1  ;;  %4324 = vmatprep.subr.bf16.mxu0 %v6785_v2  ;;  %4026 = vmatprep.mubr.bf16.mxu1 %v1391_v51  ;;  %v1665_v36 = vsel %vm1646_vm0, %v1662_v23, %v1664_v32  ;;  %v6643_v60 = vld [vmem:[%s8685_s1 + $0x1d0] sm:$0xff]   ;;  %v6598_v1 = vld [vmem:[#allocation3 + $0x40] sm:$0xff]   ;;  %v6606_v51 = vld [vmem:[#allocation3 + $0x58] sm:$0xff]   ;;  %v1424_v23 = vshrl.u32 %v6605_v47, 16  ;;  %v1444_v6 = vshll.u32 %v6622_v55, 16 }
  0xd6   : > { %v739_v52 = vpop.permute.xlu1 %738  ;;  %v734_v58 = vpop.permute.xlu0 %733  ;;  %4204 = vmatmul.mubr.bf16.gmra.mrb[24].mxu0 %v1661_v59  ;;  %6343 = vmatpush1.bf16.msra.mxu1 %v6639_v25  ;;  %v6607_v59 = vld [vmem:[#allocation3 + $0x68] sm:$0xff]   ;;  %v6619_v56 = vld [vmem:[#allocation3 + $0x78] sm:$0xff]  }
  0xd7   : > { %6220 = vst [vmem:[#allocation3 + $0x88] sm:$0xff] %v6083_v37   ;;  %v793_v22 = vmul.f32 %v739_v52, %v506_v13  ;;  %v792_v28 = vmul.f32 %v734_v58, %v505_v34  ;;  %4211 = vmatprep.mubr.bf16.mxu0 %v1866_v29  ;;  %v1412_v13 = vshll.u32 %v6599_v8, 16  ;;  %v6642_v34 = vld [vmem:[%s8685_s1 + $0x170] sm:$0xff]   ;;  %6328 = vmatprep.subr.bf16.mxu1 %v6785_v2  ;;  %v6650_v52 = vld [vmem:[%s8685_s1 + $0x178] sm:$0xff]   ;;  %v6649_v29 = vld [vmem:[%s8685_s1 + $0x1e0] sm:$0xff]   ;;  %v1873_v33 = vrot.slane %v6607_v59, 1 }
  0xd8   : > { %4325 = vmatpush1.bf16.msra.mxu0 %v6626_v11  ;;  %v1420_v11 = vshll.u32 %v6605_v47, 16  ;;  %v1667_v37 = vsel %vm1646_vm0, %v1664_v32, %v1666_v12  ;;  %v1872_v58 = vsel %vm1646_vm0, %v1869_v18, %v1871_v10  ;;  %v6615_v32 = vld [vmem:[#allocation3 + $0x58] sm:$0xff]   ;;  %v1877_v31 = vrot.slane %v6619_v56, 1 }
  0xd9   : > { %v6088_v15 = vpack.c.bf16 %v793_v22, %v792_v28  ;;  %4326 = vmatprep.subr.bf16.mxu0 %v6785_v2  ;;  %v1414_v62 = vrot.slane %v1412_v13, 1  ;;  %v6611_v22 = vld [vmem:[#allocation3 + $0x60] sm:$0xff]   ;;  %v1668_v28 = vrot.slane %v6606_v51, 1  ;;  %v6624_v13 = vld [vmem:[#allocation3 + $0x70] sm:$0xff]   ;;  %v6628_v4 = vld [vmem:[#allocation3 + $0x78] sm:$0xff]  }
  0xda   : > { %v749_v39 = vpop.permute.xlu1 %748  ;;  %v744_v40 = vpop.permute.xlu0 %743  ;;  %6344 = vmatpush1.bf16.msra.mxu1 %v6643_v60  ;;  %v1422_v27 = vrot.slane %v1420_v11, 1  ;;  %v1432_v61 = vshrl.u32 %v6611_v22, 16  ;;  %v6625_v21 = vld [vmem:[#allocation3 + $0x80] sm:$0xff]   ;;  %v1674_v9 = vrot.slane %v6624_v13, 1  ;;  %v1452_v60 = vshll.u32 %v6628_v4, 16 }
  0xdb   : > { %6221 = vst [vmem:[#allocation3 + $0x90] sm:$0xff] %v6088_v15   ;;  %v795_v43 = vmul.f32 %v749_v39, %v508_v24  ;;  %v794_v53 = vmul.f32 %v744_v40, %v507_v16  ;;  %v1415_v14 = vsel %vm1331_vm1, %v1410_v50, %v1414_v62  ;;  %6329 = vmatprep.subr.bf16.mxu1 %v6785_v2  ;;  %v1416_v24 = vshrl.u32 %v6599_v8, 16  ;;  %v6604_v16 = vld [vmem:[#allocation3 + $0x48] sm:$0xff]   ;;  %v6635_v51 = vld [vmem:[#allocation3 + $0x80] sm:$0xff]  }
  0xdc   : > { %4327 = vmatpush1.bf16.msra.mxu0 %v6634_v57  ;;  %4027 = vmatmul.mubr.bf16.gmra.mrb[24].mxu1 %v6586_v20  ;;  %v1428_v15 = vshll.u32 %v6611_v22, 16  ;;  %v1669_v19 = vsel %vm1646_vm0, %v1666_v12, %v1668_v28  ;;  %v6654_v39 = vld [vmem:[%s8685_s1 + $0x1e8] sm:$0xff]   ;;  %v1874_v40 = vsel %vm1646_vm0, %v1871_v10, %v1873_v33  ;;  %v1670_v20 = vrot.slane %v6612_v42, 1  ;;  %v6633_v42 = vld [vmem:[#allocation3 + $0x70] sm:$0xff]  }
  0xdd   : > { %v6093_v54 = vpack.c.bf16 %v795_v43, %v794_v53  ;;  %4328 = vmatprep.subr.bf16.mxu0 %v6785_v2  ;;  %4034 = vmatprep.mubr.bf16.mxu1 %v1399_v49  ;;  %v1418_v30 = vor.u32 %v1416_v24, %v1414_v62  ;;  %v6617_v53 = vld [vmem:[#allocation3 + $0x68] sm:$0xff]   ;;  %v6621_v62 = vld [vmem:[#allocation3 + $0x60] sm:$0xff]   ;;  %v1448_v11 = vshrl.u32 %v6622_v55, 16  ;;  %v7743_v55 = vld [vmem:[#allocation3 + $0x10] sm:$0xff]  }
  0xde   : > { %v754_v45 = vpop.permute.xlu0 %753  ;;  %4212 = vmatmul.mubr.bf16.gmra.mrb[28].mxu0 %v1663_v3  ;;  %6345 = vmatpush1.bf16.msra.mxu1 %v6646_v35  ;;  %v1430_v43 = vrot.slane %v1428_v15, 1  ;;  %v6618_v3 = vld [vmem:[#allocation3 + $0x68] sm:$0xff]   ;;  %v1671_v44 = vsel %vm1646_vm0, %v1668_v28, %v1670_v20  ;;  %v1440_v25 = vshrl.u32 %v6617_v53, 16  ;;  %v6637_v28 = vld [vmem:[#allocation3 + $0x80] sm:$0xff]  }
  0xdf   : > { %6222 = vst [vmem:[#allocation3 + $0x98] sm:$0xff] %v6093_v54   ;;  %v796_v38 = vmul.f32 %v754_v45, %v509_v5  ;;  %4219 = vmatprep.mubr.bf16.mxu0 %v1868_v63  ;;  %6330 = vmatprep.subr.bf16.mxu1 %v6785_v2  ;;  %v1423_v57 = vsel %vm1331_vm1, %v1418_v30, %v1422_v27  ;;  %v6613_v5 = vld [vmem:[#allocation3 + $0x70] sm:$0xff]   ;;  %v1436_v45 = vshll.u32 %v6617_v53, 16  ;;  %v1672_v8 = vrot.slane %v6618_v3, 1  ;;  %v6641_v30 = vld [vmem:[#allocation3 + $0x88] sm:$0xff]  }
  0xe0   : > { %4329 = vmatpush1.bf16.msra.mxu0 %v6642_v34  ;;  %v1426_v54 = vor.u32 %v1424_v23, %v1422_v27  ;;  %v1875_v49 = vrot.slane %v6613_v5, 1  ;;  %v1879_v34 = vrot.slane %v6625_v21, 1  ;;  %v1460_v27 = vshll.u32 %v6635_v51, 16 }
  0xe1   : > { %v5878_v0 = vpack.c.bf16 %v796_v38, %v796_v38  ;;  %4330 = vmatprep.subr.bf16.mxu0 %v6785_v2  ;;  %v6662_v38 = vld [vmem:[%s8685_s1 + $0x1f8] sm:$0xff]   ;;  %v1675_v50 = vsel %vm1646_vm0, %v1672_v8, %v1674_v9  ;;  %v1678_v15 = vrot.slane %v6637_v28, 1 }
  0xe2   : > { %6346 = vmatpush1.bf16.msra.mxu1 %v6649_v29  ;;  %v1431_v41 = vsel %vm1331_vm1, %v1426_v54, %v1430_v43  ;;  %v1876_v63 = vsel %vm1646_vm0, %v1873_v33, %v1875_v49  ;;  %v1880_v10 = vsel %vm1646_vm0, %v1877_v31, %v1879_v34  ;;  %v1456_v33 = vshrl.u32 %v6628_v4, 16  ;;  %v7751_v28 = vld [vmem:[#allocation3 + $0x18] sm:$0xff]  }
  0xe3   : > { %1002 = vst [vmem:[#allocation3 + $0xa0] sm:$0xf] %v5878_v0  ;;  %6331 = vmatprep.subr.bf16.mxu1 %v6785_v2  ;;  %v1438_v0 = vrot.slane %v1436_v45, 1  ;;  %v1464_v54 = vshrl.u32 %v6635_v51, 16 }
  0xe4   : > { %4035 = vmatmul.mubr.bf16.gmra.mrb[28].mxu1 %v6592_v17  ;;  %4331 = vmatpush1.bf16.msra.mxu0 %v6650_v52  ;;  %v1434_v17 = vor.u32 %v1432_v61, %v1430_v43  ;;  %v6627_v52 = vld [vmem:[#allocation3 + $0x68] sm:$0xff]   ;;  %v7737_v43 = vld [vmem:[%s8685_s1 + $0x200] sm:$0xff]  }
  0xe5   : > { %4042 = vmatprep.mubr.bf16.mxu1 %v1407_v7  ;;  %4477 = vmatprep.subr.bf16.mxu0 %v6785_v2  ;;  %v1673_v7 = vsel %vm1646_vm0, %v1670_v20, %v1672_v8  ;;  %v1442_v47 = vor.u32 %v1440_v25, %v1438_v0  ;;  %v6644_v20 = vld [vmem:[#allocation3 + $0x88] sm:$0xff]  }
  0xe6   : > { %4220 = vmatmul.mubr.bf16.gmra.mrb[32].mxu0 %v1665_v36  ;;  %6347 = vmatpush1.bf16.msra.mxu1 %v6654_v39  ;;  %v1439_v18 = vsel %vm1331_vm1, %v1434_v17, %v1438_v0  ;;  %v1878_v36 = vsel %vm1646_vm0, %v1875_v49, %v1877_v31  ;;  %v6645_v23 = vld [vmem:[#allocation3 + $0x98] ss:$0 sps:$4 sm:$0x11]   ;;  %v1680_v45 = vrot.slane %v6644_v20, 1  ;;  %v6652_v0 = vld [vmem:[#allocation3 + $0x8] sm:$0xfc]  }
  0xe7   : > { %4227 = vmatprep.mubr.bf16.mxu0 %v1870_v26  ;;  %6332 = vmatprep.subr.bf16.mxu1 %v6785_v2  ;;  %v1446_v26 = vrot.slane %v1444_v6, 1  ;;  %v6659_v8 = vld [vmem:[#allocation3 + $0x8] sm:$0xfe]   ;;  %v6660_v17 = vld [vmem:[#allocation3 + $0x10] sm:$0xff]   ;;  %v6657_v6 = vld [vmem:[#allocation3 + $0x38] sm:$0xff]  }
  0xe8   : > { %v2058_v4 = vshll.u32 %v6659_v8, 16 }
  0xe9   : > { %v1447_v12 = vsel %vm1331_vm1, %v1442_v47, %v1446_v26  ;;  %v2066_v47 = vshll.u32 %v6660_v17, 16 }
  0xea   : > { %6348 = vmatpush1.bf16.msra.mxu1 %v6656_v46 }
  0xeb   : > { %6333 = vmatprep.subr.bf16.mxu1 %v6785_v2 }
  0xec   : > { %4043 = vmatmul.mubr.bf16.gmra.mrb[32].mxu1 %v6598_v1  ;;  %v6630_v1 = vld [vmem:[#allocation3 + $0x78] sm:$0xff]  }
  0xed   : > { %4050 = vmatprep.mubr.bf16.mxu1 %v1415_v14  ;;  %v6631_v14 = vld [vmem:[#allocation3 + $0x88] sm:$0xff]   ;;  %v1676_v35 = vrot.slane %v6630_v1, 1  ;;  %v2846_v1 = vshll.u32 %v6657_v6, 16 }
  0xee   : > { %4228 = vmatmul.mubr.bf16.gmra.mrb[36].mxu0 %v1667_v37  ;;  %6349 = vmatpush1.bf16.msra.mxu1 %v6662_v38  ;;  %v1454_v37 = vrot.slane %v1452_v60, 1  ;;  %v1881_v59 = vrot.slane %v6631_v14, 1  ;;  %v6651_v38 = vld [vmem:[#allocation3 + $0x90] ss:$0 sps:$4 sm:$0x11]   ;;  %v2843_v60 = vshrl.u32 %v6657_v6, 16 }
  0xef   : > { %4235 = vmatprep.mubr.bf16.mxu0 %v1872_v58  ;;  %v1450_v58 = vor.u32 %v1448_v11, %v1446_v26  ;;  %v1677_v22 = vsel %vm1646_vm0, %v1674_v9, %v1676_v35  ;;  %v1679_v53 = vsel %vm1646_vm0, %v1676_v35, %v1678_v15  ;;  %6266 = vmatprep.subr.bf16.mxu1 %v7737_v43  ;;  %v1682_v25 = vrot.slane %v6651_v38, 1  ;;  %v6761_v38 = vld [vmem:[%s8685_s1 + $0x180] sm:$0xff]  }
  0xf0   : > { %v1882_v29 = vsel %vm1646_vm0, %v1879_v34, %v1881_v59  ;;  %v2055_v26 = vshrl.u32 %v6659_v8, 16  ;;  %v2391_v34 = vrot.slane %v6652_v0, 2  ;;  %v2060_v35 = vrot.slane %v2058_v4, 2 }
  0xf1   : > { %v1455_v24 = vsel %vm1331_vm1, %v1450_v58, %v1454_v37  ;;  %v1683_v51 = vsel %vm1646_vm0, %v1680_v45, %v1682_v25  ;;  %v2068_v58 = vrot.slane %v2066_v47, 2  ;;  %v7784_v25 = vld [vmem:[#allocation3 + $0x28] sm:$0xff]  }
  0xf2   : > { %v2057_v11 = vrot.slane %v2055_v26, 1 }
  0xf4   : > { %4051 = vmatmul.mubr.bf16.gmra.mrb[36].mxu1 %v6604_v16  ;;  %v6638_v16 = vld [vmem:[#allocation3 + $0x90] sm:$0xff]  }
  0xf5   : > { %4058 = vmatprep.mubr.bf16.mxu1 %v1423_v57  ;;  %v1462_v57 = vrot.slane %v1460_v27, 1  ;;  %v1883_v39 = vrot.slane %v6638_v16, 1  ;;  %v2845_v27 = vrot.slane %v2843_v60, 2 }
  0xf6   : > { %4236 = vmatmul.mubr.bf16.gmra.mrb[40].mxu0 %v1669_v19  ;;  %v1458_v19 = vor.u32 %v1456_v33, %v1454_v37  ;;  %v6665_v37 = vld [vmem:[#allocation3 + $0x48] sm:$0xff]   ;;  %v2061_v33 = vor.u32 %v2060_v35, %v2057_v11 }
  0xf7   : > { %4243 = vmatprep.mubr.bf16.mxu0 %v1874_v40  ;;  %v1468_v40 = vshll.u32 %v6641_v30, 16  ;;  %v1884_v46 = vsel %vm1646_vm0, %v1881_v59, %v1883_v39  ;;  %v1466_v3 = vor.u32 %v1464_v54, %v1462_v57  ;;  %v6666_v59 = vld [vmem:[#allocation3 + $0x18] sm:$0xff]   ;;  %v2861_v16 = vshrl.u32 %v6665_v37, 16 }
  0xf8   : > { %v1463_v5 = vsel %vm1331_vm1, %v1458_v19, %v1462_v57  ;;  %v6655_v19 = vld [vmem:[#allocation3 + $0x88] sm:$0xff]  }
  0xf9   : > { %v1470_v49 = vrot.slane %v1468_v40, 1  ;;  %v2394_v40 = vrot.slane %v7751_v28, 2  ;;  %v2863_v20 = vrot.slane %v2861_v16, 2  ;;  %v6677_v28 = vld [vmem:[#allocation3 + $0x60] sm:$0xff]   ;;  %v7810_v16 = vld [vmem:[#allocation3 + $0x30] sm:$0xff]  }
  0xfb   : > { %v1471_v56 = vsel %vm1331_vm1, %v1466_v3, %v1470_v49 }
  0xfc   : > { %4059 = vmatmul.mubr.bf16.gmra.mrb[40].mxu1 %v6610_v48  ;;  %v6648_v48 = vld [vmem:[#allocation3 + $0x90] ss:$0 sps:$4 sm:$0x11]  }
  0xfd   : > { %4066 = vmatprep.mubr.bf16.mxu1 %v1431_v41  ;;  %v6640_v41 = vld [vmem:[#allocation3 + $0x78] sm:$0xff]   ;;  %v1476_v61 = vshll.u32 %v6648_v48, 16  ;;  %v6670_v48 = vld [vmem:[#allocation3 + $0x20] sm:$0xff]  }
  0xfe   : > { %4244 = vmatmul.mubr.bf16.gmra.mrb[44].mxu0 %v1671_v44  ;;  %v1885_v44 = vrot.slane %v6645_v23, 1  ;;  %v6669_v23 = vld [vmem:[#allocation3 + $0x50] sm:$0xff]  }
  0xff   : > { %4251 = vmatprep.mubr.bf16.mxu0 %v1876_v63  ;;  %v6658_v63 = vld [vmem:[#allocation3 + $0x40] sm:$0xff]   ;;  %v1478_v21 = vrot.slane %v1476_v61, 1  ;;  %v2873_v0 = vshll.u32 %v6669_v23, 16 }
 0x100   : > { %v1886_v31 = vsel %vm1646_vm0, %v1883_v39, %v1885_v44  ;;  %v2855_v13 = vshll.u32 %v6658_v63, 16  ;;  %v7764_v44 = vld [vmem:[#allocation3 + $0x20] sm:$0xff]  }
 0x101   : > { %v2396_v6 = vrot.slane %v7764_v44, 2  ;;  %v2875_v4 = vrot.slane %v2873_v0, 3 }
 0x104   : > { %4067 = vmatmul.mubr.bf16.gmra.mrb[44].mxu1 %v6615_v32  ;;  %v1681_v32 = vsel %vm1646_vm0, %v1678_v15, %v1680_v45  ;;  %v2072_v15 = vshrl.u32 %v6666_v59, 16 }
 0x105   : > { %4074 = vmatprep.mubr.bf16.mxu1 %v1439_v18  ;;  %v1472_v18 = vshrl.u32 %v6641_v30, 16  ;;  %v2864_v30 = vshll.u32 %v6665_v37, 16  ;;  %v2398_v37 = vrot.slane %v7784_v25, 2  ;;  %v6767_v25 = vld [vmem:[%s8685_s1 + $0x1b0] sm:$0xff]  }
 0x106   : > { %4252 = vmatmul.mubr.bf16.gmra.mrb[48].mxu0 %v1673_v7  ;;  %v2852_v7 = vshrl.u32 %v6658_v63, 16 }
 0x107   : > { %4259 = vmatprep.mubr.bf16.mxu0 %v1878_v36  ;;  %v6647_v36 = vld [vmem:[#allocation3 + $0x80] sm:$0xff]   ;;  %v1474_v9 = vor.u32 %v1472_v18, %v1470_v49  ;;  %v7761_v49 = vld [vmem:[#allocation3 + $0x38] sm:$0xff]  }
 0x108   : > { %v2603_v8 = vrot.slane %v7761_v49, 2  ;;  %v6673_v18 = vld [vmem:[#allocation3 + $0x58] sm:$0xff]  }
 0x109   : > { %v1479_v14 = vsel %vm1331_vm1, %v1474_v9, %v1478_v21  ;;  %v2879_v60 = vshrl.u32 %v6673_v18, 16 }
 0x10c   : > { %4075 = vmatmul.mubr.bf16.gmra.mrb[48].mxu1 %v6621_v62  ;;  %v2063_v62 = vshrl.u32 %v6660_v17, 16  ;;  %v7772_v17 = vld [vmem:[#allocation3 + $0x48] sm:$0xff]  }
 0x10d   : > { %4082 = vmatprep.mubr.bf16.mxu1 %v1447_v12  ;;  %v2392_v12 = vrot.slane %v7743_v55, 2  ;;  %v2081_v55 = vshrl.u32 %v6670_v48, 16 }
 0x10e   : > { %4260 = vmatmul.mubr.bf16.gmra.mrb[52].mxu0 %v1675_v50  ;;  %v2854_v50 = vrot.slane %v2852_v7, 2  ;;  %v6698_v7 = vld [vmem:[%s8685_s1 + $0x208] sm:$0xff]  }
 0x10f   : > { %4267 = vmatprep.mubr.bf16.mxu0 %v1880_v10  ;;  %v2857_v10 = vrot.slane %v2855_v13, 3  ;;  %v2395_v3 = vsel %vm2390_vm2, %v2392_v12, %v2394_v40  ;;  %v2083_v9 = vrot.slane %v2081_v55, 1 }
 0x114   : > { %4083 = vmatmul.mubr.bf16.gmra.mrb[52].mxu1 %v6627_v52  ;;  %v2065_v52 = vrot.slane %v2063_v62, 1 }
 0x115   : > { %4090 = vmatprep.mubr.bf16.mxu1 %v1455_v24  ;;  %v2393_v24 = vsel %vm2390_vm2, %v2391_v34, %v2392_v12  ;;  %v6674_v34 = vld [vmem:[#allocation3 + $0x28] sm:$0xff]   ;;  %v2397_v12 = vsel %vm2390_vm2, %v2394_v40, %v2396_v6  ;;  %v6713_v40 = vld [vmem:[%s8685_s1 + $0x220] sm:$0xff]  }
 0x116   : > { %4268 = vmatmul.mubr.bf16.gmra.mrb[56].mxu0 %v1677_v22  ;;  %v2848_v22 = vrot.slane %v2846_v1, 3  ;;  %v2069_v57 = vor.u32 %v2068_v58, %v2065_v52  ;;  %v6706_v1 = vld [vmem:[%s8685_s1 + $0x210] sm:$0xff]   ;;  %v2090_v35 = vshrl.u32 %v6674_v34, 16  ;;  %v2093_v52 = vshll.u32 %v6674_v34, 16  ;;  %v6724_v34 = vld [vmem:[%s8685_s1 + $0x238] sm:$0xff]  }
 0x117   : > { %4275 = vmatprep.mubr.bf16.mxu0 %v1882_v29  ;;  %v2858_v29 = vor.u32 %v2857_v10, %v2854_v50  ;;  %v2607_v50 = vrot.slane %v7772_v17, 2  ;;  %v6763_v10 = vld [vmem:[%s8685_s1 + $0x190] sm:$0xff]   ;;  %v2881_v58 = vrot.slane %v2879_v60, 2  ;;  %v6682_v17 = vld [vmem:[#allocation3 + $0x38] sm:$0xff]   ;;  %v7852_v60 = vld [vmem:[#allocation3 + $0x60] sm:$0xff]  }
 0x118   : > { %v7753_v39 = vor.u32 %v2848_v22, %v2845_v27  ;;  %v2070_v54 = vsel %vm2053_vm3, %v2061_v33, %v2069_v57  ;;  %v6764_v22 = vld [vmem:[%s8685_s1 + $0x198] sm:$0xff]  }
 0x11c   : > { %4091 = vmatmul.mubr.bf16.gmra.mrb[56].mxu1 %v6633_v42  ;;  %v2075_v42 = vshll.u32 %v6666_v59, 16  ;;  %v6711_v59 = vld [vmem:[%s8685_s1 + $0x218] sm:$0xff]  }
 0x11d   : > { %4098 = vmatprep.mubr.bf16.mxu1 %v1463_v5  ;;  %v7756_v5 = vld [vmem:[#allocation3 + $0x40] sm:$0xff]  }
 0x11e   : > { %4276 = vmatmul.mubr.bf16.gmra.mrb[60].mxu0 %v1679_v53  ;;  %v2859_v53 = vsel %vm2797_vm4, %v7753_v39, %v2858_v29  ;;  %v2077_v45 = vrot.slane %v2075_v42, 2  ;;  %v2605_v63 = vrot.slane %v7756_v5, 2  ;;  %v2399_v42 = vsel %vm2390_vm2, %v2396_v6, %v2398_v37  ;;  %v7837_v6 = vld [vmem:[#allocation3 + $0x38] sm:$0xff]  }
 0x11f   : > { %4283 = vmatprep.mubr.bf16.mxu0 %v1884_v46  ;;  %v2866_v46 = vrot.slane %v2864_v30, 3  ;;  %v6678_v30 = vld [vmem:[#allocation3 + $0x30] sm:$0xff]  }
 0x120   : > { %v2606_v13 = vsel %vm2390_vm2, %v2603_v8, %v2605_v63 }
 0x121   : > { %v2867_v61 = vor.u32 %v2866_v46, %v2863_v20  ;;  %v6765_v20 = vld [vmem:[%s8685_s1 + $0x1a0] sm:$0xff]   ;;  %v2099_v46 = vshrl.u32 %v6678_v30, 16 }
 0x123   : > { %v2868_v26 = vsel %vm2797_vm4, %v2858_v29, %v2867_v61  ;;  %v2101_v55 = vrot.slane %v2099_v46, 1  ;;  %v6690_v46 = vld [vmem:[#allocation3 + $0x48] sm:$0xff]  }
 0x124   : > { %4099 = vmatmul.mubr.bf16.gmra.mrb[60].mxu1 %v6640_v41  ;;  %v2074_v41 = vrot.slane %v2072_v15, 1  ;;  %v2095_v15 = vrot.slane %v2093_v52, 2 }
 0x125   : > { %4106 = vmatprep.mubr.bf16.mxu1 %v1471_v56  ;;  %v2870_v56 = vshrl.u32 %v6669_v23, 16  ;;  %v2888_v23 = vshrl.u32 %v6677_v28, 16 }
 0x126   : > { %4284 = vmatmul.mubr.bf16.gmra.mrb[64].mxu0 %v1681_v32  ;;  %v2078_v32 = vor.u32 %v2077_v45, %v2074_v41  ;;  %v7823_v41 = vld [vmem:[#allocation3 + $0x58] sm:$0xff]   ;;  %v2400_v45 = vrot.slane %v7810_v16, 2 }
 0x127   : > { %4291 = vmatprep.mubr.bf16.mxu0 %v1886_v31  ;;  %v2084_v31 = vshll.u32 %v6670_v48, 16  ;;  %v2872_v21 = vrot.slane %v2870_v56, 2  ;;  %v2102_v48 = vshll.u32 %v6678_v30, 16  ;;  %v6766_v56 = vld [vmem:[%s8685_s1 + $0x1a8] sm:$0xff]  }
 0x128   : > { %v2079_v62 = vsel %vm2053_vm3, %v2069_v57, %v2078_v32  ;;  %v2092_v57 = vrot.slane %v2090_v35, 1 }
 0x129   : > { %v2086_v47 = vrot.slane %v2084_v31, 2  ;;  %v2876_v11 = vor.u32 %v2875_v4, %v2872_v21 }
 0x12b   : > { %v2877_v29 = vsel %vm2797_vm4, %v2867_v61, %v2876_v11  ;;  %v2890_v61 = vrot.slane %v2888_v23, 2 }
 0x12c   : > { %4107 = vmatmul.mubr.bf16.gmra.mrb[64].mxu1 %v6647_v36  ;;  %v6762_v36 = vld [vmem:[%s8685_s1 + $0x188] sm:$0xff]  }
 0x12d   : > { %4114 = vmatprep.mubr.bf16.mxu1 %v1479_v14  ;;  %v2882_v14 = vshll.u32 %v6673_v18, 16  ;;  %v2401_v18 = vsel %vm2390_vm2, %v2398_v37, %v2400_v45 }
 0x12e   : > { %4292 = vmatmul.mubr.bf16.gmra.mrb[68].mxu0 %v1683_v51  ;;  %v7800_v51 = vld [vmem:[#allocation3 + $0x50] sm:$0xff]  }
 0x12f   : > { %4332 = vmatprep.mubr.bf16.mxu0 %v2393_v24  ;;  %v2608_v24 = vsel %vm2390_vm2, %v2605_v63, %v2607_v50  ;;  %v2884_v27 = vrot.slane %v2882_v14, 3  ;;  %v6681_v63 = vld [vmem:[#allocation3 + $0x68] sm:$0xff]   ;;  %v6768_v14 = vld [vmem:[%s8685_s1 + $0x1b8] sm:$0xff]  }
 0x130   : > { %v2900_v21 = vshll.u32 %v6681_v63, 16 }
 0x131   : > { %v2885_v5 = vor.u32 %v2884_v27, %v2881_v58  ;;  %v7861_v58 = vld [vmem:[#allocation3 + $0x40] sm:$0xff]  }
 0x134   : > { %4115 = vmatmul.mubr.bf16.gmra.mrb[68].mxu1 %v6655_v19  ;;  %v2609_v19 = vrot.slane %v7800_v51, 2 }
 0x135   : > { %4549 = vmatprep.mubr.bf16.mxu1 %v2859_v53  ;;  %v2891_v53 = vshll.u32 %v6677_v28, 16  ;;  %v6769_v28 = vld [vmem:[%s8685_s1 + $0x1c0] sm:$0xff]  }
 0x136   : > { %4333 = vmatmul.mubr.bf16.vlgmr.msra.gmra.mrb[0].mxu0 %v2070_v54  ;;  %v2096_v54 = vor.u32 %v2095_v15, %v2092_v57  ;;  %v2610_v44 = vsel %vm2390_vm2, %v2607_v50, %v2609_v19  ;;  %v2902_v50 = vrot.slane %v2900_v21, 3  ;;  %v6684_v57 = vld [vmem:[#allocation3 + $0x68] sm:$0xff]   ;;  %v6689_v15 = vld [vmem:[#allocation3 + $0x78] sm:$0xff]  }
 0x137   : > { %4478 = vmatpush1.bf16.msra.mxu0 %v6761_v38  ;;  %4340 = vmatprep.mubr.bf16.mxu0 %v2395_v3  ;;  %v6717_v3 = vld [vmem:[%s8685_s1 + $0x228] sm:$0xff]   ;;  %v2886_v38 = vsel %vm2797_vm4, %v2876_v11, %v2885_v5  ;;  %v2893_v0 = vrot.slane %v2891_v53, 3 }
 0x138   : > { %4479 = vmatprep.subr.bf16.mxu0 %v6785_v2 }
 0x13b   : > { %4480 = vmatpush1.bf16.msra.mxu0 %v6762_v36  ;;  %v2897_v36 = vshrl.u32 %v6681_v63, 16  ;;  %v2918_v63 = vshll.u32 %v6689_v15, 16 }
 0x13c   : > { %4550 = vmatmul.mubr.bf16.vlgmr.msra.gmra.mrb[72].mxu1 %v2606_v13  ;;  %4481 = vmatprep.subr.bf16.mxu0 %v6785_v2  ;;  %v2611_v13 = vrot.slane %v7823_v41, 2  ;;  %v6687_v41 = vld [vmem:[#allocation3 + $0x48] sm:$0xff]  }
 0x13d   : > { %4557 = vmatprep.mubr.bf16.mxu1 %v2868_v26  ;;  %6267 = vmatpush3.bf16.msra.mxu1 %v7737_v43  ;;  %v2087_v43 = vor.u32 %v2086_v47, %v2083_v9  ;;  %v2894_v26 = vor.u32 %v2893_v0, %v2890_v61  ;;  %v2108_v9 = vshrl.u32 %v6682_v17, 16  ;;  %v2402_v47 = vrot.slane %v7837_v6, 2 }
 0x13e   : > { %4341 = vmatmul.mubr.bf16.gmra.mrb[4].mxu0 %v2079_v62  ;;  %6268 = vmatprep.subr.bf16.mxu1 %v6698_v7  ;;  %v2111_v62 = vshll.u32 %v6682_v17, 16  ;;  %v2129_v0 = vshll.u32 %v6690_v46, 16  ;;  %v6688_v17 = vld [vmem:[#allocation3 + $0x70] sm:$0xff]  }
 0x13f   : > { %4348 = vmatprep.mubr.bf16.mxu0 %v2397_v12  ;;  %4482 = vmatpush1.bf16.msra.mxu0 %v6763_v10  ;;  %v2088_v33 = vsel %vm2053_vm3, %v2078_v32, %v2087_v43  ;;  %v2104_v32 = vrot.slane %v2102_v48, 2  ;;  %v2097_v31 = vsel %vm2053_vm3, %v2087_v43, %v2096_v54  ;;  %v2612_v12 = vsel %vm2390_vm2, %v2609_v19, %v2611_v13  ;;  %v6685_v10 = vld [vmem:[#allocation3 + $0x70] sm:$0xff]   ;;  %v6686_v43 = vld [vmem:[#allocation3 + $0x40] sm:$0xff]  }
 0x140   : > { %4483 = vmatprep.subr.bf16.mxu0 %v6785_v2  ;;  %v2895_v11 = vsel %vm2797_vm4, %v2885_v5, %v2894_v26  ;;  %v2110_v51 = vrot.slane %v2108_v9, 1  ;;  %v2113_v35 = vrot.slane %v2111_v62, 2  ;;  %v2403_v52 = vsel %vm2390_vm2, %v2400_v45, %v2402_v47  ;;  %v6692_v9 = vld [vmem:[#allocation3 + $0x50] sm:$0xff]  }
 0x141   : > { %6269 = vmatpush3.bf16.msra.mxu1 %v6698_v7  ;;  %v6719_v7 = vld [vmem:[%s8685_s1 + $0x230] sm:$0xff]   ;;  %v2105_v4 = vor.u32 %v2104_v32, %v2101_v55  ;;  %v2906_v27 = vshrl.u32 %v6685_v10, 16  ;;  %v2120_v16 = vshll.u32 %v6686_v43, 16  ;;  %v2615_v45 = vrot.slane %v6684_v57, 2 }
 0x142   : > { %6270 = vmatprep.subr.bf16.mxu1 %v6706_v1  ;;  %v2114_v30 = vor.u32 %v2113_v35, %v2110_v51  ;;  %v2406_v55 = vrot.slane %v6687_v41, 2  ;;  %v2617_v62 = vrot.slane %v6688_v17, 2  ;;  %v6703_v41 = vld [vmem:[#allocation3 + $0x90] sm:$0xff]  }
 0x143   : > { %4484 = vmatpush1.bf16.msra.mxu0 %v6764_v22  ;;  %v2106_v37 = vsel %vm2053_vm3, %v2096_v54, %v2105_v4  ;;  %v2909_v22 = vshll.u32 %v6685_v10, 16  ;;  %v2908_v5 = vrot.slane %v2906_v27, 2 }
 0x144   : > { %4558 = vmatmul.mubr.bf16.gmra.mrb[76].mxu1 %v2608_v24  ;;  %4485 = vmatprep.subr.bf16.mxu0 %v6785_v2  ;;  %v2115_v48 = vsel %vm2053_vm3, %v2105_v4, %v2114_v30 }
 0x145   : > { %4565 = vmatprep.mubr.bf16.mxu1 %v2877_v29  ;;  %6271 = vmatpush3.bf16.msra.mxu1 %v6706_v1  ;;  %v2899_v1 = vrot.slane %v2897_v36, 2  ;;  %v2117_v29 = vshrl.u32 %v6686_v43, 16  ;;  %v2911_v23 = vrot.slane %v2909_v22, 3  ;;  %v6694_v36 = vld [vmem:[#allocation3 + $0x80] sm:$0xff]   ;;  %v6693_v43 = vld [vmem:[#allocation3 + $0x78] sm:$0xff]  }
 0x146   : > { %4349 = vmatmul.mubr.bf16.gmra.mrb[8].mxu0 %v2088_v33  ;;  %6272 = vmatprep.subr.bf16.mxu1 %v6711_v59  ;;  %v2404_v33 = vrot.slane %v7861_v58, 2  ;;  %v6699_v58 = vld [vmem:[#allocation3 + $0x88] sm:$0xff]   ;;  %v6700_v22 = vld [vmem:[#allocation3 + $0x58] sm:$0xff]  }
 0x147   : > { %4356 = vmatprep.mubr.bf16.mxu0 %v2399_v42  ;;  %4486 = vmatpush1.bf16.msra.mxu0 %v6765_v20  ;;  %v2903_v24 = vor.u32 %v2902_v50, %v2899_v1  ;;  %v2119_v53 = vrot.slane %v2117_v29, 1  ;;  %v2122_v20 = vrot.slane %v2120_v16, 2  ;;  %v6696_v29 = vld [vmem:[#allocation3 + $0x58] sm:$0xff]   ;;  %v2619_v16 = vrot.slane %v6693_v43, 2 }
 0x148   : > { %4487 = vmatprep.subr.bf16.mxu0 %v6785_v2  ;;  %v2405_v54 = vsel %vm2390_vm2, %v2402_v47, %v2404_v33  ;;  %v2407_v4 = vsel %vm2390_vm2, %v2404_v33, %v2406_v55  ;;  %v6773_v47 = vld [vmem:[%s8685_s1 + $0x1e0] sm:$0xff]   ;;  %v2933_v57 = vshrl.u32 %v6699_v58, 16 }
 0x149   : > { %6273 = vmatpush3.bf16.msra.mxu1 %v6711_v59  ;;  %v2613_v59 = vrot.slane %v7852_v60, 2  ;;  %v2904_v19 = vsel %vm2797_vm4, %v2894_v26, %v2903_v24  ;;  %v2123_v61 = vor.u32 %v2122_v20, %v2119_v53  ;;  %v6695_v26 = vld [vmem:[#allocation3 + $0x50] sm:$0xff]   ;;  %v2927_v60 = vshll.u32 %v6694_v36, 16  ;;  %v6697_v53 = vld [vmem:[#allocation3 + $0x80] sm:$0xff]   ;;  %v6776_v20 = vld [vmem:[%s8685_s1 + $0x1f8] sm:$0xff]  }
 0x14a   : > { %6274 = vmatprep.subr.bf16.mxu1 %v6713_v40  ;;  %v2135_v50 = vshrl.u32 %v6695_v26, 16  ;;  %v2138_v10 = vshll.u32 %v6695_v26, 16 }
 0x14b   : > { %4488 = vmatpush1.bf16.msra.mxu0 %v6766_v56  ;;  %v2614_v42 = vsel %vm2390_vm2, %v2611_v13, %v2613_v59  ;;  %v2126_v56 = vshrl.u32 %v6690_v46, 16  ;;  %v2616_v32 = vsel %vm2390_vm2, %v2613_v59, %v2615_v45  ;;  %v2124_v21 = vsel %vm2053_vm3, %v2114_v30, %v2123_v61  ;;  %v6775_v30 = vld [vmem:[%s8685_s1 + $0x1f0] sm:$0xff]  }
 0x14c   : > { %4566 = vmatmul.mubr.bf16.gmra.mrb[80].mxu1 %v2610_v44  ;;  %4489 = vmatprep.subr.bf16.mxu0 %v6785_v2  ;;  %v6771_v44 = vld [vmem:[%s8685_s1 + $0x1d0] sm:$0xff]   ;;  %v2140_v27 = vrot.slane %v2138_v10, 2 }
 0x14d   : > { %4573 = vmatprep.mubr.bf16.mxu1 %v2886_v38  ;;  %6275 = vmatpush3.bf16.msra.mxu1 %v6713_v40  ;;  %v6770_v40 = vld [vmem:[%s8685_s1 + $0x1c8] sm:$0xff]   ;;  %v2912_v38 = vor.u32 %v2911_v23, %v2908_v5  ;;  %v2128_v13 = vrot.slane %v2126_v56, 1  ;;  %v2410_v5 = vrot.slane %v6696_v29, 2  ;;  %v2620_v23 = vsel %vm2390_vm2, %v2617_v62, %v2619_v16 }
 0x14e   : > { %4357 = vmatmul.mubr.bf16.gmra.mrb[12].mxu0 %v2097_v31  ;;  %6276 = vmatprep.subr.bf16.mxu1 %v6717_v3  ;;  %v6772_v31 = vld [vmem:[%s8685_s1 + $0x1d8] sm:$0xff]   ;;  %v2621_v56 = vrot.slane %v6697_v53, 2 }
 0x14f   : > { %4364 = vmatprep.mubr.bf16.mxu0 %v2401_v18  ;;  %4490 = vmatpush1.bf16.msra.mxu0 %v6767_v25  ;;  %v2913_v18 = vsel %vm2797_vm4, %v2903_v24, %v2912_v38  ;;  %v2131_v25 = vrot.slane %v2129_v0, 2  ;;  %v2137_v24 = vrot.slane %v2135_v50, 1  ;;  %v2942_v0 = vshrl.u32 %v6703_v41, 16 }
 0x150   : > { %4491 = vmatprep.subr.bf16.mxu0 %v6785_v2 }
 0x151   : > { %6277 = vmatpush3.bf16.msra.mxu1 %v6717_v3  ;;  %v2915_v3 = vshrl.u32 %v6689_v15, 16  ;;  %v2132_v1 = vor.u32 %v2131_v25, %v2128_v13  ;;  %v2936_v15 = vshll.u32 %v6699_v58, 16  ;;  %v6708_v25 = vld [vmem:[#allocation3 + $0x98] sm:$0xff]  }
 0x152   : > { %6278 = vmatprep.subr.bf16.mxu1 %v6719_v7  ;;  %v2951_v10 = vshrl.u32 %v6708_v25, 16 }
 0x153   : > { %4492 = vmatpush1.bf16.msra.mxu0 %v6768_v14  ;;  %v2917_v6 = vrot.slane %v2915_v3, 2  ;;  %v2408_v14 = vrot.slane %v6692_v9, 2  ;;  %v2133_v59 = vsel %vm2053_vm3, %v2123_v61, %v2132_v1 }
 0x154   : > { %4574 = vmatmul.mubr.bf16.gmra.mrb[84].mxu1 %v2612_v12  ;;  %4493 = vmatprep.subr.bf16.mxu0 %v6785_v2  ;;  %v2924_v12 = vshrl.u32 %v6694_v36, 16  ;;  %v2944_v36 = vrot.slane %v2942_v0, 2 }
 0x155   : > { %4581 = vmatprep.mubr.bf16.mxu1 %v2895_v11  ;;  %6279 = vmatpush3.bf16.msra.mxu1 %v6719_v7  ;;  %v2920_v7 = vrot.slane %v2918_v63, 3  ;;  %v2618_v11 = vsel %vm2390_vm2, %v2615_v45, %v2617_v62  ;;  %v6701_v63 = vld [vmem:[#allocation3 + $0x60] sm:$0xff]   ;;  %v6709_v62 = vld [vmem:[#allocation3 + $0x68] sm:$0xff]  }
 0x156   : > { %4365 = vmatmul.mubr.bf16.gmra.mrb[16].mxu0 %v2106_v37  ;;  %6280 = vmatprep.subr.bf16.mxu1 %v6724_v34  ;;  %v6774_v37 = vld [vmem:[%s8685_s1 + $0x1e8] sm:$0xff]   ;;  %v2926_v35 = vrot.slane %v2924_v12, 2 }
 0x157   : > { %4372 = vmatprep.mubr.bf16.mxu0 %v2403_v52  ;;  %4494 = vmatpush1.bf16.msra.mxu0 %v6769_v28  ;;  %v2929_v52 = vrot.slane %v2927_v60, 3  ;;  %v2409_v28 = vsel %vm2390_vm2, %v2406_v55, %v2408_v14  ;;  %v2945_v55 = vshll.u32 %v6703_v41, 16 }
 0x158   : > { %4495 = vmatprep.subr.bf16.mxu0 %v6785_v2 }
 0x159   : > { %6281 = vmatpush3.bf16.msra.mxu1 %v6724_v34  ;;  %v2921_v34 = vor.u32 %v2920_v7, %v2917_v6  ;;  %v2930_v33 = vor.u32 %v2929_v52, %v2926_v35  ;;  %v2622_v6 = vsel %vm2390_vm2, %v2619_v16, %v2621_v56  ;;  %v6702_v7 = vld [vmem:[#allocation3 + $0x88] sm:$0xff]  }
 0x15a   : > { %v2623_v60 = vrot.slane %v6702_v7, 2 }
 0x15b   : > { %4496 = vmatpush1.bf16.msra.mxu0 %v6770_v40  ;;  %v2922_v51 = vsel %vm2797_vm4, %v2912_v38, %v2921_v34  ;;  %v2147_v40 = vshll.u32 %v6700_v22, 16  ;;  %v2931_v46 = vsel %vm2797_vm4, %v2921_v34, %v2930_v33  ;;  %v2411_v38 = vsel %vm2390_vm2, %v2408_v14, %v2410_v5  ;;  %v6705_v34 = vld [vmem:[#allocation3 + $0x68] sm:$0xff]  }
 0x15c   : > { %4582 = vmatmul.mubr.bf16.gmra.mrb[88].mxu1 %v2614_v42  ;;  %4497 = vmatprep.subr.bf16.mxu0 %v6785_v2  ;;  %v2141_v42 = vor.u32 %v2140_v27, %v2137_v24  ;;  %v2954_v14 = vshll.u32 %v6708_v25, 16  ;;  %v2414_v52 = vrot.slane %v6705_v34, 2  ;;  %v2624_v58 = vsel %vm2390_vm2, %v2621_v56, %v2623_v60  ;;  %v6721_v34 = vld [vmem:[#allocation3 + $0x18] sm:$0xff]  }
 0x15d   : > { %4589 = vmatprep.mubr.bf16.mxu1 %v2904_v19  ;;  %v2144_v19 = vshrl.u32 %v6700_v22, 16  ;;  %v2149_v3 = vrot.slane %v2147_v40, 2  ;;  %v2953_v27 = vrot.slane %v2951_v10, 2  ;;  %v6727_v10 = vld [vmem:[#allocation3 + $0x80] sm:$0xff]  }
 0x15e   : > { %4373 = vmatmul.mubr.bf16.gmra.mrb[20].mxu0 %v2115_v48  ;;  %v2935_v48 = vrot.slane %v2933_v57, 2  ;;  %v2956_v22 = vrot.slane %v2954_v14, 3 }
 0x15f   : > { %4380 = vmatprep.mubr.bf16.mxu0 %v2405_v54  ;;  %4498 = vmatpush1.bf16.msra.mxu0 %v6771_v44  ;;  %v2938_v54 = vrot.slane %v2936_v15, 3  ;;  %v2146_v45 = vrot.slane %v2144_v19, 1  ;;  %v6704_v44 = vld [vmem:[#allocation3 + $0x60] sm:$0xff]   ;;  %v6710_v15 = vld [vmem:[#allocation3 + $0x70] sm:$0xff]  }
 0x160   : > { %4499 = vmatprep.subr.bf16.mxu0 %v6785_v2  ;;  %v2153_v17 = vshrl.u32 %v6704_v44, 16 }
 0x161   : > { %v2939_v61 = vor.u32 %v2938_v54, %v2935_v48 }
 0x163   : > { %4500 = vmatpush1.bf16.msra.mxu0 %v6772_v31  ;;  %v2156_v31 = vshll.u32 %v6704_v44, 16  ;;  %v2940_v13 = vsel %vm2797_vm4, %v2930_v33, %v2939_v61  ;;  %v6715_v33 = vld [vmem:[#allocation3 + $0x70] sm:$0xff]  }
 0x164   : > { %4590 = vmatmul.mubr.bf16.gmra.mrb[92].mxu1 %v2616_v32  ;;  %4501 = vmatprep.subr.bf16.mxu0 %v6785_v2  ;;  %v2150_v32 = vor.u32 %v2149_v3, %v2146_v45  ;;  %v2171_v48 = vshrl.u32 %v6715_v33, 16  ;;  %v2174_v54 = vshll.u32 %v6715_v33, 16  ;;  %v6712_v3 = vld [vmem:[#allocation3 + $0x98] sm:$0xff]   ;;  %v6725_v33 = vld [vmem:[#allocation3 + $0x20] sm:$0xff]  }
 0x165   : > { %4597 = vmatprep.mubr.bf16.mxu1 %v2913_v18  ;;  %v2412_v18 = vrot.slane %v6701_v63, 2  ;;  %v2158_v9 = vrot.slane %v2156_v31, 2 }
 0x166   : > { %4381 = vmatmul.mubr.bf16.gmra.mrb[24].mxu0 %v2124_v21  ;;  %v2947_v21 = vrot.slane %v2945_v55, 3  ;;  %v2151_v26 = vsel %vm2053_vm3, %v2141_v42, %v2150_v32  ;;  %v2176_v0 = vrot.slane %v2174_v54, 2  ;;  %v6722_v55 = vld [vmem:[#allocation3 + $0x78] sm:$0xff]   ;;  %v3138_v54 = vrot.slane %v6725_v33, 3 }
 0x167   : > { %4388 = vmatprep.mubr.bf16.mxu0 %v2407_v4  ;;  %4502 = vmatpush1.bf16.msra.mxu0 %v6773_v47  ;;  %v2155_v4 = vrot.slane %v2153_v17, 1  ;;  %v2413_v47 = vsel %vm2390_vm2, %v2410_v5, %v2412_v18  ;;  %v2415_v57 = vsel %vm2390_vm2, %v2412_v18, %v2414_v52  ;;  %v2957_v5 = vor.u32 %v2956_v22, %v2953_v27  ;;  %v6716_v17 = vld [vmem:[#allocation3 + $0x78] sm:$0xff]  }
 0x168   : > { %4503 = vmatprep.subr.bf16.mxu0 %v6785_v2  ;;  %v2948_v50 = vor.u32 %v2947_v21, %v2944_v36  ;;  %v2627_v18 = vrot.slane %v6712_v3, 2  ;;  %v2180_v21 = vshrl.u32 %v6722_v55, 16  ;;  %v2183_v25 = vshll.u32 %v6722_v55, 16 }
 0x169   : > { %v2159_v43 = vor.u32 %v2158_v9, %v2155_v4  ;;  %v2418_v4 = vrot.slane %v6716_v17, 2  ;;  %v2189_v27 = vshrl.u32 %v6727_v10, 16  ;;  %v2192_v22 = vshll.u32 %v6727_v10, 16 }
 0x16a   : > { %v2949_v24 = vsel %vm2797_vm4, %v2939_v61, %v2948_v50  ;;  %v2958_v44 = vsel %vm2797_vm4, %v2948_v50, %v2957_v5  ;;  %v2173_v61 = vrot.slane %v2171_v48, 1  ;;  %v2185_v50 = vrot.slane %v2183_v25, 2 }
 0x16b   : > { %4504 = vmatpush1.bf16.msra.mxu0 %v6774_v37  ;;  %v2162_v37 = vshrl.u32 %v6709_v62, 16  ;;  %v2160_v29 = vsel %vm2053_vm3, %v2150_v32, %v2159_v43 }
 0x16c   : > { %4598 = vmatmul.mubr.bf16.gmra.mrb[96].mxu1 %v2618_v11  ;;  %4505 = vmatprep.subr.bf16.mxu0 %v6785_v2  ;;  %v2177_v36 = vor.u32 %v2176_v0, %v2173_v61  ;;  %v6729_v0 = vld [vmem:[#allocation3 + $0x30] sm:$0xff]  }
 0x16d   : > { %4605 = vmatprep.mubr.bf16.mxu1 %v2922_v51  ;;  %v2165_v51 = vshll.u32 %v6709_v62, 16  ;;  %v2164_v16 = vrot.slane %v2162_v37, 1  ;;  %v6718_v62 = vld [vmem:[#allocation3 + $0xa0] ss:$0 sps:$4 sm:$0x33]  }
 0x16e   : > { %4389 = vmatmul.mubr.bf16.gmra.mrb[28].mxu0 %v2133_v59  ;;  %v6707_v59 = vld [vmem:[#allocation3 + $0x90] sm:$0xff]   ;;  %v6723_v37 = vld [vmem:[#allocation3 + $0x80] sm:$0xff]  }
 0x16f   : > { %4396 = vmatprep.mubr.bf16.mxu0 %v2409_v28  ;;  %4506 = vmatpush1.bf16.msra.mxu0 %v6775_v30  ;;  %v6714_v28 = vld [vmem:[#allocation3 + $0xa0] ss:$0 sps:$4 sm:$0x77]   ;;  %v2167_v30 = vrot.slane %v2165_v51, 2  ;;  %v2625_v19 = vrot.slane %v6707_v59, 2 }
 0x170   : > { %4507 = vmatprep.subr.bf16.mxu0 %v6785_v2  ;;  %v2142_v2 = vsel %vm2053_vm3, %v2132_v1, %v2141_v42  ;;  %v2963_v53 = vshll.u32 %v6714_v28, 16 }
 0x171   : > { %v2626_v45 = vsel %vm2390_vm2, %v2623_v60, %v2625_v19  ;;  %v2628_v9 = vsel %vm2390_vm2, %v2625_v19, %v2627_v18 }
 0x172   : > { %v2965_v63 = vrot.slane %v2963_v53, 3 }
 0x173   : > { %4508 = vmatpush1.bf16.msra.mxu0 %v6776_v20 }
 0x174   : > { %4606 = vmatmul.mubr.bf16.gmra.mrb[100].mxu1 %v2620_v23  ;;  %v2960_v23 = vshrl.u32 %v6714_v28, 16 }
 0x175   : > { %4613 = vmatprep.mubr.bf16.mxu1 %v2931_v46  ;;  %v2168_v46 = vor.u32 %v2167_v30, %v2164_v16  ;;  %v2420_v16 = vrot.slane %v6723_v37, 2  ;;  %v6734_v37 = vld [vmem:[#allocation3 + $0x48] sm:$0xff]  }
 0x176   : > { %4397 = vmatmul.mubr.bf16.gmra.mrb[32].mxu0 %v2142_v2  ;;  %v2416_v2 = vrot.slane %v6710_v15, 2  ;;  %v6726_v15 = vld [vmem:[#allocation3 + $0x28] sm:$0xff]   ;;  %v3148_v33 = vrot.slane %v6734_v37, 3 }
 0x177   : > { %4404 = vmatprep.mubr.bf16.mxu0 %v2411_v38  ;;  %v2962_v38 = vrot.slane %v2960_v23, 2  ;;  %v2169_v56 = vsel %vm2053_vm3, %v2159_v43, %v2168_v46  ;;  %v2178_v60 = vsel %vm2053_vm3, %v2168_v46, %v2177_v36  ;;  %v6720_v43 = vld [vmem:[#allocation3 + $0x10] sm:$0xf8]   ;;  %v6731_v23 = vld [vmem:[#allocation3 + $0x88] sm:$0xff]   ;;  %v2421_v53 = vsel %vm2390_vm2, %v2418_v4, %v2420_v16 }
 0x178   : > { %v2417_v32 = vsel %vm2390_vm2, %v2414_v52, %v2416_v2  ;;  %v2419_v14 = vsel %vm2390_vm2, %v2416_v2, %v2418_v4  ;;  %v6728_v46 = vld [vmem:[#allocation3 + $0x88] sm:$0xff]   ;;  %v3140_v2 = vrot.slane %v6726_v15, 3 }
 0x179   : > { %v2966_v7 = vor.u32 %v2965_v63, %v2962_v38  ;;  %v2201_v38 = vshll.u32 %v6731_v23, 16 }
 0x17a   : > { %v3141_v55 = vsel %vm3134_vm5, %v3138_v54, %v3140_v2 }
 0x17c   : > { %4614 = vmatmul.mubr.bf16.gmra.mrb[104].mxu1 %v2622_v6 }
 0x17d   : > { %4621 = vmatprep.mubr.bf16.mxu1 %v2940_v13 }
 0x17e   : > { %4405 = vmatmul.mubr.bf16.gmra.mrb[36].mxu0 %v2151_v26 }
 0x17f   : > { %v7916_v12 = vpop.f32.mrb[0].mxu1  ;;  %4412 = vmatprep.mubr.bf16.mxu0 %v2413_v47  ;;  %v2967_v47 = vsel %vm2797_vm4, %v2957_v5, %v2966_v7  ;;  %v2194_v5 = vrot.slane %v2192_v22, 2  ;;  %v6735_v7 = vld [vmem:[#allocation3 + $0x90] sm:$0xff]   ;;  %v6736_v22 = vld [vmem:[#allocation3 + $0x98] ss:$0 sps:$4 sm:$0x33]  }
 0x180   : > { %v3982_v1 = vpop.f32.mrb[1].mxu1 }
 0x181   : > { %v7918_v11 = vpop.f32.mrb[2].mxu1  ;;  %v2182_v1 = vrot.slane %v2180_v21, 1  ;;  %v6732_v21 = vld [vmem:[#allocation3 + $0x90] sm:$0xff]  }
 0x182   : > { %v3985_v35 = vpop.f32.mrb[3].mxu1 }
 0x183   : > { %v2629_v35 = vrot.slane %v6718_v62, 2 }
 0x184   : > { %4622 = vmatmul.mubr.bf16.gmra.mrb[108].mxu1 %v2624_v58  ;;  %v3136_v58 = vrot.slane %v6721_v34, 3  ;;  %v2207_v34 = vshrl.u32 %v6735_v7, 16 }
 0x185   : > { %4629 = vmatprep.mubr.bf16.mxu1 %v2949_v24  ;;  %v2186_v24 = vor.u32 %v2185_v50, %v2182_v1  ;;  %v2630_v30 = vsel %vm2390_vm2, %v2627_v18, %v2629_v35  ;;  %v2424_v50 = vrot.slane %v6732_v21, 2 }
 0x186   : > { %4413 = vmatmul.mubr.bf16.gmra.mrb[40].mxu0 %v2160_v29  ;;  %v3135_v29 = vrot.slane %v6720_v43, 3  ;;  %v3139_v61 = vsel %vm3134_vm5, %v3136_v58, %v3138_v54 }
 0x187   : > { %v7924_v42 = vpop.f32.mrb[4].mxu1  ;;  %4420 = vmatprep.mubr.bf16.mxu0 %v2415_v57  ;;  %v2187_v19 = vsel %vm2053_vm3, %v2177_v36, %v2186_v24 }
 0x188   : > { %v3990_v40 = vpop.f32.mrb[5].mxu1  ;;  %v3137_v57 = vsel %vm3134_vm5, %v3135_v29, %v3136_v58 }
 0x189   : > { %v7926_v20 = vpop.f32.mrb[6].mxu1  ;;  %v2191_v40 = vrot.slane %v2189_v27, 1 }
 0x18a   : > { %v3993_v41 = vpop.f32.mrb[7].mxu1 }
 0x18b   : > { %v2195_v3 = vor.u32 %v2194_v5, %v2191_v40 }
 0x18c   : > { %4630 = vmatmul.mubr.bf16.gmra.mrb[112].mxu1 %v2626_v45 }
 0x18d   : > { %4637 = vmatprep.mubr.bf16.mxu1 %v2958_v44  ;;  %v2198_v44 = vshrl.u32 %v6731_v23, 16  ;;  %v2196_v17 = vsel %vm2053_vm3, %v2186_v24, %v2195_v3  ;;  %v6739_v24 = vld [vmem:[#allocation3 + $0x98] ss:$0 sps:$4 sm:$0x33]  }
 0x18e   : > { %4421 = vmatmul.mubr.bf16.gmra.mrb[44].mxu0 %v2169_v56  ;;  %v2422_v56 = vrot.slane %v6728_v46, 2  ;;  %v2216_v40 = vshrl.u32 %v6739_v24, 16  ;;  %v2219_v5 = vshll.u32 %v6739_v24, 16 }
 0x18f   : > { %v7932_v31 = vpop.f32.mrb[8].mxu1  ;;  %4428 = vmatprep.mubr.bf16.mxu0 %v2417_v32  ;;  %v6730_v32 = vld [vmem:[#allocation3 + $0x38] sm:$0xff]   ;;  %v2200_v18 = vrot.slane %v2198_v44, 1 }
 0x190   : > { %8746 = vst [vmem:[#allocation4_spill] sm:$0xff] %v7932_v31  ;;  %v3998_v6 = vpop.f32.mrb[9].mxu1  ;;  %v2423_v36 = vsel %vm2390_vm2, %v2420_v16, %v2422_v56  ;;  %v2425_v27 = vsel %vm2390_vm2, %v2422_v56, %v2424_v50  ;;  %v6738_v44 = vld [vmem:[#allocation3 + $0x58] sm:$0xff]  }
 0x191   : > { %v7934_v13 = vpop.f32.mrb[10].mxu1  ;;  %v2203_v6 = vrot.slane %v2201_v38, 2  ;;  %v3152_v21 = vrot.slane %v6738_v44, 3 }
 0x192   : > { %8747 = vst [vmem:[#allocation5_spill] sm:$0xff] %v7934_v13  ;;  %v4001_v26 = vpop.f32.mrb[11].mxu1 }
 0x193   : > { %v3142_v26 = vrot.slane %v6729_v0, 3  ;;  %v2221_v0 = vrot.slane %v2219_v5, 2 }
 0x194   : > { %4638 = vmatmul.mubr.bf16.gmra.mrb[116].mxu1 %v2628_v9  ;;  %v3144_v9 = vrot.slane %v6730_v32, 3 }
 0x195   : > { %4645 = vmatprep.mubr.bf16.mxu1 %v2967_v47  ;;  %v2204_v47 = vor.u32 %v2203_v6, %v2200_v18  ;;  %v3143_v10 = vsel %vm3134_vm5, %v3140_v2, %v3142_v26  ;;  %v6737_v2 = vld [vmem:[#allocation3 + $0x50] sm:$0xff]   ;;  %v6746_v18 = vld [vmem:[#allocation3 + $0x20] sm:$0xff]  }
 0x196   : > { %4429 = vmatmul.mubr.bf16.gmra.mrb[48].mxu0 %v2178_v60  ;;  %v2210_v60 = vshll.u32 %v6735_v7, 16  ;;  %v3145_v43 = vsel %vm3134_vm5, %v3142_v26, %v3144_v9  ;;  %v3150_v7 = vrot.slane %v6737_v2, 3 }
 0x197   : > { %v7940_v51 = vpop.f32.mrb[12].mxu1  ;;  %4436 = vmatprep.mubr.bf16.mxu0 %v2419_v14  ;;  %v6733_v14 = vld [vmem:[#allocation3 + $0x40] sm:$0xff]   ;;  %v2205_v35 = vsel %vm2053_vm3, %v2195_v3, %v2204_v47 }
 0x198   : > { %8748 = vst [vmem:[#allocation6_spill] sm:$0xff] %v7940_v51  ;;  %v4006_v52 = vpop.f32.mrb[13].mxu1  ;;  %v2212_v58 = vrot.slane %v2210_v60, 2  ;;  %v3146_v16 = vrot.slane %v6733_v14, 3  ;;  %v6742_v14 = vld [vmem:[#allocation3 + $0x60] sm:$0xff]  }
 0x199   : > { %v7942_v59 = vpop.f32.mrb[14].mxu1  ;;  %v2209_v52 = vrot.slane %v2207_v34, 1 }
 0x19a   : > { %8749 = vst [vmem:[#allocation7_spill] sm:$0xff] %v7942_v59  ;;  %v4009_v28 = vpop.f32.mrb[15].mxu1  ;;  %v3149_v3 = vsel %vm3134_vm5, %v3146_v16, %v3148_v33 }
 0x19b   : > { %v6741_v28 = vld [vmem:[#allocation3 + $0x18] sm:$0xff]  }
 0x19c   : > { %4646 = vmatmul.mubr.bf16.gmra.mrb[120].mxu1 %v2630_v30  ;;  %v2807_v46 = vshrl.u32 %v6741_v28, 16  ;;  %v2810_v54 = vshll.u32 %v6741_v28, 16  ;;  %v6750_v28 = vld [vmem:[#allocation3 + $0x28] sm:$0xff]  }
 0x19d   : > { %6282 = vmatprep.mubr.bf16.mxu1 %v3137_v57  ;;  %v6740_v57 = vld [vmem:[#allocation3 + $0x10] sm:$0xfc]  }
 0x19e   : > { %4437 = vmatmul.mubr.bf16.gmra.mrb[52].mxu0 %v2187_v19  ;;  %v2213_v19 = vor.u32 %v2212_v58, %v2209_v52  ;;  %v2799_v38 = vshrl.u32 %v6740_v57, 16  ;;  %v2809_v32 = vrot.slane %v2807_v46, 2  ;;  %v6745_v58 = vld [vmem:[#allocation3 + $0x18] sm:$0xff]  }
 0x19f   : > { %v7948_v48 = vpop.f32.mrb[16].mxu1  ;;  %4444 = vmatprep.mubr.bf16.mxu0 %v2421_v53  ;;  %v2426_v53 = vrot.slane %v6736_v22, 2 }
 0x1a0   : > { %8750 = vst [vmem:[#allocation8_spill] sm:$0xff] %v7948_v48  ;;  %v4014_v41 = vpop.f32.mrb[17].mxu1  ;;  %v2214_v56 = vsel %vm2053_vm3, %v2204_v47, %v2213_v19  ;;  %v2801_v26 = vrot.slane %v2799_v38, 2  ;;  %v6748_v38 = vld [vmem:[#allocation3 + $0x78] sm:$0xff]  }
 0x1a1   : > { %v7950_v45 = vpop.f32.mrb[18].mxu1  ;;  %v3147_v41 = vsel %vm3134_vm5, %v3144_v9, %v3146_v16 }
 0x1a2   : > { %8751 = vst [vmem:[#allocation9_spill] sm:$0xff] %v7950_v45  ;;  %v4017_v63 = vpop.f32.mrb[19].mxu1 }
 0x1a3   : > { %v2802_v63 = vshll.u32 %v6740_v57, 16 }
 0x1a4   : > { %6283 = vmatmul.mubr.bf16.vlgmr.msra.gmra.mrb[124].mxu1 %v3139_v61  ;;  %v2218_v61 = vrot.slane %v2216_v40, 1 }
 0x1a5   : > { %6286 = vmatprep.mubr.bf16.mxu1 %v3141_v55  ;;  %v2427_v55 = vsel %vm2390_vm2, %v2424_v50, %v2426_v53  ;;  %v3151_v50 = vsel %vm3134_vm5, %v3148_v33, %v3150_v7  ;;  %v6744_v33 = vld [vmem:[#allocation3 + $0x10] sm:$0xfc]  }
 0x1a6   : > { %4445 = vmatmul.mubr.bf16.gmra.mrb[56].mxu0 %v2196_v17  ;;  %v2812_v17 = vrot.slane %v2810_v54, 3  ;;  %v2222_v34 = vor.u32 %v2221_v0, %v2218_v61  ;;  %v2828_v54 = vshll.u32 %v6750_v28, 16  ;;  %v2594_v2 = vrot.slane %v6744_v33, 2 }
 0x1a7   : > { %v7956_v25 = vpop.f32.mrb[20].mxu1  ;;  %4452 = vmatprep.mubr.bf16.mxu0 %v2423_v36 }
 0x1a8   : > { %v4022_v4 = vpop.f32.mrb[21].mxu1  ;;  %v2813_v60 = vor.u32 %v2812_v17, %v2809_v32  ;;  %v2223_v52 = vsel %vm2053_vm3, %v2213_v19, %v2222_v34  ;;  %v2825_v19 = vshrl.u32 %v6750_v28, 16  ;;  %v6754_v32 = vld [vmem:[#allocation3 + $0x30] sm:$0xff]  }
 0x1a9   : > { %v7958_v62 = vpop.f32.mrb[22].mxu1  ;;  %v2804_v4 = vrot.slane %v2802_v63, 3 }
 0x1aa   : > { %v4025_v1 = vpop.f32.mrb[23].mxu1  ;;  %v2827_v0 = vrot.slane %v2825_v19, 2 }
 0x1ab   : > { %v2816_v1 = vshrl.u32 %v6746_v18, 16  ;;  %v2805_v37 = vor.u32 %v2804_v4, %v2801_v26 }
 0x1ac   : > { %6287 = vmatmul.mubr.bf16.gmra.mrb[128].mxu1 %v3143_v10  ;;  %v2819_v10 = vshll.u32 %v6746_v18, 16 }
 0x1ad   : > { %6290 = vmatprep.mubr.bf16.mxu1 %v3145_v43  ;;  %v3153_v43 = vsel %vm3134_vm5, %v3150_v7, %v3152_v21  ;;  %v2814_v24 = vsel %vm2797_vm4, %v2805_v37, %v2813_v60  ;;  %v6753_v37 = vld [vmem:[#allocation3 + $0x28] sm:$0xff]  }
 0x1ae   : > { %4453 = vmatmul.mubr.bf16.gmra.mrb[60].mxu0 %v2205_v35  ;;  %v6743_v35 = vld [vmem:[#allocation3 + $0x68] sm:$0xff]   ;;  %v2821_v22 = vrot.slane %v2819_v10, 3  ;;  %v2599_v33 = vrot.slane %v6753_v37, 2 }
 0x1af   : > { %v7964_v29 = vpop.f32.mrb[24].mxu1  ;;  %4460 = vmatprep.mubr.bf16.mxu0 %v2425_v27  ;;  %v2818_v27 = vrot.slane %v2816_v1, 2  ;;  %v3156_v40 = vrot.slane %v6743_v35, 3  ;;  %v2837_v1 = vshll.u32 %v6754_v32, 16 }
 0x1b0   : > { %v4030_v30 = vpop.f32.mrb[25].mxu1 }
 0x1b1   : > { %v7966_v15 = vpop.f32.mrb[26].mxu1  ;;  %v3154_v30 = vrot.slane %v6742_v14, 3  ;;  %v2822_v46 = vor.u32 %v2821_v22, %v2818_v27  ;;  %v6752_v14 = vld [vmem:[#allocation3 + $0x88] sm:$0xff]  }
 0x1b2   : > { %v4033_v23 = vpop.f32.mrb[27].mxu1  ;;  %v3164_v28 = vrot.slane %v6752_v14, 3 }
 0x1b3   : > { %v2595_v23 = vrot.slane %v6745_v58, 2  ;;  %v3157_v44 = vsel %vm3134_vm5, %v3154_v30, %v3156_v40  ;;  %v2823_v61 = vsel %vm2797_vm4, %v2813_v60, %v2822_v46  ;;  %v2839_v58 = vrot.slane %v2837_v1, 3 }
 0x1b4   : > { %6291 = vmatmul.mubr.bf16.gmra.mrb[132].mxu1 %v3147_v41  ;;  %v3155_v41 = vsel %vm3134_vm5, %v3152_v21, %v3154_v30 }
 0x1b5   : > { %6294 = vmatprep.mubr.bf16.mxu1 %v3149_v3  ;;  %v6747_v3 = vld [vmem:[#allocation3 + $0x70] sm:$0xff]   ;;  %v2596_v63 = vsel %vm2390_vm2, %v2594_v2, %v2595_v23 }
 0x1b6   : > { %4461 = vmatmul.mubr.bf16.gmra.mrb[64].mxu0 %v2214_v56  ;;  %v6749_v56 = vld [vmem:[#allocation3 + $0x20] sm:$0xff]   ;;  %v3158_v18 = vrot.slane %v6747_v3, 3 }
 0x1b7   : > { %v7972_v6 = vpop.f32.mrb[28].mxu1  ;;  %4468 = vmatprep.mubr.bf16.mxu0 %v2427_v55  ;;  %v2830_v55 = vrot.slane %v2828_v54, 3  ;;  %v2597_v26 = vrot.slane %v6749_v56, 2 }
 0x1b8   : > { %v4038_v36 = vpop.f32.mrb[29].mxu1  ;;  %v3159_v10 = vsel %vm3134_vm5, %v3156_v40, %v3158_v18 }
 0x1b9   : > { %v7974_v9 = vpop.f32.mrb[30].mxu1  ;;  %v3160_v36 = vrot.slane %v6748_v38, 3  ;;  %v2831_v34 = vor.u32 %v2830_v55, %v2827_v0  ;;  %v2600_v54 = vsel %vm2390_vm2, %v2597_v26, %v2599_v33 }
 0x1ba   : > { %v4041_v47 = vpop.f32.mrb[31].mxu1 }
 0x1bb   : > { %v2834_v47 = vshrl.u32 %v6754_v32, 16  ;;  %v3161_v60 = vsel %vm3134_vm5, %v3158_v18, %v3160_v36  ;;  %v2832_v35 = vsel %vm2797_vm4, %v2822_v46, %v2831_v34  ;;  %v6756_v46 = vld [vmem:[#allocation3 + $0x98] sm:$0xff]   ;;  %v6758_v32 = vld [vmem:[#allocation3 + $0xa0] ss:$0 sps:$4 sm:$0x77]  }
 0x1bc   : > { %6295 = vmatmul.mubr.bf16.gmra.mrb[136].mxu1 %v3151_v50  ;;  %v6751_v50 = vld [vmem:[#allocation3 + $0x80] sm:$0xff]  }
 0x1bd   : > { %6298 = vmatprep.mubr.bf16.mxu1 %v3153_v43  ;;  %v2598_v43 = vsel %vm2390_vm2, %v2595_v23, %v2597_v26  ;;  %v3162_v27 = vrot.slane %v6751_v50, 3  ;;  %v6755_v23 = vld [vmem:[#allocation3 + $0x90] sm:$0xff]  }
 0x1be   : > { %4469 = vmatmul.mubr.bf16.gmra.mrb[68].mxu0 %v2223_v52  ;;  %v2836_v52 = vrot.slane %v2834_v47, 2 }
 0x1bf   : > { %v7980_v16 = vpop.f32.mrb[32].mxu1  ;;  %4509 = vmatprep.mubr.bf16.mxu0 %v2814_v24  ;;  %v3165_v19 = vsel %vm3134_vm5, %v3162_v27, %v3164_v28 }
 0x1c0   : > { %v4046_v57 = vpop.f32.mrb[33].mxu1  ;;  %v2840_v40 = vor.u32 %v2839_v58, %v2836_v52 }
 0x1c1   : > { %v7982_v5 = vpop.f32.mrb[34].mxu1 }
 0x1c2   : > { %v4049_v53 = vpop.f32.mrb[35].mxu1  ;;  %v2841_v2 = vsel %vm2797_vm4, %v2831_v34, %v2840_v40 }
 0x1c3   : > { %v3163_v53 = vsel %vm3134_vm5, %v3160_v36, %v3162_v27  ;;  %v2850_v36 = vsel %vm2797_vm4, %v2840_v40, %v7753_v39 }
 0x1c4   : > { %6299 = vmatmul.mubr.bf16.gmra.mrb[140].mxu1 %v3155_v41  ;;  %v6757_v41 = vld [vmem:[#allocation3 + $0x30] sm:$0xff]  }
 0x1c5   : > { %6302 = vmatprep.mubr.bf16.mxu1 %v3157_v44  ;;  %v3166_v44 = vrot.slane %v6755_v23, 3 }
 0x1c6   : > { %4510 = vmatmul.mubr.bf16.vlgmr.msra.gmra.mrb[0].mxu0 %v2596_v63  ;;  %v3168_v63 = vrot.slane %v6756_v46, 3 }
 0x1c7   : > { %v7988_v17 = vpop.f32.mrb[36].mxu1  ;;  %4517 = vmatprep.mubr.bf16.mxu0 %v2823_v61  ;;  %v2601_v61 = vrot.slane %v6757_v41, 2  ;;  %v3167_v55 = vsel %vm3134_vm5, %v3164_v28, %v3166_v44 }
 0x1c8   : > { %v4054_v7 = vpop.f32.mrb[37].mxu1  ;;  %v3169_v18 = vsel %vm3134_vm5, %v3166_v44, %v3168_v63 }
 0x1c9   : > { %v7990_v21 = vpop.f32.mrb[38].mxu1  ;;  %v2602_v7 = vsel %vm2390_vm2, %v2599_v33, %v2601_v61  ;;  %v2604_v50 = vsel %vm2390_vm2, %v2601_v61, %v2603_v8 }
 0x1ca   : > { %v4057_v4 = vpop.f32.mrb[39].mxu1 }
 0x1cb   : > { %v3170_v4 = vrot.slane %v6758_v32, 3 }
 0x1cc   : > { %6303 = vmatmul.mubr.bf16.gmra.mrb[144].mxu1 %v3159_v10 }
 0x1cd   : > { %6306 = vmatprep.mubr.bf16.mxu1 %v3161_v60  ;;  %v3171_v10 = vsel %vm3134_vm5, %v3168_v63, %v3170_v4 }
 0x1ce   : > { %4518 = vmatmul.mubr.bf16.gmra.mrb[4].mxu0 %v2598_v43 }
 0x1cf   : > { %v7996_v24 = vpop.f32.mrb[40].mxu1  ;;  %4525 = vmatprep.mubr.bf16.mxu0 %v2832_v35 }
 0x1d0   : > { %v4062_v22 = vpop.f32.mrb[41].mxu1 }
 0x1d1   : > { %v7998_v30 = vpop.f32.mrb[42].mxu1 }
 0x1d2   : > { %v4065_v57 = vpop.f32.mrb[43].mxu1 }
 0x1d4   : > { %6307 = vmatmul.mubr.bf16.gmra.mrb[148].mxu1 %v3163_v53 }
 0x1d5   : > { %6310 = vmatprep.mubr.bf16.mxu1 %v3165_v19 }
 0x1d6   : > { %4526 = vmatmul.mubr.bf16.gmra.mrb[8].mxu0 %v2600_v54 }
 0x1d7   : > { %v8004_v3 = vpop.f32.mrb[44].mxu1  ;;  %4533 = vmatprep.mubr.bf16.mxu0 %v2841_v2 }
 0x1d8   : > { %v4070_v38 = vpop.f32.mrb[45].mxu1 }
 0x1d9   : > { %v8006_v56 = vpop.f32.mrb[46].mxu1 }
 0x1da   : > { %v4073_v0 = vpop.f32.mrb[47].mxu1 }
 0x1dc   : > { %6311 = vmatmul.mubr.bf16.gmra.mrb[152].mxu1 %v3167_v55 }
 0x1dd   : > { %6314 = vmatprep.mubr.bf16.mxu1 %v3169_v18 }
 0x1de   : > { %4534 = vmatmul.mubr.bf16.gmra.mrb[12].mxu0 %v2602_v7 }
 0x1df   : > { %v8013_v26 = vpop.f32.mrb[48].mxu1  ;;  %4541 = vmatprep.mubr.bf16.mxu0 %v2850_v36 }
 0x1e0   : > { %v4078_v34 = vpop.f32.mrb[49].mxu1 }
 0x1e1   : > { %v8015_v47 = vpop.f32.mrb[50].mxu1 }
 0x1e2   : > { %v4081_v1 = vpop.f32.mrb[51].mxu1 }
 0x1e4   : > { %6315 = vmatmul.mubr.bf16.gmra.mrb[156].mxu1 %v3171_v10 }
 0x1e6   : > { %4542 = vmatmul.mubr.bf16.gmra.mrb[16].mxu0 %v2604_v50  ;;  %v8043_v50 = vpop.permute.xlu1 %4833 }
 0x1e7   : > { %v8021_v60 = vpop.f32.mrb[52].mxu1 }
 0x1e8   : > { %v4086_v14 = vpop.f32.mrb[53].mxu1 }
 0x1e9   : > { %v8023_v39 = vpop.f32.mrb[54].mxu1 }
 0x1ea   : > { %v4089_v43 = vpop.f32.mrb[55].mxu1 }
 0x1ef   : > { %v8025_v37 = vpop.f32.mrb[56].mxu1 }
 0x1f0   : > { %v4094_v35 = vpop.f32.mrb[57].mxu1 }
 0x1f1   : > { %v8027_v52 = vpop.f32.mrb[58].mxu1 }
 0x1f2   : > { %v4097_v58 = vpop.f32.mrb[59].mxu1 }
 0x1f7   : > { %v8029_v27 = vpop.f32.mrb[60].mxu1 }
 0x1f8   : > { %v4102_v22 = vpop.f32.mrb[61].mxu1 }
 0x1f9   : > { %v8031_v28 = vpop.f32.mrb[62].mxu1 }
 0x1fa   : > { %v4105_v49 = vpop.f32.mrb[63].mxu1 }
 0x1ff   : > { %v8033_v8 = vpop.f32.mrb[64].mxu1 }
 0x200   : > { %v4110_v33 = vpop.f32.mrb[65].mxu1 }
 0x201   : > { %v8035_v57 = vpop.f32.mrb[66].mxu1 }
 0x202   : > { %v4113_v40 = vpop.f32.mrb[67].mxu1 }
 0x207   : > { %v8037_v53 = vpop.f32.mrb[68].mxu1 }
 0x208   : > { %v4118_v23 = vpop.f32.mrb[69].mxu1 }
 0x209   : > { %v8039_v19 = vpop.f32.mrb[70].mxu1 }
 0x20a   : > { %v4121_v46 = vpop.f32.mrb[71].mxu1 }
 0x20f   : > { %v4551_v54 = vpop.f32.mrb[72].mxu1 }
 0x210   : > { %v4553_v41 = vpop.f32.mrb[73].mxu1 }
 0x211   : > { %v4554_v2 = vpop.f32.mrb[74].mxu1 }
 0x212   : > { %v4556_v44 = vpop.f32.mrb[75].mxu1 }
 0x213   : > { %v8053_v44 = vpop.permute.xlu1 %4843 }
 0x217   : > { %v4559_v38 = vpop.f32.mrb[76].mxu1 }
 0x218   : > { %v4561_v63 = vpop.f32.mrb[77].mxu1 }
 0x219   : > { %v4562_v61 = vpop.f32.mrb[78].mxu1 }
 0x21a   : > { %v4564_v0 = vpop.f32.mrb[79].mxu1 }
 0x21b   : > { %v8057_v0 = vpop.permute.xlu0 %4838 }
 0x21f   : > { %v4567_v55 = vpop.f32.mrb[80].mxu1 }
 0x220   : > { %v4569_v32 = vpop.f32.mrb[81].mxu1 }
 0x221   : > { %v4570_v18 = vpop.f32.mrb[82].mxu1 }
 0x222   : > { %v4572_v7 = vpop.f32.mrb[83].mxu1 }
 0x227   : > { %v4575_v36 = vpop.f32.mrb[84].mxu1 }
 0x228   : > { %v4577_v4 = vpop.f32.mrb[85].mxu1 }
 0x229   : > { %v4578_v34 = vpop.f32.mrb[86].mxu1 }
 0x22a   : > { %v4580_v1 = vpop.f32.mrb[87].mxu1 }
 0x22f   : > { %v8041_v10 = vpop.f32.mrb[88].mxu1 }
 0x230   : > { %v4585_v14 = vpop.f32.mrb[89].mxu1 }
 0x231   : > { %v8045_v43 = vpop.f32.mrb[90].mxu1  ;;  %v4374_v35 = vpop.f32.mrb[20].mxu0 }
 0x232   : > { %v6360_v58 = vadd.f32 %v4374_v35, %v7956_v25  ;;  %v4588_v22 = vpop.f32.mrb[91].mxu1  ;;  %v4376_v49 = vpop.f32.mrb[21].mxu0 }
 0x233   : > { %v4377_v33 = vpop.f32.mrb[22].mxu0  ;;  %v8067_v22 = vpop.permute.xlu1 %4853 }
 0x234   : > { %v6362_v40 = vadd.f32 %v4377_v33, %v7958_v62  ;;  %v4379_v23 = vpop.f32.mrb[23].mxu0  ;;  %v8049_v46 = vadd.f32 %v6360_v58, %v4551_v54  ;;  %8752 = vst [vmem:[#allocation10_spill] sm:$0xff] %v8067_v22  ;;  %v8071_v33 = vpop.permute.xlu0 %4848 }
 0x236   : > { %v8051_v41 = vadd.f32 %v6362_v40, %v4554_v2 }
 0x237   : > { %v8055_v63 = vpop.f32.mrb[92].mxu1 }
 0x238   : > { %v4593_v32 = vpop.f32.mrb[93].mxu1 }
 0x239   : > { %v8059_v7 = vpop.f32.mrb[94].mxu1  ;;  %v4382_v25 = vpop.f32.mrb[24].mxu0 }
 0x23a   : > { %v6364_v4 = vadd.f32 %v4382_v25, %v7964_v29  ;;  %v4596_v1 = vpop.f32.mrb[95].mxu1  ;;  %v4384_v14 = vpop.f32.mrb[25].mxu0 }
 0x23b   : > { %v4385_v62 = vpop.f32.mrb[26].mxu0 }
 0x23c   : > { %v6366_v54 = vadd.f32 %v4385_v62, %v7966_v15  ;;  %v4387_v35 = vpop.f32.mrb[27].mxu0  ;;  %v8063_v2 = vadd.f32 %v6364_v4, %v4559_v38  ;;  %v8081_v62 = vpop.permute.xlu1 %4863 }
 0x23d   : > { %8753 = vst [vmem:[#allocation11_spill] sm:$0xff] %v8081_v62  ;;  %v8085_v35 = vpop.permute.xlu0 %4858 }
 0x23e   : > { %v8065_v58 = vadd.f32 %v6366_v54, %v4562_v61  ;;  %8754 = vst [vmem:[#allocation12_spill] sm:$0xff] %v8085_v35 }
 0x23f   : > { %v8069_v49 = vpop.f32.mrb[96].mxu1 }
 0x240   : > { %v4601_v40 = vpop.f32.mrb[97].mxu1 }
 0x241   : > { %v8073_v23 = vpop.f32.mrb[98].mxu1  ;;  %v4390_v29 = vpop.f32.mrb[28].mxu0 }
 0x242   : > { %v6368_v32 = vadd.f32 %v4390_v29, %v7972_v6  ;;  %v4604_v25 = vpop.f32.mrb[99].mxu1  ;;  %v4392_v1 = vpop.f32.mrb[29].mxu0 }
 0x243   : > { %v4393_v15 = vpop.f32.mrb[30].mxu0 }
 0x244   : > { %v6370_v38 = vadd.f32 %v4393_v15, %v7974_v9  ;;  %v4395_v4 = vpop.f32.mrb[31].mxu0  ;;  %v8077_v61 = vadd.f32 %v6368_v32, %v4567_v55 }
 0x246   : > { %v8079_v14 = vadd.f32 %v6370_v38, %v4570_v18  ;;  %v8095_v38 = vpop.permute.xlu1 %4873 }
 0x247   : > { %v8083_v54 = vpop.f32.mrb[100].mxu1  ;;  %8755 = vst [vmem:[#allocation13_spill] sm:$0xff] %v8095_v38 }
 0x248   : > { %v4609_v40 = vpop.f32.mrb[101].mxu1 }
 0x249   : > { %v8087_v45 = vpop.f32.mrb[102].mxu1  ;;  %v4398_v6 = vpop.f32.mrb[32].mxu0 }
 0x24a   : > { %v6372_v29 = vadd.f32 %v4398_v6, %v7980_v16  ;;  %v4612_v25 = vpop.f32.mrb[103].mxu1  ;;  %v4400_v1 = vpop.f32.mrb[33].mxu0 }
 0x24b   : > { %v4401_v9 = vpop.f32.mrb[34].mxu0  ;;  %v8099_v40 = vpop.permute.xlu0 %4868 }
 0x24c   : > { %v6374_v55 = vadd.f32 %v4401_v9, %v7982_v5  ;;  %v4403_v32 = vpop.f32.mrb[35].mxu0  ;;  %v8091_v18 = vadd.f32 %v6372_v29, %v4575_v36  ;;  %8756 = vst [vmem:[#allocation14_spill] sm:$0xff] %v8099_v40 }
 0x24e   : > { %v8093_v15 = vadd.f32 %v6374_v55, %v4578_v34  ;;  %v8111_v55 = vpop.permute.xlu1 %4883 }
 0x24f   : > { %v8097_v4 = vpop.f32.mrb[104].mxu1  ;;  %8757 = vst [vmem:[#allocation15_spill] sm:$0xff] %v8111_v55  ;;  %v8115_v32 = vpop.permute.xlu0 %4878 }
 0x250   : > { %v4617_v48 = vpop.f32.mrb[105].mxu1  ;;  %8758 = vst [vmem:[#allocation16_spill] sm:$0xff] %v8115_v32 }
 0x251   : > { %v8101_v62 = vpop.f32.mrb[106].mxu1  ;;  %v4406_v16 = vpop.f32.mrb[36].mxu0 }
 0x252   : > { %v6376_v6 = vadd.f32 %v4406_v16, %v7988_v17  ;;  %v4620_v25 = vpop.f32.mrb[107].mxu1  ;;  %v4408_v1 = vpop.f32.mrb[37].mxu0 }
 0x253   : > { %v4409_v5 = vpop.f32.mrb[38].mxu0  ;;  %v8131_v32 = vpop.permute.xlu0 %4888 }
 0x254   : > { %v6378_v36 = vadd.f32 %v4409_v5, %v7990_v21  ;;  %v4411_v29 = vpop.f32.mrb[39].mxu0  ;;  %v8106_v34 = vadd.f32 %v6376_v6, %v8041_v10  ;;  %8760 = vst [vmem:[#allocation18_spill] sm:$0xff] %v8131_v32 }
 0x255   : > { %v8127_v29 = vpop.permute.xlu1 %4893 }
 0x256   : > { %v8109_v9 = vadd.f32 %v6378_v36, %v8045_v43  ;;  %8759 = vst [vmem:[#allocation17_spill] sm:$0xff] %v8127_v29 }
 0x257   : > { %v8113_v48 = vpop.f32.mrb[108].mxu1  ;;  %v8147_v59 = vpop.permute.xlu0 %4898 }
 0x258   : > { %v4625_v38 = vpop.f32.mrb[109].mxu1  ;;  %8762 = vst [vmem:[#allocation20_spill] sm:$0xff] %v8147_v59 }
 0x259   : > { %v8117_v17 = vpop.f32.mrb[110].mxu1  ;;  %v4414_v16 = vpop.f32.mrb[40].mxu0 }
 0x25a   : > { %v6380_v25 = vadd.f32 %v4414_v16, %v7996_v24  ;;  %v4628_v21 = vpop.f32.mrb[111].mxu1  ;;  %v4416_v1 = vpop.f32.mrb[41].mxu0 }
 0x25b   : > { %v4417_v5 = vpop.f32.mrb[42].mxu0  ;;  %v8163_v35 = vpop.permute.xlu0 %4908 }
 0x25c   : > { %v6382_v10 = vadd.f32 %v4417_v5, %v7998_v30  ;;  %v4419_v6 = vpop.f32.mrb[43].mxu0  ;;  %v8122_v43 = vadd.f32 %v6380_v25, %v8055_v63  ;;  %8765 = vst [vmem:[#allocation23_spill] sm:$0xff] %v8163_v35 }
 0x25d   : > { %v8143_v6 = vpop.permute.xlu1 %4903 }
 0x25e   : > { %v8125_v36 = vadd.f32 %v6382_v10, %v8059_v7  ;;  %8761 = vst [vmem:[#allocation19_spill] sm:$0xff] %v8143_v6 }
 0x25f   : > { %v8129_v38 = vpop.f32.mrb[112].mxu1  ;;  %v8179_v13 = vpop.permute.xlu0 %4918 }
 0x260   : > { %v4633_v40 = vpop.f32.mrb[113].mxu1  ;;  %8768 = vst [vmem:[#allocation26_spill] sm:$0xff] %v8179_v13 }
 0x261   : > { %v8133_v24 = vpop.f32.mrb[114].mxu1  ;;  %v4422_v16 = vpop.f32.mrb[44].mxu0 }
 0x262   : > { %v6384_v21 = vadd.f32 %v4422_v16, %v8004_v3  ;;  %v4636_v30 = vpop.f32.mrb[115].mxu1  ;;  %v4424_v1 = vpop.f32.mrb[45].mxu0 }
 0x263   : > { %v4425_v5 = vpop.f32.mrb[46].mxu0 }
 0x264   : > { %v6386_v63 = vadd.f32 %v4425_v5, %v8006_v56  ;;  %v4427_v25 = vpop.f32.mrb[47].mxu0  ;;  %v8138_v7 = vadd.f32 %v6384_v21, %v8069_v49 }
 0x265   : > { %v8159_v25 = vpop.permute.xlu1 %4913 }
 0x266   : > { %v8141_v10 = vadd.f32 %v6386_v63, %v8073_v23  ;;  %8764 = vst [vmem:[#allocation22_spill] sm:$0xff] %v8159_v25 }
 0x267   : > { %v8145_v40 = vpop.f32.mrb[116].mxu1 }
 0x268   : > { %v4641_v51 = vpop.f32.mrb[117].mxu1 }
 0x269   : > { %v8149_v3 = vpop.f32.mrb[118].mxu1  ;;  %v4430_v16 = vpop.f32.mrb[48].mxu0 }
 0x26a   : > { %v6388_v30 = vadd.f32 %v4430_v16, %v8013_v26  ;;  %v4644_v56 = vpop.f32.mrb[119].mxu1  ;;  %v4432_v1 = vpop.f32.mrb[49].mxu0 }
 0x26b   : > { %v4433_v5 = vpop.f32.mrb[50].mxu0 }
 0x26c   : > { %v6390_v49 = vadd.f32 %v4433_v5, %v8015_v47  ;;  %v4435_v21 = vpop.f32.mrb[51].mxu0  ;;  %v8154_v23 = vadd.f32 %v6388_v30, %v8083_v54 }
 0x26d   : > { %v8175_v21 = vpop.permute.xlu1 %4923 }
 0x26e   : > { %v8157_v63 = vadd.f32 %v6390_v49, %v8087_v45  ;;  %8767 = vst [vmem:[#allocation25_spill] sm:$0xff] %v8175_v21 }
 0x26f   : > { %v8161_v51 = vpop.f32.mrb[120].mxu1 }
 0x270   : > { %8763 = vst [vmem:[#allocation21_spill] sm:$0xff] %v8157_v63  ;;  %v4649_v22 = vpop.f32.mrb[121].mxu1 }
 0x271   : > { %v8165_v26 = vpop.f32.mrb[122].mxu1  ;;  %v4438_v16 = vpop.f32.mrb[52].mxu0 }
 0x272   : > { %v6392_v56 = vadd.f32 %v4438_v16, %v8021_v60  ;;  %v4652_v47 = vpop.f32.mrb[123].mxu1  ;;  %v4440_v1 = vpop.f32.mrb[53].mxu0 }
 0x273   : > { %v4441_v5 = vpop.f32.mrb[54].mxu0 }
 0x274   : > { %v6394_v54 = vadd.f32 %v4441_v5, %v8023_v39  ;;  %v4443_v30 = vpop.f32.mrb[55].mxu0  ;;  %v8170_v45 = vadd.f32 %v6392_v56, %v8097_v4 }
 0x275   : > { %v8195_v30 = vpop.permute.xlu1 %4933 }
 0x276   : > { %v8173_v49 = vadd.f32 %v6394_v54, %v8101_v62  ;;  %8771 = vst [vmem:[#allocation29_spill] sm:$0xff] %v8195_v30 }
 0x277   : > { %v8177_v22 = vpop.f32.mrb[124].mxu1 }
 0x278   : > { %8766 = vst [vmem:[#allocation24_spill] sm:$0xff] %v8173_v49  ;;  %v8181_v63 = vpop.f32.mrb[125].mxu1  ;;  %v8199_v49 = vpop.permute.xlu0 %4928 }
 0x279   : > { %v8183_v60 = vpop.f32.mrb[126].mxu1  ;;  %v4446_v16 = vpop.f32.mrb[56].mxu0  ;;  %8773 = vst [vmem:[#allocation31_spill] sm:$0xff] %v8199_v49 }
 0x27a   : > { %v6396_v39 = vadd.f32 %v4446_v16, %v8025_v37  ;;  %v8186_v47 = vpop.f32.mrb[127].mxu1  ;;  %v4448_v4 = vpop.f32.mrb[57].mxu0 }
 0x27b   : > { %v4449_v56 = vpop.f32.mrb[58].mxu0 }
 0x27c   : > { %v6398_v62 = vadd.f32 %v4449_v56, %v8027_v52  ;;  %v4451_v1 = vpop.f32.mrb[59].mxu0  ;;  %v8190_v5 = vadd.f32 %v6396_v39, %v8113_v48 }
 0x27e   : > { %8769 = vst [vmem:[#allocation27_spill] sm:$0xff] %v8190_v5  ;;  %v8193_v54 = vadd.f32 %v6398_v62, %v8117_v17 }
 0x27f   : > { %v8197_v31 = vpop.f32.mrb[128].mxu1 }
 0x280   : > { %8770 = vst [vmem:[#allocation28_spill] sm:$0xff] %v8193_v54  ;;  %8772 = vst [vmem:[#allocation30_spill] sm:$0xff] %v8197_v31  ;;  %v8201_v37 = vpop.f32.mrb[129].mxu1  ;;  %v8215_v54 = vpop.permute.xlu1 %4943 }
 0x281   : > { %v8203_v16 = vpop.f32.mrb[130].mxu1  ;;  %v4454_v4 = vpop.f32.mrb[60].mxu0  ;;  %8775 = vst [vmem:[#allocation33_spill] sm:$0xff] %v8215_v54 }
 0x282   : > { %8774 = vst [vmem:[#allocation32_spill] sm:$0xff] %v8203_v16  ;;  %v6400_v52 = vadd.f32 %v4454_v4, %v8029_v27  ;;  %v8206_v56 = vpop.f32.mrb[131].mxu1  ;;  %v4456_v48 = vpop.f32.mrb[61].mxu0 }
 0x283   : > { %v4457_v39 = vpop.f32.mrb[62].mxu0  ;;  %v8217_v16 = vpop.permute.xlu0 %4938 }
 0x284   : > { %v6402_v17 = vadd.f32 %v4457_v39, %v8031_v28  ;;  %v4459_v62 = vpop.f32.mrb[63].mxu0  ;;  %v8210_v1 = vadd.f32 %v6400_v52, %v8129_v38  ;;  %8776 = vst [vmem:[#allocation34_spill] sm:$0xff] %v8217_v16 }
 0x286   : > { %v8213_v31 = vadd.f32 %v6402_v17, %v8133_v24 }
 0x287   : > { %v6292_v5 = vpop.f32.mrb[132].mxu1 }
 0x288   : > { %v8220_v27 = vadd.f32 %v8049_v46, %v6292_v5  ;;  %v8222_v4 = vpop.f32.mrb[133].mxu1 }
 0x289   : > { %8778 = vst [vmem:[#allocation36_spill] sm:$0xff] %v8222_v4  ;;  %v6293_v48 = vpop.f32.mrb[134].mxu1  ;;  %v4462_v28 = vpop.f32.mrb[64].mxu0 }
 0x28a   : > { %8777 = vst [vmem:[#allocation35_spill] sm:$0xff] %v8220_v27  ;;  %v8226_v39 = vadd.f32 %v8051_v41, %v6293_v48  ;;  %v6404_v38 = vadd.f32 %v4462_v28, %v8033_v8  ;;  %v8229_v24 = vpop.f32.mrb[135].mxu1  ;;  %v4464_v52 = vpop.f32.mrb[65].mxu0  ;;  %v8233_v62 = vmul.f32 %v8111_v55, %v8220_v27 }
 0x28b   : > { %v4465_v17 = vpop.f32.mrb[66].mxu0  ;;  %v8253_v28 = vpop.permute.xlu1 %4953 }
 0x28c   : > { %8779 = vst [vmem:[#allocation37_spill] sm:$0xff] %v8226_v39  ;;  %v8237_v46 = vmul.f32 %v8131_v32, %v8226_v39  ;;  %v6406_v5 = vadd.f32 %v4465_v17, %v8035_v57  ;;  %v4467_v4 = vpop.f32.mrb[67].mxu0  ;;  %v8241_v41 = vadd.f32 %v6404_v38, %v8145_v40  ;;  %8780 = vst [vmem:[#allocation38_spill] sm:$0xff] %v8253_v28  ;;  %v8255_v57 = vpop.permute.xlu0 %4948 }
 0x28d   : > { %8781 = vst [vmem:[#allocation39_spill] sm:$0xff] %v8255_v57 }
 0x28e   : > { %v6123_v8 = vpack.c.bf16 %v8237_v46, %v8233_v62  ;;  %v8251_v48 = vadd.f32 %v6406_v5, %v8149_v3 }
 0x28f   : > { %v6296_v52 = vpop.f32.mrb[136].mxu1 }
 0x290   : > { %6227 = vst [vmem:[%s8246_s16 + $0x28] sm:$0xff] %v6123_v8   ;;  %v8259_v40 = vadd.f32 %v8077_v61, %v6296_v52  ;;  %v4736_v4 = vpop.f32.mrb[137].mxu1 }
 0x291   : > { %v8262_v38 = vadd.f32 %v8063_v2, %v4736_v4  ;;  %v6297_v17 = vpop.f32.mrb[138].mxu1  ;;  %v4470_v32 = vpop.f32.mrb[68].mxu0 }
 0x292   : > { %8782 = vst [vmem:[#allocation40_spill] sm:$0xff] %v8259_v40  ;;  %v8265_v55 = vadd.f32 %v8079_v14, %v6297_v17  ;;  %v6408_v3 = vadd.f32 %v4470_v32, %v8037_v53  ;;  %v4739_v5 = vpop.f32.mrb[139].mxu1  ;;  %v4472_v39 = vpop.f32.mrb[69].mxu0  ;;  %v8273_v61 = vmul.f32 %v8143_v6, %v8259_v40  ;;  %v8816_v40 = vld [vmem:[#allocation28_spill] sm:$0xff] }
 0x293   : > { %8783 = vst [vmem:[#allocation41_spill] sm:$0xff] %v8262_v38  ;;  %v8269_v27 = vadd.f32 %v8065_v58, %v4739_v5  ;;  %v4473_v8 = vpop.f32.mrb[70].mxu0  ;;  %v8285_v58 = vmul.f32 %v8127_v29, %v8262_v38  ;;  %v8296_v17 = vpop.permute.xlu1 %4963 }
 0x294   : > { %8784 = vst [vmem:[#allocation42_spill] sm:$0xff] %v8265_v55  ;;  %v8277_v2 = vmul.f32 %v8163_v35, %v8265_v55  ;;  %v6410_v14 = vadd.f32 %v4473_v8, %v8039_v19  ;;  %v4475_v52 = vpop.f32.mrb[71].mxu0  ;;  %v8281_v53 = vadd.f32 %v6408_v3, %v8161_v51  ;;  %8786 = vst [vmem:[#allocation44_spill] sm:$0xff] %v8296_v17  ;;  %v8300_v3 = vpop.permute.xlu0 %4958 }
 0x295   : > { %8785 = vst [vmem:[#allocation43_spill] sm:$0xff] %v8269_v27  ;;  %v8289_v32 = vmul.f32 %v8147_v59, %v8269_v27  ;;  %8787 = vst [vmem:[#allocation45_spill] sm:$0xff] %v8300_v3 }
 0x296   : > { %v6133_v39 = vpack.c.bf16 %v8277_v2, %v8273_v61  ;;  %v8294_v4 = vadd.f32 %v6410_v14, %v8165_v26 }
 0x297   : > { %v6128_v19 = vpack.c.bf16 %v8289_v32, %v8285_v58  ;;  %v6300_v51 = vpop.f32.mrb[140].mxu1 }
 0x298   : > { %6229 = vst [vmem:[%s8246_s16 + $0x38] sm:$0xff] %v6133_v39   ;;  %v8304_v5 = vadd.f32 %v8106_v34, %v6300_v51  ;;  %v4752_v8 = vpop.f32.mrb[141].mxu1 }
 0x299   : > { %6228 = vst [vmem:[%s8246_s16 + $0x30] sm:$0xff] %v6128_v19   ;;  %v8308_v52 = vadd.f32 %v8091_v18, %v4752_v8  ;;  %v6301_v35 = vpop.f32.mrb[142].mxu1  ;;  %v4511_v26 = vpop.f32.mrb[0].mxu0 }
 0x29a   : > { %8788 = vst [vmem:[#allocation46_spill] sm:$0xff] %v8304_v5  ;;  %v8311_v14 = vadd.f32 %v8109_v9, %v6301_v35  ;;  %v6350_v6 = vadd.f32 %v4511_v26, %v7916_v12  ;;  %v4755_v59 = vpop.f32.mrb[143].mxu1  ;;  %v4513_v55 = vpop.f32.mrb[1].mxu0  ;;  %v8319_v19 = vmul.f32 %v8175_v21, %v8304_v5 }
 0x29b   : > { %8789 = vst [vmem:[#allocation47_spill] sm:$0xff] %v8308_v52  ;;  %v8315_v39 = vadd.f32 %v8093_v15, %v4755_v59  ;;  %v4514_v34 = vpop.f32.mrb[2].mxu0  ;;  %v8331_v59 = vmul.f32 %v8159_v25, %v8308_v52  ;;  %v8346_v8 = vpop.permute.xlu0 %4968  ;;  %v8805_v52 = vld [vmem:[#allocation21_spill] sm:$0xff] }
 0x29c   : > { %8790 = vst [vmem:[#allocation48_spill] sm:$0xff] %v8311_v14  ;;  %v8323_v18 = vmul.f32 %v8199_v49, %v8311_v14  ;;  %v8326_v35 = vadd.f32 %v6350_v6, %v8181_v63  ;;  %v6351_v12 = vadd.f32 %v4514_v34, %v7918_v11  ;;  %v4516_v9 = vpop.f32.mrb[3].mxu0  ;;  %v8342_v6 = vpop.permute.xlu1 %4973  ;;  %8793 = vst [vmem:[#allocation51_spill] sm:$0xff] %v8346_v8 }
 0x29d   : > { %8791 = vst [vmem:[#allocation49_spill] sm:$0xff] %v8315_v39  ;;  %v8335_v15 = vmul.f32 %v8179_v13, %v8315_v39  ;;  %8792 = vst [vmem:[#allocation50_spill] sm:$0xff] %v8342_v6 }
 0x29e   : > { %v6143_v55 = vpack.c.bf16 %v8323_v18, %v8319_v19  ;;  %v8340_v51 = vadd.f32 %v6351_v12, %v8186_v47  ;;  %v5011_v26 = vmul.f32 %v8043_v50, %v8326_v35 }
 0x29f   : > { %v6138_v11 = vpack.c.bf16 %v8335_v15, %v8331_v59  ;;  %v6304_v63 = vpop.f32.mrb[144].mxu1 }
 0x2a0   : > { %6231 = vst [vmem:[%s8246_s16 + $0x48] sm:$0xff] %v6143_v55   ;;  %v5012_v34 = vmul.f32 %v8057_v0, %v8340_v51  ;;  %v8354_v9 = vadd.f32 %v8138_v7, %v6304_v63  ;;  %v4768_v47 = vpop.f32.mrb[145].mxu1 }
 0x2a1   : > { %6230 = vst [vmem:[%s8246_s16 + $0x40] sm:$0xff] %v6138_v11   ;;  %v8358_v12 = vadd.f32 %v8122_v43, %v4768_v47  ;;  %v6305_v49 = vpop.f32.mrb[146].mxu1  ;;  %v4519_v21 = vpop.f32.mrb[4].mxu0 }
 0x2a2   : > { %8794 = vst [vmem:[#allocation52_spill] sm:$0xff] %v8354_v9  ;;  %v6098_v13 = vpack.c.bf16 %v5012_v34, %v5011_v26  ;;  %v8361_v55 = vadd.f32 %v8141_v10, %v6305_v49  ;;  %v4771_v14 = vpop.f32.mrb[147].mxu1  ;;  %v4521_v25 = vpop.f32.mrb[5].mxu0  ;;  %v6352_v5 = vadd.f32 %v4519_v21, %v7924_v42  ;;  %v8370_v43 = vmul.f32 %v8215_v54, %v8354_v9 }
 0x2a3   : > { %8795 = vst [vmem:[#allocation53_spill] sm:$0xff] %v8358_v12  ;;  %v8365_v39 = vadd.f32 %v8125_v36, %v4771_v14  ;;  %v4522_v7 = vpop.f32.mrb[6].mxu0  ;;  %v8379_v42 = vmul.f32 %v8195_v30, %v8358_v12  ;;  %v8397_v47 = vpop.permute.xlu0 %4978  ;;  %v5047_v12 = vadd.f32 %v5012_v34, %v5011_v26 }
 0x2a4   : > { %8796 = vst [vmem:[#allocation54_spill] sm:$0xff] %v8361_v55  ;;  %6099 = vst [vmem:[%s8246_s16] sm:$0xff] %v6098_v13   ;;  %v8374_v11 = vmul.f32 %v8255_v57, %v8361_v55  ;;  %v6353_v10 = vadd.f32 %v4522_v7, %v7926_v20  ;;  %v4524_v25 = vpop.f32.mrb[7].mxu0  ;;  %v8382_v36 = vadd.f32 %v6352_v5, %v8177_v22  ;;  %v8393_v20 = vpop.permute.xlu1 %4983  ;;  %v8804_v55 = vld [vmem:[#allocation4_spill] sm:$0xff] }
 0x2a5   : > { %8797 = vst [vmem:[#allocation55_spill] sm:$0xff] %v8365_v39  ;;  %v8386_v13 = vmul.f32 %v8217_v16, %v8365_v39  ;;  %8798 = vst [vmem:[#allocation56_spill] sm:$0xff] %v8393_v20  ;;  %v8802_v16 = vld [vmem:[#allocation24_spill] sm:$0xff] }
 0x2a6   : > { %v6153_v49 = vpack.c.bf16 %v8374_v11, %v8370_v43  ;;  %v8391_v21 = vadd.f32 %v6353_v10, %v8183_v60  ;;  %8799 = vst [vmem:[#allocation57_spill] sm:$0xff] %v8397_v47  ;;  %v5013_v22 = vmul.f32 %v8053_v44, %v8382_v36 }
 0x2a7   : > { %v6148_v14 = vpack.c.bf16 %v8386_v13, %v8379_v42  ;;  %v6308_v63 = vpop.f32.mrb[148].mxu1 }
 0x2a8   : > { %6233 = vst [vmem:[%s8246_s16 + $0x58] sm:$0xff] %v6153_v49   ;;  %v5014_v5 = vmul.f32 %v8071_v33, %v8391_v21  ;;  %v8405_v7 = vadd.f32 %v8170_v45, %v6308_v63  ;;  %v4784_v60 = vpop.f32.mrb[149].mxu1  ;;  %v5048_v34 = vadd.f32 %v5047_v12, %v5013_v22  ;;  %v8810_v12 = vld [vmem:[#allocation12_spill] sm:$0xff] }
 0x2a9   : > { %6232 = vst [vmem:[%s8246_s16 + $0x50] sm:$0xff] %v6148_v14   ;;  %v8409_v10 = vadd.f32 %v8154_v23, %v4784_v60  ;;  %v6309_v25 = vpop.f32.mrb[150].mxu1  ;;  %v4527_v57 = vpop.f32.mrb[8].mxu0 }
 0x2aa   : > { %8800 = vst [vmem:[#allocation58_spill] sm:$0xff] %v8405_v7  ;;  %v6103_v54 = vpack.c.bf16 %v5014_v5, %v5013_v22  ;;  %v8412_v49 = vadd.f32 %v8802_v16, %v6309_v25  ;;  %v6354_v30 = vadd.f32 %v4527_v57, %v8804_v55  ;;  %v4787_v9 = vpop.f32.mrb[151].mxu1  ;;  %v4529_v39 = vpop.f32.mrb[9].mxu0  ;;  %v8421_v23 = vmul.f32 %v8296_v17, %v8405_v7  ;;  %v8807_v57 = vld [vmem:[#allocation5_spill] sm:$0xff]  ;;  %v8809_v25 = vld [vmem:[#allocation10_spill] sm:$0xff] }
 0x2ab   : > { %8801 = vst [vmem:[#allocation59_spill] sm:$0xff] %v8409_v10  ;;  %v8416_v29 = vadd.f32 %v8805_v52, %v4787_v9  ;;  %v4530_v45 = vpop.f32.mrb[10].mxu0  ;;  %v8433_v52 = vmul.f32 %v8253_v28, %v8409_v10  ;;  %v8448_v60 = vpop.permute.xlu1 %4993 }
 0x2ac   : > { %8803 = vst [vmem:[#allocation24_spill] sm:$0xff] %v8412_v49  ;;  %6223 = vst [vmem:[%s8246_s16 + $0x8] sm:$0xff] %v6103_v54   ;;  %v8425_v14 = vmul.f32 %v8346_v8, %v8412_v49  ;;  %v8428_v16 = vadd.f32 %v6354_v30, %v8201_v37  ;;  %v6355_v39 = vadd.f32 %v4530_v45, %v8807_v57  ;;  %v4532_v26 = vpop.f32.mrb[11].mxu0  ;;  %v8444_v30 = vpop.permute.xlu0 %4988 }
 0x2ad   : > { %8806 = vst [vmem:[#allocation4_spill] sm:$0xff] %v8416_v29  ;;  %v8437_v54 = vmul.f32 %v8300_v3, %v8416_v29  ;;  %8808 = vst [vmem:[#allocation21_spill] sm:$0xff] %v8444_v30  ;;  %v5049_v3 = vadd.f32 %v5048_v34, %v5014_v5  ;;  %v8815_v29 = vld [vmem:[#allocation6_spill] sm:$0xff]  ;;  %v8821_v34 = vld [vmem:[#allocation32_spill] sm:$0xff] }
 0x2ae   : > { %v6163_v9 = vpack.c.bf16 %v8425_v14, %v8421_v23  ;;  %v8442_v55 = vadd.f32 %v6355_v39, %v8206_v56  ;;  %v5015_v45 = vmul.f32 %v8809_v25, %v8428_v16  ;;  %v8812_v39 = vld [vmem:[#allocation27_spill] sm:$0xff] }
 0x2af   : > { %v6158_v37 = vpack.c.bf16 %v8437_v54, %v8433_v52  ;;  %v6312_v63 = vpop.f32.mrb[152].mxu1 }
 0x2b0   : > { %6235 = vst [vmem:[%s8246_s16 + $0x68] sm:$0xff] %v6163_v9   ;;  %v5016_v22 = vmul.f32 %v8810_v12, %v8442_v55  ;;  %v8456_v57 = vadd.f32 %v8210_v1, %v6312_v63  ;;  %v4800_v56 = vpop.f32.mrb[153].mxu1  ;;  %v5050_v63 = vadd.f32 %v5049_v3, %v5015_v45 }
 0x2b1   : > { %6234 = vst [vmem:[%s8246_s16 + $0x60] sm:$0xff] %v6158_v37   ;;  %v8460_v26 = vadd.f32 %v8812_v39, %v4800_v56  ;;  %v6313_v8 = vpop.f32.mrb[154].mxu1  ;;  %v4535_v17 = vpop.f32.mrb[12].mxu0  ;;  %v8822_v56 = vld [vmem:[#allocation11_spill] sm:$0xff] }
 0x2b2   : > { %8811 = vst [vmem:[#allocation5_spill] sm:$0xff] %v8456_v57  ;;  %v6108_v49 = vpack.c.bf16 %v5016_v22, %v5015_v45  ;;  %v8463_v9 = vadd.f32 %v8213_v31, %v6313_v8  ;;  %v4803_v28 = vpop.f32.mrb[155].mxu1  ;;  %v4537_v7 = vpop.f32.mrb[13].mxu0  ;;  %v6356_v10 = vadd.f32 %v4535_v17, %v8815_v29  ;;  %v8472_v37 = vmul.f32 %v8393_v20, %v8456_v57  ;;  %v8818_v31 = vld [vmem:[#allocation7_spill] sm:$0xff] }
 0x2b3   : > { %8813 = vst [vmem:[#allocation10_spill] sm:$0xff] %v8460_v26  ;;  %v8467_v27 = vadd.f32 %v8816_v40, %v4803_v28  ;;  %v4538_v1 = vpop.f32.mrb[14].mxu0  ;;  %v8479_v29 = vpop.permute.xlu0 %4998  ;;  %v8483_v28 = vmul.f32 %v8342_v6, %v8460_v26  ;;  %v8820_v40 = vld [vmem:[#allocation30_spill] sm:$0xff] }
 0x2b4   : > { %8814 = vst [vmem:[#allocation12_spill] sm:$0xff] %v8463_v9  ;;  %6224 = vst [vmem:[%s8246_s16 + $0x10] sm:$0xff] %v6108_v49   ;;  %v8476_v5 = vmul.f32 %v8444_v30, %v8463_v9  ;;  %v6357_v8 = vadd.f32 %v4538_v1, %v8818_v31  ;;  %v4540_v7 = vpop.f32.mrb[15].mxu0  ;;  %v8486_v17 = vadd.f32 %v6356_v10, %v8820_v40  ;;  %v8824_v10 = vld [vmem:[#allocation14_spill] sm:$0xff] }
 0x2b5   : > { %8817 = vst [vmem:[#allocation27_spill] sm:$0xff] %v8467_v27  ;;  %8819 = vst [vmem:[#allocation6_spill] sm:$0xff] %v8479_v29  ;;  %v5040_v3 = vmul.f32 %v8397_v47, %v8467_v27  ;;  %v8498_v7 = vpop.permute.xlu1 %5003  ;;  %v5051_v30 = vadd.f32 %v5050_v63, %v5016_v22  ;;  %v8826_v22 = vld [vmem:[#allocation8_spill] sm:$0xff] }
 0x2b6   : > { %v6173_v49 = vpack.c.bf16 %v8476_v5, %v8472_v37  ;;  %v8493_v45 = vadd.f32 %v6357_v8, %v8821_v34  ;;  %v5017_v39 = vmul.f32 %v8822_v56, %v8486_v17  ;;  %8823 = vst [vmem:[#allocation28_spill] sm:$0xff] %v8498_v7 }
 0x2b7   : > { %v6168_v1 = vpack.c.bf16 %v5040_v3, %v8483_v28  ;;  %v6316_v31 = vpop.f32.mrb[156].mxu1  ;;  %v8514_v38 = vpop.permute.xlu0 %5008 }
 0x2b8   : > { %6237 = vst [vmem:[%s8246_s16 + $0x78] sm:$0xff] %v6173_v49   ;;  %v5018_v40 = vmul.f32 %v8824_v10, %v8493_v45  ;;  %v8504_v20 = vadd.f32 %v8281_v53, %v6316_v31  ;;  %v4816_v47 = vpop.f32.mrb[157].mxu1  ;;  %v5052_v6 = vadd.f32 %v5051_v30, %v5017_v39  ;;  %8827 = vst [vmem:[#allocation30_spill] sm:$0xff] %v8514_v38 }
 0x2b9   : > { %6236 = vst [vmem:[%s8246_s16 + $0x70] sm:$0xff] %v6168_v1   ;;  %v8508_v8 = vadd.f32 %v8241_v41, %v4816_v47  ;;  %v6317_v34 = vpop.f32.mrb[158].mxu1  ;;  %v4543_v9 = vpop.f32.mrb[16].mxu0  ;;  %v8828_v47 = vld [vmem:[#allocation36_spill] sm:$0xff] }
 0x2ba   : > { %v6113_v57 = vpack.c.bf16 %v5018_v40, %v5017_v39  ;;  %v8511_v27 = vadd.f32 %v8294_v4, %v6317_v34  ;;  %v6358_v63 = vadd.f32 %v4543_v9, %v8826_v22  ;;  %v4819_v49 = vpop.f32.mrb[159].mxu1  ;;  %v4545_v26 = vpop.f32.mrb[17].mxu0  ;;  %v5045_v41 = vmul.f32 %v8498_v7, %v8504_v20  ;;  %v8829_v9 = vld [vmem:[#allocation9_spill] sm:$0xff] }
 0x2bb   : > { %v8517_v53 = vadd.f32 %v8251_v48, %v4819_v49  ;;  %v4546_v1 = vpop.f32.mrb[18].mxu0  ;;  %v5043_v31 = vmul.f32 %v8448_v60, %v8508_v8  ;;  %v8830_v22 = vld [vmem:[#allocation13_spill] sm:$0xff] }
 0x2bc   : > { %8825 = vst [vmem:[#allocation7_spill] sm:$0xff] %v8511_v27  ;;  %6225 = vst [vmem:[%s8246_s16 + $0x18] sm:$0xff] %v6113_v57   ;;  %v5046_v4 = vmul.f32 %v8514_v38, %v8511_v27  ;;  %v8525_v30 = vadd.f32 %v6358_v63, %v8828_v47  ;;  %v6359_v26 = vadd.f32 %v4546_v1, %v8829_v9  ;;  %v4548_v39 = vpop.f32.mrb[19].mxu0  ;;  %v8831_v1 = vld [vmem:[#allocation16_spill] sm:$0xff] }
 0x2bd   : > { %v5044_v48 = vmul.f32 %v8479_v29, %v8517_v53  ;;  %v5053_v57 = vadd.f32 %v5052_v6, %v5018_v40 }
 0x2be   : > { %v6183_v34 = vpack.c.bf16 %v5046_v4, %v5045_v41  ;;  %v5019_v49 = vmul.f32 %v8830_v22, %v8525_v30  ;;  %v8535_v7 = vadd.f32 %v6359_v26, %v8229_v24 }
 0x2bf   : > { %v6178_v38 = vpack.c.bf16 %v5044_v48, %v5043_v31 }
 0x2c0   : > { %6239 = vst [vmem:[%s8246_s16 + $0x88] sm:$0xff] %v6183_v34   ;;  %v5054_v63 = vadd.f32 %v5053_v57, %v5019_v49  ;;  %v5020_v47 = vmul.f32 %v8831_v1, %v8535_v7 }
 0x2c1   : > { %6238 = vst [vmem:[%s8246_s16 + $0x80] sm:$0xff] %v6178_v38  }
 0x2c2   : > { %v5055_v9 = vadd.f32 %v5054_v63, %v5020_v47  ;;  %v6118_v63 = vpack.c.bf16 %v5020_v47, %v5019_v49 }
 0x2c4   : > { %v5056_v39 = vadd.f32 %v5055_v9, %v8233_v62  ;;  %6226 = vst [vmem:[%s8246_s16 + $0x20] sm:$0xff] %v6118_v63   ;;  %v8838_v63 = vld [vmem:[#allocation40_spill] sm:$0xff] }
 0x2c6   : > { %v5057_v29 = vadd.f32 %v5056_v39, %v8237_v46 }
 0x2c8   : > { %v5058_v6 = vadd.f32 %v5057_v29, %v8285_v58 }
 0x2ca   : > { %v5059_v40 = vadd.f32 %v5058_v6, %v8289_v32 }
 0x2cc   : > { %v5060_v27 = vadd.f32 %v5059_v40, %v8273_v61 }
 0x2ce   : > { %v5061_v24 = vadd.f32 %v5060_v27, %v8277_v2 }
 0x2d0   : > { %v5062_v26 = vadd.f32 %v5061_v24, %v8331_v59 }
 0x2d2   : > { %v5063_v57 = vadd.f32 %v5062_v26, %v8335_v15 }
 0x2d4   : > { %v5064_v34 = vadd.f32 %v5063_v57, %v8319_v19 }
 0x2d6   : > { %v5065_v38 = vadd.f32 %v5064_v34, %v8323_v18 }
 0x2d8   : > { %v5066_v62 = vadd.f32 %v5065_v38, %v8379_v42 }
 0x2da   : > { %v5067_v46 = vadd.f32 %v5066_v62, %v8386_v13 }
 0x2dc   : > { %v5068_v58 = vadd.f32 %v5067_v46, %v8370_v43 }
 0x2de   : > { %v5069_v32 = vadd.f32 %v5068_v58, %v8374_v11 }
 0x2e0   : > { %v5070_v61 = vadd.f32 %v5069_v32, %v8433_v52 }
 0x2e2   : > { %v5071_v27 = vadd.f32 %v5070_v61, %v8437_v54 }
 0x2e4   : > { %v5072_v2 = vadd.f32 %v5071_v27, %v8421_v23 }
 0x2e6   : > { %v5073_v59 = vadd.f32 %v5072_v2, %v8425_v14 }
 0x2e8   : > { %v5074_v19 = vadd.f32 %v5073_v59, %v8483_v28 }
 0x2ea   : > { %v5075_v18 = vadd.f32 %v5074_v19, %v5040_v3 }
 0x2ec   : > { %v5076_v15 = vadd.f32 %v5075_v18, %v8472_v37 }
 0x2ee   : > { %v5077_v42 = vadd.f32 %v5076_v15, %v8476_v5  ;;  %v8836_v15 = vld [vmem:[#allocation43_spill] sm:$0xff] }
 0x2f0   : > { %v5078_v13 = vadd.f32 %v5077_v42, %v5043_v31 }
 0x2f2   : > { %v5079_v29 = vadd.f32 %v5078_v13, %v5044_v48 }
 0x2f4   : > { %v5080_v43 = vadd.f32 %v5079_v29, %v5045_v41 }
 0x2f6   : > { %v5081_v11 = vadd.f32 %v5080_v43, %v5046_v4 }
 0x2f8   : > { %v5082_v52 = vrot.slane %v5081_v11, 4 }
 0x2fa   : > { %v5083_v9 = vadd.f32 %v5082_v52, %v5081_v11 }
 0x2fc   : > { %v5084_v54 = vrot.slane %v5083_v9, 2 }
 0x2fe   : > { %v5085_v39 = vadd.f32 %v5084_v54, %v5083_v9 }
 0x300   : > { %v5086_v23 = vrot.slane %v5085_v39, 1 }
 0x302   : > { %v8563_v6 = vadd.f32 %v5086_v23, %v5085_v39  ;;  %v8840_v39 = vld [vmem:[#allocation42_spill] sm:$0xff] }
 0x304   : > { %v8566_v14 = vmul.f32 0.00390625, %v8563_v6 }
 0x306   : > { %v5089_v37 = vsub.f32 %v8326_v35, %v8566_v14  ;;  %v5090_v5 = vsub.f32 %v8340_v51, %v8566_v14  ;;  %v5091_v28 = vsub.f32 %v8382_v36, %v8566_v14  ;;  %v5092_v4 = vsub.f32 %v8391_v21, %v8566_v14 }
 0x307   : > { %v5093_v31 = vsub.f32 %v8428_v16, %v8566_v14  ;;  %v5094_v51 = vsub.f32 %v8442_v55, %v8566_v14  ;;  %v5096_v21 = vsub.f32 %v8493_v45, %v8566_v14  ;;  %v5097_v26 = vsub.f32 %v8525_v30, %v8566_v14  ;;  %v8832_v45 = vld [vmem:[#allocation35_spill] sm:$0xff]  ;;  %v8833_v30 = vld [vmem:[#allocation37_spill] sm:$0xff] }
 0x308   : > { %v5125_v3 = vmul.f32 %v5089_v37, %v8043_v50  ;;  %v5126_v41 = vmul.f32 %v5090_v5, %v8057_v0  ;;  %v5127_v48 = vmul.f32 %v5091_v28, %v8053_v44  ;;  %v5128_v47 = vmul.f32 %v5092_v4, %v8071_v33  ;;  %v8841_v37 = vld [vmem:[#allocation20_spill] sm:$0xff] }
 0x309   : > { %v5095_v50 = vsub.f32 %v8486_v17, %v8566_v14  ;;  %v5129_v0 = vmul.f32 %v5093_v31, %v8809_v25  ;;  %v5130_v16 = vmul.f32 %v5094_v51, %v8810_v12  ;;  %v5098_v17 = vsub.f32 %v8535_v7, %v8566_v14  ;;  %v8834_v7 = vld [vmem:[#allocation41_spill] sm:$0xff]  ;;  %v8843_v31 = vld [vmem:[#allocation19_spill] sm:$0xff] }
 0x30a   : > { %v5161_v49 = vmul.f32 %v5125_v3, %v5125_v3  ;;  %v5162_v35 = vmul.f32 %v5126_v41, %v5126_v41  ;;  %v5163_v36 = vmul.f32 %v5127_v48, %v5127_v48  ;;  %v5164_v44 = vmul.f32 %v5128_v47, %v5128_v47  ;;  %v8842_v41 = vld [vmem:[#allocation47_spill] sm:$0xff]  ;;  %v8844_v51 = vld [vmem:[#allocation49_spill] sm:$0xff] }
 0x30b   : > { %v5131_v55 = vmul.f32 %v5095_v50, %v8822_v56  ;;  %v5165_v33 = vmul.f32 %v5129_v0, %v5129_v0  ;;  %v5132_v25 = vmul.f32 %v5096_v21, %v8824_v10  ;;  %v5166_v34 = vmul.f32 %v5130_v16, %v5130_v16  ;;  %v8835_v10 = vld [vmem:[#allocation15_spill] sm:$0xff]  ;;  %v8846_v21 = vld [vmem:[#allocation46_spill] sm:$0xff] }
 0x30c   : > { %v5197_v40 = vadd.f32 %v5162_v35, %v5161_v49  ;;  %v5099_v62 = vsub.f32 %v8832_v45, %v8566_v14  ;;  %v5133_v12 = vmul.f32 %v5097_v26, %v8830_v22  ;;  %v5100_v32 = vsub.f32 %v8833_v30, %v8566_v14  ;;  %v8837_v22 = vld [vmem:[#allocation18_spill] sm:$0xff]  ;;  %v8845_v50 = vld [vmem:[#allocation23_spill] sm:$0xff]  ;;  %v8850_v45 = vld [vmem:[#allocation53_spill] sm:$0xff] }
 0x30d   : > { %v5167_v46 = vmul.f32 %v5131_v55, %v5131_v55  ;;  %v5134_v56 = vmul.f32 %v5098_v17, %v8831_v1  ;;  %v5168_v61 = vmul.f32 %v5132_v25, %v5132_v25  ;;  %v5101_v2 = vsub.f32 %v8834_v7, %v8566_v14  ;;  %v8839_v1 = vld [vmem:[#allocation17_spill] sm:$0xff]  ;;  %v8849_v17 = vld [vmem:[#allocation26_spill] sm:$0xff] }
 0x30e   : > { %v5198_v24 = vadd.f32 %v5197_v40, %v5163_v36  ;;  %v5135_v59 = vmul.f32 %v5099_v62, %v8835_v10  ;;  %v5169_v19 = vmul.f32 %v5133_v12, %v5133_v12  ;;  %v5102_v42 = vsub.f32 %v8836_v15, %v8566_v14  ;;  %v8851_v12 = vld [vmem:[#allocation25_spill] sm:$0xff]  ;;  %v8854_v10 = vld [vmem:[#allocation52_spill] sm:$0xff] }
 0x30f   : > { %v5136_v13 = vmul.f32 %v5100_v32, %v8837_v22  ;;  %v5170_v29 = vmul.f32 %v5134_v56, %v5134_v56  ;;  %v5103_v11 = vsub.f32 %v8838_v63, %v8566_v14  ;;  %v5137_v52 = vmul.f32 %v5101_v2, %v8839_v1  ;;  %v8852_v32 = vld [vmem:[#allocation55_spill] sm:$0xff]  ;;  %v8856_v22 = vld [vmem:[#allocation54_spill] sm:$0xff] }
 0x310   : > { %v5199_v57 = vadd.f32 %v5198_v24, %v5164_v44  ;;  %v5171_v9 = vmul.f32 %v5135_v59, %v5135_v59  ;;  %v5104_v23 = vsub.f32 %v8840_v39, %v8566_v14  ;;  %v5138_v5 = vmul.f32 %v5102_v42, %v8841_v37  ;;  %v8847_v44 = vld [vmem:[#allocation22_spill] sm:$0xff]  ;;  %v8858_v1 = vld [vmem:[#allocation59_spill] sm:$0xff]  ;;  %v8860_v37 = vld [vmem:[#allocation4_spill] sm:$0xff] }
 0x311   : > { %v5172_v28 = vmul.f32 %v5136_v13, %v5136_v13  ;;  %v5105_v4 = vsub.f32 %v8842_v41, %v8566_v14  ;;  %v5139_v48 = vmul.f32 %v5103_v11, %v8843_v31  ;;  %v5173_v49 = vmul.f32 %v5137_v52, %v5137_v52  ;;  %v8862_v31 = vld [vmem:[#allocation58_spill] sm:$0xff] }
 0x312   : > { %v5200_v38 = vadd.f32 %v5199_v57, %v5165_v33  ;;  %v5106_v47 = vsub.f32 %v8844_v51, %v8566_v14  ;;  %v5140_v0 = vmul.f32 %v5104_v23, %v8845_v50  ;;  %v5174_v36 = vmul.f32 %v5138_v5, %v5138_v5  ;;  %v8848_v33 = vld [vmem:[#allocation48_spill] sm:$0xff] }
 0x313   : > { %v5107_v16 = vsub.f32 %v8846_v21, %v8566_v14  ;;  %v5141_v24 = vmul.f32 %v5105_v4, %v8847_v44  ;;  %v5175_v26 = vmul.f32 %v5139_v48, %v5139_v48  ;;  %v5108_v57 = vsub.f32 %v8848_v33, %v8566_v14  ;;  %v8864_v50 = vld [vmem:[#allocation24_spill] sm:$0xff]  ;;  %v8866_v44 = vld [vmem:[#allocation10_spill] sm:$0xff] }
 0x314   : > { %v5201_v58 = vadd.f32 %v5200_v38, %v5166_v34  ;;  %v5142_v25 = vmul.f32 %v5106_v47, %v8849_v17  ;;  %v5176_v34 = vmul.f32 %v5140_v0, %v5140_v0  ;;  %v5109_v62 = vsub.f32 %v8850_v45, %v8566_v14  ;;  %v8868_v17 = vld [vmem:[#allocation27_spill] sm:$0xff] }
 0x315   : > { %v5110_v56 = vsub.f32 %v8852_v32, %v8566_v14  ;;  %v5111_v59 = vsub.f32 %v8854_v10, %v8566_v14  ;;  %v5112_v13 = vsub.f32 %v8856_v22, %v8566_v14  ;;  %v5113_v52 = vsub.f32 %v8858_v1, %v8566_v14 }
 0x316   : > { %v5202_v27 = vadd.f32 %v5201_v58, %v5167_v46  ;;  %v5143_v46 = vmul.f32 %v5107_v16, %v8851_v12  ;;  %v5177_v58 = vmul.f32 %v5141_v24, %v5141_v24  ;;  %v5178_v7 = vmul.f32 %v5142_v25, %v5142_v25  ;;  %v8870_v12 = vld [vmem:[#allocation5_spill] sm:$0xff] }
 0x317   : > { %v5114_v5 = vsub.f32 %v8860_v37, %v8566_v14  ;;  %v5115_v48 = vsub.f32 %v8862_v31, %v8566_v14  ;;  %v5116_v0 = vsub.f32 %v8864_v50, %v8566_v14  ;;  %v5117_v24 = vsub.f32 %v8866_v44, %v8566_v14  ;;  %v8879_v31 = vld [vmem:[#allocation30_spill] sm:$0xff] }
 0x318   : > { %v5203_v18 = vadd.f32 %v5202_v27, %v5168_v61  ;;  %v8853_v61 = vld [vmem:[#allocation31_spill] sm:$0xff]  ;;  %v5179_v15 = vmul.f32 %v5143_v46, %v5143_v46  ;;  %v5118_v25 = vsub.f32 %v8868_v17, %v8566_v14  ;;  %v5119_v46 = vsub.f32 %v8870_v12, %v8566_v14 }
 0x319   : > { %v5144_v27 = vmul.f32 %v5108_v57, %v8853_v61  ;;  %v8872_v61 = vld [vmem:[#allocation12_spill] sm:$0xff]  ;;  %v5123_v1 = vsub.f32 %v8504_v20, %v8566_v14 }
 0x31a   : > { %v5204_v43 = vadd.f32 %v5203_v18, %v5169_v19  ;;  %v8855_v19 = vld [vmem:[#allocation29_spill] sm:$0xff] }
 0x31b   : > { %v5145_v18 = vmul.f32 %v5109_v62, %v8855_v19  ;;  %v5180_v63 = vmul.f32 %v5144_v27, %v5144_v27  ;;  %v5120_v27 = vsub.f32 %v8872_v61, %v8566_v14  ;;  %v5121_v19 = vsub.f32 %v8508_v8, %v8566_v14  ;;  %v8876_v8 = vld [vmem:[#allocation7_spill] sm:$0xff] }
 0x31c   : > { %v5205_v54 = vadd.f32 %v5204_v43, %v5170_v29  ;;  %v8857_v29 = vld [vmem:[#allocation34_spill] sm:$0xff] }
 0x31d   : > { %v5146_v43 = vmul.f32 %v5110_v56, %v8857_v29  ;;  %v5181_v39 = vmul.f32 %v5145_v18, %v5145_v18  ;;  %v8874_v18 = vld [vmem:[#allocation56_spill] sm:$0xff]  ;;  %v8875_v29 = vld [vmem:[#allocation21_spill] sm:$0xff] }
 0x31e   : > { %v5206_v3 = vadd.f32 %v5205_v54, %v5171_v9  ;;  %v8859_v9 = vld [vmem:[#allocation33_spill] sm:$0xff] }
 0x31f   : > { %v5147_v54 = vmul.f32 %v5111_v59, %v8859_v9  ;;  %v5182_v41 = vmul.f32 %v5146_v43, %v5146_v43  ;;  %v5156_v43 = vmul.f32 %v5120_v27, %v8875_v29 }
 0x320   : > { %v5207_v35 = vadd.f32 %v5206_v3, %v5172_v28  ;;  %v8861_v28 = vld [vmem:[#allocation39_spill] sm:$0xff] }
 0x321   : > { %v5148_v3 = vmul.f32 %v5112_v13, %v8861_v28  ;;  %v5183_v51 = vmul.f32 %v5147_v54, %v5147_v54  ;;  %v5122_v13 = vsub.f32 %v8517_v53, %v8566_v14 }
 0x322   : > { %v5208_v40 = vadd.f32 %v5207_v35, %v5173_v49  ;;  %v8863_v49 = vld [vmem:[#allocation38_spill] sm:$0xff] }
 0x323   : > { %v5149_v35 = vmul.f32 %v5113_v52, %v8863_v49  ;;  %v5184_v21 = vmul.f32 %v5148_v3, %v5148_v3  ;;  %v5157_v52 = vmul.f32 %v5121_v19, %v8448_v60  ;;  %v8878_v3 = vld [vmem:[#allocation28_spill] sm:$0xff] }
 0x324   : > { %v5209_v55 = vadd.f32 %v5208_v40, %v5174_v36  ;;  %v8865_v36 = vld [vmem:[#allocation45_spill] sm:$0xff]  ;;  %v5159_v53 = vmul.f32 %v5123_v1, %v8878_v3 }
 0x325   : > { %v5150_v40 = vmul.f32 %v5114_v5, %v8865_v36  ;;  %v5185_v33 = vmul.f32 %v5149_v35, %v5149_v35  ;;  %v5192_v5 = vmul.f32 %v5156_v43, %v5156_v43 }
 0x326   : > { %v5210_v38 = vadd.f32 %v5209_v55, %v5175_v26  ;;  %v8867_v26 = vld [vmem:[#allocation44_spill] sm:$0xff]  ;;  %v5195_v35 = vmul.f32 %v5159_v53, %v5159_v53 }
 0x327   : > { %v5151_v55 = vmul.f32 %v5115_v48, %v8867_v26  ;;  %v5186_v45 = vmul.f32 %v5150_v40, %v5150_v40 }
 0x328   : > { %v5211_v30 = vadd.f32 %v5210_v38, %v5176_v34  ;;  %v8869_v34 = vld [vmem:[#allocation51_spill] sm:$0xff] }
 0x329   : > { %v5152_v38 = vmul.f32 %v5116_v0, %v8869_v34  ;;  %v5187_v32 = vmul.f32 %v5151_v55, %v5151_v55 }
 0x32a   : > { %v5212_v2 = vadd.f32 %v5211_v30, %v5177_v58  ;;  %v8871_v58 = vld [vmem:[#allocation50_spill] sm:$0xff] }
 0x32b   : > { %v5153_v30 = vmul.f32 %v5117_v24, %v8871_v58  ;;  %v5188_v10 = vmul.f32 %v5152_v38, %v5152_v38 }
 0x32c   : > { %v5213_v42 = vadd.f32 %v5212_v2, %v5178_v7  ;;  %v8873_v7 = vld [vmem:[#allocation57_spill] sm:$0xff] }
 0x32d   : > { %v5154_v2 = vmul.f32 %v5118_v25, %v8873_v7 }
 0x32e   : > { %v5214_v11 = vadd.f32 %v5213_v42, %v5179_v15  ;;  %v5155_v15 = vmul.f32 %v5119_v46, %v8874_v18  ;;  %v5189_v42 = vmul.f32 %v5153_v30, %v5153_v30 }
 0x330   : > { %v5215_v23 = vadd.f32 %v5214_v11, %v5180_v63  ;;  %v5190_v63 = vmul.f32 %v5154_v2, %v5154_v2  ;;  %v5191_v9 = vmul.f32 %v5155_v15, %v5155_v15 }
 0x332   : > { %v5216_v4 = vadd.f32 %v5215_v23, %v5181_v39  ;;  %v5124_v39 = vsub.f32 %v8876_v8, %v8566_v14  ;;  %v8877_v23 = vld [vmem:[#allocation6_spill] sm:$0xff] }
 0x333   : > { %v5158_v37 = vmul.f32 %v5122_v13, %v8877_v23 }
 0x334   : > { %v5217_v47 = vadd.f32 %v5216_v4, %v5182_v41  ;;  %v5193_v41 = vmul.f32 %v5157_v52, %v5157_v52  ;;  %v5160_v48 = vmul.f32 %v5124_v39, %v8879_v31 }
 0x335   : > { %v5194_v49 = vmul.f32 %v5158_v37, %v5158_v37 }
 0x336   : > { %v5218_v16 = vadd.f32 %v5217_v47, %v5183_v51  ;;  %v5196_v51 = vmul.f32 %v5160_v48, %v5160_v48 }
 0x338   : > { %v5219_v57 = vadd.f32 %v5218_v16, %v5184_v21 }
 0x33a   : > { %v5220_v62 = vadd.f32 %v5219_v57, %v5185_v33 }
 0x33c   : > { %v5221_v56 = vadd.f32 %v5220_v62, %v5186_v45 }
 0x33e   : > { %v5222_v59 = vadd.f32 %v5221_v56, %v5187_v32 }
 0x340   : > { %v5223_v22 = vadd.f32 %v5222_v59, %v5188_v10 }
 0x342   : > { %v5224_v11 = vadd.f32 %v5223_v22, %v5189_v42 }
 0x344   : > { %v5225_v54 = vadd.f32 %v5224_v11, %v5190_v63 }
 0x346   : > { %v5226_v28 = vadd.f32 %v5225_v54, %v5191_v9 }
 0x348   : > { %v5227_v4 = vadd.f32 %v5226_v28, %v5192_v5 }
 0x34a   : > { %v5228_v20 = vadd.f32 %v5227_v4, %v5193_v41 }
 0x34c   : > { %v5229_v60 = vadd.f32 %v5228_v20, %v5194_v49 }
 0x34e   : > { %v5230_v47 = vadd.f32 %v5229_v60, %v5195_v35 }
 0x350   : > { %v5231_v50 = vadd.f32 %v5230_v47, %v5196_v51 }
 0x352   : > { %v5232_v0 = vrot.slane %v5231_v50, 4 }
 0x354   : > { %v5233_v14 = vadd.f32 %v5232_v0, %v5231_v50 }
 0x356   : > { %v5234_v36 = vrot.slane %v5233_v14, 2 }
 0x358   : > { %v5235_v40 = vadd.f32 %v5234_v36, %v5233_v14 }
 0x35a   : > { %v5236_v21 = vrot.slane %v5235_v40, 1 }
 0x35c   : > { %v5237_v16 = vadd.f32 %v5236_v21, %v5235_v40 }
 0x35e   : > { %v5239_v44 = vsel %vm5238_vm6, %v8563_v6, %v5237_v16 }
 0x35f   : > { %5240 = vst [vmem:[%s289_s20] sm:$0x3] %v5239_v44 }
 0x360 PF: > { %s18_s24 = sadd.s32 1, %s6783_s24  }
 0x361   : > { %p15_p4 = scmp.ge.s32.totalorder %s18_s24, 4  }
 0x363   :  { %17 = sbr.rel (!%p15_p4) target bundleno = 1 (0x1), region = 86 }

</bundles_post_ra>
